<compile_context>
chip_gen: v6e
topology: v6e:2x2x1
jax: 0.10.0
libtpu: 0.0.40
codegen_flags: <defaults>
</compile_context>

<pallas_src>
import functools

import jax
import jax.numpy as jnp
from jax import lax
from jax.experimental import pallas as pl
from jax.experimental.pallas import tpu as pltpu


# Network geometry fixed by the module: 20x20 input so fc1 sees 128*3*3.
_IH = _IW = 20
_C_IN = 3
_C1, _C2, _C3 = 32, 64, 128
_OW1, _OW2, _OW3 = 16, 7, 3            # conv output widths
_N1 = _OW1 * _C1                       # 512 lanes after g1
_N2 = _OW2 * _C2                       # 448 lanes after c1
_N3 = _OW3 * _C3                       # 384 lanes after c2


# ----------------------------------------------------------------------------
# Fused kernel for one block of `bb` images (everything resident in VMEM).
# ----------------------------------------------------------------------------
def _make_kernel(bb):
    m1 = 20 * bb - 4     # g1 rows computed  (valid rows: b*20 + oh, oh < 16)
    m2 = 10 * bb - 3     # c1 rows computed  (valid rows: b*10 + oh', oh' < 7)
    m3 = 5 * bb - 2      # c2 rows computed  (valid rows: b*5 + oh'', oh'' < 3)

    def kernel(x_ref, wb1_ref, b1_ref, se1_ref, so1_ref,
               wb2_ref, b2_ref, se2_ref, so2_ref,
               wb3_ref, b3_ref, s3_ref,
               wf1_ref, bf1_ref, wf3_ref, bf3_ref, o_ref):
        f32, bf16 = jnp.float32, jnp.bfloat16

        def leaky(v):                   # negative_slope = 0.01, f32 VPU math (v5e-safe)
            return jnp.where(v > 0, v, 0.01 * v)

        x = x_ref[...]                  # (bb*20, 60) bf16; row = b*20 + h, col = w*3 + c

        # --- g1: 5x5 stride-1 conv as 5 kernel-row Toeplitz matmuls --------
        # Two interleaved accumulators break the MXU-pop -> VALU-add chain.
        acc_a = jnp.dot(x[0:m1, :], wb1_ref[0], preferred_element_type=f32)
        acc_b = jnp.dot(x[1:1 + m1, :], wb1_ref[1], preferred_element_type=f32)
        acc_a = acc_a + jnp.dot(x[2:2 + m1, :], wb1_ref[2], preferred_element_type=f32)
        acc_b = acc_b + jnp.dot(x[3:3 + m1, :], wb1_ref[3], preferred_element_type=f32)
        acc_a = acc_a + jnp.dot(x[4:4 + m1, :], wb1_ref[4], preferred_element_type=f32)
        a1 = leaky(acc_a + acc_b + b1_ref[...]).astype(bf16)          # (m1, 512)

        # Stride-2 row decimation via tiny lane-dense 0/1 selection matmuls.
        a1e = jnp.dot(se1_ref[...], a1, preferred_element_type=f32).astype(bf16)
        a1o = jnp.dot(so1_ref[...], a1, preferred_element_type=f32).astype(bf16)

        # --- c1: 3x3 stride-2 conv, 32 -> 64 --------------------------------
        acc = jnp.dot(a1e[0:m2, :], wb2_ref[0], preferred_element_type=f32)
        acc = acc + jnp.dot(a1o[0:m2, :], wb2_ref[1], preferred_element_type=f32)
        acc = acc + jnp.dot(a1e[1:m2 + 1, :], wb2_ref[2], preferred_element_type=f32)
        a2 = leaky(acc + b2_ref[...]).astype(bf16)                    # (m2, 448)

        a2e = jnp.dot(se2_ref[...], a2, preferred_element_type=f32).astype(bf16)
        a2o = jnp.dot(so2_ref[...], a2, preferred_element_type=f32).astype(bf16)

        # --- c2: 3x3 stride-2 conv, 64 -> 128 -------------------------------
        acc = jnp.dot(a2e[0:m3, :], wb3_ref[0], preferred_element_type=f32)
        acc = acc + jnp.dot(a2o[0:m3, :], wb3_ref[1], preferred_element_type=f32)
        acc = acc + jnp.dot(a2e[1:m3 + 1, :], wb3_ref[2], preferred_element_type=f32)
        a3 = leaky(acc + b3_ref[...]).astype(bf16)                    # (m3, 384)

        # --- fc1: 1152 -> 64, batch folded into M ---------------------------
        accf = jnp.zeros((bb, 64), f32)
        for h in range(3):
            a3h = jnp.dot(s3_ref[h], a3, preferred_element_type=f32).astype(bf16)  # (bb, 384)
            accf = accf + jnp.dot(a3h, wf1_ref[h], preferred_element_type=f32)
        z1 = leaky(accf + bf1_ref[...]).astype(bf16)                  # (bb, 64)

        # --- fc3: 64 -> 1 (padded to 128 lanes) + exact sigmoid -------------
        logits = jnp.dot(z1, wf3_ref[...], preferred_element_type=f32) + bf3_ref[...]
        o_ref[...] = (1.0 / (1.0 + jnp.exp(-logits))).astype(o_ref.dtype)

    return kernel


# ----------------------------------------------------------------------------
# Host-side weight layout prep (one-time, outside the hot path).
# ----------------------------------------------------------------------------
def _toeplitz_conv_weight(w_oihw, in_w, out_w, stride):
    """(KH, IW*Cin, OW*Cout): folds the kernel-width taps + channel mixing so
    each kernel-row tap of the conv becomes one dense matmul over (w*Cin+ci)."""
    co, ci, kh, kw = w_oihw.shape
    p = jnp.arange(in_w)[None, :, None]
    q = jnp.arange(out_w)[None, None, :]
    j = jnp.arange(kw)[:, None, None]
    pat = (p == stride * q + j).astype(w_oihw.dtype)           # (kw, in_w, out_w)
    wb = jnp.einsum('jpq,cdij->ipdqc', pat, w_oihw)             # (kh, in_w, ci, out_w, co)
    return wb.reshape(kh, in_w * ci, out_w * co)


def _row_select(n_out, n_in, stride, offset, dtype=jnp.bfloat16):
    """S[v, r] = 1 iff r == stride*v + offset (0/1 row-decimation matrix)."""
    v = jnp.arange(n_out)[:, None]
    r = jnp.arange(n_in)[None, :]
    return (r == stride * v + offset).astype(dtype)


def prepare_params(params):
    """Convert PyTorch-layout weights into kernel-ready constants (call once)."""
    bf16, f32 = jnp.bfloat16, jnp.float32
    prep = {}
    prep["wb1"] = _toeplitz_conv_weight(params["g1_w"], _IW, _OW1, 1).astype(bf16)   # (5, 60, 512)
    prep["wb2"] = _toeplitz_conv_weight(params["c1_w"], _OW1, _OW2, 2).astype(bf16)  # (3, 512, 448)
    prep["wb3"] = _toeplitz_conv_weight(params["c2_w"], _OW2, _OW3, 2).astype(bf16)  # (3, 448, 384)
    prep["b1"] = jnp.tile(params["g1_b"], _OW1)[None].astype(f32)                    # (1, 512)
    prep["b2"] = jnp.tile(params["c1_b"], _OW2)[None].astype(f32)                    # (1, 448)
    prep["b3"] = jnp.tile(params["c2_b"], _OW3)[None].astype(f32)                    # (1, 384)
    # fc1 rows are PyTorch NCHW-flatten features c*9 + h*3 + w  ->  per-h (w*128+c, out).
    wf1 = params["fc1_w"].reshape(_C3, 3, 3, 64)              # (c, h, w, o)
    wf1 = jnp.transpose(wf1, (1, 2, 0, 3)).reshape(3, 3 * _C3, 64)
    prep["wf1"] = wf1.astype(bf16)                            # (3, 384, 64)
    prep["bf1"] = params["fc1_b"][None].astype(f32)           # (1, 64)
    # fc3 padded from 1 to 128 output lanes so the final store is lane-dense.
    prep["wf3"] = jnp.pad(params["fc3_w"], ((0, 0), (0, 127))).astype(bf16)           # (64, 128)
    prep["bf3"] = jnp.pad(params["fc3_b"].reshape(1, 1), ((0, 0), (0, 127))).astype(f32)
    return prep


# ----------------------------------------------------------------------------
# Forward pass wrapper.
# ----------------------------------------------------------------------------
def gabor_nn_forward(x_nchw, prep, block_b=8):
    n = x_nchw.shape[0]
    bb = max(1, min(block_b, n))
    g = -(-n // bb)                       # grid steps
    n_pad = g * bb

    m1 = 20 * bb - 4
    m2 = 10 * bb - 3
    m3 = 5 * bb - 2

    # Lane-dense input: (G, bb*20, 60) bf16, row = b*20 + h, col = w*3 + c.
    x = jnp.transpose(x_nchw, (0, 2, 3, 1)).reshape(n, _IH, _IW * _C_IN)
    x = jnp.pad(x, ((0, n_pad - n), (0, 0), (0, 0)))
    x = x.reshape(g, bb * _IH, _IW * _C_IN).astype(jnp.bfloat16)

    bf16 = jnp.bfloat16
    se1 = _row_select(m2 + 1, m1, 2, 0, bf16)     # (m2+1, m1)
    so1 = _row_select(m2 + 1, m1, 2, 1, bf16)
    se2 = _row_select(m3 + 1, m2, 2, 0, bf16)     # (m3+1, m2)
    so2 = _row_select(m3 + 1, m2, 2, 1, bf16)
    s3 = jnp.stack([_row_select(bb, m3, 5, h, bf16) for h in range(3)], 0)   # (3, bb, m3)

    def const_spec(a):
        zeros = (0,) * a.ndim
        return pl.BlockSpec(a.shape, lambda i, _z=zeros: _z)   # fetched once (constant index)

    out = pl.pallas_call(
        _make_kernel(bb),
        out_shape=jax.ShapeDtypeStruct((g, bb, 128), jnp.float32),
        grid=(g,),
        in_specs=[
            pl.BlockSpec((None, bb * _IH, _IW * _C_IN), lambda i: (i, 0, 0)),
            const_spec(prep["wb1"]), const_spec(prep["b1"]),
            const_spec(se1), const_spec(so1),
            const_spec(prep["wb2"]), const_spec(prep["b2"]),
            const_spec(se2), const_spec(so2),
            const_spec(prep["wb3"]), const_spec(prep["b3"]),
            const_spec(s3),
            const_spec(prep["wf1"]), const_spec(prep["bf1"]),
            const_spec(prep["wf3"]), const_spec(prep["bf3"]),
        ],
        out_specs=pl.BlockSpec((None, bb, 128), lambda i: (i, 0, 0)),
        compiler_params=pltpu.CompilerParams(
            dimension_semantics=("parallel",),
            vmem_limit_bytes=32 * 1024 * 1024,
        ),
    )(x, prep["wb1"], prep["b1"], se1, so1,
      prep["wb2"], prep["b2"], se2, so2,
      prep["wb3"], prep["b3"], s3,
      prep["wf1"], prep["bf1"], prep["wf3"], prep["bf3"])

    return out.reshape(n_pad, 128)[:n, :1]       # (N, 1)


# ----------------------------------------------------------------------------
# Pure-JAX reference (correctness check only).
# ----------------------------------------------------------------------------
def _reference_forward(x_nchw, params):
    def conv(x, w, b, stride):
        y = lax.conv_general_dilated(
            x, w, window_strides=(stride, stride), padding="VALID",
            dimension_numbers=("NCHW", "OIHW", "NCHW"))
        return y + b.reshape(1, -1, 1, 1)

    def leaky(v):
        return jnp.where(v > 0, v, 0.01 * v)

    x = leaky(conv(x_nchw, params["g1_w"], params["g1_b"], 1))
    x = leaky(conv(x, params["c1_w"], params["c1_b"], 2))
    x = leaky(conv(x, params["c2_w"], params["c2_b"], 2))
    x = x.reshape(x.shape[0], -1)                 # NCHW flatten: c*9 + h*3 + w
    x = leaky(x @ params["fc1_w"] + params["fc1_b"])
    return jax.nn.sigmoid(x @ params["fc3_w"] + params["fc3_b"])


# ----------------------------------------------------------------------------
# Parameter construction (deterministic, in-script).
# ----------------------------------------------------------------------------
def make_gabor_weight(key, cout, cin, kh, kw):
    """Gabor-parameterized conv weight (OIHW): freq/theta/psi/sigma -> filters."""
    k1, k2, k3 = jax.random.split(key, 3)
    freq = (jnp.pi / 2.0) * (
        jnp.sqrt(2.0)
        ** (-jax.random.randint(k1, (cout, cin), 0, 5).astype(jnp.float32)))
    theta = (jnp.pi / 8.0) * jax.random.randint(k2, (cout, cin), 0, 8).astype(jnp.float32)
    psi = jnp.pi * jax.random.uniform(k3, (cout, cin), dtype=jnp.float32)
    sigma = jnp.pi / freq

    ys, xs = jnp.meshgrid(
        jnp.linspace(-(kh // 2), kh // 2, kh),
        jnp.linspace(-(kw // 2), kw // 2, kw),
        indexing="ij")
    xs = xs[None, None].astype(jnp.float32)
    ys = ys[None, None].astype(jnp.float32)
    s = sigma[:, :, None, None]
    f = freq[:, :, None, None]
    t = theta[:, :, None, None]
    p = psi[:, :, None, None]

    rotx = xs * jnp.cos(t) + ys * jnp.sin(t)
    roty = -xs * jnp.sin(t) + ys * jnp.cos(t)
    g = jnp.exp(-0.5 * (rotx ** 2 + roty ** 2) / (s + 1e-3) ** 2)
    g = g * jnp.cos(f * rotx + p)
    g = g / (2.0 * jnp.pi * s ** 2)
    return g  # (Cout, Cin, KH, KW)


def init_params(key):
    keys = jax.random.split(key, 8)

    def conv_init(k, cout, cin, kh, kw):
        fan_in = cin * kh * kw
        bound = 1.0 / jnp.sqrt(fan_in)
        kw_, kb_ = jax.random.split(k)
        w = jax.random.uniform(kw_, (cout, cin, kh, kw), jnp.float32, -bound, bound)
        b = jax.random.uniform(kb_, (cout,), jnp.float32, -bound, bound)
        return w, b

    def fc_init(k, fin, fout):
        bound = 1.0 / jnp.sqrt(fin)
        kw_, kb_ = jax.random.split(k)
        w = jax.random.uniform(kw_, (fin, fout), jnp.float32, -bound, bound)
        b = jax.random.uniform(kb_, (fout,), jnp.float32, -bound, bound)
        return w, b

    params = {}
    params["g1_w"] = make_gabor_weight(keys[0], 32, 3, 5, 5)
    # TODO(synk): reference GaborConv2d source not provided; bias assumed zero.
    params["g1_b"] = jnp.zeros((32,), jnp.float32)
    params["c1_w"], params["c1_b"] = conv_init(keys[1], 64, 32, 3, 3)
    params["c2_w"], params["c2_b"] = conv_init(keys[2], 128, 64, 3, 3)
    params["fc1_w"], params["fc1_b"] = fc_init(keys[3], 128 * 3 * 3, 64)
    params["fc3_w"], params["fc3_b"] = fc_init(keys[4], 64, 1)
    return params


if __name__ == "__main__":
    key = jax.random.PRNGKey(0)
    k_params, k_x = jax.random.split(key)

    # 20x20 input so the feature map reaching fc1 is exactly 128 * 3 * 3.
    # 16 images with block_b=8 -> grid of 2 parallel steps (v7x megacore).
    n = 16
    x = jax.random.normal(k_x, (n, 3, 20, 20), dtype=jnp.float32)   # NCHW
    params = init_params(k_params)

    # TODO(synk): Dropout / Dropout2d (train-mode in the reference forward) are
    # treated as identity (inference semantics).
    prep = prepare_params(params)       # one-time weight layout prep

    fwd = jax.jit(functools.partial(gabor_nn_forward, block_b=8))
    out = jax.block_until_ready(fwd(x, prep))

    ref = _reference_forward(x, params)

    assert out.shape == (n, 1), out.shape
    assert bool(jnp.all(jnp.isfinite(out)))
    assert bool(jnp.all((out >= 0.0) & (out <= 1.0)))
    assert float(jnp.max(jnp.abs(out - ref))) < 5e-2   # bf16 MXU operands vs f32 ref
    print("KERNEL_OK")
</pallas_src>

<mosaic_0001>
module attributes {stable_mosaic.version = 11 : i64} {
  func.func @kernel(%arg0: i32, %arg1: memref<1x160x60xbf16, #tpu.memory_space<vmem>>, %arg2: memref<5x60x512xbf16, #tpu.memory_space<vmem>>, %arg3: memref<1x512xf32, #tpu.memory_space<vmem>>, %arg4: memref<78x156xbf16, #tpu.memory_space<vmem>>, %arg5: memref<78x156xbf16, #tpu.memory_space<vmem>>, %arg6: memref<3x512x448xbf16, #tpu.memory_space<vmem>>, %arg7: memref<1x448xf32, #tpu.memory_space<vmem>>, %arg8: memref<39x77xbf16, #tpu.memory_space<vmem>>, %arg9: memref<39x77xbf16, #tpu.memory_space<vmem>>, %arg10: memref<3x448x384xbf16, #tpu.memory_space<vmem>>, %arg11: memref<1x384xf32, #tpu.memory_space<vmem>>, %arg12: memref<3x8x38xbf16, #tpu.memory_space<vmem>>, %arg13: memref<3x384x64xbf16, #tpu.memory_space<vmem>>, %arg14: memref<1x64xf32, #tpu.memory_space<vmem>>, %arg15: memref<64x128xbf16, #tpu.memory_space<vmem>>, %arg16: memref<1x128xf32, #tpu.memory_space<vmem>>, %arg17: memref<1x8x128xf32, #tpu.memory_space<vmem>>) attributes {dimension_semantics = [#tpu.dimension_semantics<parallel>], iteration_bounds = array<i64: 2>, scalar_prefetch = 0 : i64, scratch_operands = 0 : i64, tpu.core_type = #tpu.core_type<tc>, window_params = [{transform_indices = @transform_0, window_bounds = array<i64: 1, 160, 60>}, {pipeline_mode = #tpu.pipeline_mode<synchronous>, transform_indices = @transform_1, window_bounds = array<i64: 5, 60, 512>}, {pipeline_mode = #tpu.pipeline_mode<synchronous>, transform_indices = @transform_2, window_bounds = array<i64: 1, 512>}, {pipeline_mode = #tpu.pipeline_mode<synchronous>, transform_indices = @transform_3, window_bounds = array<i64: 78, 156>}, {pipeline_mode = #tpu.pipeline_mode<synchronous>, transform_indices = @transform_4, window_bounds = array<i64: 78, 156>}, {pipeline_mode = #tpu.pipeline_mode<synchronous>, transform_indices = @transform_5, window_bounds = array<i64: 3, 512, 448>}, {pipeline_mode = #tpu.pipeline_mode<synchronous>, transform_indices = @transform_6, window_bounds = array<i64: 1, 448>}, {pipeline_mode = #tpu.pipeline_mode<synchronous>, transform_indices = @transform_7, window_bounds = array<i64: 39, 77>}, {pipeline_mode = #tpu.pipeline_mode<synchronous>, transform_indices = @transform_8, window_bounds = array<i64: 39, 77>}, {pipeline_mode = #tpu.pipeline_mode<synchronous>, transform_indices = @transform_9, window_bounds = array<i64: 3, 448, 384>}, {pipeline_mode = #tpu.pipeline_mode<synchronous>, transform_indices = @transform_10, window_bounds = array<i64: 1, 384>}, {pipeline_mode = #tpu.pipeline_mode<synchronous>, transform_indices = @transform_11, window_bounds = array<i64: 3, 8, 38>}, {pipeline_mode = #tpu.pipeline_mode<synchronous>, transform_indices = @transform_12, window_bounds = array<i64: 3, 384, 64>}, {pipeline_mode = #tpu.pipeline_mode<synchronous>, transform_indices = @transform_13, window_bounds = array<i64: 1, 64>}, {pipeline_mode = #tpu.pipeline_mode<synchronous>, transform_indices = @transform_14, window_bounds = array<i64: 64, 128>}, {pipeline_mode = #tpu.pipeline_mode<synchronous>, transform_indices = @transform_15, window_bounds = array<i64: 1, 128>}, {transform_indices = @transform_16, window_bounds = array<i64: 1, 8, 128>}]} {
    %c0 = arith.constant 0 : index
    %c0_0 = arith.constant 0 : index
    %c0_1 = arith.constant 0 : index
    %0 = vector.load %arg1[%c0, %c0_0, %c0_1] : memref<1x160x60xbf16, #tpu.memory_space<vmem>>, vector<1x160x60xbf16>
    %1 = vector.shape_cast %0 : vector<1x160x60xbf16> to vector<160x60xbf16>
    %2 = vector.extract_strided_slice %1 {offsets = [0, 0], sizes = [156, 60], strides = [1, 1]} : vector<160x60xbf16> to vector<156x60xbf16>
    %c0_2 = arith.constant 0 : index
    %c0_3 = arith.constant 0 : index
    %c0_4 = arith.constant 0 : index
    %3 = vector.load %arg2[%c0_2, %c0_3, %c0_4] : memref<5x60x512xbf16, #tpu.memory_space<vmem>>, vector<1x60x512xbf16>
    %4 = vector.shape_cast %3 : vector<1x60x512xbf16> to vector<60x512xbf16>
    %cst = arith.constant dense<0.000000e+00> : vector<156x512xf32>
    %5 = tpu.matmul %2, %4, %cst {dimension_numbers = #tpu.dot_dimension_numbers<[1], [0], [0], [1], [0, 0, 1, 1], [], []>} : vector<156x60xbf16>, vector<60x512xbf16>, vector<156x512xf32> -> vector<156x512xf32>
    %6 = vector.extract_strided_slice %1 {offsets = [1, 0], sizes = [156, 60], strides = [1, 1]} : vector<160x60xbf16> to vector<156x60xbf16>
    %c1 = arith.constant 1 : index
    %c0_5 = arith.constant 0 : index
    %c0_6 = arith.constant 0 : index
    %7 = vector.load %arg2[%c1, %c0_5, %c0_6] : memref<5x60x512xbf16, #tpu.memory_space<vmem>>, vector<1x60x512xbf16>
    %8 = vector.shape_cast %7 : vector<1x60x512xbf16> to vector<60x512xbf16>
    %cst_7 = arith.constant dense<0.000000e+00> : vector<156x512xf32>
    %9 = tpu.matmul %6, %8, %cst_7 {dimension_numbers = #tpu.dot_dimension_numbers<[1], [0], [0], [1], [0, 0, 1, 1], [], []>} : vector<156x60xbf16>, vector<60x512xbf16>, vector<156x512xf32> -> vector<156x512xf32>
    %10 = vector.extract_strided_slice %1 {offsets = [2, 0], sizes = [156, 60], strides = [1, 1]} : vector<160x60xbf16> to vector<156x60xbf16>
    %c2 = arith.constant 2 : index
    %c0_8 = arith.constant 0 : index
    %c0_9 = arith.constant 0 : index
    %11 = vector.load %arg2[%c2, %c0_8, %c0_9] : memref<5x60x512xbf16, #tpu.memory_space<vmem>>, vector<1x60x512xbf16>
    %12 = vector.shape_cast %11 : vector<1x60x512xbf16> to vector<60x512xbf16>
    %cst_10 = arith.constant dense<0.000000e+00> : vector<156x512xf32>
    %13 = tpu.matmul %10, %12, %cst_10 {dimension_numbers = #tpu.dot_dimension_numbers<[1], [0], [0], [1], [0, 0, 1, 1], [], []>} : vector<156x60xbf16>, vector<60x512xbf16>, vector<156x512xf32> -> vector<156x512xf32>
    %14 = arith.addf %5, %13 : vector<156x512xf32>
    %15 = vector.extract_strided_slice %1 {offsets = [3, 0], sizes = [156, 60], strides = [1, 1]} : vector<160x60xbf16> to vector<156x60xbf16>
    %c3 = arith.constant 3 : index
    %c0_11 = arith.constant 0 : index
    %c0_12 = arith.constant 0 : index
    %16 = vector.load %arg2[%c3, %c0_11, %c0_12] : memref<5x60x512xbf16, #tpu.memory_space<vmem>>, vector<1x60x512xbf16>
    %17 = vector.shape_cast %16 : vector<1x60x512xbf16> to vector<60x512xbf16>
    %cst_13 = arith.constant dense<0.000000e+00> : vector<156x512xf32>
    %18 = tpu.matmul %15, %17, %cst_13 {dimension_numbers = #tpu.dot_dimension_numbers<[1], [0], [0], [1], [0, 0, 1, 1], [], []>} : vector<156x60xbf16>, vector<60x512xbf16>, vector<156x512xf32> -> vector<156x512xf32>
    %19 = arith.addf %9, %18 : vector<156x512xf32>
    %20 = vector.extract_strided_slice %1 {offsets = [4, 0], sizes = [156, 60], strides = [1, 1]} : vector<160x60xbf16> to vector<156x60xbf16>
    %c4 = arith.constant 4 : index
    %c0_14 = arith.constant 0 : index
    %c0_15 = arith.constant 0 : index
    %21 = vector.load %arg2[%c4, %c0_14, %c0_15] : memref<5x60x512xbf16, #tpu.memory_space<vmem>>, vector<1x60x512xbf16>
    %22 = vector.shape_cast %21 : vector<1x60x512xbf16> to vector<60x512xbf16>
    %cst_16 = arith.constant dense<0.000000e+00> : vector<156x512xf32>
    %23 = tpu.matmul %20, %22, %cst_16 {dimension_numbers = #tpu.dot_dimension_numbers<[1], [0], [0], [1], [0, 0, 1, 1], [], []>} : vector<156x60xbf16>, vector<60x512xbf16>, vector<156x512xf32> -> vector<156x512xf32>
    %24 = arith.addf %14, %23 : vector<156x512xf32>
    %25 = arith.addf %24, %19 : vector<156x512xf32>
    %c0_17 = arith.constant 0 : index
    %c0_18 = arith.constant 0 : index
    %26 = vector.load %arg3[%c0_17, %c0_18] : memref<1x512xf32, #tpu.memory_space<vmem>>, vector<1x512xf32>
    %27 = vector.broadcast %26 : vector<1x512xf32> to vector<156x512xf32>
    %28 = arith.addf %25, %27 : vector<156x512xf32>
    %cst_19 = arith.constant 0.000000e+00 : f32
    %29 = vector.broadcast %cst_19 : f32 to vector<156x512xf32>
    %30 = arith.cmpf ogt, %28, %29 : vector<156x512xf32>
    %cst_20 = arith.constant 0.00999999977 : f32
    %31 = vector.broadcast %cst_20 : f32 to vector<156x512xf32>
    %32 = arith.mulf %31, %28 : vector<156x512xf32>
    %33 = arith.select %30, %28, %32 : vector<156x512xi1>, vector<156x512xf32>
    %34 = arith.truncf %33 : vector<156x512xf32> to vector<156x512xbf16>
    %c0_21 = arith.constant 0 : index
    %c0_22 = arith.constant 0 : index
    %35 = vector.load %arg4[%c0_21, %c0_22] : memref<78x156xbf16, #tpu.memory_space<vmem>>, vector<78x156xbf16>
    %cst_23 = arith.constant dense<0.000000e+00> : vector<78x512xf32>
    %36 = tpu.matmul %35, %34, %cst_23 {dimension_numbers = #tpu.dot_dimension_numbers<[1], [0], [0], [1], [0, 0, 1, 1], [], []>} : vector<78x156xbf16>, vector<156x512xbf16>, vector<78x512xf32> -> vector<78x512xf32>
    %37 = arith.truncf %36 : vector<78x512xf32> to vector<78x512xbf16>
    %c0_24 = arith.constant 0 : index
    %c0_25 = arith.constant 0 : index
    %38 = vector.load %arg5[%c0_24, %c0_25] : memref<78x156xbf16, #tpu.memory_space<vmem>>, vector<78x156xbf16>
    %cst_26 = arith.constant dense<0.000000e+00> : vector<78x512xf32>
    %39 = tpu.matmul %38, %34, %cst_26 {dimension_numbers = #tpu.dot_dimension_numbers<[1], [0], [0], [1], [0, 0, 1, 1], [], []>} : vector<78x156xbf16>, vector<156x512xbf16>, vector<78x512xf32> -> vector<78x512xf32>
    %40 = arith.truncf %39 : vector<78x512xf32> to vector<78x512xbf16>
    %41 = vector.extract_strided_slice %37 {offsets = [0, 0], sizes = [77, 512], strides = [1, 1]} : vector<78x512xbf16> to vector<77x512xbf16>
    %c0_27 = arith.constant 0 : index
    %c0_28 = arith.constant 0 : index
    %c0_29 = arith.constant 0 : index
    %42 = vector.load %arg6[%c0_27, %c0_28, %c0_29] : memref<3x512x448xbf16, #tpu.memory_space<vmem>>, vector<1x512x448xbf16>
    %43 = vector.shape_cast %42 : vector<1x512x448xbf16> to vector<512x448xbf16>
    %cst_30 = arith.constant dense<0.000000e+00> : vector<77x448xf32>
    %44 = tpu.matmul %41, %43, %cst_30 {dimension_numbers = #tpu.dot_dimension_numbers<[1], [0], [0], [1], [0, 0, 1, 1], [], []>} : vector<77x512xbf16>, vector<512x448xbf16>, vector<77x448xf32> -> vector<77x448xf32>
    %45 = vector.extract_strided_slice %40 {offsets = [0, 0], sizes = [77, 512], strides = [1, 1]} : vector<78x512xbf16> to vector<77x512xbf16>
    %c1_31 = arith.constant 1 : index
    %c0_32 = arith.constant 0 : index
    %c0_33 = arith.constant 0 : index
    %46 = vector.load %arg6[%c1_31, %c0_32, %c0_33] : memref<3x512x448xbf16, #tpu.memory_space<vmem>>, vector<1x512x448xbf16>
    %47 = vector.shape_cast %46 : vector<1x512x448xbf16> to vector<512x448xbf16>
    %cst_34 = arith.constant dense<0.000000e+00> : vector<77x448xf32>
    %48 = tpu.matmul %45, %47, %cst_34 {dimension_numbers = #tpu.dot_dimension_numbers<[1], [0], [0], [1], [0, 0, 1, 1], [], []>} : vector<77x512xbf16>, vector<512x448xbf16>, vector<77x448xf32> -> vector<77x448xf32>
    %49 = arith.addf %44, %48 : vector<77x448xf32>
    %50 = vector.extract_strided_slice %37 {offsets = [1, 0], sizes = [77, 512], strides = [1, 1]} : vector<78x512xbf16> to vector<77x512xbf16>
    %c2_35 = arith.constant 2 : index
    %c0_36 = arith.constant 0 : index
    %c0_37 = arith.constant 0 : index
    %51 = vector.load %arg6[%c2_35, %c0_36, %c0_37] : memref<3x512x448xbf16, #tpu.memory_space<vmem>>, vector<1x512x448xbf16>
    %52 = vector.shape_cast %51 : vector<1x512x448xbf16> to vector<512x448xbf16>
    %cst_38 = arith.constant dense<0.000000e+00> : vector<77x448xf32>
    %53 = tpu.matmul %50, %52, %cst_38 {dimension_numbers = #tpu.dot_dimension_numbers<[1], [0], [0], [1], [0, 0, 1, 1], [], []>} : vector<77x512xbf16>, vector<512x448xbf16>, vector<77x448xf32> -> vector<77x448xf32>
    %54 = arith.addf %49, %53 : vector<77x448xf32>
    %c0_39 = arith.constant 0 : index
    %c0_40 = arith.constant 0 : index
    %55 = vector.load %arg7[%c0_39, %c0_40] : memref<1x448xf32, #tpu.memory_space<vmem>>, vector<1x448xf32>
    %56 = vector.broadcast %55 : vector<1x448xf32> to vector<77x448xf32>
    %57 = arith.addf %54, %56 : vector<77x448xf32>
    %cst_41 = arith.constant 0.000000e+00 : f32
    %58 = vector.broadcast %cst_41 : f32 to vector<77x448xf32>
    %59 = arith.cmpf ogt, %57, %58 : vector<77x448xf32>
    %cst_42 = arith.constant 0.00999999977 : f32
    %60 = vector.broadcast %cst_42 : f32 to vector<77x448xf32>
    %61 = arith.mulf %60, %57 : vector<77x448xf32>
    %62 = arith.select %59, %57, %61 : vector<77x448xi1>, vector<77x448xf32>
    %63 = arith.truncf %62 : vector<77x448xf32> to vector<77x448xbf16>
    %c0_43 = arith.constant 0 : index
    %c0_44 = arith.constant 0 : index
    %64 = vector.load %arg8[%c0_43, %c0_44] : memref<39x77xbf16, #tpu.memory_space<vmem>>, vector<39x77xbf16>
    %cst_45 = arith.constant dense<0.000000e+00> : vector<39x448xf32>
    %65 = tpu.matmul %64, %63, %cst_45 {dimension_numbers = #tpu.dot_dimension_numbers<[1], [0], [0], [1], [0, 0, 1, 1], [], []>} : vector<39x77xbf16>, vector<77x448xbf16>, vector<39x448xf32> -> vector<39x448xf32>
    %66 = arith.truncf %65 : vector<39x448xf32> to vector<39x448xbf16>
    %c0_46 = arith.constant 0 : index
    %c0_47 = arith.constant 0 : index
    %67 = vector.load %arg9[%c0_46, %c0_47] : memref<39x77xbf16, #tpu.memory_space<vmem>>, vector<39x77xbf16>
    %cst_48 = arith.constant dense<0.000000e+00> : vector<39x448xf32>
    %68 = tpu.matmul %67, %63, %cst_48 {dimension_numbers = #tpu.dot_dimension_numbers<[1], [0], [0], [1], [0, 0, 1, 1], [], []>} : vector<39x77xbf16>, vector<77x448xbf16>, vector<39x448xf32> -> vector<39x448xf32>
    %69 = arith.truncf %68 : vector<39x448xf32> to vector<39x448xbf16>
    %70 = vector.extract_strided_slice %66 {offsets = [0, 0], sizes = [38, 448], strides = [1, 1]} : vector<39x448xbf16> to vector<38x448xbf16>
    %c0_49 = arith.constant 0 : index
    %c0_50 = arith.constant 0 : index
    %c0_51 = arith.constant 0 : index
    %71 = vector.load %arg10[%c0_49, %c0_50, %c0_51] : memref<3x448x384xbf16, #tpu.memory_space<vmem>>, vector<1x448x384xbf16>
    %72 = vector.shape_cast %71 : vector<1x448x384xbf16> to vector<448x384xbf16>
    %cst_52 = arith.constant dense<0.000000e+00> : vector<38x384xf32>
    %73 = tpu.matmul %70, %72, %cst_52 {dimension_numbers = #tpu.dot_dimension_numbers<[1], [0], [0], [1], [0, 0, 1, 1], [], []>} : vector<38x448xbf16>, vector<448x384xbf16>, vector<38x384xf32> -> vector<38x384xf32>
    %74 = vector.extract_strided_slice %69 {offsets = [0, 0], sizes = [38, 448], strides = [1, 1]} : vector<39x448xbf16> to vector<38x448xbf16>
    %c1_53 = arith.constant 1 : index
    %c0_54 = arith.constant 0 : index
    %c0_55 = arith.constant 0 : index
    %75 = vector.load %arg10[%c1_53, %c0_54, %c0_55] : memref<3x448x384xbf16, #tpu.memory_space<vmem>>, vector<1x448x384xbf16>
    %76 = vector.shape_cast %75 : vector<1x448x384xbf16> to vector<448x384xbf16>
    %cst_56 = arith.constant dense<0.000000e+00> : vector<38x384xf32>
    %77 = tpu.matmul %74, %76, %cst_56 {dimension_numbers = #tpu.dot_dimension_numbers<[1], [0], [0], [1], [0, 0, 1, 1], [], []>} : vector<38x448xbf16>, vector<448x384xbf16>, vector<38x384xf32> -> vector<38x384xf32>
    %78 = arith.addf %73, %77 : vector<38x384xf32>
    %79 = vector.extract_strided_slice %66 {offsets = [1, 0], sizes = [38, 448], strides = [1, 1]} : vector<39x448xbf16> to vector<38x448xbf16>
    %c2_57 = arith.constant 2 : index
    %c0_58 = arith.constant 0 : index
    %c0_59 = arith.constant 0 : index
    %80 = vector.load %arg10[%c2_57, %c0_58, %c0_59] : memref<3x448x384xbf16, #tpu.memory_space<vmem>>, vector<1x448x384xbf16>
    %81 = vector.shape_cast %80 : vector<1x448x384xbf16> to vector<448x384xbf16>
    %cst_60 = arith.constant dense<0.000000e+00> : vector<38x384xf32>
    %82 = tpu.matmul %79, %81, %cst_60 {dimension_numbers = #tpu.dot_dimension_numbers<[1], [0], [0], [1], [0, 0, 1, 1], [], []>} : vector<38x448xbf16>, vector<448x384xbf16>, vector<38x384xf32> -> vector<38x384xf32>
    %83 = arith.addf %78, %82 : vector<38x384xf32>
    %c0_61 = arith.constant 0 : index
    %c0_62 = arith.constant 0 : index
    %84 = vector.load %arg11[%c0_61, %c0_62] : memref<1x384xf32, #tpu.memory_space<vmem>>, vector<1x384xf32>
    %85 = vector.broadcast %84 : vector<1x384xf32> to vector<38x384xf32>
    %86 = arith.addf %83, %85 : vector<38x384xf32>
    %cst_63 = arith.constant 0.000000e+00 : f32
    %87 = vector.broadcast %cst_63 : f32 to vector<38x384xf32>
    %88 = arith.cmpf ogt, %86, %87 : vector<38x384xf32>
    %cst_64 = arith.constant 0.00999999977 : f32
    %89 = vector.broadcast %cst_64 : f32 to vector<38x384xf32>
    %90 = arith.mulf %89, %86 : vector<38x384xf32>
    %91 = arith.select %88, %86, %90 : vector<38x384xi1>, vector<38x384xf32>
    %92 = arith.truncf %91 : vector<38x384xf32> to vector<38x384xbf16>
    %cst_65 = arith.constant 0.000000e+00 : f32
    %93 = vector.broadcast %cst_65 : f32 to vector<8x64xf32>
    %c0_66 = arith.constant 0 : index
    %c0_67 = arith.constant 0 : index
    %c0_68 = arith.constant 0 : index
    %94 = vector.load %arg12[%c0_66, %c0_67, %c0_68] : memref<3x8x38xbf16, #tpu.memory_space<vmem>>, vector<1x8x38xbf16>
    %95 = vector.shape_cast %94 : vector<1x8x38xbf16> to vector<8x38xbf16>
    %cst_69 = arith.constant dense<0.000000e+00> : vector<8x384xf32>
    %96 = tpu.matmul %95, %92, %cst_69 {dimension_numbers = #tpu.dot_dimension_numbers<[1], [0], [0], [1], [0, 0, 1, 1], [], []>} : vector<8x38xbf16>, vector<38x384xbf16>, vector<8x384xf32> -> vector<8x384xf32>
    %97 = arith.truncf %96 : vector<8x384xf32> to vector<8x384xbf16>
    %c0_70 = arith.constant 0 : index
    %c0_71 = arith.constant 0 : index
    %c0_72 = arith.constant 0 : index
    %98 = vector.load %arg13[%c0_70, %c0_71, %c0_72] : memref<3x384x64xbf16, #tpu.memory_space<vmem>>, vector<1x384x64xbf16>
    %99 = vector.shape_cast %98 : vector<1x384x64xbf16> to vector<384x64xbf16>
    %cst_73 = arith.constant dense<0.000000e+00> : vector<8x64xf32>
    %100 = tpu.matmul %97, %99, %cst_73 {dimension_numbers = #tpu.dot_dimension_numbers<[1], [0], [0], [1], [0, 0, 1, 1], [], []>} : vector<8x384xbf16>, vector<384x64xbf16>, vector<8x64xf32> -> vector<8x64xf32>
    %101 = arith.addf %93, %100 : vector<8x64xf32>
    %c1_74 = arith.constant 1 : index
    %c0_75 = arith.constant 0 : index
    %c0_76 = arith.constant 0 : index
    %102 = vector.load %arg12[%c1_74, %c0_75, %c0_76] : memref<3x8x38xbf16, #tpu.memory_space<vmem>>, vector<1x8x38xbf16>
    %103 = vector.shape_cast %102 : vector<1x8x38xbf16> to vector<8x38xbf16>
    %cst_77 = arith.constant dense<0.000000e+00> : vector<8x384xf32>
    %104 = tpu.matmul %103, %92, %cst_77 {dimension_numbers = #tpu.dot_dimension_numbers<[1], [0], [0], [1], [0, 0, 1, 1], [], []>} : vector<8x38xbf16>, vector<38x384xbf16>, vector<8x384xf32> -> vector<8x384xf32>
    %105 = arith.truncf %104 : vector<8x384xf32> to vector<8x384xbf16>
    %c1_78 = arith.constant 1 : index
    %c0_79 = arith.constant 0 : index
    %c0_80 = arith.constant 0 : index
    %106 = vector.load %arg13[%c1_78, %c0_79, %c0_80] : memref<3x384x64xbf16, #tpu.memory_space<vmem>>, vector<1x384x64xbf16>
    %107 = vector.shape_cast %106 : vector<1x384x64xbf16> to vector<384x64xbf16>
    %cst_81 = arith.constant dense<0.000000e+00> : vector<8x64xf32>
    %108 = tpu.matmul %105, %107, %cst_81 {dimension_numbers = #tpu.dot_dimension_numbers<[1], [0], [0], [1], [0, 0, 1, 1], [], []>} : vector<8x384xbf16>, vector<384x64xbf16>, vector<8x64xf32> -> vector<8x64xf32>
    %109 = arith.addf %101, %108 : vector<8x64xf32>
    %c2_82 = arith.constant 2 : index
    %c0_83 = arith.constant 0 : index
    %c0_84 = arith.constant 0 : index
    %110 = vector.load %arg12[%c2_82, %c0_83, %c0_84] : memref<3x8x38xbf16, #tpu.memory_space<vmem>>, vector<1x8x38xbf16>
    %111 = vector.shape_cast %110 : vector<1x8x38xbf16> to vector<8x38xbf16>
    %cst_85 = arith.constant dense<0.000000e+00> : vector<8x384xf32>
    %112 = tpu.matmul %111, %92, %cst_85 {dimension_numbers = #tpu.dot_dimension_numbers<[1], [0], [0], [1], [0, 0, 1, 1], [], []>} : vector<8x38xbf16>, vector<38x384xbf16>, vector<8x384xf32> -> vector<8x384xf32>
    %113 = arith.truncf %112 : vector<8x384xf32> to vector<8x384xbf16>
    %c2_86 = arith.constant 2 : index
    %c0_87 = arith.constant 0 : index
    %c0_88 = arith.constant 0 : index
    %114 = vector.load %arg13[%c2_86, %c0_87, %c0_88] : memref<3x384x64xbf16, #tpu.memory_space<vmem>>, vector<1x384x64xbf16>
    %115 = vector.shape_cast %114 : vector<1x384x64xbf16> to vector<384x64xbf16>
    %cst_89 = arith.constant dense<0.000000e+00> : vector<8x64xf32>
    %116 = tpu.matmul %113, %115, %cst_89 {dimension_numbers = #tpu.dot_dimension_numbers<[1], [0], [0], [1], [0, 0, 1, 1], [], []>} : vector<8x384xbf16>, vector<384x64xbf16>, vector<8x64xf32> -> vector<8x64xf32>
    %117 = arith.addf %109, %116 : vector<8x64xf32>
    %c0_90 = arith.constant 0 : index
    %c0_91 = arith.constant 0 : index
    %118 = vector.load %arg14[%c0_90, %c0_91] : memref<1x64xf32, #tpu.memory_space<vmem>>, vector<1x64xf32>
    %119 = vector.broadcast %118 : vector<1x64xf32> to vector<8x64xf32>
    %120 = arith.addf %117, %119 : vector<8x64xf32>
    %cst_92 = arith.constant 0.000000e+00 : f32
    %121 = vector.broadcast %cst_92 : f32 to vector<8x64xf32>
    %122 = arith.cmpf ogt, %120, %121 : vector<8x64xf32>
    %cst_93 = arith.constant 0.00999999977 : f32
    %123 = vector.broadcast %cst_93 : f32 to vector<8x64xf32>
    %124 = arith.mulf %123, %120 : vector<8x64xf32>
    %125 = arith.select %122, %120, %124 : vector<8x64xi1>, vector<8x64xf32>
    %126 = arith.truncf %125 : vector<8x64xf32> to vector<8x64xbf16>
    %c0_94 = arith.constant 0 : index
    %c0_95 = arith.constant 0 : index
    %127 = vector.load %arg15[%c0_94, %c0_95] : memref<64x128xbf16, #tpu.memory_space<vmem>>, vector<64x128xbf16>
    %cst_96 = arith.constant dense<0.000000e+00> : vector<8x128xf32>
    %128 = tpu.matmul %126, %127, %cst_96 {dimension_numbers = #tpu.dot_dimension_numbers<[1], [0], [0], [1], [0, 0, 1, 1], [], []>} : vector<8x64xbf16>, vector<64x128xbf16>, vector<8x128xf32> -> vector<8x128xf32>
    %c0_97 = arith.constant 0 : index
    %c0_98 = arith.constant 0 : index
    %129 = vector.load %arg16[%c0_97, %c0_98] : memref<1x128xf32, #tpu.memory_space<vmem>>, vector<1x128xf32>
    %130 = vector.broadcast %129 : vector<1x128xf32> to vector<8x128xf32>
    %131 = arith.addf %128, %130 : vector<8x128xf32>
    %cst_99 = arith.constant 0.000000e+00 : f32
    %132 = vector.broadcast %cst_99 : f32 to vector<8x128xf32>
    %133 = arith.subf %132, %131 : vector<8x128xf32>
    %134 = math.exp %133 : vector<8x128xf32>
    %cst_100 = arith.constant 1.000000e+00 : f32
    %135 = vector.broadcast %cst_100 : f32 to vector<8x128xf32>
    %136 = arith.addf %135, %134 : vector<8x128xf32>
    %cst_101 = arith.constant 1.000000e+00 : f32
    %137 = vector.broadcast %cst_101 : f32 to vector<8x128xf32>
    %138 = arith.divf %137, %136 : vector<8x128xf32>
    %c0_102 = arith.constant 0 : index
    %c0_103 = arith.constant 0 : index
    %c0_104 = arith.constant 0 : index
    %139 = vector.load %arg17[%c0_102, %c0_103, %c0_104] : memref<1x8x128xf32, #tpu.memory_space<vmem>>, vector<1x8x128xf32>
    %140 = vector.shape_cast %139 : vector<1x8x128xf32> to vector<8x128xf32>
    %141 = vector.shape_cast %138 : vector<8x128xf32> to vector<1x8x128xf32>
    tpu.vector_store %arg17[%c0_102, %c0_103, %c0_104], %141 {strides = array<i32>} : memref<1x8x128xf32, #tpu.memory_space<vmem>>, vector<1x8x128xf32>,
    return
  }
  func.func @transform_0(%arg0: i32) -> (i32, i32, i32) {
    %c0_i32 = arith.constant 0 : i32
    %c0_i32_0 = arith.constant 0 : i32
    %c0_i32_1 = arith.constant 0 : i32
    return %arg0, %c0_i32, %c0_i32_0 : i32, i32, i32
  }
  func.func @transform_1(%arg0: i32) -> (i32, i32, i32) {
    %c0_i32 = arith.constant 0 : i32
    %c0_i32_0 = arith.constant 0 : i32
    %c0_i32_1 = arith.constant 0 : i32
    %c0_i32_2 = arith.constant 0 : i32
    return %c0_i32, %c0_i32_0, %c0_i32_1 : i32, i32, i32
  }
  func.func @transform_2(%arg0: i32) -> (i32, i32) {
    %c0_i32 = arith.constant 0 : i32
    %c0_i32_0 = arith.constant 0 : i32
    %c0_i32_1 = arith.constant 0 : i32
    return %c0_i32, %c0_i32_0 : i32, i32
  }
  func.func @transform_3(%arg0: i32) -> (i32, i32) {
    %c0_i32 = arith.constant 0 : i32
    %c0_i32_0 = arith.constant 0 : i32
    %c0_i32_1 = arith.constant 0 : i32
    return %c0_i32, %c0_i32_0 : i32, i32
  }
  func.func @transform_4(%arg0: i32) -> (i32, i32) {
    %c0_i32 = arith.constant 0 : i32
    %c0_i32_0 = arith.constant 0 : i32
    %c0_i32_1 = arith.constant 0 : i32
    return %c0_i32, %c0_i32_0 : i32, i32
  }
  func.func @transform_5(%arg0: i32) -> (i32, i32, i32) {
    %c0_i32 = arith.constant 0 : i32
    %c0_i32_0 = arith.constant 0 : i32
    %c0_i32_1 = arith.constant 0 : i32
    %c0_i32_2 = arith.constant 0 : i32
    return %c0_i32, %c0_i32_0, %c0_i32_1 : i32, i32, i32
  }
  func.func @transform_6(%arg0: i32) -> (i32, i32) {
    %c0_i32 = arith.constant 0 : i32
    %c0_i32_0 = arith.constant 0 : i32
    %c0_i32_1 = arith.constant 0 : i32
    return %c0_i32, %c0_i32_0 : i32, i32
  }
  func.func @transform_7(%arg0: i32) -> (i32, i32) {
    %c0_i32 = arith.constant 0 : i32
    %c0_i32_0 = arith.constant 0 : i32
    %c0_i32_1 = arith.constant 0 : i32
    return %c0_i32, %c0_i32_0 : i32, i32
  }
  func.func @transform_8(%arg0: i32) -> (i32, i32) {
    %c0_i32 = arith.constant 0 : i32
    %c0_i32_0 = arith.constant 0 : i32
    %c0_i32_1 = arith.constant 0 : i32
    return %c0_i32, %c0_i32_0 : i32, i32
  }
  func.func @transform_9(%arg0: i32) -> (i32, i32, i32) {
    %c0_i32 = arith.constant 0 : i32
    %c0_i32_0 = arith.constant 0 : i32
    %c0_i32_1 = arith.constant 0 : i32
    %c0_i32_2 = arith.constant 0 : i32
    return %c0_i32, %c0_i32_0, %c0_i32_1 : i32, i32, i32
  }
  func.func @transform_10(%arg0: i32) -> (i32, i32) {
    %c0_i32 = arith.constant 0 : i32
    %c0_i32_0 = arith.constant 0 : i32
    %c0_i32_1 = arith.constant 0 : i32
    return %c0_i32, %c0_i32_0 : i32, i32
  }
  func.func @transform_11(%arg0: i32) -> (i32, i32, i32) {
    %c0_i32 = arith.constant 0 : i32
    %c0_i32_0 = arith.constant 0 : i32
    %c0_i32_1 = arith.constant 0 : i32
    %c0_i32_2 = arith.constant 0 : i32
    return %c0_i32, %c0_i32_0, %c0_i32_1 : i32, i32, i32
  }
  func.func @transform_12(%arg0: i32) -> (i32, i32, i32) {
    %c0_i32 = arith.constant 0 : i32
    %c0_i32_0 = arith.constant 0 : i32
    %c0_i32_1 = arith.constant 0 : i32
    %c0_i32_2 = arith.constant 0 : i32
    return %c0_i32, %c0_i32_0, %c0_i32_1 : i32, i32, i32
  }
  func.func @transform_13(%arg0: i32) -> (i32, i32) {
    %c0_i32 = arith.constant 0 : i32
    %c0_i32_0 = arith.constant 0 : i32
    %c0_i32_1 = arith.constant 0 : i32
    return %c0_i32, %c0_i32_0 : i32, i32
  }
  func.func @transform_14(%arg0: i32) -> (i32, i32) {
    %c0_i32 = arith.constant 0 : i32
    %c0_i32_0 = arith.constant 0 : i32
    %c0_i32_1 = arith.constant 0 : i32
    return %c0_i32, %c0_i32_0 : i32, i32
  }
  func.func @transform_15(%arg0: i32) -> (i32, i32) {
    %c0_i32 = arith.constant 0 : i32
    %c0_i32_0 = arith.constant 0 : i32
    %c0_i32_1 = arith.constant 0 : i32
    return %c0_i32, %c0_i32_0 : i32, i32
  }
  func.func @transform_16(%arg0: i32) -> (i32, i32, i32) {
    %c0_i32 = arith.constant 0 : i32
    %c0_i32_0 = arith.constant 0 : i32
    %c0_i32_1 = arith.constant 0 : i32
    return %arg0, %c0_i32, %c0_i32_0 : i32, i32, i32
  }
}

</mosaic_0001>

<bundles_post_ra>
// kernel: gabor_nn_forward.1
= control target key start
LH: loop header
LB: loop body
LE: loop exit
PB: predicated region body
PF: predicated region fallthrough
CT: control target
= control target key end

     0   :  { %s14990_s21 = smov 0   ;;  %s21833_s0 = inlined_call_operand.vmem [shape: bf16[2,160,60], index: 0, kind: input, shape index: {}]   ;;  %s21834_s1 = inlined_call_operand.vmem [shape: bf16[5,60,512], index: 1, kind: input, shape index: {}]   ;;  %s21835_s2 = inlined_call_operand.vmem [shape: f32[1,512], index: 2, kind: input, shape index: {}]   ;;  %s21836_s3 = inlined_call_operand.vmem [shape: bf16[78,156], index: 3, kind: input, shape index: {}]   ;;  %s21837_s4 = inlined_call_operand.vmem [shape: bf16[78,156], index: 4, kind: input, shape index: {}]   ;;  %s21838_s5 = inlined_call_operand.vmem [shape: bf16[3,512,448], index: 5, kind: input, shape index: {}]   ;;  %s21839_s6 = inlined_call_operand.vmem [shape: f32[1,448], index: 6, kind: input, shape index: {}]   ;;  %s21840_s7 = inlined_call_operand.vmem [shape: bf16[39,77], index: 7, kind: input, shape index: {}]   ;;  %s21841_s8 = inlined_call_operand.vmem [shape: bf16[39,77], index: 8, kind: input, shape index: {}]   ;;  %s21842_s9 = inlined_call_operand.vmem [shape: bf16[3,448,384], index: 9, kind: input, shape index: {}]   ;;  %s21843_s10 = inlined_call_operand.vmem [shape: f32[1,384], index: 10, kind: input, shape index: {}]   ;;  %s21844_s11 = inlined_call_operand.vmem [shape: bf16[3,8,38], index: 11, kind: input, shape index: {}]   ;;  %s21845_s12 = inlined_call_operand.vmem [shape: bf16[3,384,64], index: 12, kind: input, shape index: {}]   ;;  %s21846_s13 = inlined_call_operand.vmem [shape: f32[1,64], index: 13, kind: input, shape index: {}]   ;;  %s21847_s14 = inlined_call_operand.vmem [shape: bf16[64,128], index: 14, kind: input, shape index: {}]   ;;  %s21848_s15 = inlined_call_operand.vmem [shape: f32[1,128], index: 15, kind: input, shape index: {}]   ;;  %s21849_s16 = inlined_call_operand.vmem [shape: f32[2,8,128], index: 16, kind: output, shape index: {}]  }
   0x1   :  { %21962 = sst [smem:[#allocation244_spill]] %s21833_s0 }
   0x2 LB: > { %s11733_s22 = sadd.s32 4294967295, %s14899_s21   ;;  %p11737_p0 = scmp.ge.s32.totalorder %s14899_s21, 1  ;;  %s14899_s21 = sphi %s14990_s21, %s26_s21  }
   0x3   : > { %p462_p1 = scmp.lt.s32.totalorder %s14899_s21, 3 }
   0x5   : > { %p463_p2 = pnand %p11737_p0, %p462_p1 }
   0x7   : > { %466 = sbr.rel (%p463_p2) target bundleno = 3146 (0xc4a), region = 84 }
   0xc   : > { %v13715_v0 = vld [vmem:[%s21834_s1 + $0x164] ss:$16 sps:$4 sm:$0x3f]   ;;  %vm21951_vm0 = vcmask 1045504   ;;  %v21867_v3 = vmov 0   ;;  %p511_p3 = scmp.lt.s32.totalorder %s11733_s22, 1 }
   0xd   : > { %11798 = vmatprep.subr.msk.bf16.mxu0 %vm21951_vm0, %v13715_v0  ;;  %v13717_v1 = vld [vmem:[%s21834_s1 + $0x16c] ss:$16 sps:$4 sm:$0x3f]   ;;  %v13719_v2 = vld [vmem:[%s21834_s1 + $0x160] ss:$16 sps:$4 sm:$0x3f]   ;;  %813 = vmatprep.mubr.bf16.mxu0 %v21867_v3 }
   0xe   : > { %v13720_v4 = vld [vmem:[%s21834_s1 + $0x168] ss:$16 sps:$4 sm:$0x3f]   ;;  %v13721_v5 = vld [vmem:[%s21834_s1 + $0x144] ss:$16 sps:$4 sm:$0xff]   ;;  %946 = vmatprep.mubr.bf16.mxu1 %v21867_v3  ;;  %11809 = vmatprep.subr.msk.bf16.mxu1 %vm21951_vm0, %v13717_v1  ;;  %v770_v6 = vsel %vm21951_vm0, %v13719_v2, 0 }
   0xf   : > { %v13723_v7 = vld [vmem:[%s21834_s1 + $0x14c] ss:$16 sps:$4 sm:$0xff]   ;;  %790 = vmatpush1.bf16.msra.mxu0 %v770_v6  ;;  %v776_v8 = vsel %vm21951_vm0, %v13720_v4, 0  ;;  %v13725_v9 = vld [vmem:[%s21834_s1 + $0x140] ss:$16 sps:$4 sm:$0xff]   ;;  %s23038_s22 = smov (!%p511_p3, %s11733_s22), 1 }
  0x10   : > { %v13726_v10 = vld [vmem:[%s21834_s1 + $0x148] ss:$16 sps:$4 sm:$0xff]   ;;  %923 = vmatpush1.bf16.msra.mxu1 %v776_v8  ;;  %791 = vmatprep.subr.bf16.mxu0 %v13721_v5  ;;  %v13727_v11 = vld [vmem:[%s21834_s1 + $0x124] ss:$16 sps:$4 sm:$0xff]   ;;  %v13729_v12 = vld [vmem:[%s21834_s1 + $0x12c] ss:$16 sps:$4 sm:$0xff]  }
  0x11   : > { %924 = vmatprep.subr.bf16.mxu1 %v13723_v7  ;;  %s13702_s30 = smul.u32 80, %s23038_s22  ;;  %v13731_v13 = vld [vmem:[%s21834_s1 + $0x120] ss:$16 sps:$4 sm:$0xff]   ;;  %v13732_v14 = vld [vmem:[%s21834_s1 + $0x128] ss:$16 sps:$4 sm:$0xff]   ;;  %s21963_s28 = sld [smem:[#allocation244_spill]] }
  0x12   : > { %v13733_v15 = vld [vmem:[%s21834_s1 + $0x104] ss:$16 sps:$4 sm:$0xff]   ;;  %v13735_v16 = vld [vmem:[%s21834_s1 + $0x10c] ss:$16 sps:$4 sm:$0xff]   ;;  %v13737_v17 = vld [vmem:[%s21834_s1 + $0x100] ss:$16 sps:$4 sm:$0xff]  }
  0x13   : > { %792 = vmatpush1.bf16.msra.mxu0 %v13725_v9  ;;  %vm21949_vm1 = vcmask 1046528   ;;  %v13738_v20 = vld [vmem:[%s21834_s1 + $0x108] ss:$16 sps:$4 sm:$0xff]   ;;  %vm737_vm2 = vcmask 490496   ;;  %v13756_v34 = vld [vmem:[%s21834_s1 + $0x44] ss:$16 sps:$4 sm:$0xff]  }
  0x14   : > { %925 = vmatpush1.bf16.msra.mxu1 %v13726_v10  ;;  %793 = vmatprep.subr.bf16.mxu0 %v13727_v11  ;;  %v13746_v25 = vld [vmem:[%s21834_s1 + $0x64] ss:$16 sps:$4 sm:$0x3f]   ;;  %v13748_v27 = vld [vmem:[%s21834_s1 + $0x6c] ss:$16 sps:$4 sm:$0x3f]  }
  0x15   : > { %926 = vmatprep.subr.bf16.mxu1 %v13729_v12  ;;  %v13750_v28 = vld [vmem:[%s21834_s1 + $0x60] ss:$16 sps:$4 sm:$0x3f]   ;;  %v13751_v29 = vld [vmem:[%s21834_s1 + $0x68] ss:$16 sps:$4 sm:$0x3f]  }
  0x16   : > { %v1154_v30 = vsel %vm21951_vm0, %v13750_v28, 0  ;;  %v1160_v31 = vsel %vm21951_vm0, %v13751_v29, 0  ;;  %v13754_v35 = vld [vmem:[%s21834_s1 + $0x40] ss:$16 sps:$4 sm:$0xff]   ;;  %v13759_v36 = vld [vmem:[%s21834_s1 + $0x4c] ss:$16 sps:$4 sm:$0xff]  }
  0x17   : > { %s15052_s29 = scalar_lea.vmem %s21963_s28, %s13702_s30  ;;  %794 = vmatpush1.bf16.msra.mxu0 %v13731_v13  ;;  %v13757_v37 = vld [vmem:[%s21834_s1 + $0x48] ss:$16 sps:$4 sm:$0xff]   ;;  %v13763_v38 = vld [vmem:[%s21834_s1 + $0x24] ss:$16 sps:$4 sm:$0xff]   ;;  %v13761_v40 = vld [vmem:[%s21834_s1 + $0x20] ss:$16 sps:$4 sm:$0xff]  }
  0x18   : > { %v15058_v18 = vld [vmem:[%s15052_s29] sm:$0xff]   ;;  %v15061_v19 = vld [vmem:[%s15052_s29 + $0x8] sm:$0xff]   ;;  %927 = vmatpush1.bf16.msra.mxu1 %v13732_v14  ;;  %795 = vmatprep.subr.bf16.mxu0 %v13733_v15  ;;  %v15069_v23 = vld [vmem:[%s15052_s29 + $0x10] sm:$0xff]   ;;  %vm1448_vm3 = vsmask.f32 6400  ;;  %s11739_s26 = sshll.u32 %s23038_s22, 3 }
  0x19   : > { %v642_v21 = vrot.slane %v15058_v18, 1  ;;  %v643_v22 = vrot.slane %v15061_v19, 1  ;;  %928 = vmatprep.subr.bf16.mxu1 %v13735_v16  ;;  %v645_v26 = vrot.slane %v15069_v23, 1  ;;  %v15094_v32 = vld [vmem:[%s15052_s29 + $0x18] sm:$0xff]   ;;  %v13769_v43 = vld [vmem:[%s21834_s1 + $0x4] ss:$16 sps:$4 sm:$0xff]  }
  0x1a   : > { %v647_v39 = vrot.slane %v15094_v32, 1  ;;  %v13766_v41 = vld [vmem:[%s21834_s1 + $0x2c] ss:$16 sps:$4 sm:$0xff]   ;;  %v13764_v42 = vld [vmem:[%s21834_s1 + $0x28] ss:$16 sps:$4 sm:$0xff]   ;;  %v15134_v46 = vld [vmem:[%s15052_s29 + $0x20] sm:$0xff]  }
  0x1b   : > { %796 = vmatpush1.bf16.msra.mxu0 %v13737_v17  ;;  %v644_v24 = vsel %vm21949_vm1, %v642_v21, %v643_v22  ;;  %v646_v33 = vsel %vm21949_vm1, %v643_v22, %v645_v26  ;;  %v13772_v44 = vld [vmem:[%s21834_s1 + $0xc] ss:$16 sps:$4 sm:$0xff]   ;;  %v13767_v47 = vld [vmem:[%s21834_s1] ss:$16 sps:$4 sm:$0xff]   ;;  %v13770_v48 = vld [vmem:[%s21834_s1 + $0x8] ss:$16 sps:$4 sm:$0xff]  }
  0x1c   : > { %929 = vmatpush1.bf16.msra.mxu1 %v13738_v20  ;;  %11836 = vmatprep.subr.msk.bf16.mxu0 %vm21951_vm0, %v13746_v25  ;;  %v648_v45 = vsel %vm21949_vm1, %v645_v26, %v647_v39  ;;  %v13773_v49 = vld [vmem:[%s21834_s1 + $0x1e4] ss:$16 sps:$4 sm:$0x3f]   ;;  %v13775_v50 = vld [vmem:[%s21834_s1 + $0x1ec] ss:$16 sps:$4 sm:$0x3f]  }
  0x1d   : > { %11847 = vmatprep.subr.msk.bf16.mxu1 %vm21951_vm0, %v13748_v27  ;;  %v649_v51 = vrot.slane %v15134_v46, 1  ;;  %v15154_v52 = vld [vmem:[%s15052_s29 + $0x28] sm:$0xff]   ;;  %v15165_v55 = vld [vmem:[%s15052_s29 + $0x30] sm:$0xff]   ;;  %v15174_v58 = vld [vmem:[%s15052_s29 + $0x38] sm:$0xff]   ;;  %vm21950_vm4 = vsmask.f32 7424 }
  0x1e   : > { %11799 = vmatmul.mubr.msk.bf16.vlgmr.msra.gmra.mxu0 %vm737_vm2, %v644_v24  ;;  %v651_v54 = vrot.slane %v15154_v52, 1  ;;  %v653_v57 = vrot.slane %v15165_v55, 1  ;;  %v655_v60 = vrot.slane %v15174_v58, 1  ;;  %v15183_v61 = vld [vmem:[%s15052_s29 + $0x40] sm:$0xff]   ;;  %v15192_v0 = vld [vmem:[%s15052_s29 + $0x48] sm:$0xff]  }
  0x1f   : > { %11810 = vmatmul.mubr.msk.bf16.vlgmr.msra.gmra.mxu1 %vm737_vm2, %v644_v24  ;;  %823 = vmatprep.mubr.bf16.mxu0 %v21867_v3  ;;  %v650_v53 = vsel %vm21949_vm1, %v647_v39, %v649_v51  ;;  %v657_v63 = vrot.slane %v15183_v61, 1  ;;  %v659_v2 = vrot.slane %v15192_v0, 1  ;;  %v13777_v5 = vld [vmem:[%s21834_s1 + $0x1e0] ss:$16 sps:$4 sm:$0x3f]   ;;  %v15320_v26 = vld [vmem:[%s15052_s29 + $0x8] sm:$0xff]  }
  0x20   : > { %956 = vmatprep.mubr.bf16.mxu1 %v21867_v3  ;;  %1174 = vmatpush1.bf16.msra.mxu0 %v1154_v30  ;;  %v652_v56 = vsel %vm21949_vm1, %v649_v51, %v651_v54  ;;  %v654_v59 = vsel %vm21949_vm1, %v651_v54, %v653_v57  ;;  %v656_v62 = vsel %vm21949_vm1, %v653_v57, %v655_v60  ;;  %v13778_v6 = vld [vmem:[%s21834_s1 + $0x1e8] ss:$16 sps:$4 sm:$0x3f]   ;;  %v13781_v7 = vld [vmem:[%s21834_s1 + $0x1c4] ss:$16 sps:$4 sm:$0xff]   ;;  %v1635_v9 = vsel %vm21951_vm0, %v13777_v5, 0 }
  0x21   : > { %1307 = vmatpush1.bf16.msra.mxu1 %v1160_v31  ;;  %1175 = vmatprep.subr.bf16.mxu0 %v13756_v34  ;;  %v658_v1 = vsel %vm21949_vm1, %v655_v60, %v657_v63  ;;  %v660_v4 = vsel %vm21949_vm1, %v657_v63, %v659_v2  ;;  %v13784_v8 = vld [vmem:[%s21834_s1 + $0x1cc] ss:$16 sps:$4 sm:$0xff]   ;;  %v1641_v10 = vsel %vm21951_vm0, %v13778_v6, 0  ;;  %v13779_v11 = vld [vmem:[%s21834_s1 + $0x1c0] ss:$16 sps:$4 sm:$0xff]   ;;  %v21866_v27 = vshrl.u32 %v15320_v26, 16 }
  0x22   : > { %1308 = vmatprep.subr.bf16.mxu1 %v13759_v36  ;;  %v13782_v12 = vld [vmem:[%s21834_s1 + $0x1c8] ss:$16 sps:$4 sm:$0xff]   ;;  %v13787_v13 = vld [vmem:[%s21834_s1 + $0x1a4] ss:$16 sps:$4 sm:$0xff]   ;;  %v13790_v14 = vld [vmem:[%s21834_s1 + $0x1ac] ss:$16 sps:$4 sm:$0xff]  }
  0x23   : > { %v13785_v15 = vld [vmem:[%s21834_s1 + $0x1a0] ss:$16 sps:$4 sm:$0xff]   ;;  %v13788_v16 = vld [vmem:[%s21834_s1 + $0x1a8] ss:$16 sps:$4 sm:$0xff]   ;;  %v13793_v17 = vld [vmem:[%s21834_s1 + $0x184] ss:$16 sps:$4 sm:$0xff]  }
  0x24   : > { %1176 = vmatpush1.bf16.msra.mxu0 %v13754_v35  ;;  %v13791_v20 = vld [vmem:[%s21834_s1 + $0x180] ss:$16 sps:$4 sm:$0xff]   ;;  %v13794_v21 = vld [vmem:[%s21834_s1 + $0x188] ss:$16 sps:$4 sm:$0xff]   ;;  %v1459_v28 = vshll.u32 %v15320_v26, 16  ;;  %v1458_v31 = vrot.slane %v21866_v27, 1 }
  0x25   : > { %1309 = vmatpush1.bf16.msra.mxu1 %v13757_v37  ;;  %1177 = vmatprep.subr.bf16.mxu0 %v13763_v38  ;;  %v13797_v22 = vld [vmem:[%s21834_s1 + $0xe4] ss:$16 sps:$4 sm:$0x3f]   ;;  %v13799_v24 = vld [vmem:[%s21834_s1 + $0xec] ss:$16 sps:$4 sm:$0x3f]  }
  0x26   : > { %11800 = vmatmul.mubr.msk.bf16.gmra.mxu0 %vm737_vm2, %v646_v33  ;;  %1310 = vmatprep.subr.bf16.mxu1 %v13766_v41  ;;  %v15339_v35 = vld [vmem:[%s15052_s29 + $0x10] sm:$0xff]   ;;  %v13802_v39 = vld [vmem:[%s21834_s1 + $0xe8] ss:$16 sps:$4 sm:$0x3f]   ;;  %v13814_v54 = vld [vmem:[%s21834_s1 + $0xac] ss:$16 sps:$4 sm:$0xff]  }
  0x27   : > { %11811 = vmatmul.mubr.msk.bf16.gmra.mxu1 %vm737_vm2, %v646_v33  ;;  %833 = vmatprep.mubr.bf16.mxu0 %v21867_v3  ;;  %v21863_v36 = vshrl.u32 %v15339_v35, 16  ;;  %v21865_v37 = vshll.u32 %v15339_v35, 16  ;;  %v13801_v38 = vld [vmem:[%s21834_s1 + $0xe0] ss:$16 sps:$4 sm:$0x3f]  }
  0x28   : > { %966 = vmatprep.mubr.bf16.mxu1 %v21867_v3  ;;  %1178 = vmatpush1.bf16.msra.mxu0 %v13761_v40  ;;  %v13817_v60 = vld [vmem:[%s21834_s1 + $0x84] ss:$16 sps:$4 sm:$0xff]   ;;  %v13823_v6 = vld [vmem:[%s21834_s1 + $0x26c] ss:$16 sps:$4 sm:$0x3f]  }
  0x29   : > { %1311 = vmatpush1.bf16.msra.mxu1 %v13764_v42  ;;  %1179 = vmatprep.subr.bf16.mxu0 %v13769_v43  ;;  %v1466_v41 = vrot.slane %v21863_v36, 1  ;;  %v1469_v42 = vrot.slane %v21865_v37, 2  ;;  %v13805_v43 = vld [vmem:[%s21834_s1 + $0xc4] ss:$16 sps:$4 sm:$0xff]   ;;  %v13832_v27 = vld [vmem:[%s21834_s1 + $0x24c] ss:$16 sps:$4 sm:$0xff]  }
  0x2a   : > { %1312 = vmatprep.subr.bf16.mxu1 %v13772_v44  ;;  %v13808_v44 = vld [vmem:[%s21834_s1 + $0xcc] ss:$16 sps:$4 sm:$0xff]   ;;  %v13821_v5 = vld [vmem:[%s21834_s1 + $0x264] ss:$16 sps:$4 sm:$0x3f]  }
  0x2c   : > { %1180 = vmatpush1.bf16.msra.mxu0 %v13767_v47  ;;  %v13803_v47 = vld [vmem:[%s21834_s1 + $0xc0] ss:$16 sps:$4 sm:$0xff]  }
  0x2d   : > { %1313 = vmatpush1.bf16.msra.mxu1 %v13770_v48  ;;  %11890 = vmatprep.subr.msk.bf16.mxu0 %vm21951_vm0, %v13773_v49  ;;  %v1470_v48 = vor.u32 %v1469_v42, %v1466_v41  ;;  %v15370_v49 = vld [vmem:[%s15052_s29 + $0x18] sm:$0xff]  }
  0x2e   : > { %11801 = vmatmul.mubr.msk.bf16.gmra.mxu0 %vm737_vm2, %v648_v45  ;;  %11901 = vmatprep.subr.msk.bf16.mxu1 %vm21951_vm0, %v13775_v50  ;;  %v21861_v50 = vshrl.u32 %v15370_v49, 16  ;;  %v21864_v51 = vshll.u32 %v15370_v49, 16 }
  0x2f   : > { %11812 = vmatmul.mubr.msk.bf16.gmra.mxu1 %vm737_vm2, %v648_v45  ;;  %843 = vmatprep.mubr.bf16.mxu0 %v21867_v3  ;;  %v2049_v45 = vsel %vm21951_vm0, %v13801_v38, 0 }
  0x30   : > { %976 = vmatprep.mubr.bf16.mxu1 %v21867_v3  ;;  %v1474_v57 = vrot.slane %v21861_v50, 1 }
  0x36   : > { %11802 = vmatmul.mubr.msk.bf16.gmra.mxu0 %vm737_vm2, %v650_v53 }
  0x37   : > { %11813 = vmatmul.mubr.msk.bf16.gmra.mxu1 %vm737_vm2, %v650_v53  ;;  %853 = vmatprep.mubr.bf16.mxu0 %v21867_v3  ;;  %v13811_v53 = vld [vmem:[%s21834_s1 + $0xa4] ss:$16 sps:$4 sm:$0xff]  }
  0x38   : > { %986 = vmatprep.mubr.bf16.mxu1 %v21867_v3 }
  0x3e   : > { %11803 = vmatmul.mubr.msk.bf16.gmra.mxu0 %vm737_vm2, %v652_v56 }
  0x3f   : > { %11814 = vmatmul.mubr.msk.bf16.gmra.mxu1 %vm737_vm2, %v652_v56  ;;  %863 = vmatprep.mubr.bf16.mxu0 %v21867_v3 }
  0x40   : > { %996 = vmatprep.mubr.bf16.mxu1 %v21867_v3 }
  0x46   : > { %11804 = vmatmul.mubr.msk.bf16.gmra.mxu0 %vm737_vm2, %v654_v59 }
  0x47   : > { %11815 = vmatmul.mubr.msk.bf16.gmra.mxu1 %vm737_vm2, %v654_v59  ;;  %873 = vmatprep.mubr.bf16.mxu0 %v21867_v3  ;;  %v13812_v59 = vld [vmem:[%s21834_s1 + $0xa8] ss:$16 sps:$4 sm:$0xff]  }
  0x48   : > { %1006 = vmatprep.mubr.bf16.mxu1 %v21867_v3 }
  0x4e   : > { %11805 = vmatmul.mubr.msk.bf16.gmra.mxu0 %vm737_vm2, %v656_v62 }
  0x4f   : > { %11816 = vmatmul.mubr.msk.bf16.gmra.mxu1 %vm737_vm2, %v656_v62  ;;  %883 = vmatprep.mubr.bf16.mxu0 %v21867_v3  ;;  %v13815_v62 = vld [vmem:[%s21834_s1 + $0x80] ss:$16 sps:$4 sm:$0xff]  }
  0x50   : > { %1016 = vmatprep.mubr.bf16.mxu1 %v21867_v3 }
  0x56   : > { %11806 = vmatmul.mubr.msk.bf16.gmra.mxu0 %vm737_vm2, %v658_v1 }
  0x57   : > { %11817 = vmatmul.mubr.msk.bf16.gmra.mxu1 %vm737_vm2, %v658_v1  ;;  %893 = vmatprep.mubr.bf16.mxu0 %v21867_v3 }
  0x58   : > { %1026 = vmatprep.mubr.bf16.mxu1 %v21867_v3 }
  0x5e   : > { %11807 = vmatmul.mubr.msk.bf16.gmra.mxu0 %vm737_vm2, %v660_v4 }
  0x5f   : > { %11818 = vmatmul.mubr.msk.bf16.gmra.mxu1 %vm737_vm2, %v660_v4  ;;  %903 = vmatprep.mubr.bf16.mxu0 %v21867_v3  ;;  %v13818_v4 = vld [vmem:[%s21834_s1 + $0x88] ss:$16 sps:$4 sm:$0xff]  }
  0x60   : > { %1036 = vmatprep.mubr.bf16.mxu1 %v21867_v3 }
  0x66   : > { %11808 = vmatmul.mubr.msk.bf16.gmra.mxu0 %vm737_vm2, %v659_v2 }
  0x67   : > { %11819 = vmatmul.mubr.msk.bf16.gmra.mxu1 %vm737_vm2, %v659_v2  ;;  %1197 = vmatprep.mubr.bf16.mxu0 %v21867_v3 }
  0x68   : > { %1330 = vmatprep.mubr.bf16.mxu1 %v21867_v3 }
  0x6e   : > { %11837 = vmatmul.mubr.msk.bf16.vlgmr.msra.gmra.mxu0 %vm737_vm2, %v15058_v18 }
  0x6f   : > { %11848 = vmatmul.mubr.msk.bf16.vlgmr.msra.gmra.mxu1 %vm737_vm2, %v15058_v18  ;;  %1207 = vmatprep.mubr.bf16.mxu0 %v21867_v3  ;;  %v13796_v18 = vld [vmem:[%s21834_s1 + $0x18c] ss:$16 sps:$4 sm:$0xff]  }
  0x70   : > { %1340 = vmatprep.mubr.bf16.mxu1 %v21867_v3  ;;  %1655 = vmatpush1.bf16.msra.mxu0 %v1635_v9 }
  0x71   : > { %1788 = vmatpush1.bf16.msra.mxu1 %v1641_v10  ;;  %1656 = vmatprep.subr.bf16.mxu0 %v13781_v7  ;;  %v15428_v10 = vld [vmem:[%s15052_s29 + $0x28] sm:$0xff]  }
  0x72   : > { %1789 = vmatprep.subr.bf16.mxu1 %v13784_v8 }
  0x74   : > { %1657 = vmatpush1.bf16.msra.mxu0 %v13779_v11  ;;  %v21858_v11 = vshrl.u32 %v15428_v10, 16 }
  0x75   : > { %1790 = vmatpush1.bf16.msra.mxu1 %v13782_v12  ;;  %1658 = vmatprep.subr.bf16.mxu0 %v13787_v13  ;;  %v21859_v12 = vshll.u32 %v15428_v10, 16 }
  0x76   : > { %11838 = vmatmul.mubr.msk.bf16.gmra.mxu0 %vm737_vm2, %v15061_v19  ;;  %1791 = vmatprep.subr.bf16.mxu1 %v13790_v14  ;;  %v1490_v14 = vrot.slane %v21858_v11, 1 }
  0x77   : > { %11849 = vmatmul.mubr.msk.bf16.gmra.mxu1 %vm737_vm2, %v15061_v19  ;;  %1217 = vmatprep.mubr.bf16.mxu0 %v21867_v3  ;;  %v15312_v19 = vld [vmem:[%s15052_s29] sm:$0xff]  }
  0x78   : > { %1350 = vmatprep.mubr.bf16.mxu1 %v21867_v3  ;;  %1659 = vmatpush1.bf16.msra.mxu0 %v13785_v15  ;;  %v1452_v25 = vshll.u32 %v15312_v19, 16  ;;  %v1493_v15 = vrot.slane %v21859_v12, 2 }
  0x79   : > { %1792 = vmatpush1.bf16.msra.mxu1 %v13788_v16  ;;  %1660 = vmatprep.subr.bf16.mxu0 %v13793_v17 }
  0x7a   : > { %1793 = vmatprep.subr.bf16.mxu1 %v13796_v18  ;;  %v1454_v30 = vrot.slane %v1452_v25, 2  ;;  %v1494_v17 = vor.u32 %v1493_v15, %v1490_v14  ;;  %v15447_v18 = vld [vmem:[%s15052_s29 + $0x30] sm:$0xff]  }
  0x7c   : > { %1661 = vmatpush1.bf16.msra.mxu0 %v13791_v20  ;;  %v21855_v20 = vshrl.u32 %v15447_v18, 16 }
  0x7d   : > { %1794 = vmatpush1.bf16.msra.mxu1 %v13794_v21  ;;  %11928 = vmatprep.subr.msk.bf16.mxu0 %vm21951_vm0, %v13797_v22  ;;  %v21857_v21 = vshll.u32 %v15447_v18, 16 }
  0x7e   : > { %11839 = vmatmul.mubr.msk.bf16.gmra.mxu0 %vm737_vm2, %v15069_v23  ;;  %11939 = vmatprep.subr.msk.bf16.mxu1 %vm21951_vm0, %v13799_v24  ;;  %v1498_v24 = vrot.slane %v21855_v20, 1 }
  0x7f   : > { %11850 = vmatmul.mubr.msk.bf16.gmra.mxu1 %vm737_vm2, %v15069_v23  ;;  %1227 = vmatprep.mubr.bf16.mxu0 %v21867_v3  ;;  %v1449_v23 = vshrl.u32 %v15312_v19, 16 }
  0x80   : > { %1360 = vmatprep.mubr.bf16.mxu1 %v21867_v3 }
  0x81   : > { %v1451_v29 = vrot.slane %v1449_v23, 1 }
  0x83   : > { %v1455_v33 = vor.u32 %v1454_v30, %v1451_v29  ;;  %v1501_v29 = vrot.slane %v21857_v21, 2  ;;  %v1913_v21 = vrot.slane %v1452_v25, 1  ;;  %v1915_v25 = vrot.slane %v1459_v28, 1 }
  0x85   : > { %v1914_v50 = vor.u32 %v1913_v21, %v1449_v23 }
  0x86   : > { %11840 = vmatmul.mubr.msk.bf16.gmra.mxu0 %vm737_vm2, %v15094_v32 }
  0x87   : > { %11851 = vmatmul.mubr.msk.bf16.gmra.mxu1 %vm737_vm2, %v15094_v32  ;;  %1237 = vmatprep.mubr.bf16.mxu0 %v21867_v3  ;;  %v1461_v32 = vrot.slane %v1459_v28, 2  ;;  %v1916_v23 = vsel %vm21950_vm4, %v1914_v50, %v1915_v25  ;;  %v13829_v28 = vld [vmem:[%s21834_s1 + $0x244] ss:$16 sps:$4 sm:$0xff]  }
  0x88   : > { %1370 = vmatprep.mubr.bf16.mxu1 %v21867_v3 }
  0x89   : > { %v1462_v34 = vor.u32 %v1461_v32, %v1458_v31  ;;  %v1502_v32 = vor.u32 %v1501_v29, %v1498_v24 }
  0x8b   : > { %v1463_v40 = vsel %vm1448_vm3, %v1455_v33, %v1462_v34  ;;  %v1471_v56 = vsel %vm1448_vm3, %v1462_v34, %v1470_v48  ;;  %v15465_v33 = vld [vmem:[%s15052_s29 + $0x38] sm:$0xff]  }
  0x8c   : > { %v21852_v34 = vshrl.u32 %v15465_v33, 16  ;;  %v21856_v38 = vshll.u32 %v15465_v33, 16 }
  0x8e   : > { %11841 = vmatmul.mubr.msk.bf16.gmra.mxu0 %vm737_vm2, %v15134_v46 }
  0x8f   : > { %11852 = vmatmul.mubr.msk.bf16.gmra.mxu1 %vm737_vm2, %v15134_v46  ;;  %1247 = vmatprep.mubr.bf16.mxu0 %v21867_v3  ;;  %v2055_v46 = vsel %vm21951_vm0, %v13802_v39, 0 }
  0x90   : > { %1380 = vmatprep.mubr.bf16.mxu1 %v21867_v3 }
  0x96   : > { %11842 = vmatmul.mubr.msk.bf16.gmra.mxu0 %vm737_vm2, %v15154_v52 }
  0x97   : > { %11853 = vmatmul.mubr.msk.bf16.gmra.mxu1 %vm737_vm2, %v15154_v52  ;;  %1257 = vmatprep.mubr.bf16.mxu0 %v21867_v3  ;;  %v13806_v52 = vld [vmem:[%s21834_s1 + $0xc8] ss:$16 sps:$4 sm:$0xff]  }
  0x98   : > { %1390 = vmatprep.mubr.bf16.mxu1 %v21867_v3 }
  0x9e   : > { %11843 = vmatmul.mubr.msk.bf16.gmra.mxu0 %vm737_vm2, %v15165_v55 }
  0x9f   : > { %11854 = vmatmul.mubr.msk.bf16.gmra.mxu1 %vm737_vm2, %v15165_v55  ;;  %1267 = vmatprep.mubr.bf16.mxu0 %v21867_v3  ;;  %v13809_v55 = vld [vmem:[%s21834_s1 + $0xa0] ss:$16 sps:$4 sm:$0xff]  }
  0xa0   : > { %1400 = vmatprep.mubr.bf16.mxu1 %v21867_v3 }
  0xa6   : > { %11844 = vmatmul.mubr.msk.bf16.gmra.mxu0 %vm737_vm2, %v15174_v58 }
  0xa7   : > { %11855 = vmatmul.mubr.msk.bf16.gmra.mxu1 %vm737_vm2, %v15174_v58  ;;  %1277 = vmatprep.mubr.bf16.mxu0 %v21867_v3  ;;  %v1477_v58 = vrot.slane %v21864_v51, 2 }
  0xa8   : > { %1410 = vmatprep.mubr.bf16.mxu1 %v21867_v3 }
  0xa9   : > { %v1478_v63 = vor.u32 %v1477_v58, %v1474_v57 }
  0xab   : > { %v1479_v7 = vsel %vm1448_vm3, %v1470_v48, %v1478_v63 }
  0xae   : > { %11845 = vmatmul.mubr.msk.bf16.gmra.mxu0 %vm737_vm2, %v15183_v61 }
  0xaf   : > { %11856 = vmatmul.mubr.msk.bf16.gmra.mxu1 %vm737_vm2, %v15183_v61  ;;  %1287 = vmatprep.mubr.bf16.mxu0 %v21867_v3  ;;  %v13820_v61 = vld [vmem:[%s21834_s1 + $0x8c] ss:$16 sps:$4 sm:$0xff]  }
  0xb0   : > { %1420 = vmatprep.mubr.bf16.mxu1 %v21867_v3 }
  0xb6   : > { %11846 = vmatmul.mubr.msk.bf16.gmra.mxu0 %vm737_vm2, %v15192_v0 }
  0xb7   : > { %11857 = vmatmul.mubr.msk.bf16.gmra.mxu1 %vm737_vm2, %v15192_v0  ;;  %1678 = vmatprep.mubr.bf16.mxu0 %v21867_v3  ;;  %v15408_v0 = vld [vmem:[%s15052_s29 + $0x20] sm:$0xff]  }
  0xb8   : > { %1811 = vmatprep.mubr.bf16.mxu1 %v21867_v3  ;;  %v21860_v1 = vshrl.u32 %v15408_v0, 16  ;;  %v21862_v2 = vshll.u32 %v15408_v0, 16 }
  0xba   : > { %v1482_v8 = vrot.slane %v21860_v1, 1  ;;  %v1485_v9 = vrot.slane %v21862_v2, 2  ;;  %v13825_v2 = vld [vmem:[%s21834_s1 + $0x260] ss:$16 sps:$4 sm:$0x3f]  }
  0xbc   : > { %v1486_v13 = vor.u32 %v1485_v9, %v1482_v8 }
  0xbe   : > { %11891 = vmatmul.mubr.msk.bf16.vlgmr.msra.gmra.mxu0 %vm737_vm2, %v1463_v40  ;;  %v1487_v16 = vsel %vm1448_vm3, %v1478_v63, %v1486_v13  ;;  %v1495_v22 = vsel %vm1448_vm3, %v1486_v13, %v1494_v17 }
  0xbf   : > { %11902 = vmatmul.mubr.msk.bf16.vlgmr.msra.gmra.mxu1 %vm737_vm2, %v1463_v40  ;;  %1688 = vmatprep.mubr.bf16.mxu0 %v21867_v3 }
  0xc0   : > { %1821 = vmatprep.mubr.bf16.mxu1 %v21867_v3  ;;  %2069 = vmatpush1.bf16.msra.mxu0 %v2049_v45  ;;  %v1509_v45 = vrot.slane %v21856_v38, 2 }
  0xc1   : > { %2202 = vmatpush1.bf16.msra.mxu1 %v2055_v46  ;;  %2070 = vmatprep.subr.bf16.mxu0 %v13805_v43  ;;  %v1503_v43 = vsel %vm1448_vm3, %v1494_v17, %v1502_v32 }
  0xc2   : > { %2203 = vmatprep.subr.bf16.mxu1 %v13808_v44  ;;  %v1506_v44 = vrot.slane %v21852_v34, 1 }
  0xc4   : > { %2071 = vmatpush1.bf16.msra.mxu0 %v13803_v47 }
  0xc5   : > { %2204 = vmatpush1.bf16.msra.mxu1 %v13806_v52  ;;  %2072 = vmatprep.subr.bf16.mxu0 %v13811_v53  ;;  %v1510_v53 = vor.u32 %v1509_v45, %v1506_v44 }
  0xc6   : > { %11892 = vmatmul.mubr.msk.bf16.gmra.mxu0 %vm737_vm2, %v1471_v56  ;;  %2205 = vmatprep.subr.bf16.mxu1 %v13814_v54  ;;  %v15495_v54 = vld [vmem:[%s15052_s29 + $0x40] sm:$0xff]  }
  0xc7   : > { %11903 = vmatmul.mubr.msk.bf16.gmra.mxu1 %vm737_vm2, %v1471_v56  ;;  %1698 = vmatprep.mubr.bf16.mxu0 %v21867_v3  ;;  %v21854_v56 = vshll.u32 %v15495_v54, 16 }
  0xc8   : > { %1831 = vmatprep.mubr.bf16.mxu1 %v21867_v3  ;;  %2073 = vmatpush1.bf16.msra.mxu0 %v13809_v55  ;;  %v21851_v55 = vshrl.u32 %v15495_v54, 16 }
  0xc9   : > { %2206 = vmatpush1.bf16.msra.mxu1 %v13812_v59  ;;  %2074 = vmatprep.subr.bf16.mxu0 %v13817_v60  ;;  %v1517_v63 = vrot.slane %v21854_v56, 2 }
  0xca   : > { %2207 = vmatprep.subr.bf16.mxu1 %v13820_v61  ;;  %v1511_v61 = vsel %vm1448_vm3, %v1502_v32, %v1510_v53 }
  0xcc   : > { %2075 = vmatpush1.bf16.msra.mxu0 %v13815_v62  ;;  %v1514_v62 = vrot.slane %v21851_v55, 1 }
  0xcd   : > { %2208 = vmatpush1.bf16.msra.mxu1 %v13818_v4  ;;  %11982 = vmatprep.subr.msk.bf16.mxu0 %vm21951_vm0, %v13821_v5 }
  0xce   : > { %11893 = vmatmul.mubr.msk.bf16.gmra.mxu0 %vm737_vm2, %v1479_v7  ;;  %11993 = vmatprep.subr.msk.bf16.mxu1 %vm21951_vm0, %v13823_v6  ;;  %v1518_v13 = vor.u32 %v1517_v63, %v1514_v62 }
  0xcf   : > { %11904 = vmatmul.mubr.msk.bf16.gmra.mxu1 %vm737_vm2, %v1479_v7  ;;  %1708 = vmatprep.mubr.bf16.mxu0 %v21867_v3  ;;  %v15521_v7 = vld [vmem:[%s15052_s29 + $0x48] sm:$0xff]  }
  0xd0   : > { %1841 = vmatprep.mubr.bf16.mxu1 %v21867_v3  ;;  %v21850_v8 = vshrl.u32 %v15521_v7, 16  ;;  %v21853_v14 = vshll.u32 %v15521_v7, 16  ;;  %v1519_v29 = vsel %vm1448_vm3, %v1510_v53, %v1518_v13 }
  0xd2   : > { %v1525_v32 = vrot.slane %v21853_v14, 2 }
  0xd6   : > { %11894 = vmatmul.mubr.msk.bf16.gmra.mxu0 %vm737_vm2, %v1487_v16 }
  0xd7   : > { %11905 = vmatmul.mubr.msk.bf16.gmra.mxu1 %vm737_vm2, %v1487_v16  ;;  %1718 = vmatprep.mubr.bf16.mxu0 %v21867_v3 }
  0xd8   : > { %1851 = vmatprep.mubr.bf16.mxu1 %v21867_v3 }
  0xde   : > { %v15457_v30 = vpop.f32.mrf.mxu0  ;;  %11895 = vmatmul.mubr.msk.bf16.gmra.mxu0 %vm737_vm2, %v1495_v22 }
  0xdf   : > { %v15460_v31 = vpop.f32.mrf.mxu1  ;;  %11906 = vmatmul.mubr.msk.bf16.gmra.mxu1 %vm737_vm2, %v1495_v22  ;;  %1728 = vmatprep.mubr.bf16.mxu0 %v21867_v3  ;;  %v1522_v22 = vrot.slane %v21850_v8, 1 }
  0xe0   : > { %v15469_v39 = vpop.f32.mrf.mxu0  ;;  %1861 = vmatprep.mubr.bf16.mxu1 %v21867_v3 }
  0xe1   : > { %v15472_v40 = vpop.f32.mrf.mxu1  ;;  %v1526_v62 = vor.u32 %v1525_v32, %v1522_v22 }
  0xe2   : > { %v15474_v41 = vpop.f32.mrf.mxu0 }
  0xe3   : > { %v15476_v42 = vpop.f32.mrf.mxu1  ;;  %v1527_v34 = vsel %vm1448_vm3, %v1518_v13, %v1526_v62 }
  0xe4   : > { %v15483_v46 = vpop.f32.mrf.mxu0 }
  0xe5   : > { %v15485_v47 = vpop.f32.mrf.mxu1 }
  0xe6   : > { %v15487_v48 = vpop.f32.mrf.mxu0  ;;  %11896 = vmatmul.mubr.msk.bf16.gmra.mxu0 %vm737_vm2, %v1503_v43 }
  0xe7   : > { %v15490_v52 = vpop.f32.mrf.mxu1  ;;  %11907 = vmatmul.mubr.msk.bf16.gmra.mxu1 %vm737_vm2, %v1503_v43  ;;  %1738 = vmatprep.mubr.bf16.mxu0 %v21867_v3 }
  0xe8   : > { %v15499_v57 = vpop.f32.mrf.mxu0  ;;  %1871 = vmatprep.mubr.bf16.mxu1 %v21867_v3 }
  0xe9   : > { %v15502_v58 = vpop.f32.mrf.mxu1 }
  0xea   : > { %v15504_v59 = vpop.f32.mrf.mxu0 }
  0xeb   : > { %v15506_v60 = vpop.f32.mrf.mxu1 }
  0xec   : > { %v15513_v4 = vpop.f32.mrf.mxu0 }
  0xed   : > { %v15515_v5 = vpop.f32.mrf.mxu1 }
  0xee   : > { %v15517_v6 = vpop.f32.mrf.mxu0  ;;  %11897 = vmatmul.mubr.msk.bf16.gmra.mxu0 %vm737_vm2, %v1511_v61 }
  0xef   : > { %v15524_v9 = vpop.f32.mrf.mxu1  ;;  %11908 = vmatmul.mubr.msk.bf16.gmra.mxu1 %vm737_vm2, %v1511_v61  ;;  %1748 = vmatprep.mubr.bf16.mxu0 %v21867_v3 }
  0xf0   : > { %v15529_v15 = vpop.f32.mrf.mxu0  ;;  %1881 = vmatprep.mubr.bf16.mxu1 %v21867_v3 }
  0xf1   : > { %v15532_v16 = vpop.f32.mrf.mxu1 }
  0xf2   : > { %v15534_v17 = vpop.f32.mrf.mxu0 }
  0xf3   : > { %v15538_v24 = vpop.f32.mrf.mxu1 }
  0xf4   : > { %v15543_v43 = vpop.f32.mrf.mxu0 }
  0xf5   : > { %21964 = vst [vmem:[#allocation2_spill] sm:$0xff] %v15543_v43  ;;  %v15545_v44 = vpop.f32.mrf.mxu1 }
  0xf6   : > { %21965 = vst [vmem:[#allocation3_spill] sm:$0xff] %v15545_v44  ;;  %v15547_v45 = vpop.f32.mrf.mxu0  ;;  %11898 = vmatmul.mubr.msk.bf16.gmra.mxu0 %vm737_vm2, %v1519_v29 }
  0xf7   : > { %21966 = vst [vmem:[#allocation4_spill] sm:$0xff] %v15547_v45  ;;  %v15550_v61 = vpop.f32.mrf.mxu1  ;;  %11909 = vmatmul.mubr.msk.bf16.gmra.mxu1 %vm737_vm2, %v1519_v29  ;;  %1758 = vmatprep.mubr.bf16.mxu0 %v21867_v3 }
  0xf8   : > { %21967 = vst [vmem:[#allocation5_spill] sm:$0xff] %v15550_v61  ;;  %v15554_v63 = vpop.f32.mrf.mxu0  ;;  %1891 = vmatprep.mubr.bf16.mxu1 %v21867_v3 }
  0xf9   : > { %21968 = vst [vmem:[#allocation6_spill] sm:$0xff] %v15554_v63  ;;  %v15557_v53 = vpop.f32.mrf.mxu1 }
  0xfa   : > { %21969 = vst [vmem:[#allocation7_spill] sm:$0xff] %v15557_v53  ;;  %v15559_v8 = vpop.f32.mrf.mxu0 }
  0xfb   : > { %21970 = vst [vmem:[#allocation8_spill] sm:$0xff] %v15559_v8  ;;  %v15561_v55 = vpop.f32.mrf.mxu1 }
  0xfc   : > { %21971 = vst [vmem:[#allocation9_spill] sm:$0xff] %v15561_v55  ;;  %v15564_v14 = vpop.f32.mrf.mxu0 }
  0xfd   : > { %21972 = vst [vmem:[#allocation10_spill] sm:$0xff] %v15564_v14  ;;  %v15566_v56 = vpop.f32.mrf.mxu1 }
  0xfe   : > { %21973 = vst [vmem:[#allocation11_spill] sm:$0xff] %v15566_v56  ;;  %v15568_v29 = vpop.f32.mrf.mxu0  ;;  %11899 = vmatmul.mubr.msk.bf16.gmra.mxu0 %vm737_vm2, %v1527_v34  ;;  %v15830_v56 = vld [vmem:[%s15052_s29 + $0x28] sm:$0xff]  }
  0xff   : > { %21974 = vst [vmem:[#allocation12_spill] sm:$0xff] %v15568_v29  ;;  %v15571_v22 = vpop.f32.mrf.mxu1  ;;  %11910 = vmatmul.mubr.msk.bf16.gmra.mxu1 %vm737_vm2, %v1527_v34  ;;  %1768 = vmatprep.mubr.bf16.mxu0 %v21867_v3 }
 0x100   : > { %21975 = vst [vmem:[#allocation13_spill] sm:$0xff] %v15571_v22  ;;  %v15575_v32 = vpop.f32.mrf.mxu0  ;;  %1901 = vmatprep.mubr.bf16.mxu1 %v21867_v3  ;;  %v15826_v22 = vld [vmem:[%s15052_s29 + $0x20] sm:$0xff]  }
 0x101   : > { %21976 = vst [vmem:[#allocation14_spill] sm:$0xff] %v15575_v32  ;;  %v15578_v20 = vpop.f32.mrf.mxu1 }
 0x102   : > { %21977 = vst [vmem:[#allocation15_spill] sm:$0xff] %v15578_v20  ;;  %v15580_v13 = vpop.f32.mrf.mxu0 }
 0x103   : > { %21978 = vst [vmem:[#allocation16_spill] sm:$0xff] %v15580_v13  ;;  %v15582_v38 = vpop.f32.mrf.mxu1  ;;  %v15819_v13 = vld [vmem:[%s15052_s29 + $0x18] sm:$0xff]  }
 0x104   : > { %21979 = vst [vmem:[#allocation17_spill] sm:$0xff] %v15582_v38  ;;  %v15586_v11 = vpop.f32.mrf.mxu0 }
 0x105   : > { %21980 = vst [vmem:[#allocation18_spill] sm:$0xff] %v15586_v11  ;;  %v15588_v12 = vpop.f32.mrf.mxu1 }
 0x106   : > { %21981 = vst [vmem:[#allocation19_spill] sm:$0xff] %v15588_v12  ;;  %v15590_v34 = vpop.f32.mrf.mxu0  ;;  %11900 = vmatmul.mubr.msk.bf16.gmra.mxu0 %vm737_vm2, %v1526_v62 }
 0x107   : > { %21982 = vst [vmem:[#allocation20_spill] sm:$0xff] %v15590_v34  ;;  %v15593_v1 = vpop.f32.mrf.mxu1  ;;  %11911 = vmatmul.mubr.msk.bf16.gmra.mxu1 %vm737_vm2, %v1526_v62  ;;  %2092 = vmatprep.mubr.bf16.mxu0 %v21867_v3  ;;  %v13826_v62 = vld [vmem:[%s21834_s1 + $0x268] ss:$16 sps:$4 sm:$0x3f]   ;;  %v13835_v34 = vld [vmem:[%s21834_s1 + $0x224] ss:$16 sps:$4 sm:$0xff]  }
 0x108   : > { %21983 = vst [vmem:[#allocation21_spill] sm:$0xff] %v15593_v1  ;;  %v15604_v36 = vpop.f32.mrf.mxu0  ;;  %2225 = vmatprep.mubr.bf16.mxu1 %v21867_v3  ;;  %v2476_v50 = vsel %vm21951_vm0, %v13826_v62, 0  ;;  %v13830_v62 = vld [vmem:[%s21834_s1 + $0x248] ss:$16 sps:$4 sm:$0xff]  }
 0x109   : > { %21984 = vst [vmem:[#allocation22_spill] sm:$0xff] %v15604_v36  ;;  %v15610_v51 = vpop.f32.mrf.mxu1 }
 0x10a   : > { %21985 = vst [vmem:[#allocation23_spill] sm:$0xff] %v15610_v51  ;;  %v15612_v37 = vpop.f32.mrf.mxu0  ;;  %v2470_v51 = vsel %vm21951_vm0, %v13825_v2, 0  ;;  %v21994_v2 = vshll.u32 %v15339_v35, 16 }
 0x10b   : > { %21986 = vst [vmem:[#allocation24_spill] sm:$0xff] %v15612_v37  ;;  %v15614_v19 = vpop.f32.mrf.mxu1 }
 0x10c   : > { %21987 = vst [vmem:[#allocation25_spill] sm:$0xff] %v15614_v19  ;;  %v15620_v21 = vpop.f32.mrf.mxu0  ;;  %v13827_v19 = vld [vmem:[%s21834_s1 + $0x240] ss:$16 sps:$4 sm:$0xff]  }
 0x10d   : > { %21988 = vst [vmem:[#allocation26_spill] sm:$0xff] %v15620_v21  ;;  %v15625_v3 = vpop.f32.mrf.mxu1  ;;  %v21992_v21 = vmov 0  }
 0x10e   : > { %21989 = vst [vmem:[#allocation27_spill] sm:$0xff] %v15625_v3  ;;  %v15628_v36 = vpop.f32.mrf.mxu0  ;;  %11929 = vmatmul.mubr.msk.bf16.vlgmr.msra.gmra.mxu0 %vm737_vm2, %v1916_v23  ;;  %v21993_v3 = vshrl.u32 %v15320_v26, 16 }
 0x10f   : > { %21990 = vst [vmem:[#allocation28_spill] sm:$0xff] %v15628_v36  ;;  %v15635_v37 = vpop.f32.mrf.mxu1  ;;  %11940 = vmatmul.mubr.msk.bf16.vlgmr.msra.gmra.mxu1 %vm737_vm2, %v1916_v23  ;;  %2102 = vmatprep.mubr.bf16.mxu0 %v21992_v21  ;;  %v1918_v36 = vrot.slane %v21994_v2, 1  ;;  %v13833_v23 = vld [vmem:[%s21834_s1 + $0x220] ss:$16 sps:$4 sm:$0xff]  }
 0x110   : > { %21991 = vst [vmem:[#allocation29_spill] sm:$0xff] %v15635_v37  ;;  %v1917_v1 = vor.u32 %v1915_v25, %v21993_v3  ;;  %v15649_v12 = vpop.f32.mrf.mxu0  ;;  %2235 = vmatprep.mubr.bf16.mxu1 %v21992_v21  ;;  %2490 = vmatpush1.bf16.msra.mxu0 %v2470_v51  ;;  %v13838_v3 = vld [vmem:[%s21834_s1 + $0x22c] ss:$16 sps:$4 sm:$0xff]   ;;  %v13836_v51 = vld [vmem:[%s21834_s1 + $0x228] ss:$16 sps:$4 sm:$0xff]  }
 0x111   : > { %21995 = vst [vmem:[#allocation30_spill] sm:$0xff] %v15649_v12  ;;  %v15655_v26 = vpop.f32.mrf.mxu1  ;;  %2623 = vmatpush1.bf16.msra.mxu1 %v2476_v50  ;;  %2491 = vmatprep.subr.bf16.mxu0 %v13829_v28  ;;  %v13841_v50 = vld [vmem:[%s21834_s1 + $0x204] ss:$16 sps:$4 sm:$0xff]  }
 0x112   : > { %21996 = vst [vmem:[#allocation31_spill] sm:$0xff] %v15655_v26  ;;  %v15657_v25 = vpop.f32.mrf.mxu0  ;;  %2624 = vmatprep.subr.bf16.mxu1 %v13832_v27  ;;  %v1919_v12 = vsel %vm21950_vm4, %v1917_v1, %v1918_v36  ;;  %v13844_v27 = vld [vmem:[%s21834_s1 + $0x20c] ss:$16 sps:$4 sm:$0xff]  }
 0x113   : > { %21997 = vst [vmem:[#allocation32_spill] sm:$0xff] %v15657_v25  ;;  %v15662_v2 = vpop.f32.mrf.mxu1 }
 0x114   : > { %21998 = vst [vmem:[#allocation33_spill] sm:$0xff] %v15662_v2  ;;  %v15671_v28 = vpop.f32.mrf.mxu0  ;;  %2492 = vmatpush1.bf16.msra.mxu0 %v13827_v19  ;;  %v22002_v2 = vshll.u32 %v15370_v49, 16  ;;  %v13839_v19 = vld [vmem:[%s21834_s1 + $0x200] ss:$16 sps:$4 sm:$0xff]  }
 0x115   : > { %21999 = vst [vmem:[#allocation34_spill] sm:$0xff] %v15671_v28  ;;  %v15676_v25 = vpop.f32.mrf.mxu1  ;;  %2625 = vmatpush1.bf16.msra.mxu1 %v13830_v62  ;;  %2493 = vmatprep.subr.bf16.mxu0 %v13835_v34  ;;  %v22004_v34 = vshrl.u32 %v15339_v35, 16 }
 0x116   : > { %22000 = vst [vmem:[#allocation35_spill] sm:$0xff] %v15676_v25  ;;  %v15678_v1 = vpop.f32.mrf.mxu0  ;;  %11930 = vmatmul.mubr.msk.bf16.gmra.mxu0 %vm737_vm2, %v1919_v12  ;;  %v1921_v26 = vrot.slane %v22002_v2, 1  ;;  %2626 = vmatprep.subr.bf16.mxu1 %v13838_v3 }
 0x117   : > { %22001 = vst [vmem:[#allocation36_spill] sm:$0xff] %v15678_v1  ;;  %v15686_v28 = vpop.f32.mrf.mxu1  ;;  %11941 = vmatmul.mubr.msk.bf16.gmra.mxu1 %vm737_vm2, %v1919_v12  ;;  %2112 = vmatprep.mubr.bf16.mxu0 %v21992_v21  ;;  %v1920_v62 = vor.u32 %v1918_v36, %v22004_v34  ;;  %v13842_v1 = vld [vmem:[%s21834_s1 + $0x208] ss:$16 sps:$4 sm:$0xff]  }
 0x118   : > { %22003 = vst [vmem:[#allocation37_spill] sm:$0xff] %v15686_v28  ;;  %v15695_v25 = vpop.f32.mrf.mxu0  ;;  %2245 = vmatprep.mubr.bf16.mxu1 %v21992_v21  ;;  %2494 = vmatpush1.bf16.msra.mxu0 %v13833_v23  ;;  %v22012_v23 = vshll.u32 %v15408_v0, 16  ;;  %v22036_v28 = vshll.u32 %v15521_v7, 16 }
 0x119   : > { %22005 = vst [vmem:[#allocation38_spill] sm:$0xff] %v15695_v25  ;;  %v15698_v3 = vpop.f32.mrf.mxu1  ;;  %2627 = vmatpush1.bf16.msra.mxu1 %v13836_v51  ;;  %2495 = vmatprep.subr.bf16.mxu0 %v13841_v50  ;;  %v1922_v35 = vsel %vm21950_vm4, %v1920_v62, %v1921_v26 }
 0x11a   : > { %22006 = vst [vmem:[#allocation39_spill] sm:$0xff] %v15698_v3  ;;  %v15700_v2 = vpop.f32.mrf.mxu0  ;;  %2628 = vmatprep.subr.bf16.mxu1 %v13844_v27  ;;  %v1924_v51 = vrot.slane %v22012_v23, 1  ;;  %v22014_v27 = vshrl.u32 %v15370_v49, 16  ;;  %v1939_v37 = vrot.slane %v22036_v28, 1 }
 0x11b   : > { %22007 = vst [vmem:[#allocation40_spill] sm:$0xff] %v15700_v2  ;;  %v15702_v12 = vpop.f32.mrf.mxu1  ;;  %v22035_v2 = vshll.u32 %v15495_v54, 16 }
 0x11c   : > { %22008 = vst [vmem:[#allocation41_spill] sm:$0xff] %v15702_v12  ;;  %v15705_v36 = vpop.f32.mrf.mxu0  ;;  %2496 = vmatpush1.bf16.msra.mxu0 %v13839_v19  ;;  %v1923_v62 = vor.u32 %v1921_v26, %v22014_v27  ;;  %v22023_v26 = vshrl.u32 %v15408_v0, 16 }
 0x11d   : > { %22009 = vst [vmem:[#allocation42_spill] sm:$0xff] %v15705_v36  ;;  %v15707_v34 = vpop.f32.mrf.mxu1  ;;  %2629 = vmatpush1.bf16.msra.mxu1 %v13842_v1  ;;  %v1936_v3 = vrot.slane %v22035_v2, 1 }
 0x11e   : > { %22010 = vst [vmem:[#allocation43_spill] sm:$0xff] %v15707_v34  ;;  %v15709_v25 = vpop.f32.mrf.mxu0  ;;  %11931 = vmatmul.mubr.msk.bf16.gmra.mxu0 %vm737_vm2, %v1922_v35  ;;  %v1925_v23 = vsel %vm21950_vm4, %v1923_v62, %v1924_v51  ;;  %v1926_v27 = vor.u32 %v1924_v51, %v22023_v26  ;;  %v22031_v51 = vshrl.u32 %v15428_v10, 16 }
 0x11f   : > { %22011 = vst [vmem:[#allocation44_spill] sm:$0xff] %v15709_v25  ;;  %v15714_v50 = vpop.f32.mrf.mxu1  ;;  %11942 = vmatmul.mubr.msk.bf16.gmra.mxu1 %vm737_vm2, %v1922_v35  ;;  %2122 = vmatprep.mubr.bf16.mxu0 %v21992_v21 }
 0x120   : > { %22013 = vst [vmem:[#allocation45_spill] sm:$0xff] %v15714_v50  ;;  %v15720_v19 = vpop.f32.mrf.mxu0  ;;  %2255 = vmatprep.mubr.bf16.mxu1 %v21992_v21 }
 0x121   : > { %22015 = vst [vmem:[#allocation46_spill] sm:$0xff] %v15720_v19  ;;  %v15723_v1 = vpop.f32.mrf.mxu1 }
 0x122   : > { %22016 = vst [vmem:[#allocation47_spill] sm:$0xff] %v15723_v1  ;;  %v15725_v25 = vpop.f32.mrf.mxu0 }
 0x123   : > { %22017 = vst [vmem:[#allocation48_spill] sm:$0xff] %v15725_v25  ;;  %v15727_v34 = vpop.f32.mrf.mxu1 }
 0x124   : > { %22018 = vst [vmem:[#allocation49_spill] sm:$0xff] %v15727_v34  ;;  %v15730_v50 = vpop.f32.mrf.mxu0  ;;  %v22024_v34 = vshll.u32 %v15428_v10, 16 }
 0x125   : > { %22019 = vst [vmem:[#allocation50_spill] sm:$0xff] %v15730_v50  ;;  %v15732_v35 = vpop.f32.mrf.mxu1 }
 0x126   : > { %22020 = vst [vmem:[#allocation51_spill] sm:$0xff] %v15732_v35  ;;  %v15734_v36 = vpop.f32.mrf.mxu0  ;;  %11932 = vmatmul.mubr.msk.bf16.gmra.mxu0 %vm737_vm2, %v1925_v23  ;;  %v1927_v62 = vrot.slane %v22024_v34, 1 }
 0x127   : > { %22021 = vst [vmem:[#allocation52_spill] sm:$0xff] %v15734_v36  ;;  %v15737_v49 = vpop.f32.mrf.mxu1  ;;  %11943 = vmatmul.mubr.msk.bf16.gmra.mxu1 %vm737_vm2, %v1925_v23  ;;  %2132 = vmatprep.mubr.bf16.mxu0 %v21992_v21 }
 0x128   : > { %22022 = vst [vmem:[#allocation53_spill] sm:$0xff] %v15737_v49  ;;  %v15745_v25 = vpop.f32.mrf.mxu0  ;;  %2265 = vmatprep.mubr.bf16.mxu1 %v21992_v21  ;;  %v1928_v23 = vsel %vm21950_vm4, %v1926_v27, %v1927_v62  ;;  %v1929_v26 = vor.u32 %v1927_v62, %v22031_v51 }
 0x129   : > { %22025 = vst [vmem:[#allocation54_spill] sm:$0xff] %v15745_v25  ;;  %v15748_v35 = vpop.f32.mrf.mxu1 }
 0x12a   : > { %22026 = vst [vmem:[#allocation55_spill] sm:$0xff] %v15748_v35  ;;  %v15750_v36 = vpop.f32.mrf.mxu0 }
 0x12b   : > { %22027 = vst [vmem:[#allocation56_spill] sm:$0xff] %v15750_v36  ;;  %v15752_v50 = vpop.f32.mrf.mxu1 }
 0x12c   : > { %22028 = vst [vmem:[#allocation57_spill] sm:$0xff] %v15752_v50  ;;  %v15755_v49 = vpop.f32.mrf.mxu0  ;;  %v22032_v50 = vshll.u32 %v15447_v18, 16 }
 0x12d   : > { %22029 = vst [vmem:[#allocation58_spill] sm:$0xff] %v15755_v49  ;;  %v15757_v1 = vpop.f32.mrf.mxu1 }
 0x12e   : > { %22030 = vst [vmem:[#allocation59_spill] sm:$0xff] %v15757_v1  ;;  %v15759_v0 = vpop.f32.mrf.mxu0  ;;  %11933 = vmatmul.mubr.msk.bf16.gmra.mxu0 %vm737_vm2, %v1928_v23  ;;  %v1930_v27 = vrot.slane %v22032_v50, 1  ;;  %v22033_v50 = vshll.u32 %v15465_v33, 16 }
 0x12f   : > { %v15762_v34 = vpop.f32.mrf.mxu1  ;;  %11944 = vmatmul.mubr.msk.bf16.gmra.mxu1 %vm737_vm2, %v1928_v23  ;;  %2142 = vmatprep.mubr.bf16.mxu0 %v21992_v21 }
 0x130   : > { %v15770_v36 = vpop.f32.mrf.mxu0  ;;  %2275 = vmatprep.mubr.bf16.mxu1 %v21992_v21  ;;  %v1931_v23 = vsel %vm21950_vm4, %v1929_v26, %v1930_v27  ;;  %v1933_v51 = vrot.slane %v22033_v50, 1  ;;  %v22034_v26 = vshrl.u32 %v15447_v18, 16  ;;  %v15803_v50 = vld [vmem:[%s15052_s29] sm:$0xff]   ;;  %v15809_v18 = vld [vmem:[%s15052_s29 + $0x8] sm:$0xff]  }
 0x131   : > { %v15773_v1 = vpop.f32.mrf.mxu1 }
 0x132   : > { %v15775_v49 = vpop.f32.mrf.mxu0  ;;  %v1932_v12 = vor.u32 %v1930_v27, %v22034_v26  ;;  %v15815_v26 = vld [vmem:[%s15052_s29 + $0x10] sm:$0xff]  }
 0x133   : > { %v15777_v35 = vpop.f32.mrf.mxu1 }
 0x134   : > { %v15780_v25 = vpop.f32.mrf.mxu0 }
 0x135   : > { %v15782_v10 = vpop.f32.mrf.mxu1 }
 0x136   : > { %v15784_v62 = vpop.f32.mrf.mxu0  ;;  %11934 = vmatmul.mubr.msk.bf16.gmra.mxu0 %vm737_vm2, %v1931_v23 }
 0x137   : > { %v15789_v19 = vpop.f32.mrf.mxu1  ;;  %11945 = vmatmul.mubr.msk.bf16.gmra.mxu1 %vm737_vm2, %v1931_v23  ;;  %2152 = vmatprep.mubr.bf16.mxu0 %v21992_v21  ;;  %v1934_v23 = vsel %vm21950_vm4, %v1932_v12, %v1933_v51  ;;  %v22037_v12 = vshrl.u32 %v15465_v33, 16 }
 0x138   : > { %v15799_v11 = vpop.f32.mrf.mxu0  ;;  %2285 = vmatprep.mubr.bf16.mxu1 %v21992_v21 }
 0x139   : > { %v15806_v38 = vpop.f32.mrf.mxu1  ;;  %v1935_v29 = vor.u32 %v1933_v51, %v22037_v12  ;;  %v22043_v51 = vshrl.u32 %v15495_v54, 16 }
 0x13a   : > { %v15812_v2 = vpop.f32.mrf.mxu0 }
 0x13b   : > { %v15822_v32 = vpop.f32.mrf.mxu1  ;;  %v1937_v61 = vsel %vm21950_vm4, %v1935_v29, %v1936_v3  ;;  %v1938_v12 = vor.u32 %v1936_v3, %v22043_v51 }
 0x13c   : > { %v15833_v14 = vpop.f32.mrf.mxu0 }
 0x13d   : > { %v15835_v55 = vpop.f32.mrf.mxu1 }
 0x13e   : > { %v15837_v28 = vpop.f32.mrf.mxu0  ;;  %11935 = vmatmul.mubr.msk.bf16.gmra.mxu0 %vm737_vm2, %v1934_v23 }
 0x13f   : > { %v15840_v20 = vpop.f32.mrf.mxu1  ;;  %11946 = vmatmul.mubr.msk.bf16.gmra.mxu1 %vm737_vm2, %v1934_v23  ;;  %2162 = vmatprep.mubr.bf16.mxu0 %v21992_v21 }
 0x140   : > { %v15846_v8 = vpop.f32.mrf.mxu0  ;;  %2295 = vmatprep.mubr.bf16.mxu1 %v21992_v21 }
 0x141   : > { %v15849_v27 = vpop.f32.mrf.mxu1 }
 0x142   : > { %v15851_v53 = vpop.f32.mrf.mxu0 }
 0x143   : > { %v15853_v63 = vpop.f32.mrf.mxu1 }
 0x144   : > { %22038 = vst [vmem:[#allocation60_spill] sm:$0xff] %v15853_v63  ;;  %v15856_v45 = vpop.f32.mrf.mxu0 }
 0x145   : > { %22039 = vst [vmem:[#allocation61_spill] sm:$0xff] %v15856_v45  ;;  %v15858_v23 = vpop.f32.mrf.mxu1  ;;  %v1940_v45 = vsel %vm21950_vm4, %v1938_v12, %v1939_v37 }
 0x146   : > { %22040 = vst [vmem:[#allocation62_spill] sm:$0xff] %v15858_v23  ;;  %v15860_v44 = vpop.f32.mrf.mxu0  ;;  %11936 = vmatmul.mubr.msk.bf16.gmra.mxu0 %vm737_vm2, %v1937_v61 }
 0x147   : > { %22041 = vst [vmem:[#allocation63_spill] sm:$0xff] %v15860_v44  ;;  %v15863_v33 = vpop.f32.mrf.mxu1  ;;  %11947 = vmatmul.mubr.msk.bf16.gmra.mxu1 %vm737_vm2, %v1937_v61  ;;  %2172 = vmatprep.mubr.bf16.mxu0 %v21992_v21 }
 0x148   : > { %22042 = vst [vmem:[#allocation64_spill] sm:$0xff] %v15863_v33  ;;  %v15869_v43 = vpop.f32.mrf.mxu0  ;;  %2305 = vmatprep.mubr.bf16.mxu1 %v21992_v21 }
 0x149   : > { %v15872_v29 = vpop.f32.mrf.mxu1 }
 0x14a   : > { %v15874_v23 = vpop.f32.mrf.mxu0 }
 0x14b   : > { %v15876_v44 = vpop.f32.mrf.mxu1 }
 0x14c   : > { %22044 = vst [vmem:[#allocation65_spill] sm:$0xff] %v15876_v44  ;;  %v15879_v33 = vpop.f32.mrf.mxu0 }
 0x14d   : > { %22045 = vst [vmem:[#allocation66_spill] sm:$0xff] %v15879_v33  ;;  %v15881_v61 = vpop.f32.mrf.mxu1 }
 0x14e   : > { %22046 = vst [vmem:[#allocation67_spill] sm:$0xff] %v15881_v61  ;;  %v15883_v63 = vpop.f32.mrf.mxu0  ;;  %11937 = vmatmul.mubr.msk.bf16.gmra.mxu0 %vm737_vm2, %v1940_v45  ;;  %v22051_v61 = vshrl.u32 %v15521_v7, 16 }
 0x14f   : > { %22047 = vst [vmem:[#allocation68_spill] sm:$0xff] %v15883_v63  ;;  %v15886_v54 = vpop.f32.mrf.mxu1  ;;  %11948 = vmatmul.mubr.msk.bf16.gmra.mxu1 %vm737_vm2, %v1940_v45  ;;  %2182 = vmatprep.mubr.bf16.mxu0 %v21992_v21 }
 0x150   : > { %22048 = vst [vmem:[#allocation69_spill] sm:$0xff] %v15886_v54  ;;  %v15890_v3 = vpop.f32.mrf.mxu0  ;;  %2315 = vmatprep.mubr.bf16.mxu1 %v21992_v21  ;;  %v1941_v33 = vor.u32 %v1939_v37, %v22051_v61 }
 0x151   : > { %22049 = vst [vmem:[#allocation70_spill] sm:$0xff] %v15890_v3  ;;  %v15893_v51 = vpop.f32.mrf.mxu1 }
 0x152   : > { %v15895_v12 = vpop.f32.mrf.mxu0 }
 0x153   : > { %22050 = vst [vmem:[#allocation71_spill] sm:$0xff] %v15895_v12  ;;  %v15899_v63 = vpop.f32.mrf.mxu1 }
 0x154   : > { %22052 = vst [vmem:[#allocation72_spill] sm:$0xff] %v15899_v63  ;;  %v15901_v44 = vpop.f32.mrf.mxu0 }
 0x155   : > { %22053 = vst [vmem:[#allocation73_spill] sm:$0xff] %v15901_v44  ;;  %v15903_v54 = vpop.f32.mrf.mxu1 }
 0x156   : > { %22054 = vst [vmem:[#allocation74_spill] sm:$0xff] %v15903_v54  ;;  %v15905_v45 = vpop.f32.mrf.mxu0  ;;  %11938 = vmatmul.mubr.msk.bf16.gmra.mxu0 %vm737_vm2, %v1941_v33  ;;  %v22061_v54 = vrot.slane %v15803_v50, 2 }
 0x157   : > { %22055 = vst [vmem:[#allocation75_spill] sm:$0xff] %v15905_v45  ;;  %v15908_v3 = vpop.f32.mrf.mxu1  ;;  %11949 = vmatmul.mubr.msk.bf16.gmra.mxu1 %vm737_vm2, %v1941_v33  ;;  %2513 = vmatprep.mubr.bf16.mxu0 %v21992_v21  ;;  %v22060_v45 = vrot.slane %v15809_v18, 2 }
 0x158   : > { %22056 = vst [vmem:[#allocation76_spill] sm:$0xff] %v15908_v3  ;;  %v15912_v12 = vpop.f32.mrf.mxu0  ;;  %2646 = vmatprep.mubr.bf16.mxu1 %v21992_v21 }
 0x159   : > { %22057 = vst [vmem:[#allocation77_spill] sm:$0xff] %v15912_v12  ;;  %v15915_v37 = vpop.f32.mrf.mxu1  ;;  %v2346_v3 = vsel %vm21951_vm0, %v22061_v54, %v22060_v45 }
 0x15a   : > { %v15917_v7 = vpop.f32.mrf.mxu0 }
 0x15b   : > { %22058 = vst [vmem:[#allocation78_spill] sm:$0xff] %v15917_v7  ;;  %v15919_v61 = vpop.f32.mrf.mxu1 }
 0x15c   : > { %22059 = vst [vmem:[#allocation79_spill] sm:$0xff] %v15919_v61  ;;  %v15926_v44 = vpop.f32.mrf.mxu0 }
 0x15d   : > { %22062 = vst [vmem:[#allocation80_spill] sm:$0xff] %v15926_v44  ;;  %v15928_v33 = vpop.f32.mrf.mxu1 }
 0x15e   : > { %22063 = vst [vmem:[#allocation81_spill] sm:$0xff] %v15928_v33  ;;  %v15930_v63 = vpop.f32.mrf.mxu0  ;;  %11983 = vmatmul.mubr.msk.bf16.vlgmr.msra.gmra.mxu0 %vm737_vm2, %v2346_v3  ;;  %v22070_v33 = vrot.slane %v15809_v18, 2 }
 0x15f   : > { %22064 = vst [vmem:[#allocation82_spill] sm:$0xff] %v15930_v63  ;;  %v15933_v12 = vpop.f32.mrf.mxu1  ;;  %11994 = vmatmul.mubr.msk.bf16.vlgmr.msra.gmra.mxu1 %vm737_vm2, %v2346_v3  ;;  %2523 = vmatprep.mubr.bf16.mxu0 %v21992_v21  ;;  %v22069_v63 = vrot.slane %v15815_v26, 2 }
 0x160   : > { %22065 = vst [vmem:[#allocation83_spill] sm:$0xff] %v15933_v12  ;;  %v15937_v61 = vpop.f32.mrf.mxu0  ;;  %2656 = vmatprep.mubr.bf16.mxu1 %v21992_v21 }
 0x161   : > { %22066 = vst [vmem:[#allocation84_spill] sm:$0xff] %v15937_v61  ;;  %v15940_v50 = vpop.f32.mrf.mxu1  ;;  %v2348_v12 = vsel %vm21951_vm0, %v22070_v33, %v22069_v63 }
 0x162   : > { %v15942_v54 = vpop.f32.mrf.mxu0 }
 0x163   : > { %22067 = vst [vmem:[#allocation85_spill] sm:$0xff] %v15942_v54  ;;  %v15944_v45 = vpop.f32.mrf.mxu1 }
 0x164   : > { %22068 = vst [vmem:[#allocation86_spill] sm:$0xff] %v15944_v45  ;;  %v15951_v44 = vpop.f32.mrf.mxu0 }
 0x165   : > { %22071 = vst [vmem:[#allocation87_spill] sm:$0xff] %v15951_v44  ;;  %v15953_v3 = vpop.f32.mrf.mxu1 }
 0x166   : > { %22072 = vst [vmem:[#allocation88_spill] sm:$0xff] %v15953_v3  ;;  %v15955_v7 = vpop.f32.mrf.mxu0  ;;  %11984 = vmatmul.mubr.msk.bf16.gmra.mxu0 %vm737_vm2, %v2348_v12  ;;  %v22079_v3 = vrot.slane %v15815_v26, 2 }
 0x167   : > { %22073 = vst [vmem:[#allocation89_spill] sm:$0xff] %v15955_v7  ;;  %v15958_v61 = vpop.f32.mrf.mxu1  ;;  %11995 = vmatmul.mubr.msk.bf16.gmra.mxu1 %vm737_vm2, %v2348_v12  ;;  %2533 = vmatprep.mubr.bf16.mxu0 %v21992_v21  ;;  %v22078_v7 = vrot.slane %v15819_v13, 2 }
 0x168   : > { %22074 = vst [vmem:[#allocation90_spill] sm:$0xff] %v15958_v61  ;;  %v15962_v45 = vpop.f32.mrf.mxu0  ;;  %2666 = vmatprep.mubr.bf16.mxu1 %v21992_v21 }
 0x169   : > { %22075 = vst [vmem:[#allocation91_spill] sm:$0xff] %v15962_v45  ;;  %v15965_v18 = vpop.f32.mrf.mxu1  ;;  %v2350_v61 = vsel %vm21951_vm0, %v22079_v3, %v22078_v7 }
 0x16a   : > { %v15967_v63 = vpop.f32.mrf.mxu0 }
 0x16b   : > { %22076 = vst [vmem:[#allocation92_spill] sm:$0xff] %v15967_v63  ;;  %v15969_v33 = vpop.f32.mrf.mxu1 }
 0x16c   : > { %22077 = vst [vmem:[#allocation93_spill] sm:$0xff] %v15969_v33  ;;  %v15976_v44 = vpop.f32.mrf.mxu0 }
 0x16d   : > { %22080 = vst [vmem:[#allocation94_spill] sm:$0xff] %v15976_v44  ;;  %v15978_v12 = vpop.f32.mrf.mxu1 }
 0x16e   : > { %22081 = vst [vmem:[#allocation95_spill] sm:$0xff] %v15978_v12  ;;  %v15980_v54 = vpop.f32.mrf.mxu0  ;;  %11985 = vmatmul.mubr.msk.bf16.gmra.mxu0 %vm737_vm2, %v2350_v61  ;;  %v22088_v12 = vrot.slane %v15819_v13, 2 }
 0x16f   : > { %22082 = vst [vmem:[#allocation96_spill] sm:$0xff] %v15980_v54  ;;  %v15983_v45 = vpop.f32.mrf.mxu1  ;;  %11996 = vmatmul.mubr.msk.bf16.gmra.mxu1 %vm737_vm2, %v2350_v61  ;;  %2543 = vmatprep.mubr.bf16.mxu0 %v21992_v21  ;;  %v22087_v54 = vrot.slane %v15826_v22, 2 }
 0x170   : > { %22083 = vst [vmem:[#allocation97_spill] sm:$0xff] %v15983_v45  ;;  %v15987_v33 = vpop.f32.mrf.mxu0  ;;  %2676 = vmatprep.mubr.bf16.mxu1 %v21992_v21 }
 0x171   : > { %22084 = vst [vmem:[#allocation98_spill] sm:$0xff] %v15987_v33  ;;  %v15990_v26 = vpop.f32.mrf.mxu1  ;;  %v2352_v45 = vsel %vm21951_vm0, %v22088_v12, %v22087_v54 }
 0x172   : > { %v15992_v7 = vpop.f32.mrf.mxu0 }
 0x173   : > { %22085 = vst [vmem:[#allocation99_spill] sm:$0xff] %v15992_v7  ;;  %v15994_v3 = vpop.f32.mrf.mxu1 }
 0x174   : > { %22086 = vst [vmem:[#allocation100_spill] sm:$0xff] %v15994_v3  ;;  %v16001_v44 = vpop.f32.mrf.mxu0 }
 0x175   : > { %22089 = vst [vmem:[#allocation101_spill] sm:$0xff] %v16001_v44  ;;  %v16003_v61 = vpop.f32.mrf.mxu1 }
 0x176   : > { %22090 = vst [vmem:[#allocation102_spill] sm:$0xff] %v16003_v61  ;;  %v16005_v63 = vpop.f32.mrf.mxu0  ;;  %11986 = vmatmul.mubr.msk.bf16.gmra.mxu0 %vm737_vm2, %v2352_v45  ;;  %v22098_v61 = vrot.slane %v15826_v22, 2 }
 0x177   : > { %22091 = vst [vmem:[#allocation103_spill] sm:$0xff] %v16005_v63  ;;  %v16008_v33 = vpop.f32.mrf.mxu1  ;;  %11997 = vmatmul.mubr.msk.bf16.gmra.mxu1 %vm737_vm2, %v2352_v45  ;;  %2553 = vmatprep.mubr.bf16.mxu0 %v21992_v21  ;;  %v22097_v63 = vrot.slane %v15830_v56, 2 }
 0x178   : > { %22092 = vst [vmem:[#allocation104_spill] sm:$0xff] %v16008_v33  ;;  %v16012_v3 = vpop.f32.mrf.mxu0  ;;  %2686 = vmatprep.mubr.bf16.mxu1 %v21992_v21 }
 0x179   : > { %22093 = vst [vmem:[#allocation105_spill] sm:$0xff] %v16012_v3  ;;  %v16015_v13 = vpop.f32.mrf.mxu1  ;;  %v2354_v33 = vsel %vm21951_vm0, %v22098_v61, %v22097_v63 }
 0x17a   : > { %22094 = vst [vmem:[#allocation106_spill] sm:$0xff] %v16015_v13  ;;  %v16017_v54 = vpop.f32.mrf.mxu0 }
 0x17b   : > { %22095 = vst [vmem:[#allocation107_spill] sm:$0xff] %v16017_v54  ;;  %v16019_v12 = vpop.f32.mrf.mxu1 }
 0x17c   : > { %22096 = vst [vmem:[#allocation108_spill] sm:$0xff] %v16019_v12  ;;  %v16026_v44 = vpop.f32.mrf.mxu0  ;;  %v14889_v12 = vld [vmem:[%s15052_s29 + $0x30] sm:$0xff]  }
 0x17d   : > { %22099 = vst [vmem:[#allocation109_spill] sm:$0xff] %v16026_v44  ;;  %v16028_v45 = vpop.f32.mrf.mxu1  ;;  %v2355_v54 = vrot.slane %v14889_v12, 2 }
 0x17e   : > { %22100 = vst [vmem:[#allocation110_spill] sm:$0xff] %v16028_v45  ;;  %v16030_v7 = vpop.f32.mrf.mxu0  ;;  %11987 = vmatmul.mubr.msk.bf16.gmra.mxu0 %vm737_vm2, %v2354_v33  ;;  %v22107_v45 = vrot.slane %v15830_v56, 2 }
 0x17f   : > { %22101 = vst [vmem:[#allocation111_spill] sm:$0xff] %v16030_v7  ;;  %v16033_v3 = vpop.f32.mrf.mxu1  ;;  %11998 = vmatmul.mubr.msk.bf16.gmra.mxu1 %vm737_vm2, %v2354_v33  ;;  %2563 = vmatprep.mubr.bf16.mxu0 %v21992_v21 }
 0x180   : > { %22102 = vst [vmem:[#allocation112_spill] sm:$0xff] %v16033_v3  ;;  %v16038_v22 = vpop.f32.mrf.mxu0  ;;  %2696 = vmatprep.mubr.bf16.mxu1 %v21992_v21  ;;  %v2356_v3 = vsel %vm21951_vm0, %v22107_v45, %v2355_v54 }
 0x181   : > { %22103 = vst [vmem:[#allocation113_spill] sm:$0xff] %v16038_v22  ;;  %v16041_v63 = vpop.f32.mrf.mxu1 }
 0x182   : > { %22104 = vst [vmem:[#allocation114_spill] sm:$0xff] %v16041_v63  ;;  %v16043_v61 = vpop.f32.mrf.mxu0 }
 0x183   : > { %22105 = vst [vmem:[#allocation115_spill] sm:$0xff] %v16043_v61  ;;  %v16045_v7 = vpop.f32.mrf.mxu1 }
 0x184   : > { %22106 = vst [vmem:[#allocation116_spill] sm:$0xff] %v16045_v7  ;;  %v16050_v33 = vpop.f32.mrf.mxu0  ;;  %v14890_v7 = vld [vmem:[%s15052_s29 + $0x38] sm:$0xff]  }
 0x185   : > { %22108 = vst [vmem:[#allocation117_spill] sm:$0xff] %v16050_v33  ;;  %v16052_v44 = vpop.f32.mrf.mxu1  ;;  %v2357_v61 = vrot.slane %v14890_v7, 2 }
 0x186   : > { %22109 = vst [vmem:[#allocation118_spill] sm:$0xff] %v16052_v44  ;;  %v16054_v13 = vpop.f32.mrf.mxu0  ;;  %11988 = vmatmul.mubr.msk.bf16.gmra.mxu0 %vm737_vm2, %v2356_v3 }
 0x187   : > { %22110 = vst [vmem:[#allocation119_spill] sm:$0xff] %v16054_v13  ;;  %v16057_v12 = vpop.f32.mrf.mxu1  ;;  %11999 = vmatmul.mubr.msk.bf16.gmra.mxu1 %vm737_vm2, %v2356_v3  ;;  %2573 = vmatprep.mubr.bf16.mxu0 %v21992_v21  ;;  %v2358_v33 = vsel %vm21951_vm0, %v2355_v54, %v2357_v61 }
 0x188   : > { %22111 = vst [vmem:[#allocation120_spill] sm:$0xff] %v16057_v12  ;;  %v16062_v56 = vpop.f32.mrf.mxu0  ;;  %2706 = vmatprep.mubr.bf16.mxu1 %v21992_v21 }
 0x189   : > { %22112 = vst [vmem:[#allocation121_spill] sm:$0xff] %v16062_v56  ;;  %v16065_v45 = vpop.f32.mrf.mxu1 }
 0x18a   : > { %22113 = vst [vmem:[#allocation122_spill] sm:$0xff] %v16065_v45  ;;  %v16067_v44 = vpop.f32.mrf.mxu0 }
 0x18b   : > { %22114 = vst [vmem:[#allocation123_spill] sm:$0xff] %v16067_v44  ;;  %v16069_v13 = vpop.f32.mrf.mxu1  ;;  %v14891_v44 = vld [vmem:[%s15052_s29 + $0x40] sm:$0xff]  }
 0x18c   : > { %22115 = vst [vmem:[#allocation124_spill] sm:$0xff] %v16069_v13  ;;  %v16072_v12 = vpop.f32.mrf.mxu0  ;;  %v2359_v45 = vrot.slane %v14891_v44, 2 }
 0x18d   : > { %22116 = vst [vmem:[#allocation125_spill] sm:$0xff] %v16072_v12  ;;  %v16074_v3 = vpop.f32.mrf.mxu1 }
 0x18e   : > { %22117 = vst [vmem:[#allocation126_spill] sm:$0xff] %v16074_v3  ;;  %v16076_v63 = vpop.f32.mrf.mxu0  ;;  %11989 = vmatmul.mubr.msk.bf16.gmra.mxu0 %vm737_vm2, %v2358_v33  ;;  %v2360_v12 = vsel %vm21951_vm0, %v2357_v61, %v2359_v45 }
 0x18f   : > { %22118 = vst [vmem:[#allocation127_spill] sm:$0xff] %v16076_v63  ;;  %v16079_v7 = vpop.f32.mrf.mxu1  ;;  %12000 = vmatmul.mubr.msk.bf16.gmra.mxu1 %vm737_vm2, %v2358_v33  ;;  %2583 = vmatprep.mubr.bf16.mxu0 %v21992_v21 }
 0x190   : > { %22119 = vst [vmem:[#allocation128_spill] sm:$0xff] %v16079_v7  ;;  %v16084_v13 = vpop.f32.mrf.mxu0  ;;  %2716 = vmatprep.mubr.bf16.mxu1 %v21992_v21 }
 0x191   : > { %22120 = vst [vmem:[#allocation129_spill] sm:$0xff] %v16084_v13  ;;  %v16087_v54 = vpop.f32.mrf.mxu1 }
 0x192   : > { %22121 = vst [vmem:[#allocation130_spill] sm:$0xff] %v16087_v54  ;;  %v16089_v3 = vpop.f32.mrf.mxu0  ;;  %v14892_v54 = vld [vmem:[%s15052_s29 + $0x48] sm:$0xff]   ;;  %s519_s29 = scalar_lea.vmem %s21849_s16, %s11739_s26 }
 0x193   : > { %22122 = vst [vmem:[#allocation131_spill] sm:$0xff] %v16089_v3  ;;  %v16091_v63 = vpop.f32.mrf.mxu1  ;;  %v2361_v3 = vrot.slane %v14892_v54, 2 }
 0x194   : > { %22123 = vst [vmem:[#allocation132_spill] sm:$0xff] %v16091_v63  ;;  %v16094_v7 = vpop.f32.mrf.mxu0 }
 0x195   : > { %22124 = vst [vmem:[#allocation133_spill] sm:$0xff] %v16094_v7  ;;  %v16096_v33 = vpop.f32.mrf.mxu1 }
 0x196   : > { %22125 = vst [vmem:[#allocation134_spill] sm:$0xff] %v16096_v33  ;;  %v16098_v56 = vpop.f32.mrf.mxu0  ;;  %11990 = vmatmul.mubr.msk.bf16.gmra.mxu0 %vm737_vm2, %v2360_v12 }
 0x197   : > { %22126 = vst [vmem:[#allocation135_spill] sm:$0xff] %v16098_v56  ;;  %v16101_v44 = vpop.f32.mrf.mxu1  ;;  %12001 = vmatmul.mubr.msk.bf16.gmra.mxu1 %vm737_vm2, %v2360_v12  ;;  %2593 = vmatprep.mubr.bf16.mxu0 %v21992_v21  ;;  %v2362_v56 = vsel %vm21951_vm0, %v2359_v45, %v2361_v3 }
 0x198   : > { %22127 = vst [vmem:[#allocation136_spill] sm:$0xff] %v16101_v44  ;;  %v16106_v13 = vpop.f32.mrf.mxu0  ;;  %2726 = vmatprep.mubr.bf16.mxu1 %v21992_v21 }
 0x199   : > { %22128 = vst [vmem:[#allocation137_spill] sm:$0xff] %v16106_v13  ;;  %v16109_v61 = vpop.f32.mrf.mxu1 }
 0x19a   : > { %22129 = vst [vmem:[#allocation138_spill] sm:$0xff] %v16109_v61  ;;  %v16111_v7 = vpop.f32.mrf.mxu0 }
 0x19b   : > { %22130 = vst [vmem:[#allocation139_spill] sm:$0xff] %v16111_v7  ;;  %v16113_v33 = vpop.f32.mrf.mxu1 }
 0x19c   : > { %22131 = vst [vmem:[#allocation140_spill] sm:$0xff] %v16113_v33  ;;  %v16116_v63 = vpop.f32.mrf.mxu0 }
 0x19d   : > { %22132 = vst [vmem:[#allocation141_spill] sm:$0xff] %v16116_v63  ;;  %v16118_v44 = vpop.f32.mrf.mxu1 }
 0x19e   : > { %22133 = vst [vmem:[#allocation142_spill] sm:$0xff] %v16118_v44  ;;  %v16120_v12 = vpop.f32.mrf.mxu0  ;;  %11991 = vmatmul.mubr.msk.bf16.gmra.mxu0 %vm737_vm2, %v2362_v56 }
 0x19f   : > { %22134 = vst [vmem:[#allocation143_spill] sm:$0xff] %v16120_v12  ;;  %v16123_v54 = vpop.f32.mrf.mxu1  ;;  %12002 = vmatmul.mubr.msk.bf16.gmra.mxu1 %vm737_vm2, %v2362_v56  ;;  %2603 = vmatprep.mubr.bf16.mxu0 %v21992_v21 }
 0x1a0   : > { %22135 = vst [vmem:[#allocation144_spill] sm:$0xff] %v16123_v54  ;;  %v16127_v61 = vpop.f32.mrf.mxu0  ;;  %2736 = vmatprep.mubr.bf16.mxu1 %v21992_v21 }
 0x1a1   : > { %22136 = vst [vmem:[#allocation145_spill] sm:$0xff] %v16127_v61  ;;  %v16130_v33 = vpop.f32.mrf.mxu1 }
 0x1a2   : > { %22137 = vst [vmem:[#allocation146_spill] sm:$0xff] %v16130_v33  ;;  %v16132_v45 = vpop.f32.mrf.mxu0 }
 0x1a3   : > { %22138 = vst [vmem:[#allocation147_spill] sm:$0xff] %v16132_v45  ;;  %v16134_v63 = vpop.f32.mrf.mxu1 }
 0x1a4   : > { %22139 = vst [vmem:[#allocation148_spill] sm:$0xff] %v16134_v63  ;;  %v16136_v44 = vpop.f32.mrf.mxu0 }
 0x1a5   : > { %22140 = vst [vmem:[#allocation149_spill] sm:$0xff] %v16136_v44  ;;  %v16138_v12 = vpop.f32.mrf.mxu1 }
 0x1a6   : > { %22141 = vst [vmem:[#allocation150_spill] sm:$0xff] %v16138_v12  ;;  %v16140_v7 = vpop.f32.mrf.mxu0  ;;  %11992 = vmatmul.mubr.msk.bf16.gmra.mxu0 %vm737_vm2, %v2361_v3 }
 0x1a7   : > { %22142 = vst [vmem:[#allocation151_spill] sm:$0xff] %v16140_v7  ;;  %v16143_v56 = vpop.f32.mrf.mxu1  ;;  %12003 = vmatmul.mubr.msk.bf16.gmra.mxu1 %vm737_vm2, %v2361_v3 }
 0x1a8   : > { %22143 = vst [vmem:[#allocation152_spill] sm:$0xff] %v16143_v56  ;;  %v16146_v61 = vpop.f32.mrf.mxu0 }
 0x1a9   : > { %22144 = vst [vmem:[#allocation153_spill] sm:$0xff] %v16146_v61  ;;  %v16148_v21 = vpop.f32.mrf.mxu1 }
 0x1aa   : > { %22145 = vst [vmem:[#allocation154_spill] sm:$0xff] %v16148_v21  ;;  %v16150_v33 = vpop.f32.mrf.mxu0 }
 0x1ab   : > { %22146 = vst [vmem:[#allocation155_spill] sm:$0xff] %v16150_v33  ;;  %v16152_v45 = vpop.f32.mrf.mxu1 }
 0x1ac   : > { %22147 = vst [vmem:[#allocation156_spill] sm:$0xff] %v16152_v45  ;;  %v16154_v63 = vpop.f32.mrf.mxu0 }
 0x1ad   : > { %22148 = vst [vmem:[#allocation157_spill] sm:$0xff] %v16154_v63  ;;  %v16156_v44 = vpop.f32.mrf.mxu1 }
 0x1ae   : > { %22149 = vst [vmem:[#allocation158_spill] sm:$0xff] %v16156_v44  ;;  %v16158_v12 = vpop.f32.mrf.mxu0 }
 0x1af   : > { %22150 = vst [vmem:[#allocation159_spill] sm:$0xff] %v16158_v12  ;;  %v16160_v7 = vpop.f32.mrf.mxu1 }
 0x1b0   : > { %22151 = vst [vmem:[#allocation160_spill] sm:$0xff] %v16160_v7  ;;  %v16162_v54 = vpop.f32.mrf.mxu0 }
 0x1b1   : > { %22152 = vst [vmem:[#allocation161_spill] sm:$0xff] %v16162_v54  ;;  %v16164_v56 = vpop.f32.mrf.mxu1 }
 0x1b2   : > { %22153 = vst [vmem:[#allocation162_spill] sm:$0xff] %v16164_v56  ;;  %v16166_v3 = vpop.f32.mrf.mxu0 }
 0x1b3   : > { %22154 = vst [vmem:[#allocation163_spill] sm:$0xff] %v16166_v3  ;;  %v16168_v61 = vpop.f32.mrf.mxu1 }
 0x1b4   : > { %22155 = vst [vmem:[#allocation164_spill] sm:$0xff] %v16168_v61  ;;  %v16170_v21 = vpop.f32.mrf.mxu0 }
 0x1b5   : > { %22156 = vst [vmem:[#allocation165_spill] sm:$0xff] %v16170_v21  ;;  %v16172_v33 = vpop.f32.mrf.mxu1 }
 0x1b6   : > { %22157 = vst [vmem:[#allocation166_spill] sm:$0xff] %v16172_v33  ;;  %v16174_v45 = vpop.f32.mrf.mxu0 }
 0x1b7   : > { %22158 = vst [vmem:[#allocation167_spill] sm:$0xff] %v16174_v45  ;;  %v16176_v63 = vpop.f32.mrf.mxu1 }
 0x1b8   : > { %22159 = vst [vmem:[#allocation168_spill] sm:$0xff] %v16176_v63  ;;  %v16178_v44 = vpop.f32.mrf.mxu0 }
 0x1b9   : > { %22160 = vst [vmem:[#allocation169_spill] sm:$0xff] %v16178_v44  ;;  %v16180_v12 = vpop.f32.mrf.mxu1 }
 0x1ba   : > { %22161 = vst [vmem:[#allocation170_spill] sm:$0xff] %v16180_v12  ;;  %v16182_v7 = vpop.f32.mrf.mxu0 }
 0x1bb   : > { %22162 = vst [vmem:[#allocation171_spill] sm:$0xff] %v16182_v7  ;;  %v16184_v54 = vpop.f32.mrf.mxu1 }
 0x1bc   : > { %22163 = vst [vmem:[#allocation172_spill] sm:$0xff] %v16184_v54  ;;  %v16186_v56 = vpop.f32.mrf.mxu0 }
 0x1bd   : > { %22164 = vst [vmem:[#allocation173_spill] sm:$0xff] %v16186_v56  ;;  %v16188_v3 = vpop.f32.mrf.mxu1 }
 0x1be   : > { %22165 = vst [vmem:[#allocation174_spill] sm:$0xff] %v16188_v3  ;;  %v16190_v61 = vpop.f32.mrf.mxu0 }
 0x1bf   : > { %22166 = vst [vmem:[#allocation175_spill] sm:$0xff] %v16190_v61  ;;  %v16192_v21 = vpop.f32.mrf.mxu1 }
 0x1c0   : > { %22167 = vst [vmem:[#allocation176_spill] sm:$0xff] %v16192_v21  ;;  %v16194_v33 = vpop.f32.mrf.mxu0 }
 0x1c1   : > { %22168 = vst [vmem:[#allocation177_spill] sm:$0xff] %v16194_v33  ;;  %v16196_v45 = vpop.f32.mrf.mxu1 }
 0x1c2   : > { %22169 = vst [vmem:[#allocation178_spill] sm:$0xff] %v16196_v45  ;;  %v16198_v63 = vpop.f32.mrf.mxu0 }
 0x1c3   : > { %22170 = vst [vmem:[#allocation179_spill] sm:$0xff] %v16198_v63  ;;  %v16200_v44 = vpop.f32.mrf.mxu1 }
 0x1c4   : > { %22171 = vst [vmem:[#allocation180_spill] sm:$0xff] %v16200_v44  ;;  %v16202_v12 = vpop.f32.mrf.mxu0 }
 0x1c5   : > { %22172 = vst [vmem:[#allocation181_spill] sm:$0xff] %v16202_v12  ;;  %v16204_v7 = vpop.f32.mrf.mxu1 }
 0x1c6   : > { %22173 = vst [vmem:[#allocation182_spill] sm:$0xff] %v16204_v7  ;;  %v16206_v54 = vpop.f32.mrf.mxu0 }
 0x1c7   : > { %22174 = vst [vmem:[#allocation183_spill] sm:$0xff] %v16206_v54  ;;  %v16208_v56 = vpop.f32.mrf.mxu1 }
 0x1c8   : > { %22175 = vst [vmem:[#allocation184_spill] sm:$0xff] %v16208_v56  ;;  %v16210_v3 = vpop.f32.mrf.mxu0 }
 0x1c9   : > { %22176 = vst [vmem:[#allocation185_spill] sm:$0xff] %v16210_v3  ;;  %v16212_v61 = vpop.f32.mrf.mxu1 }
 0x1ca   : > { %22177 = vst [vmem:[#allocation186_spill] sm:$0xff] %v16212_v61  ;;  %v16214_v21 = vpop.f32.mrf.mxu0 }
 0x1cb   : > { %22178 = vst [vmem:[#allocation187_spill] sm:$0xff] %v16214_v21  ;;  %v16216_v33 = vpop.f32.mrf.mxu1 }
 0x1cc   : > { %22179 = vst [vmem:[#allocation188_spill] sm:$0xff] %v16216_v33  ;;  %v16218_v45 = vpop.f32.mrf.mxu0 }
 0x1cd   : > { %22180 = vst [vmem:[#allocation189_spill] sm:$0xff] %v16218_v45  ;;  %v16220_v63 = vpop.f32.mrf.mxu1 }
 0x1ce   : > { %22181 = vst [vmem:[#allocation190_spill] sm:$0xff] %v16220_v63  ;;  %v16222_v44 = vpop.f32.mrf.mxu0 }
 0x1cf   : > { %v16224_v12 = vpop.f32.mrf.mxu1 }
 0x1d0   : > { %v16226_v7 = vpop.f32.mrf.mxu0 }
 0x1d1   : > { %22182 = vst [vmem:[#allocation191_spill] sm:$0xff] %v16226_v7  ;;  %v16228_v54 = vpop.f32.mrf.mxu1 }
 0x1d2   : > { %22183 = vst [vmem:[#allocation192_spill] sm:$0xff] %v16228_v54  ;;  %v16230_v56 = vpop.f32.mrf.mxu0 }
 0x1d3   : > { %22184 = vst [vmem:[#allocation193_spill] sm:$0xff] %v16230_v56  ;;  %v16232_v3 = vpop.f32.mrf.mxu1 }
 0x1d4   : > { %22185 = vst [vmem:[#allocation194_spill] sm:$0xff] %v16232_v3  ;;  %v16234_v61 = vpop.f32.mrf.mxu0 }
 0x1d5   : > { %22186 = vst [vmem:[#allocation195_spill] sm:$0xff] %v16234_v61  ;;  %v16236_v21 = vpop.f32.mrf.mxu1 }
 0x1d6   : > { %22187 = vst [vmem:[#allocation196_spill] sm:$0xff] %v16236_v21  ;;  %v16238_v33 = vpop.f32.mrf.mxu0 }
 0x1d7   : > { %22188 = vst [vmem:[#allocation197_spill] sm:$0xff] %v16238_v33  ;;  %v16240_v45 = vpop.f32.mrf.mxu1 }
 0x1d8   : > { %22189 = vst [vmem:[#allocation198_spill] sm:$0xff] %v16240_v45  ;;  %v16242_v63 = vpop.f32.mrf.mxu0 }
 0x1d9   : > { %22190 = vst [vmem:[#allocation199_spill] sm:$0xff] %v16242_v63  ;;  %v16244_v13 = vpop.f32.mrf.mxu1 }
 0x1da   : > { %22191 = vst [vmem:[#allocation200_spill] sm:$0xff] %v16244_v13  ;;  %v16246_v22 = vpop.f32.mrf.mxu0 }
 0x1db   : > { %22192 = vst [vmem:[#allocation201_spill] sm:$0xff] %v16246_v22  ;;  %v16248_v7 = vpop.f32.mrf.mxu1 }
 0x1dc   : > { %22193 = vst [vmem:[#allocation202_spill] sm:$0xff] %v16248_v7  ;;  %v16250_v54 = vpop.f32.mrf.mxu0 }
 0x1dd   : > { %22194 = vst [vmem:[#allocation203_spill] sm:$0xff] %v16250_v54  ;;  %v16252_v56 = vpop.f32.mrf.mxu1 }
 0x1de   : > { %22195 = vst [vmem:[#allocation204_spill] sm:$0xff] %v16252_v56  ;;  %v16254_v3 = vpop.f32.mrf.mxu0 }
 0x1df   : > { %22196 = vst [vmem:[#allocation205_spill] sm:$0xff] %v16254_v3  ;;  %v16256_v61 = vpop.f32.mrf.mxu1 }
 0x1e0   : > { %22197 = vst [vmem:[#allocation206_spill] sm:$0xff] %v16256_v61  ;;  %v16258_v21 = vpop.f32.mrf.mxu0 }
 0x1e1   : > { %22198 = vst [vmem:[#allocation207_spill] sm:$0xff] %v16258_v21  ;;  %v16260_v33 = vpop.f32.mrf.mxu1 }
 0x1e2   : > { %22199 = vst [vmem:[#allocation208_spill] sm:$0xff] %v16260_v33  ;;  %v16262_v45 = vpop.f32.mrf.mxu0 }
 0x1e3   : > { %22200 = vst [vmem:[#allocation209_spill] sm:$0xff] %v16262_v45  ;;  %v16264_v63 = vpop.f32.mrf.mxu1 }
 0x1e4   : > { %22201 = vst [vmem:[#allocation210_spill] sm:$0xff] %v16264_v63  ;;  %v16266_v13 = vpop.f32.mrf.mxu0 }
 0x1e5   : > { %22202 = vst [vmem:[#allocation211_spill] sm:$0xff] %v16266_v13  ;;  %v16268_v22 = vpop.f32.mrf.mxu1 }
 0x1e6   : > { %22203 = vst [vmem:[#allocation212_spill] sm:$0xff] %v16268_v22  ;;  %v16270_v7 = vpop.f32.mrf.mxu0 }
 0x1e7   : > { %22204 = vst [vmem:[#allocation213_spill] sm:$0xff] %v16270_v7  ;;  %v16272_v54 = vpop.f32.mrf.mxu1 }
 0x1e8   : > { %22205 = vst [vmem:[#allocation214_spill] sm:$0xff] %v16272_v54  ;;  %v16274_v56 = vpop.f32.mrf.mxu0 }
 0x1e9   : > { %22206 = vst [vmem:[#allocation215_spill] sm:$0xff] %v16274_v56  ;;  %v16276_v3 = vpop.f32.mrf.mxu1 }
 0x1ea   : > { %22207 = vst [vmem:[#allocation216_spill] sm:$0xff] %v16276_v3  ;;  %v16278_v61 = vpop.f32.mrf.mxu0 }
 0x1eb   : > { %22208 = vst [vmem:[#allocation217_spill] sm:$0xff] %v16278_v61  ;;  %v16280_v21 = vpop.f32.mrf.mxu1 }
 0x1ec   : > { %22209 = vst [vmem:[#allocation218_spill] sm:$0xff] %v16280_v21  ;;  %v16282_v33 = vpop.f32.mrf.mxu0 }
 0x1ed   : > { %22210 = vst [vmem:[#allocation219_spill] sm:$0xff] %v16282_v33  ;;  %v16284_v45 = vpop.f32.mrf.mxu1 }
 0x1ee   : > { %22211 = vst [vmem:[#allocation220_spill] sm:$0xff] %v16284_v45  ;;  %v16286_v63 = vpop.f32.mrf.mxu0 }
 0x1ef   : > { %22212 = vst [vmem:[#allocation221_spill] sm:$0xff] %v16286_v63  ;;  %v16288_v13 = vpop.f32.mrf.mxu1 }
 0x1f0   : > { %22213 = vst [vmem:[#allocation222_spill] sm:$0xff] %v16288_v13  ;;  %v16290_v22 = vpop.f32.mrf.mxu0 }
 0x1f1   : > { %22214 = vst [vmem:[#allocation223_spill] sm:$0xff] %v16290_v22  ;;  %v16292_v7 = vpop.f32.mrf.mxu1 }
 0x1f2   : > { %22215 = vst [vmem:[#allocation224_spill] sm:$0xff] %v16292_v7  ;;  %v16294_v54 = vpop.f32.mrf.mxu0 }
 0x1f3   : > { %22216 = vst [vmem:[#allocation225_spill] sm:$0xff] %v16294_v54  ;;  %v16296_v56 = vpop.f32.mrf.mxu1 }
 0x1f4   : > { %22217 = vst [vmem:[#allocation226_spill] sm:$0xff] %v16296_v56  ;;  %v16298_v3 = vpop.f32.mrf.mxu0 }
 0x1f5   : > { %22218 = vst [vmem:[#allocation227_spill] sm:$0xff] %v16298_v3  ;;  %v16300_v61 = vpop.f32.mrf.mxu1 }
 0x1f6   : > { %22219 = vst [vmem:[#allocation228_spill] sm:$0xff] %v16300_v61  ;;  %v16302_v21 = vpop.f32.mrf.mxu0 }
 0x1f7   : > { %v16304_v33 = vpop.f32.mrf.mxu1 }
 0x1f8   : > { %22220 = vst [vmem:[#allocation229_spill] sm:$0xff] %v16304_v33  ;;  %v16306_v45 = vpop.f32.mrf.mxu0  ;;  %v16326_v33 = vadd.f32 %v15759_v0, %v15457_v30  ;;  %v16348_v30 = vadd.f32 %v15777_v35, %v15476_v42  ;;  %v16354_v0 = vadd.f32 %v15780_v25, %v15483_v46  ;;  %v16376_v46 = vadd.f32 %v15806_v38, %v15502_v58 }
 0x1f9   : > { %v16308_v63 = vpop.f32.mrf.mxu1  ;;  %v16390_v25 = vadd.f32 %v15833_v14, %v15513_v4  ;;  %v16398_v38 = vadd.f32 %v15837_v28, %v15517_v6  ;;  %v22235_v4 = vld [vmem:[#allocation60_spill] sm:$0xff]  ;;  %v22237_v6 = vld [vmem:[#allocation2_spill] sm:$0xff]  ;;  %v22255_v28 = vld [vmem:[#allocation9_spill] sm:$0xff] }
 0x1fa   : > { %22221 = vst [vmem:[#allocation230_spill] sm:$0xff] %v16308_v63  ;;  %v16310_v13 = vpop.f32.mrf.mxu0  ;;  %v16330_v63 = vadd.f32 %v15762_v34, %v15460_v31  ;;  %22226 = vst [vmem:[#allocation235_spill] sm:$0xff] %v16354_v0 }
 0x1fb   : > { %22222 = vst [vmem:[#allocation231_spill] sm:$0xff] %v16310_v13  ;;  %v16312_v22 = vpop.f32.mrf.mxu1  ;;  %22228 = vst [vmem:[#allocation237_spill] sm:$0xff] %v16390_v25 }
 0x1fc   : > { %v16314_v7 = vpop.f32.mrf.mxu0  ;;  %22230 = vst [vmem:[#allocation239_spill] sm:$0xff] %v16398_v38 }
 0x1fd   : > { %22223 = vst [vmem:[#allocation232_spill] sm:$0xff] %v16314_v7  ;;  %v16316_v54 = vpop.f32.mrf.mxu1  ;;  %v16336_v7 = vadd.f32 %v15770_v36, %v15469_v39  ;;  %v16358_v39 = vadd.f32 %v15782_v10, %v15485_v47  ;;  %v16372_v36 = vadd.f32 %v15799_v11, %v15499_v57  ;;  %v16380_v47 = vadd.f32 %v15812_v2, %v15504_v59  ;;  %v22251_v10 = vld [vmem:[#allocation7_spill] sm:$0xff] }
 0x1fe   : > { %v16318_v56 = vpop.f32.mrf.mxu0  ;;  %v16394_v11 = vadd.f32 %v15835_v55, %v15515_v5  ;;  %v16402_v57 = vadd.f32 %v15840_v20, %v15524_v9  ;;  %v16408_v59 = vadd.f32 %v15846_v8, %v15529_v15  ;;  %v16416_v55 = vadd.f32 %v15851_v53, %v15534_v17  ;;  %v22238_v9 = vld [vmem:[#allocation61_spill] sm:$0xff]  ;;  %v22240_v8 = vld [vmem:[#allocation3_spill] sm:$0xff]  ;;  %v22241_v15 = vld [vmem:[#allocation62_spill] sm:$0xff] }
 0x1ff   : > { %22224 = vst [vmem:[#allocation233_spill] sm:$0xff] %v16318_v56  ;;  %v16320_v3 = vpop.f32.mrf.mxu1  ;;  %v16340_v56 = vadd.f32 %v15773_v1, %v15472_v40  ;;  %22227 = vst [vmem:[#allocation236_spill] sm:$0xff] %v16358_v39  ;;  %v16362_v40 = vadd.f32 %v15784_v62, %v15487_v48  ;;  %v16384_v48 = vadd.f32 %v15822_v32, %v15506_v60  ;;  %v22246_v17 = vld [vmem:[#allocation5_spill] sm:$0xff]  ;;  %v22247_v53 = vld [vmem:[#allocation64_spill] sm:$0xff] }
 0x200   : > { %v16322_v61 = vpop.f32.mrf.mxu0  ;;  %22229 = vst [vmem:[#allocation238_spill] sm:$0xff] %v16394_v11  ;;  %22231 = vst [vmem:[#allocation240_spill] sm:$0xff] %v16402_v57  ;;  %v16412_v60 = vadd.f32 %v15849_v27, %v15532_v16  ;;  %v16420_v5 = vadd.f32 %v22235_v4, %v15538_v24  ;;  %v16426_v14 = vadd.f32 %v22238_v9, %v22237_v6  ;;  %v22243_v16 = vld [vmem:[#allocation4_spill] sm:$0xff]  ;;  %v22256_v4 = vld [vmem:[#allocation65_spill] sm:$0xff] }
 0x201   : > { %22225 = vst [vmem:[#allocation234_spill] sm:$0xff] %v16322_v61  ;;  %v16332_v13 = vpop.f32.mrf.mxu1  ;;  %v16344_v61 = vadd.f32 %v15775_v49, %v15474_v41  ;;  %v16366_v41 = vadd.f32 %v15789_v19, %v15490_v52  ;;  %22232 = vst [vmem:[#allocation241_spill] sm:$0xff] %v16408_v59  ;;  %v16430_v32 = vadd.f32 %v22241_v15, %v22240_v8  ;;  %v22244_v19 = vld [vmem:[#allocation63_spill] sm:$0xff]  ;;  %v22249_v49 = vld [vmem:[#allocation6_spill] sm:$0xff] }
 0x202   : > { %v16350_v31 = vpop.f32.mrf.mxu0  ;;  %22233 = vst [vmem:[#allocation242_spill] sm:$0xff] %v16412_v60  ;;  %22234 = vst [vmem:[#allocation243_spill] sm:$0xff] %v16416_v55  ;;  %v16434_v1 = vadd.f32 %v22244_v19, %v22243_v16  ;;  %v16438_v35 = vadd.f32 %v22247_v53, %v22246_v17  ;;  %v16444_v34 = vadd.f32 %v15869_v43, %v22249_v49  ;;  %v22253_v27 = vld [vmem:[#allocation8_spill] sm:$0xff]  ;;  %v22258_v8 = vld [vmem:[#allocation10_spill] sm:$0xff] }
 0x203   : > { %v16368_v42 = vpop.f32.mrf.mxu1  ;;  %22236 = vst [vmem:[#allocation60_spill] sm:$0xff] %v16420_v5  ;;  %22239 = vst [vmem:[#allocation2_spill] sm:$0xff] %v16426_v14  ;;  %v16448_v62 = vadd.f32 %v15872_v29, %v22251_v10  ;;  %v16452_v2 = vadd.f32 %v15874_v23, %v22253_v27  ;;  %v16456_v6 = vadd.f32 %v22256_v4, %v22255_v28  ;;  %v22259_v15 = vld [vmem:[#allocation66_spill] sm:$0xff]  ;;  %v22261_v43 = vld [vmem:[#allocation11_spill] sm:$0xff] }
 0x204   : > { %v16386_v52 = vpop.f32.mrf.mxu0  ;;  %22242 = vst [vmem:[#allocation61_spill] sm:$0xff] %v16430_v32  ;;  %22245 = vst [vmem:[#allocation3_spill] sm:$0xff] %v16434_v1  ;;  %v16462_v16 = vadd.f32 %v22259_v15, %v22258_v8  ;;  %v22262_v19 = vld [vmem:[#allocation67_spill] sm:$0xff]  ;;  %v22264_v29 = vld [vmem:[#allocation12_spill] sm:$0xff] }
 0x205   : > { %v16404_v58 = vpop.f32.mrf.mxu1  ;;  %22248 = vst [vmem:[#allocation62_spill] sm:$0xff] %v16438_v35  ;;  %22250 = vst [vmem:[#allocation4_spill] sm:$0xff] %v16444_v34  ;;  %v16466_v17 = vadd.f32 %v22262_v19, %v22261_v43  ;;  %v22265_v53 = vld [vmem:[#allocation68_spill] sm:$0xff]  ;;  %v22267_v23 = vld [vmem:[#allocation13_spill] sm:$0xff] }
 0x206   : > { %v16422_v20 = vpop.f32.mrf.mxu0  ;;  %22252 = vst [vmem:[#allocation63_spill] sm:$0xff] %v16448_v62  ;;  %22254 = vst [vmem:[#allocation5_spill] sm:$0xff] %v16452_v2  ;;  %v16470_v49 = vadd.f32 %v22265_v53, %v22264_v29  ;;  %v22268_v10 = vld [vmem:[#allocation69_spill] sm:$0xff]  ;;  %v22270_v4 = vld [vmem:[#allocation14_spill] sm:$0xff] }
 0x207   : > { %v16440_v24 = vpop.f32.mrf.mxu1  ;;  %22257 = vst [vmem:[#allocation64_spill] sm:$0xff] %v16456_v6  ;;  %22260 = vst [vmem:[#allocation6_spill] sm:$0xff] %v16462_v16  ;;  %v16474_v27 = vadd.f32 %v22268_v10, %v22267_v23  ;;  %v22271_v32 = vld [vmem:[#allocation70_spill] sm:$0xff]  ;;  %v22273_v8 = vld [vmem:[#allocation15_spill] sm:$0xff] }
 0x208   : > { %v16458_v9 = vpop.f32.mrf.mxu0  ;;  %22263 = vst [vmem:[#allocation7_spill] sm:$0xff] %v16466_v17  ;;  %22266 = vst [vmem:[#allocation8_spill] sm:$0xff] %v16470_v49  ;;  %v16480_v14 = vadd.f32 %v22271_v32, %v22270_v4  ;;  %v16484_v15 = vadd.f32 %v15893_v51, %v22273_v8  ;;  %v22275_v43 = vld [vmem:[#allocation16_spill] sm:$0xff]  ;;  %v22276_v19 = vld [vmem:[#allocation71_spill] sm:$0xff] }
 0x209   : > { %22269 = vst [vmem:[#allocation9_spill] sm:$0xff] %v16474_v27  ;;  %v16476_v28 = vpop.f32.mrf.mxu1  ;;  %v16488_v17 = vadd.f32 %v22276_v19, %v22275_v43  ;;  %v22278_v29 = vld [vmem:[#allocation17_spill] sm:$0xff]  ;;  %v22279_v53 = vld [vmem:[#allocation72_spill] sm:$0xff]  ;;  %v22281_v10 = vld [vmem:[#allocation18_spill] sm:$0xff]  ;;  %v2909_v19 = vlaneseq }
 0x20a   : > { %22272 = vst [vmem:[#allocation65_spill] sm:$0xff] %v16480_v14  ;;  %22274 = vst [vmem:[#allocation10_spill] sm:$0xff] %v16484_v15  ;;  %v16492_v16 = vadd.f32 %v22279_v53, %v22278_v29  ;;  %v16494_v23 = vpop.f32.mrf.mxu0  ;;  %v22282_v27 = vld [vmem:[#allocation73_spill] sm:$0xff]  ;;  %v22284_v32 = vld [vmem:[#allocation19_spill] sm:$0xff] }
 0x20b   : > { %22277 = vst [vmem:[#allocation66_spill] sm:$0xff] %v16488_v17  ;;  %v16498_v49 = vadd.f32 %v22282_v27, %v22281_v10  ;;  %v22285_v4 = vld [vmem:[#allocation74_spill] sm:$0xff]  ;;  %v22287_v51 = vld [vmem:[#allocation20_spill] sm:$0xff]  ;;  %v22288_v8 = vld [vmem:[#allocation75_spill] sm:$0xff]  ;;  %v16508_v43 = vpop.f32.mrf.mxu1 }
 0x20c   : > { %22280 = vst [vmem:[#allocation11_spill] sm:$0xff] %v16492_v16  ;;  %v16502_v14 = vadd.f32 %v22285_v4, %v22284_v32  ;;  %v16506_v15 = vadd.f32 %v22288_v8, %v22287_v51  ;;  %v22290_v17 = vld [vmem:[#allocation21_spill] sm:$0xff]  ;;  %v22291_v29 = vld [vmem:[#allocation76_spill] sm:$0xff]  ;;  %v22293_v16 = vld [vmem:[#allocation22_spill] sm:$0xff]  ;;  %v16526_v51 = vpop.f32.mrf.mxu0 }
 0x20d   : > { %22283 = vst [vmem:[#allocation67_spill] sm:$0xff] %v16498_v49  ;;  %v16512_v53 = vadd.f32 %v22291_v29, %v22290_v17  ;;  %v22294_v6 = vld [vmem:[#allocation77_spill] sm:$0xff]  ;;  %v22296_v27 = vld [vmem:[#allocation23_spill] sm:$0xff]  ;;  %v22298_v32 = vld [vmem:[#allocation24_spill] sm:$0xff] }
 0x20e   : > { %22286 = vst [vmem:[#allocation12_spill] sm:$0xff] %v16502_v14  ;;  %22289 = vst [vmem:[#allocation68_spill] sm:$0xff] %v16506_v15  ;;  %v16516_v2 = vadd.f32 %v22294_v6, %v22293_v16  ;;  %v16520_v10 = vadd.f32 %v15915_v37, %v22296_v27  ;;  %v22299_v4 = vld [vmem:[#allocation78_spill] sm:$0xff]  ;;  %v22301_v8 = vld [vmem:[#allocation25_spill] sm:$0xff] }
 0x20f   : > { %22292 = vst [vmem:[#allocation13_spill] sm:$0xff] %v16512_v53  ;;  %v16524_v14 = vadd.f32 %v22299_v4, %v22298_v32  ;;  %v22302_v49 = vld [vmem:[#allocation79_spill] sm:$0xff]  ;;  %v22304_v17 = vld [vmem:[#allocation26_spill] sm:$0xff]  ;;  %v22305_v29 = vld [vmem:[#allocation80_spill] sm:$0xff]  ;;  %v16544_v32 = vpop.f32.mrf.mxu1 }
 0x210   : > { %22295 = vst [vmem:[#allocation69_spill] sm:$0xff] %v16516_v2  ;;  %22297 = vst [vmem:[#allocation14_spill] sm:$0xff] %v16520_v10  ;;  %v16530_v15 = vadd.f32 %v22302_v49, %v22301_v8  ;;  %v16534_v53 = vadd.f32 %v22305_v29, %v22304_v17  ;;  %v22307_v6 = vld [vmem:[#allocation27_spill] sm:$0xff]  ;;  %v22308_v16 = vld [vmem:[#allocation81_spill] sm:$0xff] }
 0x211   : > { %22300 = vst [vmem:[#allocation70_spill] sm:$0xff] %v16524_v14  ;;  %v16538_v2 = vadd.f32 %v22308_v16, %v22307_v6  ;;  %v22310_v37 = vld [vmem:[#allocation28_spill] sm:$0xff]  ;;  %v22311_v27 = vld [vmem:[#allocation82_spill] sm:$0xff]  ;;  %v22313_v4 = vld [vmem:[#allocation29_spill] sm:$0xff] }
 0x212   : > { %22303 = vst [vmem:[#allocation15_spill] sm:$0xff] %v16530_v15  ;;  %22306 = vst [vmem:[#allocation16_spill] sm:$0xff] %v16534_v53  ;;  %v16542_v10 = vadd.f32 %v22311_v27, %v22310_v37  ;;  %v22314_v14 = vld [vmem:[#allocation83_spill] sm:$0xff]  ;;  %v22316_v49 = vld [vmem:[#allocation30_spill] sm:$0xff]  ;;  %v16562_v37 = vpop.f32.mrf.mxu0 }
 0x213   : > { %22309 = vst [vmem:[#allocation71_spill] sm:$0xff] %v16538_v2  ;;  %v16548_v62 = vadd.f32 %v22314_v14, %v22313_v4  ;;  %v22317_v8 = vld [vmem:[#allocation84_spill] sm:$0xff]  ;;  %v22319_v17 = vld [vmem:[#allocation31_spill] sm:$0xff]  ;;  %v22322_v16 = vld [vmem:[#allocation85_spill] sm:$0xff] }
 0x214   : > { %22312 = vst [vmem:[#allocation17_spill] sm:$0xff] %v16542_v10  ;;  %v16552_v15 = vadd.f32 %v22317_v8, %v22316_v49  ;;  %v16556_v29 = vadd.f32 %v15940_v50, %v22319_v17  ;;  %v22321_v6 = vld [vmem:[#allocation32_spill] sm:$0xff]  ;;  %v22324_v27 = vld [vmem:[#allocation33_spill] sm:$0xff]  ;;  %v22325_v10 = vld [vmem:[#allocation86_spill] sm:$0xff]  ;;  %v16576_v50 = vpop.f32.mrf.mxu1  ;;  %v16578_v17 = vshrl.u32 %v2909_v19, 7 }
 0x215   : > { %22315 = vst [vmem:[#allocation72_spill] sm:$0xff] %v16548_v62  ;;  %v16560_v2 = vadd.f32 %v22322_v16, %v22321_v6  ;;  %v16566_v53 = vadd.f32 %v22325_v10, %v22324_v27  ;;  %v22327_v14 = vld [vmem:[#allocation34_spill] sm:$0xff]  ;;  %v22328_v4 = vld [vmem:[#allocation87_spill] sm:$0xff]  ;;  %v22331_v8 = vld [vmem:[#allocation88_spill] sm:$0xff] }
 0x216   : > { %22318 = vst [vmem:[#allocation18_spill] sm:$0xff] %v16552_v15  ;;  %22320 = vst [vmem:[#allocation73_spill] sm:$0xff] %v16556_v29  ;;  %v16570_v62 = vadd.f32 %v22328_v4, %v22327_v14  ;;  %v22330_v49 = vld [vmem:[#allocation35_spill] sm:$0xff]  ;;  %v22334_v6 = vld [vmem:[#allocation36_spill] sm:$0xff] }
 0x217   : > { %22323 = vst [vmem:[#allocation19_spill] sm:$0xff] %v16560_v2  ;;  %22326 = vst [vmem:[#allocation74_spill] sm:$0xff] %v16566_v53  ;;  %v16574_v15 = vadd.f32 %v22331_v8, %v22330_v49  ;;  %v22335_v16 = vld [vmem:[#allocation89_spill] sm:$0xff]  ;;  %v22338_v34 = vld [vmem:[#allocation90_spill] sm:$0xff]  ;;  %v16596_v8 = vpop.f32.mrf.mxu0 }
 0x218   : > { %22329 = vst [vmem:[#allocation20_spill] sm:$0xff] %v16570_v62  ;;  %22333 = vst [vmem:[#allocation21_spill] sm:$0xff] %v16578_v17  ;;  %v16582_v2 = vadd.f32 %v22335_v16, %v22334_v6  ;;  %v22337_v29 = vld [vmem:[#allocation37_spill] sm:$0xff]  ;;  %v22340_v27 = vld [vmem:[#allocation38_spill] sm:$0xff] }
 0x219   : > { %22332 = vst [vmem:[#allocation75_spill] sm:$0xff] %v16574_v15  ;;  %v16586_v10 = vadd.f32 %v22338_v34, %v22337_v29  ;;  %v22341_v53 = vld [vmem:[#allocation91_spill] sm:$0xff]  ;;  %v22345_v19 = vld [vmem:[#allocation40_spill] sm:$0xff]  ;;  %v22348_v6 = vld [vmem:[#allocation41_spill] sm:$0xff] }
 0x21a   : > { %22336 = vst [vmem:[#allocation76_spill] sm:$0xff] %v16582_v2  ;;  %v16590_v14 = vadd.f32 %v22341_v53, %v22340_v27  ;;  %v22343_v4 = vld [vmem:[#allocation39_spill] sm:$0xff]  ;;  %v22346_v15 = vld [vmem:[#allocation92_spill] sm:$0xff]  ;;  %v22349_v16 = vld [vmem:[#allocation93_spill] sm:$0xff] }
 0x21b   : > { %22339 = vst [vmem:[#allocation22_spill] sm:$0xff] %v16586_v10  ;;  %v16594_v49 = vadd.f32 %v15965_v18, %v22343_v4  ;;  %v16600_v62 = vadd.f32 %v22346_v15, %v22345_v19  ;;  %v16604_v2 = vadd.f32 %v22349_v16, %v22348_v6  ;;  %v22351_v34 = vld [vmem:[#allocation42_spill] sm:$0xff]  ;;  %v22354_v53 = vld [vmem:[#allocation43_spill] sm:$0xff]  ;;  %v16614_v18 = vpop.f32.mrf.mxu1  ;;  %v22357_v4 = vld [vmem:[#allocation44_spill] sm:$0xff] }
 0x21c   : > { %22342 = vst [vmem:[#allocation77_spill] sm:$0xff] %v16590_v14  ;;  %v22352_v29 = vld [vmem:[#allocation94_spill] sm:$0xff]  ;;  %v22355_v27 = vld [vmem:[#allocation95_spill] sm:$0xff]  ;;  %v22360_v15 = vld [vmem:[#allocation45_spill] sm:$0xff] }
 0x21d   : > { %22344 = vst [vmem:[#allocation23_spill] sm:$0xff] %v16594_v49  ;;  %22347 = vst [vmem:[#allocation24_spill] sm:$0xff] %v16600_v62  ;;  %v16608_v10 = vadd.f32 %v22352_v29, %v22351_v34  ;;  %v16612_v14 = vadd.f32 %v22355_v27, %v22354_v53  ;;  %v22358_v49 = vld [vmem:[#allocation96_spill] sm:$0xff]  ;;  %v22361_v19 = vld [vmem:[#allocation97_spill] sm:$0xff]  ;;  %v16632_v53 = vpop.f32.mrf.mxu0  ;;  %v16634_v27 = vpop.f32.mrf.mxu1 }
 0x21e   : > { %22350 = vst [vmem:[#allocation78_spill] sm:$0xff] %v16604_v2  ;;  %v16618_v11 = vadd.f32 %v22358_v49, %v22357_v4  ;;  %v16622_v62 = vadd.f32 %v22361_v19, %v22360_v15  ;;  %v22363_v6 = vld [vmem:[#allocation46_spill] sm:$0xff]  ;;  %v22366_v34 = vld [vmem:[#allocation47_spill] sm:$0xff]  ;;  %v16640_v49 = vsub.s32 2, %v16578_v17  ;;  %v16643_v4 = vsub.s32 1, %v16578_v17  ;;  %v22371_v19 = vld [vmem:[#allocation48_spill] sm:$0xff] }
 0x21f   : > { %22353 = vst [vmem:[#allocation25_spill] sm:$0xff] %v16608_v10  ;;  %22356 = vst [vmem:[#allocation79_spill] sm:$0xff] %v16612_v14  ;;  %v22364_v16 = vld [vmem:[#allocation98_spill] sm:$0xff]  ;;  %v16630_v29 = vadd.f32 %v15990_v26, %v22366_v34  ;;  %v16637_v14 = vsub.s32 0, %v16578_v17  ;;  %v22374_v26 = vld [vmem:[#allocation49_spill] sm:$0xff]  ;;  %v16662_v25 = vpop.f32.mrf.mxu0  ;;  %v16683_v5 = vpop.f32.mrf.mxu1 }
 0x220   : > { %22359 = vst [vmem:[#allocation26_spill] sm:$0xff] %v16618_v11  ;;  %22362 = vst [vmem:[#allocation80_spill] sm:$0xff] %v16622_v62  ;;  %v16626_v2 = vadd.f32 %v22364_v16, %v22363_v6  ;;  %v22372_v6 = vld [vmem:[#allocation99_spill] sm:$0xff]  ;;  %v22375_v34 = vld [vmem:[#allocation100_spill] sm:$0xff] }
 0x221   : > { %22367 = vst [vmem:[#allocation81_spill] sm:$0xff] %v16630_v29  ;;  %22368 = vst [vmem:[#allocation28_spill] sm:$0xff] %v16637_v14  ;;  %v16648_v16 = vadd.f32 %v22372_v6, %v22371_v19  ;;  %v16652_v29 = vadd.f32 %v22375_v34, %v22374_v26  ;;  %v22378_v62 = vld [vmem:[#allocation101_spill] sm:$0xff]  ;;  %v22380_v10 = vld [vmem:[#allocation51_spill] sm:$0xff] }
 0x222   : > { %22365 = vst [vmem:[#allocation27_spill] sm:$0xff] %v16626_v2  ;;  %22369 = vst [vmem:[#allocation82_spill] sm:$0xff] %v16640_v49  ;;  %v22377_v2 = vld [vmem:[#allocation50_spill] sm:$0xff]  ;;  %v22384_v19 = vld [vmem:[#allocation52_spill] sm:$0xff] }
 0x223   : > { %22370 = vst [vmem:[#allocation29_spill] sm:$0xff] %v16643_v4  ;;  %22373 = vst [vmem:[#allocation83_spill] sm:$0xff] %v16648_v16  ;;  %v16656_v11 = vadd.f32 %v22378_v62, %v22377_v2  ;;  %v22381_v35 = vld [vmem:[#allocation102_spill] sm:$0xff]  ;;  %v22385_v6 = vld [vmem:[#allocation103_spill] sm:$0xff] }
 0x224   : > { %22376 = vst [vmem:[#allocation30_spill] sm:$0xff] %v16652_v29  ;;  %v16660_v1 = vadd.f32 %v22381_v35, %v22380_v10  ;;  %22383 = vst [vmem:[#allocation32_spill] sm:$0xff] %v16662_v25  ;;  %v2907_v15 = vld [vmem:[%s21835_s2] sm:$0xf]  ;;  %v16669_v16 = vadd.f32 %v22385_v6, %v22384_v19  ;;  %v22387_v26 = vld [vmem:[#allocation53_spill] sm:$0xff] }
 0x225   : > { %22379 = vst [vmem:[#allocation84_spill] sm:$0xff] %v16656_v11  ;;  %v22388_v34 = vld [vmem:[#allocation104_spill] sm:$0xff]  ;;  %v22390_v62 = vld [vmem:[#allocation54_spill] sm:$0xff]  ;;  %v22391_v2 = vld [vmem:[#allocation105_spill] sm:$0xff] }
 0x226   : > { %22382 = vst [vmem:[#allocation31_spill] sm:$0xff] %v16660_v1  ;;  %22386 = vst [vmem:[#allocation85_spill] sm:$0xff] %v16669_v16  ;;  %v16673_v29 = vadd.f32 %v22388_v34, %v22387_v26  ;;  %v16677_v11 = vadd.f32 %v22391_v2, %v22390_v62  ;;  %v22393_v35 = vld [vmem:[#allocation55_spill] sm:$0xff]  ;;  %v22394_v10 = vld [vmem:[#allocation106_spill] sm:$0xff] }
 0x227   : > { %v16681_v1 = vadd.f32 %v22394_v10, %v22393_v35  ;;  %22396 = vst [vmem:[#allocation87_spill] sm:$0xff] %v16683_v5  ;;  %v22397_v55 = vld [vmem:[#allocation56_spill] sm:$0xff]  ;;  %v22398_v60 = vld [vmem:[#allocation107_spill] sm:$0xff]  ;;  %v22400_v19 = vld [vmem:[#allocation57_spill] sm:$0xff]  ;;  %v16701_v35 = vpop.f32.mrf.mxu0  ;;  %v16703_v10 = vpop.f32.mrf.mxu1 }
 0x228   : > { %22389 = vst [vmem:[#allocation33_spill] sm:$0xff] %v16673_v29  ;;  %22392 = vst [vmem:[#allocation86_spill] sm:$0xff] %v16677_v11  ;;  %v16687_v59 = vadd.f32 %v22398_v60, %v22397_v55  ;;  %v22401_v6 = vld [vmem:[#allocation108_spill] sm:$0xff]  ;;  %v22403_v26 = vld [vmem:[#allocation58_spill] sm:$0xff]  ;;  %v16709_v60 = vrot.slane %v2907_v15, %v16640_v49  ;;  %v16712_v55 = vrot.slane %v2907_v15, %v16643_v4 }
 0x229   : > { %22395 = vst [vmem:[#allocation34_spill] sm:$0xff] %v16681_v1  ;;  %v16691_v16 = vadd.f32 %v22401_v6, %v22400_v19  ;;  %v22404_v34 = vld [vmem:[#allocation109_spill] sm:$0xff]  ;;  %v22406_v62 = vld [vmem:[#allocation59_spill] sm:$0xff]  ;;  %v22407_v2 = vld [vmem:[#allocation110_spill] sm:$0xff]  ;;  %v16706_v1 = vrot.slane %v2907_v15, %v16637_v14  ;;  %v22414_v19 = vsub.s32 3, %v16578_v17 }
 0x22a   : > { %22399 = vst [vmem:[#allocation35_spill] sm:$0xff] %v16687_v59  ;;  %v16695_v29 = vadd.f32 %v22404_v34, %v22403_v26  ;;  %v16699_v11 = vadd.f32 %v22407_v2, %v22406_v62  ;;  %22409 = vst [vmem:[#allocation37_spill] sm:$0xff] %v16701_v35  ;;  %v22416_v26 = vld [vmem:[#allocation111_spill] sm:$0xff]  ;;  %v22417_v62 = vld [vmem:[#allocation112_spill] sm:$0xff] }
 0x22b   : > { %22402 = vst [vmem:[#allocation88_spill] sm:$0xff] %v16691_v16  ;;  %22410 = vst [vmem:[#allocation90_spill] sm:$0xff] %v16703_v10  ;;  %v16716_v6 = vrot.slane %v2907_v15, %v22414_v19  ;;  %v2095_v34 = vadd.f32 %v16222_v44, %v22416_v26  ;;  %v2228_v2 = vadd.f32 %v16224_v12, %v22417_v62  ;;  %v22420_v16 = vld [vmem:[#allocation114_spill] sm:$0xff]  ;;  %v22421_v59 = vld [vmem:[#allocation192_spill] sm:$0xff] }
 0x22c   : > { %22405 = vst [vmem:[#allocation36_spill] sm:$0xff] %v16695_v29  ;;  %22408 = vst [vmem:[#allocation89_spill] sm:$0xff] %v16699_v11  ;;  %v22418_v11 = vld [vmem:[#allocation113_spill] sm:$0xff]  ;;  %v22419_v29 = vld [vmem:[#allocation191_spill] sm:$0xff]  ;;  %v2230_v49 = vadd.f32 %v22421_v59, %v22420_v16 }
 0x22d   : > { %22411 = vst [vmem:[#allocation38_spill] sm:$0xff] %v16706_v1  ;;  %22412 = vst [vmem:[#allocation91_spill] sm:$0xff] %v16709_v60  ;;  %v2097_v14 = vadd.f32 %v22419_v29, %v22418_v11  ;;  %v16726_v60 = vpop.f32.mrf.mxu0  ;;  %v22423_v4 = vld [vmem:[#allocation115_spill] sm:$0xff]  ;;  %v22425_v15 = vld [vmem:[#allocation116_spill] sm:$0xff]  ;;  %v16744_v29 = vpop.f32.mrf.mxu1 }
 0x22e   : > { %22413 = vst [vmem:[#allocation39_spill] sm:$0xff] %v16712_v55  ;;  %22415 = vst [vmem:[#allocation40_spill] sm:$0xff] %v16716_v6  ;;  %v22424_v55 = vld [vmem:[#allocation193_spill] sm:$0xff]  ;;  %v22426_v19 = vld [vmem:[#allocation194_spill] sm:$0xff] }
 0x22f   : > { %22422 = vst [vmem:[#allocation92_spill] sm:$0xff] %v16726_v60  ;;  %v16730_v39 = vadd.f32 %v22424_v55, %v22423_v4  ;;  %v16734_v17 = vadd.f32 %v22426_v19, %v22425_v15  ;;  %v22427_v44 = vld [vmem:[#allocation117_spill] sm:$0xff]  ;;  %v22428_v26 = vld [vmem:[#allocation195_spill] sm:$0xff]  ;;  %v22430_v12 = vld [vmem:[#allocation118_spill] sm:$0xff] }
 0x230   : > { %v16738_v6 = vadd.f32 %v22428_v26, %v22427_v44  ;;  %v22431_v62 = vld [vmem:[#allocation196_spill] sm:$0xff]  ;;  %22433 = vst [vmem:[#allocation42_spill] sm:$0xff] %v16744_v29  ;;  %v22434_v59 = vld [vmem:[#allocation119_spill] sm:$0xff]  ;;  %v22435_v16 = vld [vmem:[#allocation197_spill] sm:$0xff] }
 0x231   : > { %v16742_v11 = vadd.f32 %v22431_v62, %v22430_v12  ;;  %v16748_v0 = vadd.f32 %v22435_v16, %v22434_v59  ;;  %v22436_v4 = vld [vmem:[#allocation120_spill] sm:$0xff]  ;;  %v22437_v55 = vld [vmem:[#allocation198_spill] sm:$0xff]  ;;  %v22438_v15 = vld [vmem:[#allocation121_spill] sm:$0xff]  ;;  %v16762_v12 = vpop.f32.mrf.mxu0 }
 0x232   : > { %22429 = vst [vmem:[#allocation41_spill] sm:$0xff] %v16738_v6  ;;  %v16752_v60 = vadd.f32 %v22437_v55, %v22436_v4  ;;  %v22439_v19 = vld [vmem:[#allocation199_spill] sm:$0xff]  ;;  %v22440_v44 = vld [vmem:[#allocation122_spill] sm:$0xff]  ;;  %v22441_v26 = vld [vmem:[#allocation200_spill] sm:$0xff] }
 0x233   : > { %22432 = vst [vmem:[#allocation93_spill] sm:$0xff] %v16742_v11  ;;  %v16756_v10 = vadd.f32 %v22439_v19, %v22438_v15  ;;  %v16760_v6 = vadd.f32 %v22441_v26, %v22440_v44  ;;  %22442 = vst [vmem:[#allocation94_spill] sm:$0xff] %v16762_v12  ;;  %v22443_v62 = vld [vmem:[#allocation123_spill] sm:$0xff]  ;;  %v22444_v11 = vld [vmem:[#allocation201_spill] sm:$0xff]  ;;  %v16780_v44 = vpop.f32.mrf.mxu1 }
 0x234   : > { %v16766_v29 = vadd.f32 %v22444_v11, %v22443_v62  ;;  %v22446_v59 = vld [vmem:[#allocation124_spill] sm:$0xff]  ;;  %v22447_v16 = vld [vmem:[#allocation202_spill] sm:$0xff]  ;;  %v22449_v4 = vld [vmem:[#allocation125_spill] sm:$0xff]  ;;  %22455 = vst [vmem:[#allocation45_spill] sm:$0xff] %v16780_v44 }
 0x235   : > { %v16770_v57 = vadd.f32 %v22447_v16, %v22446_v59  ;;  %v22450_v55 = vld [vmem:[#allocation203_spill] sm:$0xff]  ;;  %v22452_v15 = vld [vmem:[#allocation126_spill] sm:$0xff]  ;;  %v22453_v19 = vld [vmem:[#allocation204_spill] sm:$0xff] }
 0x236   : > { %22445 = vst [vmem:[#allocation43_spill] sm:$0xff] %v16766_v29  ;;  %v16774_v38 = vadd.f32 %v22450_v55, %v22449_v4  ;;  %v16778_v35 = vadd.f32 %v22453_v19, %v22452_v15  ;;  %v22456_v26 = vld [vmem:[#allocation127_spill] sm:$0xff]  ;;  %v22457_v12 = vld [vmem:[#allocation205_spill] sm:$0xff]  ;;  %v22459_v11 = vld [vmem:[#allocation128_spill] sm:$0xff]  ;;  %v16798_v15 = vpop.f32.mrf.mxu0 }
 0x237   : > { %22448 = vst [vmem:[#allocation95_spill] sm:$0xff] %v16770_v57  ;;  %v16784_v5 = vadd.f32 %v22457_v12, %v22456_v26  ;;  %v22460_v62 = vld [vmem:[#allocation206_spill] sm:$0xff]  ;;  %v22462_v59 = vld [vmem:[#allocation129_spill] sm:$0xff]  ;;  %v22463_v16 = vld [vmem:[#allocation207_spill] sm:$0xff] }
 0x238   : > { %22451 = vst [vmem:[#allocation44_spill] sm:$0xff] %v16774_v38  ;;  %22454 = vst [vmem:[#allocation96_spill] sm:$0xff] %v16778_v35  ;;  %v16788_v29 = vadd.f32 %v22460_v62, %v22459_v11  ;;  %v16792_v57 = vadd.f32 %v22463_v16, %v22462_v59  ;;  %v22465_v4 = vld [vmem:[#allocation130_spill] sm:$0xff]  ;;  %v22466_v55 = vld [vmem:[#allocation208_spill] sm:$0xff] }
 0x239   : > { %22458 = vst [vmem:[#allocation97_spill] sm:$0xff] %v16784_v5  ;;  %v16796_v38 = vadd.f32 %v22466_v55, %v22465_v4  ;;  %22468 = vst [vmem:[#allocation48_spill] sm:$0xff] %v16798_v15  ;;  %v22469_v19 = vld [vmem:[#allocation131_spill] sm:$0xff]  ;;  %v22470_v35 = vld [vmem:[#allocation209_spill] sm:$0xff]  ;;  %v16816_v4 = vpop.f32.mrf.mxu1 }
 0x23a   : > { %22461 = vst [vmem:[#allocation46_spill] sm:$0xff] %v16788_v29  ;;  %22464 = vst [vmem:[#allocation98_spill] sm:$0xff] %v16792_v57  ;;  %v16802_v44 = vadd.f32 %v22470_v35, %v22469_v19  ;;  %v22472_v12 = vld [vmem:[#allocation132_spill] sm:$0xff]  ;;  %v22473_v26 = vld [vmem:[#allocation210_spill] sm:$0xff] }
 0x23b   : > { %22467 = vst [vmem:[#allocation47_spill] sm:$0xff] %v16796_v38  ;;  %v16806_v5 = vadd.f32 %v22473_v26, %v22472_v12  ;;  %v22475_v11 = vld [vmem:[#allocation133_spill] sm:$0xff]  ;;  %v22476_v62 = vld [vmem:[#allocation211_spill] sm:$0xff]  ;;  %v22478_v59 = vld [vmem:[#allocation134_spill] sm:$0xff] }
 0x23c   : > { %22471 = vst [vmem:[#allocation99_spill] sm:$0xff] %v16802_v44  ;;  %v16810_v29 = vadd.f32 %v22476_v62, %v22475_v11  ;;  %v22479_v16 = vld [vmem:[#allocation212_spill] sm:$0xff]  ;;  %22481 = vst [vmem:[#allocation101_spill] sm:$0xff] %v16816_v4  ;;  %v22482_v55 = vld [vmem:[#allocation135_spill] sm:$0xff] }
 0x23d   : > { %22474 = vst [vmem:[#allocation49_spill] sm:$0xff] %v16806_v5  ;;  %v16814_v57 = vadd.f32 %v22479_v16, %v22478_v59  ;;  %v22483_v38 = vld [vmem:[#allocation213_spill] sm:$0xff]  ;;  %v22485_v35 = vld [vmem:[#allocation136_spill] sm:$0xff]  ;;  %v22486_v19 = vld [vmem:[#allocation214_spill] sm:$0xff]  ;;  %v2515_v59 = vpop.f32.mrf.mxu0 }
 0x23e   : > { %22477 = vst [vmem:[#allocation100_spill] sm:$0xff] %v16810_v29  ;;  %v16820_v15 = vadd.f32 %v22483_v38, %v22482_v55  ;;  %v16824_v44 = vadd.f32 %v22486_v19, %v22485_v35  ;;  %v22488_v12 = vld [vmem:[#allocation137_spill] sm:$0xff]  ;;  %v22489_v26 = vld [vmem:[#allocation215_spill] sm:$0xff]  ;;  %v22491_v11 = vld [vmem:[#allocation138_spill] sm:$0xff] }
 0x23f   : > { %22480 = vst [vmem:[#allocation50_spill] sm:$0xff] %v16814_v57  ;;  %v16828_v5 = vadd.f32 %v22489_v26, %v22488_v12  ;;  %v22492_v62 = vld [vmem:[#allocation216_spill] sm:$0xff]  ;;  %v22494_v16 = vld [vmem:[#allocation139_spill] sm:$0xff]  ;;  %v22495_v57 = vld [vmem:[#allocation217_spill] sm:$0xff]  ;;  %v2747_v12 = vadd.f32 %v2515_v59, %v16326_v33  ;;  %v2648_v26 = vpop.f32.mrf.mxu1 }
 0x240   : > { %22484 = vst [vmem:[#allocation51_spill] sm:$0xff] %v16820_v15  ;;  %22487 = vst [vmem:[#allocation102_spill] sm:$0xff] %v16824_v44  ;;  %v16832_v29 = vadd.f32 %v22492_v62, %v22491_v11  ;;  %v16836_v4 = vadd.f32 %v22495_v57, %v22494_v16  ;;  %v22497_v1 = vld [vmem:[#allocation140_spill] sm:$0xff]  ;;  %v22498_v38 = vld [vmem:[#allocation218_spill] sm:$0xff] }
 0x241   : > { %22490 = vst [vmem:[#allocation52_spill] sm:$0xff] %v16828_v5  ;;  %v16840_v55 = vadd.f32 %v22498_v38, %v22497_v1  ;;  %v22500_v15 = vld [vmem:[#allocation141_spill] sm:$0xff]  ;;  %v22501_v35 = vld [vmem:[#allocation219_spill] sm:$0xff]  ;;  %v22503_v5 = vld [vmem:[#allocation142_spill] sm:$0xff]  ;;  %v2749_v1 = vadd.f32 %v2648_v26, %v16330_v63  ;;  %v2517_v38 = vpop.f32.mrf.mxu0 }
 0x242   : > { %22493 = vst [vmem:[#allocation103_spill] sm:$0xff] %v16832_v29  ;;  %22496 = vst [vmem:[#allocation53_spill] sm:$0xff] %v16836_v4  ;;  %v16844_v19 = vadd.f32 %v22501_v35, %v22500_v15  ;;  %v22504_v44 = vld [vmem:[#allocation220_spill] sm:$0xff]  ;;  %v22506_v62 = vld [vmem:[#allocation143_spill] sm:$0xff] }
 0x243   : > { %22499 = vst [vmem:[#allocation104_spill] sm:$0xff] %v16840_v55  ;;  %v16849_v11 = vadd.f32 %v22504_v44, %v22503_v5  ;;  %v22507_v29 = vld [vmem:[#allocation221_spill] sm:$0xff]  ;;  %v22508_v57 = vld [vmem:[#allocation144_spill] sm:$0xff]  ;;  %v22509_v16 = vld [vmem:[#allocation222_spill] sm:$0xff]  ;;  %v16868_v5 = vadd.f32 %v2747_v12, %v2095_v34  ;;  %v2650_v44 = vpop.f32.mrf.mxu1 }
 0x244   : > { %22502 = vst [vmem:[#allocation54_spill] sm:$0xff] %v16844_v19  ;;  %v16853_v25 = vadd.f32 %v22507_v29, %v22506_v62  ;;  %v16857_v4 = vadd.f32 %v22509_v16, %v22508_v57  ;;  %v22511_v15 = vld [vmem:[#allocation145_spill] sm:$0xff]  ;;  %v22512_v35 = vld [vmem:[#allocation223_spill] sm:$0xff]  ;;  %v22513_v33 = vld [vmem:[#allocation146_spill] sm:$0xff]  ;;  %v2748_v29 = vadd.f32 %v2517_v38, %v16336_v7 }
 0x245   : > { %22505 = vst [vmem:[#allocation105_spill] sm:$0xff] %v16849_v11  ;;  %v16862_v19 = vadd.f32 %v22512_v35, %v22511_v15  ;;  %v22514_v59 = vld [vmem:[#allocation224_spill] sm:$0xff]  ;;  %v22516_v62 = vld [vmem:[#allocation147_spill] sm:$0xff]  ;;  %v22517_v11 = vld [vmem:[#allocation225_spill] sm:$0xff]  ;;  %v2750_v15 = vadd.f32 %v2650_v44, %v16340_v56  ;;  %v2519_v35 = vpop.f32.mrf.mxu0 }
 0x246   : > { %22510 = vst [vmem:[#allocation55_spill] sm:$0xff] %v16857_v4  ;;  %v16866_v55 = vadd.f32 %v22514_v59, %v22513_v33  ;;  %v16873_v57 = vadd.f32 %v22517_v11, %v22516_v62  ;;  %v22518_v16 = vld [vmem:[#allocation148_spill] sm:$0xff]  ;;  %v22519_v63 = vld [vmem:[#allocation226_spill] sm:$0xff]  ;;  %v16879_v4 = vadd.f32 %v2749_v1, %v2228_v2  ;;  %v22520_v33 = vld [vmem:[#allocation149_spill] sm:$0xff]  ;;  %v2751_v11 = vadd.f32 %v2519_v35, %v16344_v61  ;;  %v2652_v62 = vpop.f32.mrf.mxu1 }
 0x247   : > { %v16877_v26 = vadd.f32 %v22519_v63, %v22518_v16  ;;  %v22521_v59 = vld [vmem:[#allocation227_spill] sm:$0xff]  ;;  %v22522_v12 = vld [vmem:[#allocation150_spill] sm:$0xff]  ;;  %v22523_v7 = vld [vmem:[#allocation228_spill] sm:$0xff]  ;;  %v16901_v63 = vadd.f32 %v2750_v15, %v2230_v49 }
 0x248   : > { %22515 = vst [vmem:[#allocation106_spill] sm:$0xff] %v16866_v55  ;;  %v16884_v34 = vadd.f32 %v22521_v59, %v22520_v33  ;;  %v16888_v38 = vadd.f32 %v22523_v7, %v22522_v12  ;;  %v16890_v55 = vadd.f32 %v2748_v29, %v2097_v14  ;;  %v22525_v16 = vld [vmem:[#allocation151_spill] sm:$0xff]  ;;  %v22526_v1 = vld [vmem:[#allocation152_spill] sm:$0xff]  ;;  %v22527_v56 = vld [vmem:[#allocation229_spill] sm:$0xff]  ;;  %v2753_v33 = vadd.f32 %v2652_v62, %v16348_v30  ;;  %v16904_v59 = vpop.f32.mrf.mxu0  ;;  %v2654_v49 = vpop.f32.mrf.mxu1 }
 0x249   : > { %v16895_v2 = vadd.f32 %v16302_v21, %v22525_v16  ;;  %v16899_v44 = vadd.f32 %v22527_v56, %v22526_v1  ;;  %v22528_v12 = vld [vmem:[#allocation153_spill] sm:$0xff]  ;;  %v22529_v61 = vld [vmem:[#allocation154_spill] sm:$0xff]  ;;  %v22531_v21 = vld [vmem:[#allocation155_spill] sm:$0xff]  ;;  %v16919_v1 = vadd.f32 %v2751_v11, %v16730_v39 }
 0x24a   : > { %22524 = vst [vmem:[#allocation56_spill] sm:$0xff] %v16888_v38  ;;  %v16908_v14 = vadd.f32 %v16306_v45, %v22528_v12  ;;  %v22530_v29 = vld [vmem:[#allocation230_spill] sm:$0xff]  ;;  %v22532_v7 = vld [vmem:[#allocation231_spill] sm:$0xff]  ;;  %v22533_v15 = vld [vmem:[#allocation156_spill] sm:$0xff] }
 0x24b   : > { %v16912_v35 = vadd.f32 %v22530_v29, %v22529_v61  ;;  %v16916_v16 = vadd.f32 %v22532_v7, %v22531_v21  ;;  %v16923_v30 = vadd.f32 %v16312_v22, %v22533_v15  ;;  %v22535_v62 = vld [vmem:[#allocation157_spill] sm:$0xff]  ;;  %v22536_v56 = vld [vmem:[#allocation232_spill] sm:$0xff]  ;;  %v22537_v12 = vld [vmem:[#allocation158_spill] sm:$0xff]  ;;  %v16934_v29 = vadd.f32 %v2753_v33, %v16734_v17  ;;  %v2525_v21 = vpop.f32.mrf.mxu0 }
 0x24c   : > { %v16927_v45 = vadd.f32 %v22536_v56, %v22535_v62  ;;  %v16931_v61 = vadd.f32 %v16316_v54, %v22537_v12  ;;  %v22539_v7 = vld [vmem:[#allocation159_spill] sm:$0xff]  ;;  %v22540_v39 = vld [vmem:[#allocation233_spill] sm:$0xff]  ;;  %v22541_v38 = vld [vmem:[#allocation160_spill] sm:$0xff]  ;;  %v2658_v12 = vpop.f32.mrf.mxu1 }
 0x24d   : > { %22534 = vst [vmem:[#allocation107_spill] sm:$0xff] %v16923_v30  ;;  %v16938_v11 = vadd.f32 %v22540_v39, %v22539_v7  ;;  %v16942_v22 = vadd.f32 %v16320_v3, %v22541_v38  ;;  %v22542_v15 = vld [vmem:[#allocation161_spill] sm:$0xff]  ;;  %v22543_v30 = vld [vmem:[#allocation234_spill] sm:$0xff]  ;;  %v22546_v17 = vld [vmem:[#allocation163_spill] sm:$0xff]  ;;  %v2755_v3 = vadd.f32 %v2525_v21, %v16362_v40  ;;  %v2757_v38 = vadd.f32 %v2658_v12, %v16366_v41  ;;  %v2527_v39 = vpop.f32.mrf.mxu0 }
 0x24e   : > { %22538 = vst [vmem:[#allocation57_spill] sm:$0xff] %v16931_v61  ;;  %v16946_v62 = vadd.f32 %v22543_v30, %v22542_v15  ;;  %v22544_v56 = vld [vmem:[#allocation162_spill] sm:$0xff]  ;;  %v16954_v33 = vadd.f32 %v16350_v31, %v22546_v17  ;;  %v22547_v61 = vld [vmem:[#allocation164_spill] sm:$0xff]  ;;  %v22548_v30 = vld [vmem:[#allocation165_spill] sm:$0xff]  ;;  %v2660_v40 = vpop.f32.mrf.mxu1 }
 0x24f   : > { %v16950_v54 = vadd.f32 %v16332_v13, %v22544_v56  ;;  %v16958_v7 = vadd.f32 %v16368_v42, %v22547_v61  ;;  %v16964_v15 = vadd.f32 %v16386_v52, %v22548_v30  ;;  %v22549_v13 = vld [vmem:[#allocation166_spill] sm:$0xff]  ;;  %v22551_v17 = vld [vmem:[#allocation168_spill] sm:$0xff]  ;;  %v22552_v61 = vld [vmem:[#allocation169_spill] sm:$0xff]  ;;  %v2837_v12 = vadd.f32 %v2757_v38, %v16752_v60  ;;  %v2529_v30 = vpop.f32.mrf.mxu0 }
 0x250   : > { %v16968_v56 = vadd.f32 %v16404_v58, %v22549_v13  ;;  %v16976_v42 = vadd.f32 %v16440_v24, %v22551_v17  ;;  %v16980_v41 = vadd.f32 %v16458_v9, %v22552_v61  ;;  %v22554_v21 = vld [vmem:[#allocation170_spill] sm:$0xff]  ;;  %v2835_v58 = vadd.f32 %v2755_v3, %v16748_v0  ;;  %v22558_v24 = vld [vmem:[#allocation172_spill] sm:$0xff]  ;;  %v2662_v61 = vpop.f32.mrf.mxu1 }
 0x251   : > { %22545 = vst [vmem:[#allocation108_spill] sm:$0xff] %v16950_v54  ;;  %v22550_v54 = vld [vmem:[#allocation167_spill] sm:$0xff]  ;;  %v16984_v52 = vadd.f32 %v16476_v28, %v22554_v21  ;;  %v16994_v13 = vadd.f32 %v16508_v43, %v22558_v24  ;;  %v2756_v9 = vadd.f32 %v2527_v39, %v16372_v36  ;;  %v2758_v17 = vadd.f32 %v2660_v40, %v16376_v46  ;;  %v22560_v28 = vld [vmem:[#allocation173_spill] sm:$0xff]  ;;  %v22562_v0 = vld [vmem:[#allocation174_spill] sm:$0xff]  ;;  %v2531_v38 = vpop.f32.mrf.mxu0 }
 0x252   : > { %v16972_v31 = vadd.f32 %v16422_v20, %v22550_v54  ;;  %22553 = vst [vmem:[#allocation58_spill] sm:$0xff] %v16980_v41  ;;  %v22556_v20 = vld [vmem:[#allocation171_spill] sm:$0xff]  ;;  %v17000_v21 = vadd.f32 %v16526_v51, %v22560_v28  ;;  %v17004_v60 = vadd.f32 %v16544_v32, %v22562_v0  ;;  %v2761_v3 = vadd.f32 %v2662_v61, %v16384_v48  ;;  %v22566_v36 = vld [vmem:[#allocation176_spill] sm:$0xff]  ;;  %v2664_v32 = vpop.f32.mrf.mxu1  ;;  %v22568_v40 = vld [vmem:[#allocation177_spill] sm:$0xff] }
 0x253   : > { %22555 = vst [vmem:[#allocation109_spill] sm:$0xff] %v16984_v52  ;;  %v16990_v54 = vadd.f32 %v16494_v23, %v22556_v20  ;;  %22559 = vst [vmem:[#allocation110_spill] sm:$0xff] %v16994_v13  ;;  %v2759_v23 = vadd.f32 %v2529_v30, %v16380_v47  ;;  %v22564_v43 = vld [vmem:[#allocation175_spill] sm:$0xff]  ;;  %v17014_v46 = vadd.f32 %v16576_v50, %v22566_v36  ;;  %v22570_v48 = vld [vmem:[#allocation178_spill] sm:$0xff] }
 0x254   : > { %22561 = vst [vmem:[#allocation111_spill] sm:$0xff] %v17000_v21  ;;  %22563 = vst [vmem:[#allocation112_spill] sm:$0xff] %v17004_v60  ;;  %v17010_v20 = vadd.f32 %v16562_v37, %v22564_v43  ;;  %v2836_v51 = vadd.f32 %v2756_v9, %v16756_v10  ;;  %v17018_v39 = vadd.f32 %v2758_v17, %v16760_v6  ;;  %v22572_v37 = vld [vmem:[#allocation179_spill] sm:$0xff]  ;;  %v22574_v50 = vld [vmem:[#allocation180_spill] sm:$0xff]  ;;  %v2535_v10 = vpop.f32.mrf.mxu0 }
 0x255   : > { %22557 = vst [vmem:[#allocation59_spill] sm:$0xff] %v16990_v54  ;;  %22567 = vst [vmem:[#allocation191_spill] sm:$0xff] %v17014_v46  ;;  %v17022_v47 = vadd.f32 %v16596_v8, %v22568_v40  ;;  %v17026_v30 = vadd.f32 %v16614_v18, %v22570_v48  ;;  %v17030_v24 = vadd.f32 %v16632_v53, %v22572_v37  ;;  %v22576_v6 = vld [vmem:[#allocation181_spill] sm:$0xff]  ;;  %v22577_v9 = vld [vmem:[#allocation32_spill] sm:$0xff]  ;;  %v2668_v53 = vpop.f32.mrf.mxu1 }
 0x256   : > { %22565 = vst [vmem:[#allocation113_spill] sm:$0xff] %v17010_v20  ;;  %v17034_v61 = vadd.f32 %v16634_v27, %v22574_v50  ;;  %v17038_v17 = vadd.f32 %v22577_v9, %v22576_v6  ;;  %v22579_v8 = vld [vmem:[#allocation38_spill] sm:$0xff]  ;;  %v22581_v0 = vld [vmem:[#allocation43_spill] sm:$0xff]  ;;  %v22587_v50 = vld [vmem:[#allocation37_spill] sm:$0xff] }
 0x257   : > { %22569 = vst [vmem:[#allocation114_spill] sm:$0xff] %v17022_v47  ;;  %22571 = vst [vmem:[#allocation192_spill] sm:$0xff] %v17026_v30  ;;  %v17042_v28 = vadd.f32 %v22579_v8, %v16868_v5  ;;  %v17045_v18 = vadd.f32 %v2759_v23, %v22581_v0  ;;  %v22582_v43 = vld [vmem:[#allocation95_spill] sm:$0xff]  ;;  %v22583_v40 = vld [vmem:[#allocation182_spill] sm:$0xff] }
 0x258   : > { %22573 = vst [vmem:[#allocation115_spill] sm:$0xff] %v17030_v24  ;;  %22575 = vst [vmem:[#allocation193_spill] sm:$0xff] %v17034_v61  ;;  %v17048_v36 = vadd.f32 %v2761_v3, %v22582_v43  ;;  %v22584_v48 = vld [vmem:[#allocation87_spill] sm:$0xff]  ;;  %v2537_v24 = vpop.f32.mrf.mxu0  ;;  %v22591_v30 = vld [vmem:[#allocation184_spill] sm:$0xff] }
 0x259   : > { %22578 = vst [vmem:[#allocation116_spill] sm:$0xff] %v17038_v17  ;;  %22580 = vst [vmem:[#allocation194_spill] sm:$0xff] %v17042_v28  ;;  %v17052_v27 = vadd.f32 %v22584_v48, %v22583_v40  ;;  %v22586_v37 = vld [vmem:[#allocation183_spill] sm:$0xff]  ;;  %v22590_v17 = vld [vmem:[#allocation240_spill] sm:$0xff] }
 0x25a   : > { %v17056_v61 = vadd.f32 %v22587_v50, %v22586_v37  ;;  %v22589_v6 = vld [vmem:[#allocation239_spill] sm:$0xff]  ;;  %v2765_v5 = vadd.f32 %v2668_v53, %v22590_v17  ;;  %v22592_v23 = vld [vmem:[#allocation90_spill] sm:$0xff]  ;;  %v22594_v3 = vld [vmem:[#allocation185_spill] sm:$0xff] }
 0x25b   : > { %22585 = vst [vmem:[#allocation117_spill] sm:$0xff] %v17052_v27  ;;  %v2763_v9 = vadd.f32 %v2535_v10, %v22589_v6  ;;  %v17062_v0 = vadd.f32 %v22592_v23, %v22591_v30  ;;  %v22595_v43 = vld [vmem:[#allocation92_spill] sm:$0xff]  ;;  %v22597_v60 = vld [vmem:[#allocation186_spill] sm:$0xff]  ;;  %v22600_v27 = vld [vmem:[#allocation187_spill] sm:$0xff]  ;;  %v2670_v10 = vpop.f32.mrf.mxu1 }
 0x25c   : > { %22588 = vst [vmem:[#allocation195_spill] sm:$0xff] %v17056_v61  ;;  %v17066_v47 = vadd.f32 %v22595_v43, %v22594_v3  ;;  %v22598_v40 = vld [vmem:[#allocation42_spill] sm:$0xff]  ;;  %v22603_v6 = vld [vmem:[#allocation235_spill] sm:$0xff]  ;;  %v22604_v53 = vld [vmem:[#allocation236_spill] sm:$0xff]  ;;  %v2539_v3 = vpop.f32.mrf.mxu0 }
 0x25d   : > { %22593 = vst [vmem:[#allocation118_spill] sm:$0xff] %v17062_v0  ;;  %v17070_v48 = vadd.f32 %v22598_v40, %v22597_v60  ;;  %v22601_v37 = vld [vmem:[#allocation94_spill] sm:$0xff]  ;;  %v2752_v17 = vadd.f32 %v16904_v59, %v22603_v6  ;;  %v2754_v61 = vadd.f32 %v2654_v49, %v22604_v53  ;;  %v22605_v30 = vld [vmem:[#allocation97_spill] sm:$0xff]  ;;  %v22607_v43 = vld [vmem:[#allocation188_spill] sm:$0xff] }
 0x25e   : > { %22596 = vst [vmem:[#allocation196_spill] sm:$0xff] %v17066_v47  ;;  %v17074_v50 = vadd.f32 %v22601_v37, %v22600_v27  ;;  %v2843_v23 = vadd.f32 %v2763_v9, %v22605_v30  ;;  %v22606_v0 = vld [vmem:[#allocation46_spill] sm:$0xff]  ;;  %v22608_v47 = vld [vmem:[#allocation45_spill] sm:$0xff]  ;;  %v17092_v37 = vmul.f32 0.01, %v17042_v28  ;;  %v22614_v59 = vld [vmem:[#allocation91_spill] sm:$0xff]  ;;  %v2672_v9 = vpop.f32.mrf.mxu1 }
 0x25f   : > { %22599 = vst [vmem:[#allocation119_spill] sm:$0xff] %v17070_v48  ;;  %v17081_v46 = vadd.f32 %v2765_v5, %v22606_v0  ;;  %v17085_v60 = vadd.f32 %v22608_v47, %v22607_v43  ;;  %v22610_v40 = vld [vmem:[#allocation189_spill] sm:$0xff]  ;;  %v22611_v48 = vld [vmem:[#allocation48_spill] sm:$0xff]  ;;  %v17096_v49 = vadd.f32 %v22614_v59, %v16879_v4  ;;  %v22616_v5 = vld [vmem:[#allocation39_spill] sm:$0xff]  ;;  %v2541_v43 = vpop.f32.mrf.mxu0  ;;  %v17113_v4 = vadd.f32 %v22614_v59, %v16934_v29 }
 0x260   : > { %22602 = vst [vmem:[#allocation197_spill] sm:$0xff] %v17074_v50  ;;  %v17089_v27 = vadd.f32 %v22611_v48, %v22610_v40  ;;  %22613 = vst [vmem:[#allocation121_spill] sm:$0xff] %v17092_v37  ;;  %v17100_v0 = vadd.f32 %v22616_v5, %v16890_v55  ;;  %v22618_v6 = vld [vmem:[#allocation40_spill] sm:$0xff]  ;;  %v17108_v48 = vadd.f32 %v22579_v8, %v16919_v1  ;;  %v22621_v53 = vld [vmem:[#allocation241_spill] sm:$0xff]  ;;  %v2674_v50 = vpop.f32.mrf.mxu1 }
 0x261   : > { %22609 = vst [vmem:[#allocation120_spill] sm:$0xff] %v17085_v60  ;;  %22615 = vst [vmem:[#allocation199_spill] sm:$0xff] %v17096_v49  ;;  %v17104_v47 = vadd.f32 %v22618_v6, %v16901_v63  ;;  %v2764_v30 = vadd.f32 %v2537_v24, %v22621_v53  ;;  %v22623_v40 = vld [vmem:[#allocation242_spill] sm:$0xff]  ;;  %v22624_v28 = vld [vmem:[#allocation243_spill] sm:$0xff]  ;;  %v17121_v1 = vadd.f32 %v22579_v8, %v2835_v58  ;;  %v2545_v53 = vpop.f32.mrf.mxu0 }
 0x262   : > { %22612 = vst [vmem:[#allocation198_spill] sm:$0xff] %v17089_v27  ;;  %22617 = vst [vmem:[#allocation122_spill] sm:$0xff] %v17100_v0  ;;  %v2766_v37 = vadd.f32 %v2670_v10, %v22623_v40  ;;  %v2767_v55 = vadd.f32 %v2539_v3, %v22624_v28  ;;  %v22625_v27 = vld [vmem:[#allocation60_spill] sm:$0xff]  ;;  %v22626_v63 = vld [vmem:[#allocation41_spill] sm:$0xff]  ;;  %v17124_v24 = vadd.f32 %v22614_v59, %v2837_v12 }
 0x263   : > { %22619 = vst [vmem:[#allocation200_spill] sm:$0xff] %v17104_v47  ;;  %22620 = vst [vmem:[#allocation123_spill] sm:$0xff] %v17108_v48  ;;  %v2769_v60 = vadd.f32 %v2672_v9, %v22625_v27  ;;  %v2832_v20 = vadd.f32 %v2752_v17, %v22626_v63  ;;  %v22627_v21 = vld [vmem:[#allocation93_spill] sm:$0xff]  ;;  %v22630_v29 = vld [vmem:[#allocation98_spill] sm:$0xff]  ;;  %v2678_v17 = vpop.f32.mrf.mxu1 }
 0x264   : > { %22622 = vst [vmem:[#allocation201_spill] sm:$0xff] %v17113_v4  ;;  %v2834_v13 = vadd.f32 %v2754_v61, %v22627_v21  ;;  %22628 = vst [vmem:[#allocation124_spill] sm:$0xff] %v17121_v1  ;;  %v2844_v54 = vadd.f32 %v2764_v30, %v22630_v29  ;;  %v22631_v52 = vld [vmem:[#allocation47_spill] sm:$0xff]  ;;  %v22633_v27 = vld [vmem:[#allocation49_spill] sm:$0xff]  ;;  %v17137_v21 = vadd.f32 %v22616_v5, %v2836_v51  ;;  %v2547_v30 = vpop.f32.mrf.mxu0  ;;  %v17153_v51 = vmul.f32 0.01, %v17104_v47 }
 0x265   : > { %22629 = vst [vmem:[#allocation202_spill] sm:$0xff] %v17124_v24  ;;  %v17128_v10 = vadd.f32 %v2766_v37, %v22631_v52  ;;  %v22632_v28 = vld [vmem:[#allocation99_spill] sm:$0xff]  ;;  %v17134_v9 = vadd.f32 %v2769_v60, %v22633_v27  ;;  %v22635_v58 = vld [vmem:[#allocation237_spill] sm:$0xff]  ;;  %v22637_v63 = vld [vmem:[#allocation62_spill] sm:$0xff]  ;;  %v17150_v60 = vmul.f32 0.01, %v17100_v0 }
 0x266   : > { %v17131_v3 = vadd.f32 %v2767_v55, %v22632_v28  ;;  %22634 = vst [vmem:[#allocation125_spill] sm:$0xff] %v17137_v21  ;;  %v2760_v61 = vadd.f32 %v2531_v38, %v22635_v58  ;;  %v22636_v12 = vld [vmem:[#allocation3_spill] sm:$0xff]  ;;  %v2773_v41 = vadd.f32 %v2678_v17, %v22637_v63  ;;  %v22638_v29 = vld [vmem:[#allocation190_spill] sm:$0xff]  ;;  %v22639_v52 = vld [vmem:[#allocation101_spill] sm:$0xff]  ;;  %v17147_v55 = vmul.f32 0.01, %v17096_v49  ;;  %v2680_v28 = vpop.f32.mrf.mxu1 }
 0x267   : > { %v2771_v40 = vadd.f32 %v2545_v53, %v22636_v12  ;;  %v17144_v37 = vadd.f32 %v22639_v52, %v22638_v29  ;;  %22641 = vst [vmem:[#allocation126_spill] sm:$0xff] %v17150_v60  ;;  %22642 = vst [vmem:[#allocation204_spill] sm:$0xff] %v17153_v51  ;;  %v17156_v38 = vmul.f32 0.01, %v17108_v48  ;;  %v22644_v53 = vld [vmem:[#allocation238_spill] sm:$0xff]  ;;  %v22645_v17 = vld [vmem:[#allocation51_spill] sm:$0xff]  ;;  %v2549_v29 = vpop.f32.mrf.mxu0  ;;  %v17168_v47 = vadd.f32 %v22618_v6, %v2834_v13 }
 0x268   : > { %22640 = vst [vmem:[#allocation203_spill] sm:$0xff] %v17147_v55  ;;  %v2762_v27 = vadd.f32 %v2664_v32, %v22644_v53  ;;  %v22646_v12 = vld [vmem:[#allocation102_spill] sm:$0xff]  ;;  %v17162_v52 = vmul.f32 0.01, %v17113_v4  ;;  %v17165_v55 = vadd.f32 %v22616_v5, %v2832_v20  ;;  %v17172_v51 = vadd.f32 %v22618_v6, %v17018_v39  ;;  %v22654_v53 = vld [vmem:[#allocation44_spill] sm:$0xff]  ;;  %v22658_v60 = vld [vmem:[#allocation5_spill] sm:$0xff] }
 0x269   : > { %22643 = vst [vmem:[#allocation127_spill] sm:$0xff] %v17156_v38  ;;  %v2851_v58 = vadd.f32 %v2771_v40, %v22645_v17  ;;  %v2853_v63 = vadd.f32 %v2773_v41, %v22646_v12  ;;  %22649 = vst [vmem:[#allocation206_spill] sm:$0xff] %v17168_v47  ;;  %v2682_v38 = vpop.f32.mrf.mxu1  ;;  %v17175_v32 = vmul.f32 0.01, %v17121_v1  ;;  %v17178_v41 = vmul.f32 0.01, %v17124_v24  ;;  %v2551_v17 = vpop.f32.mrf.mxu0 }
 0x26a   : > { %22647 = vst [vmem:[#allocation205_spill] sm:$0xff] %v17162_v52  ;;  %22648 = vst [vmem:[#allocation128_spill] sm:$0xff] %v17165_v55  ;;  %v17181_v40 = vmul.f32 0.01, %v17137_v21  ;;  %v2840_v20 = vadd.f32 %v2760_v61, %v22654_v53  ;;  %v17186_v13 = vadd.f32 %v22579_v8, %v17045_v18  ;;  %v22656_v12 = vld [vmem:[#allocation4_spill] sm:$0xff]  ;;  %v22657_v52 = vld [vmem:[#allocation63_spill] sm:$0xff]  ;;  %v2775_v55 = vadd.f32 %v2549_v29, %v22658_v60 }
 0x26b   : > { %22650 = vst [vmem:[#allocation129_spill] sm:$0xff] %v17172_v51  ;;  %22651 = vst [vmem:[#allocation207_spill] sm:$0xff] %v17175_v32  ;;  %v2772_v39 = vadd.f32 %v2547_v30, %v22656_v12  ;;  %v2774_v47 = vadd.f32 %v2680_v28, %v22657_v52  ;;  %v2684_v32 = vpop.f32.mrf.mxu1  ;;  %v22660_v21 = vld [vmem:[#allocation96_spill] sm:$0xff]  ;;  %v17197_v61 = vadd.f32 %v22579_v8, %v2843_v23  ;;  %v2555_v18 = vpop.f32.mrf.mxu0  ;;  %v17201_v49 = vmul.f32 0.01, %v17172_v51  ;;  %v22666_v29 = vld [vmem:[#allocation103_spill] sm:$0xff] }
 0x26c   : > { %22652 = vst [vmem:[#allocation130_spill] sm:$0xff] %v17178_v41  ;;  %22653 = vst [vmem:[#allocation208_spill] sm:$0xff] %v17181_v40  ;;  %v17193_v41 = vadd.f32 %v22614_v59, %v17048_v36  ;;  %v2842_v40 = vadd.f32 %v2762_v27, %v22660_v21  ;;  %v22662_v53 = vld [vmem:[#allocation64_spill] sm:$0xff]  ;;  %v17205_v30 = vadd.f32 %v22614_v59, %v17081_v46  ;;  %v22668_v23 = vld [vmem:[#allocation2_spill] sm:$0xff] }
 0x26d   : > { %22655 = vst [vmem:[#allocation131_spill] sm:$0xff] %v17186_v13  ;;  %22661 = vst [vmem:[#allocation132_spill] sm:$0xff] %v17197_v61  ;;  %v2777_v4 = vadd.f32 %v2682_v38, %v22662_v53  ;;  %v22665_v60 = vld [vmem:[#allocation52_spill] sm:$0xff]  ;;  %v2854_v36 = vadd.f32 %v2774_v47, %v22666_v29  ;;  %v2688_v52 = vpop.f32.mrf.mxu1  ;;  %v17210_v21 = vadd.f32 %v22616_v5, %v2840_v20  ;;  %v22669_v12 = vld [vmem:[#allocation53_spill] sm:$0xff]  ;;  %v2557_v51 = vpop.f32.mrf.mxu0  ;;  %v17222_v20 = vmul.f32 0.01, %v17186_v13 }
 0x26e   : > { %22659 = vst [vmem:[#allocation209_spill] sm:$0xff] %v17193_v41  ;;  %22663 = vst [vmem:[#allocation210_spill] sm:$0xff] %v17201_v49  ;;  %v2852_v28 = vadd.f32 %v2772_v39, %v22665_v60  ;;  %v2768_v27 = vadd.f32 %v2541_v43, %v22668_v23  ;;  %v2855_v38 = vadd.f32 %v2775_v55, %v22669_v12  ;;  %v22670_v53 = vld [vmem:[#allocation104_spill] sm:$0xff]  ;;  %v22672_v46 = vld [vmem:[#allocation61_spill] sm:$0xff]  ;;  %v17225_v43 = vmul.f32 0.01, %v17193_v41 }
 0x26f   : > { %22664 = vst [vmem:[#allocation133_spill] sm:$0xff] %v17205_v30  ;;  %22667 = vst [vmem:[#allocation211_spill] sm:$0xff] %v17210_v21  ;;  %v2857_v48 = vadd.f32 %v2777_v4, %v22670_v53  ;;  %v17216_v49 = vadd.f32 %v22616_v5, %v2844_v54  ;;  %v2770_v0 = vadd.f32 %v2674_v50, %v22672_v46  ;;  %v22673_v24 = vld [vmem:[#allocation8_spill] sm:$0xff]  ;;  %v22674_v60 = vld [vmem:[#allocation9_spill] sm:$0xff]  ;;  %v2690_v29 = vpop.f32.mrf.mxu1  ;;  %v17231_v4 = vmul.f32 0.01, %v17197_v61  ;;  %v2559_v54 = vpop.f32.mrf.mxu0 }
 0x270   : > { %v2779_v39 = vadd.f32 %v2555_v18, %v22673_v24  ;;  %v2781_v47 = vadd.f32 %v2688_v52, %v22674_v60  ;;  %22675 = vst [vmem:[#allocation212_spill] sm:$0xff] %v17222_v20  ;;  %22676 = vst [vmem:[#allocation135_spill] sm:$0xff] %v17225_v43  ;;  %v17228_v55 = vadd.f32 %v22618_v6, %v2842_v40  ;;  %v17234_v50 = vmul.f32 0.01, %v17205_v30  ;;  %v22680_v24 = vld [vmem:[#allocation6_spill] sm:$0xff]  ;;  %v22681_v23 = vld [vmem:[#allocation55_spill] sm:$0xff] }
 0x271   : > { %22671 = vst [vmem:[#allocation134_spill] sm:$0xff] %v17216_v49  ;;  %22678 = vst [vmem:[#allocation136_spill] sm:$0xff] %v17231_v4  ;;  %v2776_v18 = vadd.f32 %v2551_v17, %v22680_v24  ;;  %v2692_v53 = vpop.f32.mrf.mxu1  ;;  %v17241_v46 = vadd.f32 %v22618_v6, %v17128_v10  ;;  %v17245_v40 = vadd.f32 %v22579_v8, %v17131_v3  ;;  %v22685_v43 = vld [vmem:[#allocation100_spill] sm:$0xff]  ;;  %v2561_v17 = vpop.f32.mrf.mxu0  ;;  %v22689_v10 = vld [vmem:[#allocation65_spill] sm:$0xff] }
 0x272   : > { %22677 = vst [vmem:[#allocation213_spill] sm:$0xff] %v17228_v55  ;;  %22679 = vst [vmem:[#allocation214_spill] sm:$0xff] %v17234_v50  ;;  %v2859_v52 = vadd.f32 %v2779_v39, %v16853_v25  ;;  %v2861_v12 = vadd.f32 %v2781_v47, %v22681_v23  ;;  %v17249_v60 = vadd.f32 %v22614_v59, %v17134_v9  ;;  %v17253_v25 = vmul.f32 0.01, %v17216_v49  ;;  %v22687_v39 = vld [vmem:[#allocation50_spill] sm:$0xff] }
 0x273   : > { %22682 = vst [vmem:[#allocation137_spill] sm:$0xff] %v17241_v46  ;;  %22683 = vst [vmem:[#allocation215_spill] sm:$0xff] %v17245_v40  ;;  %v2848_v20 = vadd.f32 %v2768_v27, %v22685_v43  ;;  %v2850_v47 = vadd.f32 %v2770_v0, %v22687_v39  ;;  %v17257_v24 = vadd.f32 %v22579_v8, %v2851_v58  ;;  %v2694_v55 = vpop.f32.mrf.mxu1  ;;  %v22691_v21 = vld [vmem:[#allocation10_spill] sm:$0xff]  ;;  %v22693_v27 = vld [vmem:[#allocation11_spill] sm:$0xff]  ;;  %v2565_v41 = vpop.f32.mrf.mxu0 }
 0x274   : > { %22684 = vst [vmem:[#allocation138_spill] sm:$0xff] %v17249_v60  ;;  %22686 = vst [vmem:[#allocation216_spill] sm:$0xff] %v17253_v25  ;;  %v2780_v23 = vadd.f32 %v2557_v51, %v22689_v10  ;;  %v17261_v3 = vadd.f32 %v22614_v59, %v2853_v63  ;;  %v2782_v9 = vadd.f32 %v2690_v29, %v22691_v21  ;;  %v22692_v50 = vld [vmem:[#allocation66_spill] sm:$0xff]  ;;  %v22697_v51 = vld [vmem:[#allocation7_spill] sm:$0xff] }
 0x275   : > { %22688 = vst [vmem:[#allocation139_spill] sm:$0xff] %v17257_v24  ;;  %v2783_v4 = vadd.f32 %v2559_v54, %v22692_v50  ;;  %v2785_v43 = vadd.f32 %v2692_v53, %v22693_v27  ;;  %v17267_v25 = vadd.f32 %v22616_v5, %v2852_v28  ;;  %v17270_v0 = vadd.f32 %v22618_v6, %v2854_v36  ;;  %v22696_v58 = vld [vmem:[#allocation54_spill] sm:$0xff]  ;;  %v2698_v49 = vpop.f32.mrf.mxu1  ;;  %v2567_v50 = vpop.f32.mrf.mxu0  ;;  %v22701_v53 = vld [vmem:[#allocation68_spill] sm:$0xff]  ;;  %v22702_v27 = vld [vmem:[#allocation13_spill] sm:$0xff] }
 0x276   : > { %22690 = vst [vmem:[#allocation217_spill] sm:$0xff] %v17261_v3  ;;  %v2856_v39 = vadd.f32 %v2776_v18, %v22696_v58  ;;  %v2778_v10 = vadd.f32 %v2684_v32, %v22697_v51  ;;  %v2860_v63 = vadd.f32 %v2780_v23, %v16862_v19  ;;  %v22698_v13 = vld [vmem:[#allocation106_spill] sm:$0xff]  ;;  %v17279_v28 = vadd.f32 %v22579_v8, %v2855_v38 }
 0x277   : > { %22694 = vst [vmem:[#allocation140_spill] sm:$0xff] %v17267_v25  ;;  %22695 = vst [vmem:[#allocation218_spill] sm:$0xff] %v17270_v0  ;;  %v2862_v21 = vadd.f32 %v2782_v9, %v22698_v13  ;;  %v2863_v29 = vadd.f32 %v2783_v4, %v16873_v57  ;;  %v2865_v54 = vadd.f32 %v2785_v43, %v16877_v26  ;;  %v2700_v58 = vpop.f32.mrf.mxu1  ;;  %v17287_v19 = vmul.f32 0.01, %v17241_v46  ;;  %v2569_v38 = vpop.f32.mrf.mxu0 }
 0x278   : > { %22699 = vst [vmem:[#allocation141_spill] sm:$0xff] %v17279_v28  ;;  %v17282_v36 = vadd.f32 %v22614_v59, %v2857_v48  ;;  %v2787_v18 = vadd.f32 %v2565_v41, %v22701_v53  ;;  %v2789_v32 = vadd.f32 %v2698_v49, %v22702_v27  ;;  %v17290_v13 = vmul.f32 0.01, %v17245_v40  ;;  %v22708_v41 = vld [vmem:[#allocation67_spill] sm:$0xff]  ;;  %v22763_v40 = vld [vmem:[#allocation25_spill] sm:$0xff] }
 0x279   : > { %22703 = vst [vmem:[#allocation142_spill] sm:$0xff] %v17287_v19  ;;  %v17293_v57 = vmul.f32 0.01, %v17249_v60  ;;  %v17296_v26 = vadd.f32 %v22616_v5, %v2848_v20  ;;  %v17299_v48 = vadd.f32 %v22618_v6, %v2850_v47  ;;  %v2784_v4 = vadd.f32 %v2561_v17, %v22708_v41  ;;  %v2702_v9 = vpop.f32.mrf.mxu1  ;;  %v2571_v47 = vpop.f32.mrf.mxu0 }
 0x27a   : > { %22700 = vst [vmem:[#allocation219_spill] sm:$0xff] %v17282_v36  ;;  %22704 = vst [vmem:[#allocation220_spill] sm:$0xff] %v17290_v13  ;;  %v2867_v49 = vadd.f32 %v2787_v18, %v16895_v2  ;;  %v2869_v23 = vadd.f32 %v2789_v32, %v16899_v44  ;;  %v17305_v43 = vmul.f32 0.01, %v17257_v24  ;;  %v17308_v51 = vmul.f32 0.01, %v17261_v3 }
 0x27b   : > { %22705 = vst [vmem:[#allocation143_spill] sm:$0xff] %v17293_v57  ;;  %22706 = vst [vmem:[#allocation221_spill] sm:$0xff] %v17296_v26  ;;  %v17311_v20 = vmul.f32 0.01, %v17267_v25  ;;  %v17314_v53 = vadd.f32 %v22616_v5, %v2856_v39  ;;  %v17317_v17 = vmul.f32 0.01, %v17270_v0  ;;  %v2704_v32 = vpop.f32.mrf.mxu1  ;;  %v17327_v41 = vadd.f32 %v22579_v8, %v2859_v52  ;;  %v2575_v26 = vpop.f32.mrf.mxu0 }
 0x27c   : > { %22707 = vst [vmem:[#allocation144_spill] sm:$0xff] %v17299_v48  ;;  %22709 = vst [vmem:[#allocation222_spill] sm:$0xff] %v17305_v43  ;;  %v17320_v2 = vmul.f32 0.01, %v17279_v28  ;;  %v17323_v44 = vmul.f32 0.01, %v17282_v36  ;;  %v17339_v52 = vadd.f32 %v22616_v5, %v2860_v63 }
 0x27d   : > { %22710 = vst [vmem:[#allocation145_spill] sm:$0xff] %v17308_v51  ;;  %22711 = vst [vmem:[#allocation223_spill] sm:$0xff] %v17311_v20  ;;  %v22716_v18 = vld [vmem:[#allocation105_spill] sm:$0xff]  ;;  %v22718_v39 = vld [vmem:[#allocation14_spill] sm:$0xff]  ;;  %v17333_v51 = vadd.f32 %v22614_v59, %v2861_v12  ;;  %v17347_v12 = vadd.f32 %v22579_v8, %v2863_v29  ;;  %v17361_v29 = vmul.f32 0.01, %v17327_v41 }
 0x27e   : > { %22712 = vst [vmem:[#allocation146_spill] sm:$0xff] %v17314_v53  ;;  %22713 = vst [vmem:[#allocation224_spill] sm:$0xff] %v17317_v17  ;;  %v2858_v27 = vadd.f32 %v2778_v10, %v22716_v18  ;;  %v22717_v57 = vld [vmem:[#allocation69_spill] sm:$0xff]  ;;  %v2790_v19 = vadd.f32 %v2700_v58, %v22718_v39  ;;  %v22719_v48 = vld [vmem:[#allocation70_spill] sm:$0xff]  ;;  %v2708_v18 = vpop.f32.mrf.mxu1 }
 0x27f   : > { %22714 = vst [vmem:[#allocation147_spill] sm:$0xff] %v17320_v2  ;;  %22715 = vst [vmem:[#allocation225_spill] sm:$0xff] %v17323_v44  ;;  %v2788_v13 = vadd.f32 %v2567_v50, %v22717_v57  ;;  %v2791_v46 = vadd.f32 %v2569_v38, %v22719_v48  ;;  %v2864_v2 = vadd.f32 %v2784_v4, %v16884_v34  ;;  %v22720_v43 = vld [vmem:[#allocation12_spill] sm:$0xff]  ;;  %v22721_v17 = vld [vmem:[#allocation15_spill] sm:$0xff]  ;;  %v2577_v38 = vpop.f32.mrf.mxu0  ;;  %vm3045_vm1 = vcmp.gt.f32.partialorder %v17347_v12, 0.0 }
 0x280   : > { %v2786_v44 = vadd.f32 %v2694_v55, %v22720_v43  ;;  %v2793_v10 = vadd.f32 %v2702_v9, %v22721_v17  ;;  %22722 = vst [vmem:[#allocation148_spill] sm:$0xff] %v17339_v52  ;;  %v17342_v50 = vadd.f32 %v22618_v6, %v2862_v21  ;;  %v2870_v57 = vadd.f32 %v2790_v19, %v16912_v35  ;;  %v22724_v48 = vld [vmem:[#allocation107_spill] sm:$0xff]  ;;  %v2710_v63 = vpop.f32.mrf.mxu1  ;;  %v22726_v21 = vld [vmem:[#allocation16_spill] sm:$0xff]  ;;  %v22741_v0 = vld [vmem:[#allocation73_spill] sm:$0xff] }
 0x281   : > { %v2868_v58 = vadd.f32 %v2788_v13, %v16908_v14  ;;  %v17350_v34 = vadd.f32 %v22614_v59, %v2865_v54  ;;  %v2871_v55 = vadd.f32 %v2791_v46, %v16916_v16  ;;  %v17355_v9 = vadd.f32 %v22618_v6, %v2858_v27  ;;  %v22727_v14 = vld [vmem:[#allocation17_spill] sm:$0xff]  ;;  %v22728_v35 = vld [vmem:[#allocation72_spill] sm:$0xff]  ;;  %v2579_v17 = vpop.f32.mrf.mxu0  ;;  %22729 = vst [vmem:[#allocation227_spill] sm:$0xff] %v17361_v29  ;;  %v22742_v53 = vld [vmem:[#allocation19_spill] sm:$0xff] }
 0x282   : > { %22723 = vst [vmem:[#allocation226_spill] sm:$0xff] %v17342_v50  ;;  %v2873_v4 = vadd.f32 %v2793_v10, %v22724_v48  ;;  %v2792_v43 = vadd.f32 %v2571_v47, %v22726_v21  ;;  %v2795_v13 = vadd.f32 %v2575_v26, %v22727_v14  ;;  %v2797_v19 = vadd.f32 %v2708_v18, %v22728_v35  ;;  %v22732_v46 = vld [vmem:[#allocation56_spill] sm:$0xff]  ;;  %v2712_v27 = vpop.f32.mrf.mxu1  ;;  %v22734_v47 = vld [vmem:[#allocation71_spill] sm:$0xff]  ;;  %v22743_v25 = vld [vmem:[#allocation74_spill] sm:$0xff] }
 0x283   : > { %22725 = vst [vmem:[#allocation149_spill] sm:$0xff] %v17355_v9  ;;  %v17364_v54 = vmul.f32 0.01, %v17333_v51  ;;  %v17367_v16 = vadd.f32 %v22616_v5, %v2864_v2  ;;  %v2866_v39 = vadd.f32 %v2786_v44, %v22732_v46  ;;  %v17371_v10 = vmul.f32 0.01, %v17339_v52  ;;  %v2581_v21 = vpop.f32.mrf.mxu0  ;;  %v22778_v36 = vld [vmem:[#allocation30_spill] sm:$0xff] }
 0x284   : > { %v2794_v26 = vadd.f32 %v2704_v32, %v22734_v47  ;;  %v2875_v18 = vadd.f32 %v2795_v13, %v16938_v11  ;;  %v2877_v48 = vadd.f32 %v2797_v19, %v16942_v22  ;;  %v17377_v14 = vmul.f32 0.01, %v17342_v50  ;;  %v2714_v46 = vpop.f32.mrf.mxu1  ;;  %v22739_v13 = vld [vmem:[#allocation18_spill] sm:$0xff]  ;;  %v22785_v24 = vld [vmem:[#allocation85_spill] sm:$0xff] }
 0x285   : > { %22730 = vst [vmem:[#allocation150_spill] sm:$0xff] %v17364_v54  ;;  %22731 = vst [vmem:[#allocation228_spill] sm:$0xff] %v17367_v16  ;;  %v17380_v35 = vmul.f32 0.01, %v17347_v12  ;;  %v17383_v2 = vmul.f32 0.01, %v17350_v34  ;;  %v17386_v44 = vadd.f32 %v22579_v8, %v2867_v49  ;;  %v17389_v32 = vadd.f32 %v22614_v59, %v2869_v23  ;;  %v2585_v47 = vpop.f32.mrf.mxu0 }
 0x286   : > { %22733 = vst [vmem:[#allocation151_spill] sm:$0xff] %v17371_v10  ;;  %22735 = vst [vmem:[#allocation152_spill] sm:$0xff] %v17377_v14  ;;  %v17392_v11 = vadd.f32 %v22616_v5, %v2868_v58  ;;  %v2872_v22 = vadd.f32 %v2792_v43, %v16927_v45  ;;  %v2796_v19 = vadd.f32 %v2577_v38, %v22739_v13  ;;  %v2718_v1 = vpop.f32.mrf.mxu1  ;;  %v22744_v45 = vld [vmem:[#allocation57_spill] sm:$0xff]  ;;  %v22745_v38 = vld [vmem:[#allocation20_spill] sm:$0xff] }
 0x287   : > { %22736 = vst [vmem:[#allocation229_spill] sm:$0xff] %v17380_v35  ;;  %22737 = vst [vmem:[#allocation153_spill] sm:$0xff] %v17383_v2  ;;  %v17397_v9 = vadd.f32 %v22618_v6, %v2870_v57  ;;  %v2798_v20 = vadd.f32 %v2710_v63, %v22741_v0  ;;  %v2799_v49 = vadd.f32 %v2579_v17, %v22742_v53  ;;  %v2587_v54 = vpop.f32.mrf.mxu0  ;;  %v22746_v35 = vld [vmem:[#allocation108_spill] sm:$0xff]  ;;  %v22762_v10 = vld [vmem:[#allocation78_spill] sm:$0xff]  ;;  %vm3049_vm3 = vcmp.gt.f32.partialorder %v17386_v44, 0.0 }
 0x288   : > { %22738 = vst [vmem:[#allocation154_spill] sm:$0xff] %v17392_v11  ;;  %v2801_v2 = vadd.f32 %v2712_v27, %v22743_v25  ;;  %v17403_v23 = vadd.f32 %v22579_v8, %v2871_v55  ;;  %v17406_v58 = vadd.f32 %v22614_v59, %v2873_v4  ;;  %v2874_v43 = vadd.f32 %v2794_v26, %v22744_v45  ;;  %v2720_v63 = vpop.f32.mrf.mxu1  ;;  %v22747_v17 = vld [vmem:[#allocation76_spill] sm:$0xff]  ;;  %v22748_v26 = vld [vmem:[#allocation22_spill] sm:$0xff] }
 0x289   : > { %22740 = vst [vmem:[#allocation230_spill] sm:$0xff] %v17397_v9  ;;  %v2800_v13 = vadd.f32 %v2581_v21, %v22745_v38  ;;  %v2876_v57 = vadd.f32 %v2796_v19, %v16946_v62  ;;  %v2878_v0 = vadd.f32 %v2798_v20, %v22746_v35  ;;  %v2879_v53 = vadd.f32 %v2799_v49, %v16954_v33  ;;  %v2589_v45 = vpop.f32.mrf.mxu0  ;;  %v22757_v49 = vld [vmem:[#allocation75_spill] sm:$0xff]  ;;  %v22761_v14 = vld [vmem:[#allocation24_spill] sm:$0xff] }
 0x28a   : > { %v2881_v25 = vadd.f32 %v2801_v2, %v16958_v7  ;;  %v17415_v55 = vadd.f32 %v22579_v8, %v2875_v18  ;;  %v17418_v4 = vadd.f32 %v22614_v59, %v2877_v48  ;;  %v2803_v27 = vadd.f32 %v2585_v47, %v22747_v17  ;;  %v2722_v18 = vpop.f32.mrf.mxu1 }
 0x28b   : > { %v2805_v21 = vadd.f32 %v2718_v1, %v22748_v26  ;;  %v17423_v62 = vadd.f32 %v22618_v6, %v2866_v39  ;;  %v17426_v20 = vmul.f32 0.01, %v17386_v44  ;;  %v17429_v33 = vmul.f32 0.01, %v17389_v32  ;;  %v2591_v2 = vpop.f32.mrf.mxu0 }
 0x28c   : > { %v17432_v7 = vadd.f32 %v22616_v5, %v2872_v22  ;;  %v17435_v48 = vmul.f32 0.01, %v17392_v11  ;;  %v17438_v35 = vmul.f32 0.01, %v17397_v9  ;;  %v2883_v1 = vadd.f32 %v2803_v27, %v16972_v31  ;;  %v2724_v17 = vpop.f32.mrf.mxu1 }
 0x28d   : > { %22749 = vst [vmem:[#allocation155_spill] sm:$0xff] %v17423_v62  ;;  %22750 = vst [vmem:[#allocation231_spill] sm:$0xff] %v17426_v20  ;;  %v2885_v39 = vadd.f32 %v2805_v21, %v16976_v42  ;;  %v17443_v19 = vmul.f32 0.01, %v17403_v23  ;;  %v17446_v47 = vmul.f32 0.01, %v17406_v58  ;;  %v2880_v22 = vadd.f32 %v2800_v13, %v16964_v15  ;;  %v2595_v27 = vpop.f32.mrf.mxu0 }
 0x28e   : > { %22751 = vst [vmem:[#allocation156_spill] sm:$0xff] %v17429_v33  ;;  %22752 = vst [vmem:[#allocation157_spill] sm:$0xff] %v17432_v7  ;;  %v2802_v38 = vadd.f32 %v2714_v46, %v22757_v49  ;;  %v17451_v26 = vadd.f32 %v22618_v6, %v2874_v43  ;;  %v17454_v29 = vmul.f32 0.01, %v17415_v55  ;;  %v17457_v31 = vmul.f32 0.01, %v17418_v4  ;;  %v2728_v60 = vpop.f32.mrf.mxu1 }
 0x28f   : > { %22753 = vst [vmem:[#allocation232_spill] sm:$0xff] %v17435_v48  ;;  %22754 = vst [vmem:[#allocation158_spill] sm:$0xff] %v17438_v35  ;;  %v17460_v42 = vadd.f32 %v22616_v5, %v2876_v57  ;;  %v17463_v21 = vadd.f32 %v22618_v6, %v2878_v0  ;;  %v22759_v15 = vld [vmem:[#allocation77_spill] sm:$0xff]  ;;  %v22760_v46 = vld [vmem:[#allocation23_spill] sm:$0xff]  ;;  %v2807_v43 = vadd.f32 %v2589_v45, %v22761_v14  ;;  %v2597_v16 = vpop.f32.mrf.mxu0  ;;  %vm3057_vm12 = vcmp.gt.f32.partialorder %v17415_v55, 0.0 }
 0x290   : > { %22755 = vst [vmem:[#allocation159_spill] sm:$0xff] %v17443_v19  ;;  %22756 = vst [vmem:[#allocation233_spill] sm:$0xff] %v17446_v47  ;;  %v2804_v13 = vadd.f32 %v2587_v54, %v22759_v15  ;;  %v2806_v49 = vadd.f32 %v2720_v63, %v22760_v46  ;;  %v17469_v62 = vadd.f32 %v22579_v8, %v2879_v53  ;;  %v22764_v63 = vld [vmem:[#allocation58_spill] sm:$0xff]  ;;  %v22765_v14 = vld [vmem:[#allocation109_spill] sm:$0xff]  ;;  %v2730_v46 = vpop.f32.mrf.mxu1  ;;  %vm3059_vm13 = vcmp.gt.f32.partialorder %v17418_v4, 0.0 }
 0x291   : > { %22758 = vst [vmem:[#allocation160_spill] sm:$0xff] %v17451_v26  ;;  %v17472_v50 = vadd.f32 %v22614_v59, %v2881_v25  ;;  %v2809_v57 = vadd.f32 %v2722_v18, %v22762_v10  ;;  %v2808_v30 = vadd.f32 %v2591_v2, %v22763_v40  ;;  %v17477_v0 = vadd.f32 %v22616_v5, %v2880_v22  ;;  %v22766_v10 = vld [vmem:[#allocation59_spill] sm:$0xff]  ;;  %v22767_v40 = vld [vmem:[#allocation110_spill] sm:$0xff]  ;;  %v2599_v61 = vpop.f32.mrf.mxu0  ;;  %v22776_v20 = vld [vmem:[#allocation81_spill] sm:$0xff] }
 0x292   : > { %v2882_v54 = vadd.f32 %v2802_v38, %v16968_v56  ;;  %v2884_v15 = vadd.f32 %v2804_v13, %v22764_v63  ;;  %v2886_v45 = vadd.f32 %v2806_v49, %v22765_v14  ;;  %v17483_v53 = vadd.f32 %v22579_v8, %v2883_v1  ;;  %v22768_v22 = vld [vmem:[#allocation111_spill] sm:$0xff]  ;;  %v22770_v38 = vld [vmem:[#allocation26_spill] sm:$0xff]  ;;  %v22771_v63 = vld [vmem:[#allocation80_spill] sm:$0xff]  ;;  %v2732_v14 = vpop.f32.mrf.mxu1 }
 0x293   : > { %v17486_v25 = vadd.f32 %v22614_v59, %v2885_v39  ;;  %v2887_v18 = vadd.f32 %v2807_v43, %v22766_v10  ;;  %v2889_v2 = vadd.f32 %v2809_v57, %v22767_v40  ;;  %v2888_v52 = vadd.f32 %v2808_v30, %v22768_v22  ;;  %v22769_v47 = vld [vmem:[#allocation79_spill] sm:$0xff]  ;;  %v2601_v30 = vpop.f32.mrf.mxu0 }
 0x294   : > { %v2810_v56 = vadd.f32 %v2724_v17, %v22769_v47  ;;  %v2811_v13 = vadd.f32 %v2595_v27, %v22770_v38  ;;  %v2813_v49 = vadd.f32 %v2728_v60, %v22771_v63  ;;  %v17495_v1 = vmul.f32 0.01, %v17460_v42  ;;  %v22772_v60 = vld [vmem:[#allocation113_spill] sm:$0xff]  ;;  %v22773_v10 = vld [vmem:[#allocation191_spill] sm:$0xff]  ;;  %v2734_v22 = vpop.f32.mrf.mxu1 }
 0x295   : > { %v17498_v39 = vmul.f32 0.01, %v17463_v21  ;;  %v17501_v43 = vmul.f32 0.01, %v17469_v62  ;;  %v17504_v57 = vadd.f32 %v22616_v5, %v2884_v15  ;;  %v17507_v47 = vmul.f32 0.01, %v17472_v50  ;;  %v2605_v3 = vpop.f32.mrf.mxu0 }
 0x296   : > { %v17510_v17 = vadd.f32 %v22618_v6, %v2886_v45  ;;  %v2891_v27 = vadd.f32 %v2811_v13, %v22772_v60  ;;  %v2893_v40 = vadd.f32 %v2813_v49, %v22773_v10  ;;  %v17515_v38 = vadd.f32 %v22618_v6, %v2882_v54  ;;  %v22774_v60 = vld [vmem:[#allocation112_spill] sm:$0xff]  ;;  %v22775_v10 = vld [vmem:[#allocation27_spill] sm:$0xff] }
 0x297   : > { %v17518_v63 = vmul.f32 0.01, %v17483_v53  ;;  %v17521_v15 = vmul.f32 0.01, %v17486_v25  ;;  %v17524_v33 = vadd.f32 %v22579_v8, %v2887_v18  ;;  %v17527_v45 = vadd.f32 %v22614_v59, %v2889_v2  ;;  %v22777_v26 = vld [vmem:[#allocation83_spill] sm:$0xff]  ;;  %v2738_v18 = vpop.f32.mrf.mxu1 }
 0x298   : > { %v2990_v13 = vadd.f32 %v22616_v5, %v2888_v52  ;;  %v2890_v49 = vadd.f32 %v2810_v56, %v22774_v60  ;;  %v2812_v19 = vadd.f32 %v2597_v16, %v22775_v10  ;;  %v3146_v54 = vmul.f32 0.01, %v17504_v57  ;;  %v22779_v16 = vld [vmem:[#allocation84_spill] sm:$0xff]  ;;  %v22783_v60 = vld [vmem:[#allocation193_spill] sm:$0xff] }
 0x299   : > { %v2814_v35 = vadd.f32 %v2730_v46, %v22776_v20  ;;  %v2815_v48 = vadd.f32 %v2599_v61, %v22777_v26  ;;  %v2817_v28 = vadd.f32 %v2732_v14, %v22778_v36  ;;  %v17537_v9 = vmul.f32 0.01, %v17510_v17  ;;  %v22780_v20 = vld [vmem:[#allocation114_spill] sm:$0xff]  ;;  %v22781_v61 = vld [vmem:[#allocation192_spill] sm:$0xff]  ;;  %v22782_v36 = vld [vmem:[#allocation115_spill] sm:$0xff] }
 0x29a   : > { %v17540_v2 = vadd.f32 %v22579_v8, %v2891_v27  ;;  %v17543_v52 = vadd.f32 %v22614_v59, %v2893_v40  ;;  %v2816_v56 = vadd.f32 %v2601_v30, %v22779_v16  ;;  %vm3069_vm5 = vcmp.gt.f32.partialorder %v17524_v33, 0.0  ;;  %v22784_v40 = vld [vmem:[#allocation31_spill] sm:$0xff]  ;;  %v22786_v16 = vld [vmem:[#allocation33_spill] sm:$0xff] }
 0x29b   : > { %v2892_v46 = vadd.f32 %v2812_v19, %v22780_v20  ;;  %v2894_v26 = vadd.f32 %v2814_v35, %v22781_v61  ;;  %v2895_v14 = vadd.f32 %v2815_v48, %v22782_v36  ;;  %v2897_v10 = vadd.f32 %v2817_v28, %v22783_v60  ;;  %v22787_v20 = vld [vmem:[#allocation116_spill] sm:$0xff]  ;;  %v2740_v60 = vpop.f32.mrf.mxu1 }
 0x29c   : > { %vm3065_vm6 = vcmp.gt.f32.partialorder %v17483_v53, 0.0  ;;  %vm3067_vm7 = vcmp.gt.f32.partialorder %v17486_v25, 0.0  ;;  %v3149_v27 = vmul.f32 0.01, %v17524_v33  ;;  %v2818_v7 = vadd.f32 %v2734_v22, %v22784_v40  ;;  %v22788_v22 = vld [vmem:[#allocation195_spill] sm:$0xff] }
 0x29d   : > { %v2819_v30 = vadd.f32 %v2605_v3, %v22785_v24  ;;  %v2821_v11 = vadd.f32 %v2738_v18, %v22786_v16  ;;  %vm3071_vm8 = vcmp.gt.f32.partialorder %v17527_v45, 0.0  ;;  %v3151_v35 = vmul.f32 0.01, %v17527_v45  ;;  %v22789_v24 = vld [vmem:[#allocation118_spill] sm:$0xff]  ;;  %v2607_v18 = vpop.f32.mrf.mxu0 }
 0x29e   : > { %v17560_v48 = vadd.f32 %v22616_v5, %v2892_v46  ;;  %v17563_v28 = vadd.f32 %v22618_v6, %v2894_v26  ;;  %v17566_v19 = vadd.f32 %v22579_v8, %v2895_v14  ;;  %v2896_v61 = vadd.f32 %v2816_v56, %v22787_v20 }
 0x29f   : > { %v2899_v36 = vadd.f32 %v2819_v30, %v22788_v22  ;;  %v2901_v3 = vadd.f32 %v2821_v11, %v22789_v24  ;;  %v2992_v40 = vadd.f32 %v22618_v6, %v2890_v49  ;;  %v17573_v16 = vmul.f32 0.01, %v17540_v2  ;;  %v22793_v11 = vld [vmem:[#allocation117_spill] sm:$0xff]  ;;  %v22794_v22 = vld [vmem:[#allocation86_spill] sm:$0xff] }
 0x2a0   : > { %v17576_v46 = vmul.f32 0.01, %v17543_v52  ;;  %v17579_v26 = vadd.f32 %v22614_v59, %v2897_v10  ;;  %v17582_v14 = vmul.f32 0.01, %v17560_v48  ;;  %v17585_v56 = vmul.f32 0.01, %v17563_v28 }
 0x2a1   : > { %22790 = vst [vmem:[#allocation161_spill] sm:$0xff] %v17573_v16  ;;  %v2898_v30 = vadd.f32 %v2818_v7, %v22793_v11  ;;  %v17589_v20 = vadd.f32 %v22579_v8, %v2899_v36  ;;  %v17592_v49 = vadd.f32 %v22614_v59, %v2901_v3  ;;  %v2820_v24 = vadd.f32 %v2607_v18, %v22794_v22  ;;  %v22798_v3 = vld [vmem:[#allocation196_spill] sm:$0xff] }
 0x2a2   : > { %22791 = vst [vmem:[#allocation234_spill] sm:$0xff] %v17576_v46  ;;  %22792 = vst [vmem:[#allocation162_spill] sm:$0xff] %v17585_v56  ;;  %v22795_v46 = vld [vmem:[#allocation34_spill] sm:$0xff]  ;;  %vm3066_vm9 = vcmp.gt.f32.partialorder %v17504_v57, 0.0  ;;  %vm3061_vm10 = vcmp.gt.f32.partialorder %v17469_v62, 0.0  ;;  %v17602_v56 = vadd.f32 %v22616_v5, %v2896_v61  ;;  %vm3070_vm11 = vcmp.gt.f32.partialorder %v2990_v13, 0.0 }
 0x2a3   : > { %v2822_v16 = vadd.f32 %v2740_v60, %v22795_v46  ;;  %v17599_v10 = vmul.f32 0.01, %v17566_v19  ;;  %v3150_v7 = vmul.f32 0.01, %v2990_v13  ;;  %v17606_v36 = vmul.f32 0.01, %v17579_v26 }
 0x2a4   : > { %v2900_v18 = vadd.f32 %v2820_v24, %v22798_v3  ;;  %v22799_v60 = vld [vmem:[#allocation119_spill] sm:$0xff]  ;;  %v3226_v11 = vsel %vm3066_vm9, %v17504_v57, %v3146_v54  ;;  %vm3063_vm14 = vcmp.gt.f32.partialorder %v17472_v50, 0.0  ;;  %vm3068_vm15 = vcmp.gt.f32.partialorder %v17510_v17, 0.0  ;;  %v2609_v57 = vpop.f32.mrf.mxu0  ;;  %v2742_v54 = vpop.f32.mrf.mxu1 }
 0x2a5   : > { %22796 = vst [vmem:[#allocation163_spill] sm:$0xff] %v17599_v10  ;;  %22797 = vst [vmem:[#allocation164_spill] sm:$0xff] %v17606_v36  ;;  %v2902_v46 = vadd.f32 %v2822_v16, %v22799_v60  ;;  %v3230_v22 = vsel %vm3070_vm11, %v2990_v13, %v3150_v7  ;;  %vm3072_vm2 = vcmp.gt.f32.partialorder %v2992_v40, 0.0  ;;  %v3152_v61 = vmul.f32 0.01, %v2992_v40 }
 0x2a6   : > { %v17615_v10 = vadd.f32 %v22618_v6, %v2898_v30  ;;  %v17618_v36 = vmul.f32 0.01, %v17589_v20  ;;  %v17621_v24 = vmul.f32 0.01, %v17592_v49  ;;  %v17623_v16 = vpack.c.bf16 %v3230_v22, %v3226_v11  ;;  %v22802_v22 = vld [vmem:[#allocation197_spill] sm:$0xff] }
 0x2a7   : > { %v17626_v3 = vadd.f32 %v22616_v5, %v2900_v18  ;;  %v3232_v13 = vsel %vm3072_vm2, %v2992_v40, %v3152_v61  ;;  %v3229_v7 = vsel %vm3069_vm5, %v17524_v33, %v3149_v27  ;;  %v3231_v30 = vsel %vm3071_vm8, %v17527_v45, %v3151_v35  ;;  %v22800_v18 = vld [vmem:[#allocation35_spill] sm:$0xff] }
 0x2a8   : > { %v17635_v60 = vadd.f32 %v22618_v6, %v2902_v46  ;;  %3372 = vmatprep.subr.bf16.mxu0 %v17623_v16  ;;  %v3228_v11 = vsel %vm3068_vm15, %v17510_v17, %v17537_v9  ;;  %v3225_v40 = vsel %vm3065_vm6, %v17483_v53, %v17518_v63  ;;  %v3227_v33 = vsel %vm3067_vm7, %v17486_v25, %v17521_v15  ;;  %v22801_v9 = vld [vmem:[#allocation88_spill] sm:$0xff]  ;;  %v2611_v17 = vpop.f32.mrf.mxu0  ;;  %v2744_v63 = vpop.f32.mrf.mxu1 }
 0x2a9   : > { %v17648_v27 = vpack.c.bf16 %v3232_v13, %v3228_v11  ;;  %v17650_v45 = vpack.c.bf16 %v3229_v7, %v3225_v40  ;;  %v17652_v35 = vpack.c.bf16 %v3231_v30, %v3227_v33  ;;  %v2823_v46 = vadd.f32 %v2609_v57, %v22800_v18  ;;  %v22803_v57 = vld [vmem:[#allocation120_spill] sm:$0xff] }
 0x2aa   : > { %vm3051_vm5 = vcmp.gt.f32.partialorder %v17389_v32, 0.0  ;;  %vm3053_vm8 = vcmp.gt.f32.partialorder %v17403_v23, 0.0  ;;  %v2825_v53 = vadd.f32 %v2742_v54, %v22801_v9  ;;  %vm3058_vm6 = vcmp.gt.f32.partialorder %v17460_v42, 0.0  ;;  %v22804_v33 = vld [vmem:[#allocation36_spill] sm:$0xff] }
 0x2ab   : > { %vm3062_vm7 = vcmp.gt.f32.partialorder %v17477_v0, 0.0  ;;  %v3142_v25 = vmul.f32 0.01, %v17477_v0  ;;  %vm3055_vm9 = vcmp.gt.f32.partialorder %v17406_v58, 0.0  ;;  %v17664_v15 = vmul.f32 0.01, %v17626_v3  ;;  %3455 = vmatprep.subr.bf16.mxu1 %v17648_v27  ;;  %3373 = vmatpush1.bf16.msra.mxu0 %v17650_v45 }
 0x2ac   : > { %v2903_v61 = vadd.f32 %v2823_v46, %v22802_v22  ;;  %vm3060_vm11 = vcmp.gt.f32.partialorder %v17463_v21, 0.0  ;;  %vm3064_vm15 = vcmp.gt.f32.partialorder %v17515_v38, 0.0  ;;  %3456 = vmatpush1.bf16.msra.mxu1 %v17652_v35  ;;  %v2905_v54 = vadd.f32 %v2825_v53, %v22803_v57  ;;  %v22805_v46 = vld [vmem:[#allocation89_spill] sm:$0xff]  ;;  %v22808_v22 = vld [vmem:[#allocation139_spill] sm:$0xff] }
 0x2ad   : > { %v3218_v13 = vsel %vm3058_vm6, %v17460_v42, %v17495_v1  ;;  %v3222_v7 = vsel %vm3062_vm7, %v17477_v0, %v3142_v25  ;;  %v3144_v30 = vmul.f32 0.01, %v17515_v38  ;;  %v3220_v40 = vsel %vm3060_vm11, %v17463_v21, %v17498_v39  ;;  %v22806_v39 = vld [vmem:[#allocation198_spill] sm:$0xff] }
 0x2ae   : > { %v17677_v11 = vpack.c.bf16 %v3222_v7, %v3218_v13  ;;  %v2824_v18 = vadd.f32 %v2611_v17, %v22804_v33  ;;  %v2826_v9 = vadd.f32 %v2744_v63, %v22805_v46  ;;  %vm3041_vm2 = vcmp.gt.f32.partialorder %v17327_v41, 0.0  ;;  %v22807_v63 = vld [vmem:[#allocation154_spill] sm:$0xff]  ;;  %v22814_v7 = vld [vmem:[#allocation232_spill] sm:$0xff] }
 0x2af   : > { %v17686_v53 = vadd.f32 %v22579_v8, %v2903_v61  ;;  %v17689_v42 = vadd.f32 %v22614_v59, %v2905_v54  ;;  %v3224_v0 = vsel %vm3064_vm15, %v17515_v38, %v3144_v30  ;;  %v3221_v21 = vsel %vm3061_vm10, %v17469_v62, %v17501_v43  ;;  %v22813_v61 = vld [vmem:[#allocation219_spill] sm:$0xff]  ;;  %v22815_v33 = vld [vmem:[#allocation160_spill] sm:$0xff]  ;;  %v22816_v46 = vld [vmem:[#allocation158_spill] sm:$0xff] }
 0x2b0   : > { %vm3043_vm6 = vcmp.gt.f32.partialorder %v17333_v51, 0.0  ;;  %3374 = vmatprep.subr.bf16.mxu0 %v17677_v11  ;;  %v17698_v1 = vpack.c.bf16 %v3224_v0, %v3220_v40  ;;  %v2904_v25 = vadd.f32 %v2824_v18, %v22806_v39  ;;  %v2906_v8 = vadd.f32 %v2826_v9, %v17144_v37 }
 0x2b1   : > { %v3217_v59 = vsel %vm3057_vm12, %v17415_v55, %v17454_v29  ;;  %vm3047_vm7 = vcmp.gt.f32.partialorder %v17350_v34, 0.0  ;;  %v17708_v38 = vmul.f32 0.01, %v17635_v60  ;;  %v3219_v43 = vsel %vm3059_vm13, %v17418_v4, %v17457_v31 }
 0x2b2   : > { %v17710_v62 = vpack.c.bf16 %v3221_v21, %v3217_v59  ;;  %v3223_v37 = vsel %vm3063_vm14, %v17472_v50, %v17507_v47  ;;  %3457 = vmatprep.subr.bf16.mxu1 %v17698_v1  ;;  %v17722_v29 = vadd.f32 %v22616_v5, %v2904_v25  ;;  %v17725_v55 = vadd.f32 %v22618_v6, %v2906_v8  ;;  %v22809_v50 = vld [vmem:[#allocation157_spill] sm:$0xff]  ;;  %v22810_v5 = vld [vmem:[#allocation230_spill] sm:$0xff]  ;;  %v22817_v21 = vld [vmem:[#allocation231_spill] sm:$0xff] }
 0x2b3   : > { %v17727_v17 = vpack.c.bf16 %v3223_v37, %v3219_v43  ;;  %vm3050_vm10 = vcmp.gt.f32.partialorder %v22807_v63, 0.0  ;;  %vm3033_vm12 = vcmp.gt.f32.partialorder %v22808_v22, 0.0  ;;  %v17732_v4 = vmul.f32 0.01, %v17686_v53  ;;  %v22811_v47 = vld [vmem:[#allocation217_spill] sm:$0xff]  ;;  %v22818_v25 = vld [vmem:[#allocation159_spill] sm:$0xff] }
 0x2b4   : > { %3375 = vmatpush1.bf16.msra.mxu0 %v17710_v62  ;;  %vm3054_vm13 = vcmp.gt.f32.partialorder %v22809_v50, 0.0  ;;  %v3134_v31 = vmul.f32 0.01, %v22809_v50  ;;  %vm3052_vm14 = vcmp.gt.f32.partialorder %v22810_v5, 0.0  ;;  %vm3035_vm11 = vcmp.gt.f32.partialorder %v22811_v47, 0.0  ;;  %v22812_v6 = vld [vmem:[#allocation141_spill] sm:$0xff] }
 0x2b5   : > { %vm3037_vm15 = vcmp.gt.f32.partialorder %v22812_v6, 0.0  ;;  %vm3039_vm4 = vcmp.gt.f32.partialorder %v22813_v61, 0.0  ;;  %v17742_v57 = vmul.f32 0.01, %v17689_v42  ;;  %v17745_v54 = vmul.f32 0.01, %v17722_v29  ;;  %3458 = vmatpush1.bf16.msra.mxu1 %v17727_v17 }
 0x2b6   : > { %v17748_v13 = vmul.f32 0.01, %v17725_v55  ;;  %v3210_v30 = vsel %vm3050_vm10, %v22807_v63, %v22814_v7  ;;  %v3214_v40 = vsel %vm3054_vm13, %v22809_v50, %v3134_v31  ;;  %vm3056_vm0 = vcmp.gt.f32.partialorder %v22815_v33, 0.0  ;;  %v22819_v59 = vld [vmem:[#allocation156_spill] sm:$0xff]  ;;  %v22821_v50 = vld [vmem:[#allocation233_spill] sm:$0xff] }
 0x2b7   : > { %v3136_v18 = vmul.f32 0.01, %v22815_v33  ;;  %v3212_v9 = vsel %vm3052_vm14, %v22810_v5, %v22816_v46  ;;  %v17758_v0 = vpack.c.bf16 %v3214_v40, %v3210_v30  ;;  %v3209_v39 = vsel %vm3049_vm3, %v17386_v44, %v22817_v21  ;;  %v22822_v44 = vld [vmem:[#allocation148_spill] sm:$0xff]  ;;  %v22826_v40 = vld [vmem:[#allocation133_spill] sm:$0xff]  ;;  %v22829_v46 = vld [vmem:[#allocation226_spill] sm:$0xff] }
 0x2b8   : > { %v3213_v8 = vsel %vm3053_vm8, %v17403_v23, %v22818_v25  ;;  %v3211_v43 = vsel %vm3051_vm5, %v17389_v32, %v22819_v59  ;;  %v3215_v31 = vsel %vm3055_vm9, %v17406_v58, %v22821_v50  ;;  %vm3042_vm3 = vcmp.gt.f32.partialorder %v22822_v44, 0.0  ;;  %v22823_v5 = vld [vmem:[#allocation132_spill] sm:$0xff]  ;;  %v22828_v58 = vld [vmem:[#allocation151_spill] sm:$0xff]  ;;  %v22834_v50 = vld [vmem:[#allocation229_spill] sm:$0xff] }
 0x2b9   : > { %v3216_v37 = vsel %vm3056_vm0, %v22815_v33, %v3136_v18  ;;  %v17773_v63 = vpack.c.bf16 %v3213_v8, %v3209_v39  ;;  %vm3025_vm10 = vcmp.gt.f32.partialorder %v22823_v5, 0.0  ;;  %3376 = vmatprep.subr.bf16.mxu0 %v17758_v0  ;;  %v17784_v7 = vpack.c.bf16 %v3215_v31, %v3211_v43  ;;  %v22825_v32 = vld [vmem:[#allocation228_spill] sm:$0xff]  ;;  %v22827_v33 = vld [vmem:[#allocation215_spill] sm:$0xff]  ;;  %v22831_v39 = vld [vmem:[#allocation138_spill] sm:$0xff] }
 0x2ba   : > { %v17782_v23 = vpack.c.bf16 %v3216_v37, %v3212_v9  ;;  %vm3046_vm5 = vcmp.gt.f32.partialorder %v22825_v32, 0.0  ;;  %v3126_v30 = vmul.f32 0.01, %v22825_v32  ;;  %vm3027_vm0 = vcmp.gt.f32.partialorder %v22826_v40, 0.0  ;;  %v22830_v21 = vld [vmem:[#allocation155_spill] sm:$0xff]  ;;  %v22832_v8 = vld [vmem:[#allocation152_spill] sm:$0xff] }
 0x2bb   : > { %22820 = vst [vmem:[#allocation165_spill] sm:$0xff] %v17773_v63  ;;  %22824 = vst [vmem:[#allocation166_spill] sm:$0xff] %v17784_v7  ;;  %vm3029_vm8 = vcmp.gt.f32.partialorder %v22827_v33, 0.0  ;;  %3377 = vmatpush1.bf16.msra.mxu0 %v17773_v63  ;;  %v3202_v18 = vsel %vm3042_vm3, %v22822_v44, %v22828_v58  ;;  %vm3044_vm9 = vcmp.gt.f32.partialorder %v22829_v46, 0.0  ;;  %vm3048_vm13 = vcmp.gt.f32.partialorder %v22830_v21, 0.0  ;;  %v22833_v43 = vld [vmem:[#allocation227_spill] sm:$0xff] }
 0x2bc   : > { %v3128_v9 = vmul.f32 0.01, %v22830_v21  ;;  %vm3031_vm14 = vcmp.gt.f32.partialorder %v22831_v39, 0.0  ;;  %3459 = vmatprep.subr.bf16.mxu1 %v17782_v23  ;;  %v3206_v25 = vsel %vm3046_vm5, %v22825_v32, %v3126_v30  ;;  %v3204_v59 = vsel %vm3044_vm9, %v22829_v46, %v22832_v8  ;;  %v22837_v30 = vld [vmem:[#allocation150_spill] sm:$0xff]  ;;  %v22838_v8 = vld [vmem:[#allocation124_spill] sm:$0xff]  ;;  %v22862_v63 = vld [vmem:[#allocation221_spill] sm:$0xff] }
 0x2bd   : > { %v3201_v37 = vsel %vm3041_vm2, %v17327_v41, %v22833_v43  ;;  %v3205_v31 = vsel %vm3045_vm1, %v17347_v12, %v22834_v50  ;;  %3460 = vmatpush1.bf16.msra.mxu1 %v17784_v7  ;;  %v17810_v44 = vpack.c.bf16 %v3206_v25, %v3202_v18  ;;  %v3203_v46 = vsel %vm3043_vm6, %v17333_v51, %v22837_v30  ;;  %v22840_v43 = vld [vmem:[#allocation153_spill] sm:$0xff]  ;;  %v22841_v18 = vld [vmem:[#allocation140_spill] sm:$0xff]  ;;  %v22842_v25 = vld [vmem:[#allocation146_spill] sm:$0xff] }
 0x2be   : > { %v3208_v58 = vsel %vm3048_vm13, %v22830_v21, %v3128_v9  ;;  %v17813_v32 = vpack.c.bf16 %v3205_v31, %v3201_v37  ;;  %vm3017_vm2 = vcmp.gt.f32.partialorder %v22838_v8, 0.0  ;;  %v3207_v12 = vsel %vm3047_vm7, %v17350_v34, %v22840_v43  ;;  %v22843_v21 = vld [vmem:[#allocation202_spill] sm:$0xff]  ;;  %v22844_v9 = vld [vmem:[#allocation131_spill] sm:$0xff]  ;;  %v22845_v37 = vld [vmem:[#allocation209_spill] sm:$0xff] }
 0x2bf   : > { %22835 = vst [vmem:[#allocation167_spill] sm:$0xff] %v17810_v44  ;;  %v17820_v41 = vpack.c.bf16 %v3208_v58, %v3204_v59  ;;  %vm3034_vm1 = vcmp.gt.f32.partialorder %v22841_v18, 0.0  ;;  %vm3038_vm3 = vcmp.gt.f32.partialorder %v22842_v25, 0.0  ;;  %vm3019_vm5 = vcmp.gt.f32.partialorder %v22843_v21, 0.0  ;;  %3378 = vmatprep.subr.bf16.mxu0 %v17810_v44  ;;  %v22847_v50 = vld [vmem:[#allocation223_spill] sm:$0xff]  ;;  %v22848_v34 = vld [vmem:[#allocation218_spill] sm:$0xff] }
 0x2c0   : > { %22836 = vst [vmem:[#allocation168_spill] sm:$0xff] %v17813_v32  ;;  %vm3021_vm9 = vcmp.gt.f32.partialorder %v22844_v9, 0.0  ;;  %vm3023_vm13 = vcmp.gt.f32.partialorder %v22845_v37, 0.0  ;;  %v17832_v51 = vpack.c.bf16 %v3207_v12, %v3203_v46  ;;  %v3118_v59 = vmul.f32 0.01, %v22842_v25  ;;  %3379 = vmatpush1.bf16.msra.mxu0 %v17813_v32  ;;  %v22849_v58 = vld [vmem:[#allocation149_spill] sm:$0xff] }
 0x2c1   : > { %22839 = vst [vmem:[#allocation169_spill] sm:$0xff] %v17820_v41  ;;  %v3194_v31 = vsel %vm3034_vm1, %v22841_v18, %v22847_v50  ;;  %vm3036_vm6 = vcmp.gt.f32.partialorder %v22848_v34, 0.0  ;;  %3461 = vmatprep.subr.bf16.mxu1 %v17820_v41  ;;  %vm3040_vm7 = vcmp.gt.f32.partialorder %v22849_v58, 0.0  ;;  %v3120_v30 = vmul.f32 0.01, %v22849_v58  ;;  %v22850_v43 = vld [vmem:[#allocation224_spill] sm:$0xff] }
 0x2c2   : > { %22846 = vst [vmem:[#allocation170_spill] sm:$0xff] %v17832_v51  ;;  %v3196_v44 = vsel %vm3036_vm6, %v22848_v34, %v22850_v43  ;;  %v22851_v46 = vld [vmem:[#allocation222_spill] sm:$0xff]  ;;  %3462 = vmatpush1.bf16.msra.mxu1 %v17832_v51  ;;  %v3198_v18 = vsel %vm3038_vm3, %v22842_v25, %v3118_v59  ;;  %v22852_v50 = vld [vmem:[#allocation147_spill] sm:$0xff]  ;;  %v22853_v41 = vld [vmem:[#allocation145_spill] sm:$0xff]  ;;  %vm3084_vm1 = vcmp.gt.f32.partialorder %v17635_v60, 0.0 }
 0x2c3   : > { %v3193_v12 = vsel %vm3033_vm12, %v22808_v22, %v22851_v46  ;;  %v3197_v32 = vsel %vm3037_vm15, %v22812_v6, %v22852_v50  ;;  %v3195_v34 = vsel %vm3035_vm11, %v22811_v47, %v22853_v41  ;;  %v22854_v43 = vld [vmem:[#allocation225_spill] sm:$0xff]  ;;  %v22855_v46 = vld [vmem:[#allocation122_spill] sm:$0xff]  ;;  %v17866_v25 = vpack.c.bf16 %v3198_v18, %v3194_v31  ;;  %v22859_v50 = vld [vmem:[#allocation123_spill] sm:$0xff] }
 0x2c4   : > { %v3199_v22 = vsel %vm3039_vm4, %v22813_v61, %v22854_v43  ;;  %v22856_v51 = vld [vmem:[#allocation194_spill] sm:$0xff]  ;;  %v3200_v59 = vsel %vm3040_vm7, %v22849_v58, %v3120_v30  ;;  %v17869_v7 = vpack.c.bf16 %v3197_v32, %v3193_v12  ;;  %vm3030_vm4 = vcmp.gt.f32.partialorder %v22862_v63, 0.0  ;;  %v22863_v43 = vld [vmem:[#allocation199_spill] sm:$0xff]  ;;  %v22864_v31 = vld [vmem:[#allocation216_spill] sm:$0xff] }
 0x2c5   : > { %22857 = vst [vmem:[#allocation171_spill] sm:$0xff] %v17866_v25  ;;  %v17871_v6 = vpack.c.bf16 %v3199_v22, %v3195_v34  ;;  %v17874_v47 = vpack.c.bf16 %v3200_v59, %v3196_v44  ;;  %v22861_v41 = vld [vmem:[#allocation134_spill] sm:$0xff]  ;;  %v3110_v61 = vmul.f32 0.01, %v22862_v63  ;;  %vm3011_vm3 = vcmp.gt.f32.partialorder %v22863_v43, 0.0  ;;  %3380 = vmatprep.subr.bf16.mxu0 %v17866_v25  ;;  %v22865_v58 = vld [vmem:[#allocation137_spill] sm:$0xff] }
 0x2c6   : > { %22858 = vst [vmem:[#allocation172_spill] sm:$0xff] %v17869_v7  ;;  %vm3026_vm11 = vcmp.gt.f32.partialorder %v22861_v41, 0.0  ;;  %vm3028_vm6 = vcmp.gt.f32.partialorder %v22865_v58, 0.0  ;;  %v22866_v30 = vld [vmem:[#allocation144_spill] sm:$0xff]  ;;  %v22867_v12 = vld [vmem:[#allocation201_spill] sm:$0xff]  ;;  %3381 = vmatpush1.bf16.msra.mxu0 %v17869_v7  ;;  %v22868_v34 = vld [vmem:[#allocation142_spill] sm:$0xff] }
 0x2c7   : > { %22860 = vst [vmem:[#allocation173_spill] sm:$0xff] %v17874_v47  ;;  %v3186_v32 = vsel %vm3026_vm11, %v22861_v41, %v22864_v31  ;;  %vm3032_vm7 = vcmp.gt.f32.partialorder %v22866_v30, 0.0  ;;  %v3112_v44 = vmul.f32 0.01, %v22866_v30  ;;  %vm3015_vm15 = vcmp.gt.f32.partialorder %v22867_v12, 0.0  ;;  %3463 = vmatprep.subr.bf16.mxu1 %v17874_v47  ;;  %v22869_v59 = vld [vmem:[#allocation136_spill] sm:$0xff] }
 0x2c8   : > { %v3190_v18 = vsel %vm3030_vm4, %v22862_v63, %v3110_v61  ;;  %v3188_v22 = vsel %vm3028_vm6, %v22865_v58, %v22868_v34  ;;  %v3185_v41 = vsel %vm3025_vm10, %v22823_v5, %v22869_v59  ;;  %v22870_v31 = vld [vmem:[#allocation125_spill] sm:$0xff]  ;;  %vm3088_vm12 = vcmp.gt.f32.partialorder %v17725_v55, 0.0  ;;  %3464 = vmatpush1.bf16.msra.mxu1 %v17871_v6  ;;  %v22871_v61 = vld [vmem:[#allocation220_spill] sm:$0xff]  ;;  %v22872_v34 = vld [vmem:[#allocation214_spill] sm:$0xff] }
 0x2c9   : > { %vm3018_vm11 = vcmp.gt.f32.partialorder %v22870_v31, 0.0  ;;  %v17902_v47 = vpack.c.bf16 %v3190_v18, %v3186_v32  ;;  %v3192_v63 = vsel %vm3032_vm7, %v22866_v30, %v3112_v44  ;;  %v3189_v58 = vsel %vm3029_vm8, %v22827_v33, %v22871_v61  ;;  %v22873_v25 = vld [vmem:[#allocation143_spill] sm:$0xff]  ;;  %v22875_v18 = vld [vmem:[#allocation208_spill] sm:$0xff] }
 0x2ca   : > { %v3187_v5 = vsel %vm3027_vm0, %v22826_v40, %v22872_v34  ;;  %v17913_v59 = vpack.c.bf16 %v3192_v63, %v3188_v22  ;;  %v17915_v7 = vpack.c.bf16 %v3189_v58, %v3185_v41  ;;  %v3191_v32 = vsel %vm3031_vm14, %v22831_v39, %v22873_v25  ;;  %v22874_v30 = vld [vmem:[#allocation211_spill] sm:$0xff]  ;;  %v22876_v22 = vld [vmem:[#allocation129_spill] sm:$0xff]  ;;  %v22878_v25 = vld [vmem:[#allocation210_spill] sm:$0xff] }
 0x2cb   : > { %vm3022_vm10 = vcmp.gt.f32.partialorder %v22874_v30, 0.0  ;;  %3382 = vmatprep.subr.bf16.mxu0 %v17902_v47  ;;  %v17923_v44 = vpack.c.bf16 %v3191_v32, %v3187_v5  ;;  %v3102_v33 = vmul.f32 0.01, %v22874_v30  ;;  %v3178_v40 = vsel %vm3018_vm11, %v22870_v31, %v22875_v18  ;;  %v22877_v41 = vld [vmem:[#allocation213_spill] sm:$0xff]  ;;  %v22879_v61 = vld [vmem:[#allocation207_spill] sm:$0xff]  ;;  %v22880_v34 = vld [vmem:[#allocation212_spill] sm:$0xff] }
 0x2cc   : > { %vm3020_vm0 = vcmp.gt.f32.partialorder %v22876_v22, 0.0  ;;  %3465 = vmatprep.subr.bf16.mxu1 %v17913_v59  ;;  %3383 = vmatpush1.bf16.msra.mxu0 %v17915_v7  ;;  %vm3024_vm8 = vcmp.gt.f32.partialorder %v22877_v41, 0.0  ;;  %v3104_v39 = vmul.f32 0.01, %v22877_v41  ;;  %v3177_v58 = vsel %vm3017_vm2, %v22838_v8, %v22879_v61  ;;  %v22881_v32 = vld [vmem:[#allocation130_spill] sm:$0xff] }
 0x2cd   : > { %v3180_v63 = vsel %vm3020_vm0, %v22876_v22, %v22878_v25  ;;  %3466 = vmatpush1.bf16.msra.mxu1 %v17923_v44  ;;  %v3182_v31 = vsel %vm3022_vm10, %v22874_v30, %v3102_v33  ;;  %v3181_v5 = vsel %vm3021_vm9, %v22844_v9, %v22880_v34  ;;  %v3179_v18 = vsel %vm3019_vm5, %v22843_v21, %v22881_v32  ;;  %v22882_v22 = vld [vmem:[#allocation135_spill] sm:$0xff]  ;;  %v22883_v21 = vld [vmem:[#allocation128_spill] sm:$0xff]  ;;  %v22884_v32 = vld [vmem:[#allocation126_spill] sm:$0xff] }
 0x2ce   : > { %v3183_v25 = vsel %vm3023_vm13, %v22845_v37, %v22882_v22  ;;  %v17953_v8 = vpack.c.bf16 %v3182_v31, %v3178_v40  ;;  %v3184_v61 = vsel %vm3024_vm8, %v22877_v41, %v3104_v39  ;;  %v17956_v30 = vpack.c.bf16 %v3181_v5, %v3177_v58  ;;  %v22886_v40 = vld [vmem:[#allocation200_spill] sm:$0xff]  ;;  %v22887_v41 = vld [vmem:[#allocation206_spill] sm:$0xff] }
 0x2cf   : > { %v17958_v33 = vpack.c.bf16 %v3183_v25, %v3179_v18  ;;  %vm3073_vm14 = vcmp.gt.f32.partialorder %v17540_v2, 0.0  ;;  %vm3077_vm2 = vcmp.gt.f32.partialorder %v17566_v19, 0.0  ;;  %v17962_v9 = vpack.c.bf16 %v3184_v61, %v3180_v63  ;;  %v22888_v63 = vld [vmem:[#allocation121_spill] sm:$0xff]  ;;  %v22890_v31 = vld [vmem:[#allocation204_spill] sm:$0xff]  ;;  %v22891_v18 = vld [vmem:[#allocation127_spill] sm:$0xff] }
 0x2d0   : > { %vm3014_vm5 = vcmp.gt.f32.partialorder %v22883_v21, 0.0  ;;  %v3094_v34 = vmul.f32 0.01, %v22883_v21  ;;  %vm22885_vm9 = vcmp.gt.f32.partialorder %v22855_v46, 0.0  ;;  %vm3075_vm13 = vcmp.gt.f32.partialorder %v17543_v52, 0.0  ;;  %3384 = vmatprep.subr.bf16.mxu0 %v17953_v8 }
 0x2d1   : > { %v3170_v37 = vsel %vm22885_vm9, %v22855_v46, %v22884_v32  ;;  %vm3079_vm4 = vcmp.gt.f32.partialorder %v17579_v26, 0.0  ;;  %vm3012_vm6 = vcmp.gt.f32.partialorder %v22886_v40, 0.0  ;;  %vm3016_vm7 = vcmp.gt.f32.partialorder %v22887_v41, 0.0  ;;  %3467 = vmatprep.subr.bf16.mxu1 %v17962_v9  ;;  %3385 = vmatpush1.bf16.msra.mxu0 %v17956_v30  ;;  %v22893_v32 = vld [vmem:[#allocation203_spill] sm:$0xff] }
 0x2d2   : > { %v3096_v39 = vmul.f32 0.01, %v22887_v41  ;;  %vm22889_vm11 = vcmp.gt.f32.partialorder %v22856_v51, 0.0  ;;  %v3174_v46 = vsel %vm3014_vm5, %v22883_v21, %v3094_v34  ;;  %v3172_v5 = vsel %vm3012_vm6, %v22886_v40, %v22890_v31  ;;  %3468 = vmatpush1.bf16.msra.mxu1 %v17958_v33  ;;  %v22894_v40 = vld [vmem:[#allocation205_spill] sm:$0xff] }
 0x2d3   : > { %v3169_v58 = vsel %vm22889_vm11, %v22856_v51, %v22888_v63  ;;  %vm22892_vm10 = vcmp.gt.f32.partialorder %v22859_v50, 0.0  ;;  %vm3081_vm0 = vcmp.gt.f32.partialorder %v17589_v20, 0.0  ;;  %v17991_v25 = vpack.c.bf16 %v3174_v46, %v3170_v37  ;;  %v22902_v63 = vld [vmem:[#allocation161_spill] sm:$0xff] }
 0x2d4   : > { %v3173_v22 = vsel %vm22892_vm10, %v22859_v50, %v22891_v18  ;;  %v3176_v51 = vsel %vm3016_vm7, %v22887_v41, %v3096_v39  ;;  %v3171_v21 = vsel %vm3011_vm3, %v22863_v43, %v22893_v32  ;;  %v3175_v50 = vsel %vm3015_vm15, %v22867_v12, %v22894_v40  ;;  %v13854_v32 = vld [vmem:[%s21836_s3 + $0x34] ss:$8 sps:$4 sm:$0xff]   ;;  %v13856_v40 = vld [vmem:[%s21836_s3 + $0x30] ss:$8 sps:$4 sm:$0xff]  }
 0x2d5   : > { %v17994_v61 = vpack.c.bf16 %v3173_v22, %v3169_v58  ;;  %v18000_v34 = vpack.c.bf16 %v3176_v51, %v3172_v5  ;;  %vm22895_vm8 = vcmp.gt.f32.partialorder %v17626_v3, 0.0  ;;  %vm22896_vm5 = vcmp.gt.f32.partialorder %v17722_v29, 0.0  ;;  %3386 = vmatprep.subr.bf16.mxu0 %v17991_v25  ;;  %v22903_v58 = vld [vmem:[#allocation163_spill] sm:$0xff]  ;;  %v22904_v5 = vld [vmem:[#allocation234_spill] sm:$0xff]  ;;  %v22905_v22 = vld [vmem:[#allocation164_spill] sm:$0xff] }
 0x2d6   : > { %v3242_v37 = vsel %vm22895_vm8, %v17626_v3, %v17664_v15  ;;  %v3246_v41 = vsel %vm22896_vm5, %v17722_v29, %v17745_v54  ;;  %v18015_v43 = vpack.c.bf16 %v3175_v50, %v3171_v21  ;;  %v3244_v12 = vsel %vm3084_vm1, %v17635_v60, %v17708_v38  ;;  %v22914_v21 = vld [vmem:[#allocation172_spill] sm:$0xff] }
 0x2d7   : > { %v18017_v39 = vpack.c.bf16 %v3246_v41, %v3242_v37  ;;  %v3248_v3 = vsel %vm3088_vm12, %v17725_v55, %v17748_v13  ;;  %3469 = vmatprep.subr.bf16.mxu1 %v18000_v34  ;;  %3387 = vmatpush1.bf16.msra.mxu0 %v17994_v61  ;;  %vm3085_vm15 = vcmp.gt.f32.partialorder %v17686_v53, 0.0  ;;  %v3241_v29 = vsel %vm3081_vm0, %v17589_v20, %v17618_v36  ;;  %v13847_v13 = vld [vmem:[%s21836_s3 + $0x4] ss:$8 sps:$4 sm:$0xff]   ;;  %v13884_v50 = vld [vmem:[%s21838_s5 + $0x6c0] ss:$16 sps:$4 sm:$0xff]  }
 0x2d8   : > { %v18029_v15 = vpack.c.bf16 %v3248_v3, %v3244_v12  ;;  %vm3083_vm1 = vcmp.gt.f32.partialorder %v17592_v49, 0.0  ;;  %3470 = vmatpush1.bf16.msra.mxu1 %v18015_v43  ;;  %vm22897_vm3 = vcmask 1045504   ;;  %v3245_v60 = vsel %vm3085_vm15, %v17686_v53, %v17732_v4  ;;  %v13889_v37 = vld [vmem:[%s21838_s5 + $0x4a4] ss:$16 sps:$4 sm:$0xff]   ;;  %v13865_v41 = vld [vmem:[%s21837_s4 + $0x10] ss:$8 sps:$4 sm:$0xff]  }
 0x2d9   : > { %12014 = vmatprep.subr.msk.bf16.mxu0 %vm22897_vm3, %v18017_v39  ;;  %vm3087_vm12 = vcmp.gt.f32.partialorder %v17689_v42, 0.0  ;;  %v3243_v38 = vsel %vm3083_vm1, %v17592_v49, %v17621_v24  ;;  %vm3074_vm9 = vcmp.gt.f32.partialorder %v17560_v48, 0.0  ;;  %vm22898_vm6 = vmmov %vm22897_vm3  ;;  %v3285_v20 = vpack.c.bf16 %v3245_v60, %v3241_v29  ;;  %v13887_v12 = vld [vmem:[%s21838_s5 + $0x4a0] ss:$16 sps:$4 sm:$0xff]   ;;  %v13898_v29 = vld [vmem:[%s21838_s5 + $0x684] ss:$16 sps:$4 sm:$0xff]  }
 0x2da   : > { %12020 = vmatprep.subr.msk.bf16.mxu1 %vm22898_vm6, %v18029_v15  ;;  %v3247_v36 = vsel %vm3087_vm12, %v17689_v42, %v17742_v57  ;;  %vm3078_vm7 = vcmp.gt.f32.partialorder %v17602_v56, 0.0  ;;  %v3158_v55 = vmul.f32 0.01, %v17602_v56  ;;  %v3234_v53 = vsel %vm3074_vm9, %v17560_v48, %v17582_v14  ;;  %vm22899_vm0 = vmmov %vm22897_vm3  ;;  %v22900_v42 = vld [vmem:[#allocation162_spill] sm:$0xff] }
 0x2db   : > { %v3287_v54 = vpack.c.bf16 %v3247_v36, %v3243_v38  ;;  %vm3076_vm11 = vcmp.gt.f32.partialorder %v17563_v28, 0.0  ;;  %vm3080_vm10 = vcmp.gt.f32.partialorder %v17615_v10, 0.0  ;;  %v18057_v49 = vsel %vm22899_vm0, %v3285_v20, 0  ;;  %vm22901_vm8 = vmmov %vm22899_vm0  ;;  %v13890_v3 = vld [vmem:[%s21838_s5 + $0x6a0] ss:$16 sps:$4 sm:$0xff]  }
 0x2dc   : > { %v3238_v24 = vsel %vm3078_vm7, %v17602_v56, %v3158_v55  ;;  %v3160_v4 = vmul.f32 0.01, %v17615_v10  ;;  %v3236_v57 = vsel %vm3076_vm11, %v17563_v28, %v22900_v42  ;;  %3401 = vmatpush2.bf16.msra.mxu0 %v18057_v49  ;;  %v3233_v56 = vsel %vm3073_vm14, %v17540_v2, %v22902_v63  ;;  %v13893_v60 = vld [vmem:[%s21838_s5 + $0x480] ss:$16 sps:$4 sm:$0xff]   ;;  %v13869_v36 = vld [vmem:[%s21837_s4 + $0x34] ss:$8 sps:$4 sm:$0xff]  }
 0x2dd   : > { %v18068_v48 = vsel %vm22901_vm8, %v3287_v54, 0  ;;  %v18070_v14 = vpack.c.bf16 %v3238_v24, %v3234_v53  ;;  %v3237_v28 = vsel %vm3077_vm2, %v17566_v19, %v22903_v58  ;;  %v3235_v18 = vsel %vm3075_vm13, %v17543_v52, %v22904_v5  ;;  %v13848_v52 = vld [vmem:[%s21836_s3 + $0x14] ss:$8 sps:$4 sm:$0xff]   ;;  %vm22915_vm2 = vmmov %vm22899_vm0  ;;  %v13896_v38 = vld [vmem:[%s21838_s5 + $0x680] ss:$16 sps:$4 sm:$0xff]  }
 0x2de   : > { %3484 = vmatpush2.bf16.msra.mxu1 %v18068_v48  ;;  %v3240_v46 = vsel %vm3080_vm10, %v17615_v10, %v3160_v4  ;;  %v18082_v31 = vpack.c.bf16 %v3237_v28, %v3233_v56  ;;  %v3239_v2 = vsel %vm3079_vm4, %v17579_v26, %v22905_v22  ;;  %vm3344_vm14 = vcmask 228352   ;;  %v13845_v10 = vld [vmem:[%s21836_s3] ss:$8 sps:$4 sm:$0xff]   ;;  %v13850_v26 = vld [vmem:[%s21836_s3 + $0x10] ss:$8 sps:$4 sm:$0xff]   ;;  %vm22916_vm13 = vmmov %vm22899_vm0 }
 0x2df   : > { %3402 = vmatprep.subr.bf16.mxu0 %v18070_v14  ;;  %v18093_v51 = vpack.c.bf16 %v3240_v46, %v3236_v57  ;;  %v18095_v19 = vpack.c.bf16 %v3239_v2, %v3235_v18  ;;  %12015 = vmatprep.mubr.msk.bf16.mxu0 %vm3344_vm14, %v13847_v13  ;;  %v13868_v20 = vld [vmem:[%s21837_s4 + $0x20] ss:$8 sps:$4 sm:$0xff]   ;;  %v13871_v55 = vld [vmem:[%s21837_s4 + $0x30] ss:$8 sps:$4 sm:$0xff]   ;;  %v13904_v4 = vld [vmem:[%s21838_s5 + $0x664] ss:$16 sps:$4 sm:$0xff]  }
 0x2e0   : > { %12021 = vmatprep.mubr.msk.bf16.mxu1 %vm3344_vm14, %v13847_v13  ;;  %3403 = vmatpush2.bf16.msra.mxu0 %v18082_v31  ;;  %v13872_v54 = vld [vmem:[%s21837_s4 + $0x44] ss:$8 sps:$4 sm:$0x7f]   ;;  %v13899_v53 = vld [vmem:[%s21838_s5 + $0x460] ss:$16 sps:$4 sm:$0xff]  }
 0x2e1   : > { %3485 = vmatprep.subr.bf16.mxu1 %v18093_v51  ;;  %3628 = vmatprep.subr.bf16.mxu0 %v17623_v16  ;;  %v13851_v16 = vld [vmem:[%s21836_s3 + $0x24] ss:$8 sps:$4 sm:$0xff]   ;;  %v13902_v24 = vld [vmem:[%s21838_s5 + $0x660] ss:$16 sps:$4 sm:$0xff]   ;;  %vm22925_vm4 = vsmask.f32 7424 }
 0x2e2   : > { %3486 = vmatpush2.bf16.msra.mxu1 %v18095_v19  ;;  %v13874_v42 = vld [vmem:[%s21837_s4 + $0x40] ss:$8 sps:$4 sm:$0x7f]   ;;  %v13907_v13 = vld [vmem:[%s21838_s5 + $0x444] ss:$16 sps:$4 sm:$0xff]   ;;  %vm22926_vm5 = vmmov %vm22925_vm4 }
 0x2e3   : > { %3711 = vmatprep.subr.bf16.mxu1 %v17648_v27  ;;  %3405 = vmatmul.mubr.bf16.vlgmr.msra.gmra.mxu0 %v13845_v10  ;;  %v22906_v27 = vld [vmem:[#allocation165_spill] sm:$0xff]  ;;  %v13905_v57 = vld [vmem:[%s21838_s5 + $0x440] ss:$16 sps:$4 sm:$0xff]   ;;  %v13913_v63 = vld [vmem:[%s21838_s5 + $0x424] ss:$16 sps:$4 sm:$0xff]  }
 0x2e4   : > { %3629 = vmatpush1.bf16.msra.mxu0 %v17650_v45  ;;  %12016 = vmatprep.mubr.msk.bf16.mxu0 %vm3344_vm14, %v13848_v52  ;;  %v22907_v45 = vld [vmem:[#allocation166_spill] sm:$0xff]  ;;  %vm22929_vm15 = vmmov %vm22925_vm4 }
 0x2e5   : > { %3488 = vmatmul.mubr.bf16.vlgmr.msra.gmra.mxu1 %v13845_v10  ;;  %3630 = vmatprep.subr.bf16.mxu0 %v17677_v11  ;;  %v22909_v11 = vld [vmem:[#allocation169_spill] sm:$0xff]  ;;  %v13916_v56 = vld [vmem:[%s21838_s5 + $0x624] ss:$16 sps:$4 sm:$0xff]   ;;  %v13911_v58 = vld [vmem:[%s21838_s5 + $0x420] ss:$16 sps:$4 sm:$0xff]  }
 0x2e6   : > { %3712 = vmatpush1.bf16.msra.mxu1 %v17652_v35  ;;  %12022 = vmatprep.mubr.msk.bf16.mxu1 %vm3344_vm14, %v13848_v52  ;;  %v22908_v35 = vld [vmem:[#allocation167_spill] sm:$0xff]  ;;  %v13914_v28 = vld [vmem:[%s21838_s5 + $0x620] ss:$16 sps:$4 sm:$0xff]   ;;  %v13919_v46 = vld [vmem:[%s21838_s5 + $0x404] ss:$16 sps:$4 sm:$0xff]  }
 0x2e7   : > { %3713 = vmatprep.subr.bf16.mxu1 %v17698_v1  ;;  %v13853_v1 = vld [vmem:[%s21836_s3 + $0x20] ss:$8 sps:$4 sm:$0xff]   ;;  %v13922_v5 = vld [vmem:[%s21838_s5 + $0x604] ss:$16 sps:$4 sm:$0xff]   ;;  %vm22930_vm1 = vmmov %vm22925_vm4 }
 0x2e8   : > { %3631 = vmatpush1.bf16.msra.mxu0 %v17710_v62  ;;  %v22910_v62 = vld [vmem:[#allocation168_spill] sm:$0xff]  ;;  %vm22931_vm3 = vmmov %vm22930_vm1 }
 0x2e9   : > { %3632 = vmatprep.subr.bf16.mxu0 %v17758_v0  ;;  %v22912_v0 = vld [vmem:[#allocation171_spill] sm:$0xff]  ;;  %v13920_v18 = vld [vmem:[%s21838_s5 + $0x600] ss:$16 sps:$4 sm:$0xff]   ;;  %v13925_v22 = vld [vmem:[%s21838_s5 + $0x5e4] ss:$16 sps:$4 sm:$0xff]  }
 0x2ea   : > { %3714 = vmatpush1.bf16.msra.mxu1 %v17727_v17  ;;  %v22911_v17 = vld [vmem:[#allocation170_spill] sm:$0xff]  ;;  %vm22932_vm12 = vmmov %vm22930_vm1 }
 0x2eb   : > { %3715 = vmatprep.subr.bf16.mxu1 %v17782_v23  ;;  %3415 = vmatmul.mubr.bf16.gmra.mxu0 %v13850_v26  ;;  %v22913_v23 = vld [vmem:[#allocation173_spill] sm:$0xff]  ;;  %v13928_v2 = vld [vmem:[%s21838_s5 + $0x7e4] ss:$16 sps:$4 sm:$0xff]   ;;  %vm22935_vm9 = vmmov %vm22930_vm1 }
 0x2ec   : > { %3633 = vmatpush1.bf16.msra.mxu0 %v22906_v27  ;;  %12017 = vmatprep.mubr.msk.bf16.mxu0 %vm3344_vm14, %v13851_v16  ;;  %v13931_v10 = vld [vmem:[%s21838_s5 + $0x5c4] ss:$16 sps:$4 sm:$0xff]   ;;  %vm22936_vm6 = vmmov %vm22930_vm1 }
 0x2ed   : > { %3498 = vmatmul.mubr.bf16.gmra.mxu1 %v13850_v26  ;;  %3634 = vmatprep.subr.bf16.mxu0 %v22908_v35  ;;  %v13934_v52 = vld [vmem:[%s21838_s5 + $0x7c4] ss:$16 sps:$4 sm:$0xff]   ;;  %v13929_v26 = vld [vmem:[%s21838_s5 + $0x5c0] ss:$16 sps:$4 sm:$0xff]   ;;  %vm22937_vm7 = vmmov %vm22930_vm1 }
 0x2ee   : > { %3716 = vmatpush1.bf16.msra.mxu1 %v22907_v45  ;;  %12023 = vmatprep.mubr.msk.bf16.mxu1 %vm3344_vm14, %v13851_v16  ;;  %v13932_v16 = vld [vmem:[%s21838_s5 + $0x7c0] ss:$16 sps:$4 sm:$0xff]   ;;  %v13937_v27 = vld [vmem:[%s21838_s5 + $0x5a4] ss:$16 sps:$4 sm:$0xff]   ;;  %vm22938_vm11 = vmmov %vm22930_vm1 }
 0x2ef   : > { %3717 = vmatprep.subr.bf16.mxu1 %v22909_v11  ;;  %v13940_v45 = vld [vmem:[%s21838_s5 + $0x7a4] ss:$16 sps:$4 sm:$0xff]   ;;  %v13935_v35 = vld [vmem:[%s21838_s5 + $0x5a0] ss:$16 sps:$4 sm:$0xff]   ;;  %vm22941_vm10 = vmmov %vm22930_vm1 }
 0x2f0   : > { %3635 = vmatpush1.bf16.msra.mxu0 %v22910_v62  ;;  %v13938_v11 = vld [vmem:[%s21838_s5 + $0x7a0] ss:$16 sps:$4 sm:$0xff]   ;;  %v13946_v62 = vld [vmem:[%s21838_s5 + $0x784] ss:$16 sps:$4 sm:$0xff]   ;;  %vm22942_vm0 = vmmov %vm22930_vm1 }
 0x2f1   : > { %3636 = vmatprep.subr.bf16.mxu0 %v22912_v0  ;;  %v13944_v0 = vld [vmem:[%s21838_s5 + $0x780] ss:$16 sps:$4 sm:$0xff]   ;;  %vm22943_vm8 = vmmov %vm22942_vm0 }
 0x2f2   : > { %3718 = vmatpush1.bf16.msra.mxu1 %v22911_v17  ;;  %v13941_v17 = vld [vmem:[%s21838_s5 + $0x580] ss:$16 sps:$4 sm:$0xff]  }
 0x2f3   : > { %3719 = vmatprep.subr.bf16.mxu1 %v22913_v23  ;;  %3425 = vmatmul.mubr.bf16.gmra.mxu0 %v13853_v1  ;;  %v13949_v23 = vld [vmem:[%s21838_s5 + $0x564] ss:$16 sps:$4 sm:$0xff]  }
 0x2f4   : > { %3637 = vmatpush1.bf16.msra.mxu0 %v22914_v21  ;;  %12018 = vmatprep.mubr.msk.bf16.mxu0 %vm3344_vm14, %v13854_v32  ;;  %v13947_v21 = vld [vmem:[%s21838_s5 + $0x560] ss:$16 sps:$4 sm:$0xff]  }
 0x2f5   : > { %3508 = vmatmul.mubr.bf16.gmra.mxu1 %v13853_v1  ;;  %3638 = vmatprep.subr.bf16.mxu0 %v17902_v47  ;;  %v13862_v47 = vld [vmem:[%s21837_s4 + $0x4] ss:$8 sps:$4 sm:$0xff]  }
 0x2f6   : > { %3720 = vmatpush1.bf16.msra.mxu1 %v17871_v6  ;;  %12024 = vmatprep.mubr.msk.bf16.mxu1 %vm3344_vm14, %v13854_v32  ;;  %v13857_v6 = vld [vmem:[%s21836_s3 + $0x44] ss:$8 sps:$4 sm:$0x7f]  }
 0x2f7   : > { %3721 = vmatprep.subr.bf16.mxu1 %v17913_v59  ;;  %v13877_v59 = vld [vmem:[%s21838_s5 + $0x4e4] ss:$16 sps:$4 sm:$0xff]  }
 0x2f8   : > { %3639 = vmatpush1.bf16.msra.mxu0 %v17915_v7  ;;  %v13859_v7 = vld [vmem:[%s21836_s3 + $0x40] ss:$8 sps:$4 sm:$0x7f]   ;;  %v13943_v1 = vld [vmem:[%s21838_s5 + $0x584] ss:$16 sps:$4 sm:$0xff]  }
 0x2f9   : > { %3640 = vmatprep.subr.bf16.mxu0 %v17953_v8  ;;  %v13860_v8 = vld [vmem:[%s21837_s4] ss:$8 sps:$4 sm:$0xff]   ;;  %v13952_v32 = vld [vmem:[%s21838_s5 + $0x764] ss:$16 sps:$4 sm:$0xff]  }
 0x2fa   : > { %3722 = vmatpush1.bf16.msra.mxu1 %v17923_v44  ;;  %v13880_v44 = vld [vmem:[%s21838_s5 + $0x6e4] ss:$16 sps:$4 sm:$0xff]  }
 0x2fb   : > { %3723 = vmatprep.subr.bf16.mxu1 %v17962_v9  ;;  %3435 = vmatmul.mubr.bf16.gmra.mxu0 %v13856_v40  ;;  %v13878_v9 = vld [vmem:[%s21838_s5 + $0x6e0] ss:$16 sps:$4 sm:$0xff]  }
 0x2fc   : > { %3641 = vmatpush1.bf16.msra.mxu0 %v17956_v30  ;;  %12019 = vmatprep.mubr.msk.bf16.mxu0 %vm3344_vm14, %v13857_v6  ;;  %v13863_v30 = vld [vmem:[%s21837_s4 + $0x14] ss:$8 sps:$4 sm:$0xff]  }
 0x2fd   : > { %3518 = vmatmul.mubr.bf16.gmra.mxu1 %v13856_v40  ;;  %3642 = vmatprep.subr.bf16.mxu0 %v17991_v25  ;;  %v13883_v25 = vld [vmem:[%s21838_s5 + $0x4c4] ss:$16 sps:$4 sm:$0xff]   ;;  %v13950_v40 = vld [vmem:[%s21838_s5 + $0x760] ss:$16 sps:$4 sm:$0xff]  }
 0x2fe   : > { %3724 = vmatpush1.bf16.msra.mxu1 %v17958_v33  ;;  %12025 = vmatprep.mubr.msk.bf16.mxu1 %vm3344_vm14, %v13857_v6  ;;  %v13875_v33 = vld [vmem:[%s21838_s5 + $0x4e0] ss:$16 sps:$4 sm:$0xff]   ;;  %v13955_v6 = vld [vmem:[%s21838_s5 + $0x544] ss:$16 sps:$4 sm:$0xff]  }
 0x2ff   : > { %3725 = vmatprep.subr.bf16.mxu1 %v18000_v34  ;;  %v13881_v34 = vld [vmem:[%s21838_s5 + $0x4c0] ss:$16 sps:$4 sm:$0xff]  }
 0x300   : > { %3643 = vmatpush1.bf16.msra.mxu0 %v17994_v61  ;;  %v13886_v61 = vld [vmem:[%s21838_s5 + $0x6c4] ss:$16 sps:$4 sm:$0xff]  }
 0x301   : > { %12036 = vmatprep.subr.msk.bf16.mxu0 %vm22915_vm2, %v18017_v39  ;;  %v13866_v39 = vld [vmem:[%s21837_s4 + $0x24] ss:$8 sps:$4 sm:$0xff]   ;;  %vm22947_vm2 = vmmov %vm22942_vm0 }
 0x302   : > { %3726 = vmatpush1.bf16.msra.mxu1 %v18015_v43  ;;  %v13892_v43 = vld [vmem:[%s21838_s5 + $0x6a4] ss:$16 sps:$4 sm:$0xff]  }
 0x303   : > { %12042 = vmatprep.subr.msk.bf16.mxu1 %vm22916_vm13, %v18029_v15  ;;  %3445 = vmatmul.mubr.bf16.gmra.mxu0 %v13859_v7  ;;  %v13895_v15 = vld [vmem:[%s21838_s5 + $0x484] ss:$16 sps:$4 sm:$0xff]   ;;  %vm22948_vm13 = vmmov %vm22942_vm0 }
 0x304   : > { %3657 = vmatpush2.bf16.msra.mxu0 %v18057_v49  ;;  %12037 = vmatprep.mubr.msk.bf16.mxu0 %vm3344_vm14, %v13862_v47  ;;  %v13901_v49 = vld [vmem:[%s21838_s5 + $0x464] ss:$16 sps:$4 sm:$0xff]  }
 0x305   : > { %3528 = vmatmul.mubr.bf16.gmra.mxu1 %v13859_v7  ;;  %3658 = vmatprep.subr.bf16.mxu0 %v18070_v14  ;;  %v13910_v14 = vld [vmem:[%s21838_s5 + $0x644] ss:$16 sps:$4 sm:$0xff]  }
 0x306   : > { %3740 = vmatpush2.bf16.msra.mxu1 %v18068_v48  ;;  %12043 = vmatprep.mubr.msk.bf16.mxu1 %vm3344_vm14, %v13862_v47  ;;  %v13908_v48 = vld [vmem:[%s21838_s5 + $0x640] ss:$16 sps:$4 sm:$0xff]   ;;  %v13958_v7 = vld [vmem:[%s21838_s5 + $0x744] ss:$16 sps:$4 sm:$0xff]  }
 0x307   : > { %3741 = vmatprep.subr.bf16.mxu1 %v18093_v51  ;;  %v13923_v51 = vld [vmem:[%s21838_s5 + $0x5e0] ss:$16 sps:$4 sm:$0xff]  }
 0x308   : > { %3659 = vmatpush2.bf16.msra.mxu0 %v18082_v31  ;;  %v13917_v31 = vld [vmem:[%s21838_s5 + $0x400] ss:$16 sps:$4 sm:$0xff]  }
 0x309   : > { %4711 = vmatprep.subr.bf16.mxu0 %v13877_v59  ;;  %v13953_v47 = vld [vmem:[%s21838_s5 + $0x540] ss:$16 sps:$4 sm:$0xff]  }
 0x30a   : > { %3742 = vmatpush2.bf16.msra.mxu1 %v18095_v19  ;;  %v13926_v19 = vld [vmem:[%s21838_s5 + $0x7e0] ss:$16 sps:$4 sm:$0xff]  }
 0x30b   : > { %4794 = vmatprep.subr.bf16.mxu1 %v13880_v44  ;;  %3661 = vmatmul.mubr.bf16.vlgmr.msra.gmra.mxu0 %v13860_v8  ;;  %v13956_v59 = vld [vmem:[%s21838_s5 + $0x740] ss:$16 sps:$4 sm:$0xff]   ;;  %v13961_v44 = vld [vmem:[%s21838_s5 + $0x524] ss:$16 sps:$4 sm:$0xff]  }
 0x30c   : > { %12038 = vmatprep.mubr.msk.bf16.mxu0 %vm3344_vm14, %v13863_v30  ;;  %4712 = vmatpush1.bf16.msra.mxu0 %v13875_v33  ;;  %v13962_v33 = vld [vmem:[%s21838_s5 + $0x720] ss:$16 sps:$4 sm:$0xff]  }
 0x30d   : > { %3744 = vmatmul.mubr.bf16.vlgmr.msra.gmra.mxu1 %v13860_v8  ;;  %4713 = vmatprep.subr.bf16.mxu0 %v13883_v25  ;;  %v13964_v8 = vld [vmem:[%s21838_s5 + $0x724] ss:$16 sps:$4 sm:$0xff]  }
 0x30e   : > { %12044 = vmatprep.mubr.msk.bf16.mxu1 %vm3344_vm14, %v13863_v30  ;;  %4795 = vmatpush1.bf16.msra.mxu1 %v13878_v9  ;;  %v13959_v30 = vld [vmem:[%s21838_s5 + $0x520] ss:$16 sps:$4 sm:$0xff]   ;;  %v13967_v9 = vld [vmem:[%s21838_s5 + $0x504] ss:$16 sps:$4 sm:$0xff]  }
 0x30f   : > { %4796 = vmatprep.subr.bf16.mxu1 %v13886_v61  ;;  %v13970_v25 = vld [vmem:[%s21838_s5 + $0x704] ss:$16 sps:$4 sm:$0xff]   ;;  %v13965_v61 = vld [vmem:[%s21838_s5 + $0x500] ss:$16 sps:$4 sm:$0xff]  }
 0x310   : > { %4714 = vmatpush1.bf16.msra.mxu0 %v13881_v34  ;;  %v13968_v34 = vld [vmem:[%s21838_s5 + $0x700] ss:$16 sps:$4 sm:$0xff]  }
 0x311   : > { %4715 = vmatprep.subr.bf16.mxu0 %v13889_v37  ;;  %v13976_v37 = vld [vmem:[%s21838_s5 + $0x6ec] ss:$16 sps:$4 sm:$0xff]  }
 0x312   : > { %4797 = vmatpush1.bf16.msra.mxu1 %v13884_v50  ;;  %v13973_v50 = vld [vmem:[%s21838_s5 + $0x4ec] ss:$16 sps:$4 sm:$0xff]  }
 0x313   : > { %3671 = vmatmul.mubr.bf16.gmra.mxu0 %v13865_v41  ;;  %4798 = vmatprep.subr.bf16.mxu1 %v13892_v43 }
 0x314   : > { %12039 = vmatprep.mubr.msk.bf16.mxu0 %vm3344_vm14, %v13866_v39  ;;  %4716 = vmatpush1.bf16.msra.mxu0 %v13887_v12 }
 0x315   : > { %3754 = vmatmul.mubr.bf16.gmra.mxu1 %v13865_v41  ;;  %4717 = vmatprep.subr.bf16.mxu0 %v13895_v15 }
 0x316   : > { %12045 = vmatprep.mubr.msk.bf16.mxu1 %vm3344_vm14, %v13866_v39  ;;  %4799 = vmatpush1.bf16.msra.mxu1 %v13890_v3 }
 0x317   : > { %4800 = vmatprep.subr.bf16.mxu1 %v13898_v29 }
 0x318   : > { %4718 = vmatpush1.bf16.msra.mxu0 %v13893_v60 }
 0x319   : > { %4719 = vmatprep.subr.bf16.mxu0 %v13901_v49 }
 0x31a   : > { %4801 = vmatpush1.bf16.msra.mxu1 %v13896_v38 }
 0x31b   : > { %3681 = vmatmul.mubr.bf16.gmra.mxu0 %v13868_v20  ;;  %4802 = vmatprep.subr.bf16.mxu1 %v13904_v4 }
 0x31c   : > { %12040 = vmatprep.mubr.msk.bf16.mxu0 %vm3344_vm14, %v13869_v36  ;;  %4720 = vmatpush1.bf16.msra.mxu0 %v13899_v53 }
 0x31d   : > { %3764 = vmatmul.mubr.bf16.gmra.mxu1 %v13868_v20  ;;  %4721 = vmatprep.subr.bf16.mxu0 %v13907_v13 }
 0x31e   : > { %12046 = vmatprep.mubr.msk.bf16.mxu1 %vm3344_vm14, %v13869_v36  ;;  %4803 = vmatpush1.bf16.msra.mxu1 %v13902_v24 }
 0x31f   : > { %4804 = vmatprep.subr.bf16.mxu1 %v13910_v14 }
 0x320   : > { %4722 = vmatpush1.bf16.msra.mxu0 %v13905_v57 }
 0x321   : > { %4723 = vmatprep.subr.bf16.mxu0 %v13913_v63 }
 0x322   : > { %4805 = vmatpush1.bf16.msra.mxu1 %v13908_v48 }
 0x323   : > { %3691 = vmatmul.mubr.bf16.gmra.mxu0 %v13871_v55  ;;  %4806 = vmatprep.subr.bf16.mxu1 %v13916_v56 }
 0x324   : > { %12041 = vmatprep.mubr.msk.bf16.mxu0 %vm3344_vm14, %v13872_v54  ;;  %4724 = vmatpush1.bf16.msra.mxu0 %v13911_v58 }
 0x325   : > { %3774 = vmatmul.mubr.bf16.gmra.mxu1 %v13871_v55  ;;  %4725 = vmatprep.subr.bf16.mxu0 %v13919_v46 }
 0x326   : > { %12047 = vmatprep.mubr.msk.bf16.mxu1 %vm3344_vm14, %v13872_v54  ;;  %4807 = vmatpush1.bf16.msra.mxu1 %v13914_v28  ;;  %vm22944_vm14 = vmmov %vm22942_vm0 }
 0x327   : > { %4808 = vmatprep.subr.bf16.mxu1 %v13922_v5 }
 0x328   : > { %4726 = vmatpush1.bf16.msra.mxu0 %v13917_v31 }
 0x329   : > { %4727 = vmatprep.subr.bf16.mxu0 %v13925_v22 }
 0x32a   : > { %4809 = vmatpush1.bf16.msra.mxu1 %v13920_v18 }
 0x32b   : > { %3701 = vmatmul.mubr.bf16.gmra.mxu0 %v13874_v42  ;;  %4810 = vmatprep.subr.bf16.mxu1 %v13928_v2 }
 0x32c   : > { %4728 = vmatpush2.bf16.msra.mxu0 %v13923_v51 }
 0x32d   : > { %3784 = vmatmul.mubr.bf16.gmra.mxu1 %v13874_v42  ;;  %4729 = vmatprep.subr.bf16.mxu0 %v13931_v10 }
 0x32e   : > { %4811 = vmatpush2.bf16.msra.mxu1 %v13926_v19 }
 0x32f   : > { %4812 = vmatprep.subr.bf16.mxu1 %v13934_v52 }
 0x330   : > { %4730 = vmatpush2.bf16.msra.mxu0 %v13929_v26 }
 0x331   : > { %4731 = vmatprep.subr.bf16.mxu0 %v13937_v27 }
 0x332   : > { %4813 = vmatpush2.bf16.msra.mxu1 %v13932_v16 }
 0x333   : > { %4814 = vmatprep.subr.bf16.mxu1 %v13940_v45 }
 0x334   : > { %4732 = vmatpush2.bf16.msra.mxu0 %v13935_v35 }
 0x335   : > { %4733 = vmatprep.subr.bf16.mxu0 %v13943_v1 }
 0x336   : > { %4815 = vmatpush2.bf16.msra.mxu1 %v13938_v11 }
 0x337   : > { %4816 = vmatprep.subr.bf16.mxu1 %v13946_v62 }
 0x338   : > { %4734 = vmatpush2.bf16.msra.mxu0 %v13941_v17 }
 0x339   : > { %4735 = vmatprep.subr.bf16.mxu0 %v13949_v23 }
 0x33a   : > { %4817 = vmatpush2.bf16.msra.mxu1 %v13944_v0 }
 0x33b   : > { %4818 = vmatprep.subr.bf16.mxu1 %v13952_v32 }
 0x33c   : > { %4736 = vmatpush2.bf16.msra.mxu0 %v13947_v21 }
 0x33d   : > { %4737 = vmatprep.subr.bf16.mxu0 %v13955_v6 }
 0x33e   : > { %4819 = vmatpush2.bf16.msra.mxu1 %v13950_v40 }
 0x33f   : > { %4820 = vmatprep.subr.bf16.mxu1 %v13958_v7 }
 0x340   : > { %4738 = vmatpush2.bf16.msra.mxu0 %v13953_v47 }
 0x341   : > { %4739 = vmatprep.subr.bf16.mxu0 %v13961_v44 }
 0x342   : > { %4821 = vmatpush2.bf16.msra.mxu1 %v13956_v59 }
 0x343   : > { %4822 = vmatprep.subr.bf16.mxu1 %v13964_v8 }
 0x344   : > { %4740 = vmatpush2.bf16.msra.mxu0 %v13959_v30 }
 0x345   : > { %4741 = vmatprep.subr.bf16.mxu0 %v13967_v9 }
 0x346   : > { %4823 = vmatpush2.bf16.msra.mxu1 %v13962_v33 }
 0x347   : > { %4824 = vmatprep.subr.bf16.mxu1 %v13970_v25  ;;  %v13971_v25 = vld [vmem:[%s21838_s5 + $0x4e8] ss:$16 sps:$4 sm:$0xff]  }
 0x348   : > { %4742 = vmatpush2.bf16.msra.mxu0 %v13965_v61 }
 0x349   : > { %4877 = vmatprep.subr.bf16.mxu0 %v13973_v50 }
 0x34a   : > { %4825 = vmatpush2.bf16.msra.mxu1 %v13968_v34 }
 0x34b   : > { %4960 = vmatprep.subr.bf16.mxu1 %v13976_v37  ;;  %v13974_v37 = vld [vmem:[%s21838_s5 + $0x6e8] ss:$16 sps:$4 sm:$0xff]  }
 0x3a3   : > { %v3406_v41 = vpop.f32.mrf.mxu0 }
 0x3a5   : > { %v3489_v43 = vpop.f32.mrf.mxu1  ;;  %v18417_v39 = vpop.f32.mrf.mxu0 }
 0x3a7   : > { %v18419_v12 = vpop.f32.mrf.mxu1  ;;  %v3410_v3 = vpop.f32.mrf.mxu0 }
 0x3a8   : > { %v18421_v15 = vpack.c.bf16 %v3410_v3, %v3406_v41  ;;  %v13979_v41 = vld [vmem:[%s21838_s5 + $0x4cc] ss:$16 sps:$4 sm:$0xff]  }
 0x3a9   : > { %v3493_v29 = vpop.f32.mrf.mxu1  ;;  %v18425_v38 = vpop.f32.mrf.mxu0 }
 0x3aa   : > { %v18423_v60 = vpack.c.bf16 %v3493_v29, %v3489_v43  ;;  %v13982_v29 = vld [vmem:[%s21838_s5 + $0x6cc] ss:$16 sps:$4 sm:$0xff]  }
 0x3ab   : > { %v18427_v20 = vpop.f32.mrf.mxu1  ;;  %v3416_v36 = vpop.f32.mrf.mxu0 }
 0x3ad   : > { %v3499_v55 = vpop.f32.mrf.mxu1  ;;  %v18429_v54 = vpop.f32.mrf.mxu0 }
 0x3af   : > { %v18431_v53 = vpop.f32.mrf.mxu1  ;;  %v3420_v49 = vpop.f32.mrf.mxu0 }
 0x3b0   : > { %v18433_v24 = vpack.c.bf16 %v3420_v49, %v3416_v36  ;;  %v13977_v49 = vld [vmem:[%s21838_s5 + $0x4c8] ss:$16 sps:$4 sm:$0xff]  }
 0x3b1   : > { %v3503_v4 = vpop.f32.mrf.mxu1  ;;  %v18437_v57 = vpop.f32.mrf.mxu0 }
 0x3b2   : > { %v18435_v42 = vpack.c.bf16 %v3503_v4, %v3499_v55 }
 0x3b3   : > { %v18439_v13 = vpop.f32.mrf.mxu1  ;;  %v3426_v48 = vpop.f32.mrf.mxu0 }
 0x3b5   : > { %v3509_v14 = vpop.f32.mrf.mxu1  ;;  %v18441_v63 = vpop.f32.mrf.mxu0 }
 0x3b7   : > { %v18443_v56 = vpop.f32.mrf.mxu1  ;;  %v3430_v58 = vpop.f32.mrf.mxu0 }
 0x3b8   : > { %v18445_v28 = vpack.c.bf16 %v3430_v58, %v3426_v48  ;;  %v13980_v48 = vld [vmem:[%s21838_s5 + $0x6c8] ss:$16 sps:$4 sm:$0xff]  }
 0x3b9   : > { %v3513_v46 = vpop.f32.mrf.mxu1  ;;  %v18449_v5 = vpop.f32.mrf.mxu0 }
 0x3ba   : > { %v18447_v31 = vpack.c.bf16 %v3513_v46, %v3509_v14  ;;  %v13985_v14 = vld [vmem:[%s21838_s5 + $0x4ac] ss:$16 sps:$4 sm:$0xff]  }
 0x3bb   : > { %v18451_v18 = vpop.f32.mrf.mxu1  ;;  %v3436_v22 = vpop.f32.mrf.mxu0  ;;  %v13988_v46 = vld [vmem:[%s21838_s5 + $0x6ac] ss:$16 sps:$4 sm:$0xff]  }
 0x3bd   : > { %v3519_v2 = vpop.f32.mrf.mxu1  ;;  %v18453_v51 = vpop.f32.mrf.mxu0 }
 0x3bf   : > { %v18455_v19 = vpop.f32.mrf.mxu1  ;;  %v3440_v10 = vpop.f32.mrf.mxu0 }
 0x3c0   : > { %v18457_v52 = vpack.c.bf16 %v3440_v10, %v3436_v22 }
 0x3c1   : > { %v3523_v26 = vpop.f32.mrf.mxu1  ;;  %v18461_v27 = vpop.f32.mrf.mxu0 }
 0x3c2   : > { %v18459_v16 = vpack.c.bf16 %v3523_v26, %v3519_v2 }
 0x3c3   : > { %v18463_v45 = vpop.f32.mrf.mxu1  ;;  %v3446_v35 = vpop.f32.mrf.mxu0 }
 0x3c5   : > { %v3529_v11 = vpop.f32.mrf.mxu1  ;;  %v18465_v1 = vpop.f32.mrf.mxu0 }
 0x3c7   : > { %v18467_v62 = vpop.f32.mrf.mxu1  ;;  %v3450_v17 = vpop.f32.mrf.mxu0 }
 0x3c8   : > { %v18469_v0 = vpack.c.bf16 %v3450_v17, %v3446_v35 }
 0x3c9   : > { %v3533_v23 = vpop.f32.mrf.mxu1  ;;  %v18473_v21 = vpop.f32.mrf.mxu0 }
 0x3ca   : > { %v18471_v32 = vpack.c.bf16 %v3533_v23, %v3529_v11  ;;  %v13983_v11 = vld [vmem:[%s21838_s5 + $0x4a8] ss:$16 sps:$4 sm:$0xff]  }
 0x3cb   : > { %v18475_v40 = vpop.f32.mrf.mxu1  ;;  %v3662_v6 = vpop.f32.mrf.mxu0 }
 0x3cd   : > { %v3745_v7 = vpop.f32.mrf.mxu1  ;;  %v3664_v47 = vpop.f32.mrf.mxu0 }
 0x3cf   : > { %v3747_v59 = vpop.f32.mrf.mxu1  ;;  %v3666_v44 = vpop.f32.mrf.mxu0 }
 0x3d0   : > { %v18482_v61 = vpack.c.bf16 %v3666_v44, %v3662_v6  ;;  %v13986_v6 = vld [vmem:[%s21838_s5 + $0x6a8] ss:$16 sps:$4 sm:$0xff]  }
 0x3d1   : > { %v3749_v8 = vpop.f32.mrf.mxu1  ;;  %v3668_v30 = vpop.f32.mrf.mxu0 }
 0x3d2   : > { %v18477_v33 = vpack.c.bf16 %v3668_v30, %v3664_v47  ;;  %v18492_v43 = vpack.c.bf16 %v3749_v8, %v3745_v7  ;;  %v13991_v7 = vld [vmem:[%s21838_s5 + $0x48c] ss:$16 sps:$4 sm:$0xff]   ;;  %v13989_v30 = vld [vmem:[%s21838_s5 + $0x488] ss:$16 sps:$4 sm:$0xff]  }
 0x3d3   : > { %v3751_v9 = vpop.f32.mrf.mxu1  ;;  %v3672_v50 = vpop.f32.mrf.mxu0 }
 0x3d4   : > { %v18484_v34 = vpack.c.bf16 %v3751_v9, %v3747_v59  ;;  %4743 = vmatprep.mubr.bf16.mxu0 %v18477_v33  ;;  %v13994_v59 = vld [vmem:[%s21838_s5 + $0x68c] ss:$16 sps:$4 sm:$0xff]  }
 0x3d5   : > { %v3755_v3 = vpop.f32.mrf.mxu1  ;;  %v3674_v36 = vpop.f32.mrf.mxu0  ;;  %4744 = vmatmul.mubr.bf16.vlgmr.msra.gmra.mxu0 %v18482_v61 }
 0x3d6   : > { %4826 = vmatprep.mubr.bf16.mxu1 %v18484_v34  ;;  %4878 = vmatpush1.bf16.msra.mxu0 %v13971_v25  ;;  %v13992_v25 = vld [vmem:[%s21838_s5 + $0x688] ss:$16 sps:$4 sm:$0xff]  }
 0x3d7   : > { %v3757_v55 = vpop.f32.mrf.mxu1  ;;  %4827 = vmatmul.mubr.bf16.vlgmr.msra.gmra.mxu1 %v18492_v43  ;;  %v3676_v4 = vpop.f32.mrf.mxu0  ;;  %4879 = vmatprep.subr.bf16.mxu0 %v13979_v41  ;;  %v14000_v41 = vld [vmem:[%s21838_s5 + $0x66c] ss:$16 sps:$4 sm:$0xff]  }
 0x3d8   : > { %4961 = vmatpush1.bf16.msra.mxu1 %v13974_v37  ;;  %v18513_v22 = vpack.c.bf16 %v3676_v4, %v3672_v50  ;;  %v13997_v50 = vld [vmem:[%s21838_s5 + $0x46c] ss:$16 sps:$4 sm:$0xff]   ;;  %v13995_v4 = vld [vmem:[%s21838_s5 + $0x468] ss:$16 sps:$4 sm:$0xff]  }
 0x3d9   : > { %v3759_v58 = vpop.f32.mrf.mxu1  ;;  %4962 = vmatprep.subr.bf16.mxu1 %v13982_v29  ;;  %v3678_v2 = vpop.f32.mrf.mxu0 }
 0x3da   : > { %v18515_v10 = vpack.c.bf16 %v3759_v58, %v3755_v3  ;;  %v18517_v26 = vpack.c.bf16 %v3678_v2, %v3674_v36  ;;  %4880 = vmatpush1.bf16.msra.mxu0 %v13977_v49  ;;  %v13998_v58 = vld [vmem:[%s21838_s5 + $0x668] ss:$16 sps:$4 sm:$0xff]  }
 0x3db   : > { %v3761_v35 = vpop.f32.mrf.mxu1  ;;  %v3682_v23 = vpop.f32.mrf.mxu0  ;;  %4881 = vmatprep.subr.bf16.mxu0 %v13985_v14 }
 0x3dc   : > { %v18522_v17 = vpack.c.bf16 %v3761_v35, %v3757_v55  ;;  %4963 = vmatpush1.bf16.msra.mxu1 %v13980_v48  ;;  %4753 = vmatprep.mubr.bf16.mxu0 %v18517_v26  ;;  %v14006_v35 = vld [vmem:[%s21838_s5 + $0x64c] ss:$16 sps:$4 sm:$0xff]  }
 0x3dd   : > { %v3765_v47 = vpop.f32.mrf.mxu1  ;;  %4964 = vmatprep.subr.bf16.mxu1 %v13988_v46  ;;  %v3684_v44 = vpop.f32.mrf.mxu0  ;;  %4754 = vmatmul.mubr.bf16.gmra.mxu0 %v18513_v22  ;;  %v14003_v46 = vld [vmem:[%s21838_s5 + $0x44c] ss:$16 sps:$4 sm:$0xff]  }
 0x3de   : > { %4836 = vmatprep.mubr.bf16.mxu1 %v18522_v17  ;;  %4882 = vmatpush1.bf16.msra.mxu0 %v13983_v11 }
 0x3df   : > { %v3767_v8 = vpop.f32.mrf.mxu1  ;;  %4837 = vmatmul.mubr.bf16.gmra.mxu1 %v18515_v10  ;;  %v3686_v9 = vpop.f32.mrf.mxu0  ;;  %4883 = vmatprep.subr.bf16.mxu0 %v13991_v7 }
 0x3e0   : > { %4965 = vmatpush1.bf16.msra.mxu1 %v13986_v6  ;;  %v18549_v3 = vpack.c.bf16 %v3686_v9, %v3682_v23  ;;  %v14001_v6 = vld [vmem:[%s21838_s5 + $0x448] ss:$16 sps:$4 sm:$0xff]  }
 0x3e1   : > { %v3769_v37 = vpop.f32.mrf.mxu1  ;;  %4966 = vmatprep.subr.bf16.mxu1 %v13994_v59  ;;  %v3688_v29 = vpop.f32.mrf.mxu0  ;;  %v14009_v59 = vld [vmem:[%s21838_s5 + $0x42c] ss:$16 sps:$4 sm:$0xff]  }
 0x3e2   : > { %v18551_v36 = vpack.c.bf16 %v3769_v37, %v3765_v47  ;;  %v18553_v55 = vpack.c.bf16 %v3688_v29, %v3684_v44  ;;  %4884 = vmatpush1.bf16.msra.mxu0 %v13989_v30  ;;  %v14004_v47 = vld [vmem:[%s21838_s5 + $0x648] ss:$16 sps:$4 sm:$0xff]  }
 0x3e3   : > { %v3771_v49 = vpop.f32.mrf.mxu1  ;;  %v3692_v14 = vpop.f32.mrf.mxu0  ;;  %4885 = vmatprep.subr.bf16.mxu0 %v13997_v50 }
 0x3e4   : > { %v18558_v48 = vpack.c.bf16 %v3771_v49, %v3767_v8  ;;  %4967 = vmatpush1.bf16.msra.mxu1 %v13992_v25  ;;  %4763 = vmatprep.mubr.bf16.mxu0 %v18553_v55  ;;  %v14012_v8 = vld [vmem:[%s21838_s5 + $0x62c] ss:$16 sps:$4 sm:$0xff]  }
 0x3e5   : > { %v3775_v2 = vpop.f32.mrf.mxu1  ;;  %4968 = vmatprep.subr.bf16.mxu1 %v14000_v41  ;;  %v3694_v11 = vpop.f32.mrf.mxu0  ;;  %4764 = vmatmul.mubr.bf16.gmra.mxu0 %v18549_v3  ;;  %v14007_v41 = vld [vmem:[%s21838_s5 + $0x428] ss:$16 sps:$4 sm:$0xff]  }
 0x3e6   : > { %4846 = vmatprep.mubr.bf16.mxu1 %v18558_v48  ;;  %4886 = vmatpush1.bf16.msra.mxu0 %v13995_v4  ;;  %v14010_v4 = vld [vmem:[%s21838_s5 + $0x628] ss:$16 sps:$4 sm:$0xff]  }
 0x3e7   : > { %v3777_v23 = vpop.f32.mrf.mxu1  ;;  %4847 = vmatmul.mubr.bf16.gmra.mxu1 %v18551_v36  ;;  %v3696_v7 = vpop.f32.mrf.mxu0  ;;  %4887 = vmatprep.subr.bf16.mxu0 %v14003_v46  ;;  %v14018_v46 = vld [vmem:[%s21838_s5 + $0x60c] ss:$16 sps:$4 sm:$0xff]  }
 0x3e8   : > { %4969 = vmatpush1.bf16.msra.mxu1 %v13998_v58  ;;  %v18585_v30 = vpack.c.bf16 %v3696_v7, %v3692_v14  ;;  %v14015_v14 = vld [vmem:[%s21838_s5 + $0x40c] ss:$16 sps:$4 sm:$0xff]  }
 0x3e9   : > { %v3779_v44 = vpop.f32.mrf.mxu1  ;;  %4970 = vmatprep.subr.bf16.mxu1 %v14006_v35  ;;  %v3698_v9 = vpop.f32.mrf.mxu0  ;;  %v14021_v7 = vld [vmem:[%s21838_s5 + $0x5ec] ss:$16 sps:$4 sm:$0xff]  }
 0x3ea   : > { %v18587_v25 = vpack.c.bf16 %v3779_v44, %v3775_v2  ;;  %v18589_v50 = vpack.c.bf16 %v3698_v9, %v3694_v11  ;;  %4888 = vmatpush1.bf16.msra.mxu0 %v14001_v6  ;;  %v14013_v11 = vld [vmem:[%s21838_s5 + $0x408] ss:$16 sps:$4 sm:$0xff]  }
 0x3eb   : > { %v3781_v37 = vpop.f32.mrf.mxu1  ;;  %v3702_v49 = vpop.f32.mrf.mxu0  ;;  %4889 = vmatprep.subr.bf16.mxu0 %v14009_v59  ;;  %v14016_v6 = vld [vmem:[%s21838_s5 + $0x608] ss:$16 sps:$4 sm:$0xff]   ;;  %v14024_v59 = vld [vmem:[%s21838_s5 + $0x7ec] ss:$16 sps:$4 sm:$0xff]  }
 0x3ec   : > { %v18594_v29 = vpack.c.bf16 %v3781_v37, %v3777_v23  ;;  %4971 = vmatpush1.bf16.msra.mxu1 %v14004_v47  ;;  %4773 = vmatprep.mubr.bf16.mxu0 %v18589_v50 }
 0x3ed   : > { %v3785_v58 = vpop.f32.mrf.mxu1  ;;  %4972 = vmatprep.subr.bf16.mxu1 %v14012_v8  ;;  %v3704_v2 = vpop.f32.mrf.mxu0  ;;  %4774 = vmatmul.mubr.bf16.gmra.mxu0 %v18585_v30 }
 0x3ee   : > { %4856 = vmatprep.mubr.bf16.mxu1 %v18594_v29  ;;  %4890 = vmatpush1.bf16.msra.mxu0 %v14007_v41 }
 0x3ef   : > { %v3787_v35 = vpop.f32.mrf.mxu1  ;;  %4857 = vmatmul.mubr.bf16.gmra.mxu1 %v18587_v25  ;;  %v3706_v23 = vpop.f32.mrf.mxu0  ;;  %4891 = vmatprep.subr.bf16.mxu0 %v14015_v14 }
 0x3f0   : > { %4973 = vmatpush1.bf16.msra.mxu1 %v14010_v4  ;;  %v18621_v44 = vpack.c.bf16 %v3706_v23, %v3702_v49  ;;  %v14019_v4 = vld [vmem:[%s21838_s5 + $0x5e8] ss:$16 sps:$4 sm:$0xff]   ;;  %v14036_v23 = vld [vmem:[%s21838_s5 + $0x7ac] ss:$16 sps:$4 sm:$0xff]  }
 0x3f1   : > { %v3789_v47 = vpop.f32.mrf.mxu1  ;;  %4974 = vmatprep.subr.bf16.mxu1 %v14018_v46  ;;  %v3708_v8 = vpop.f32.mrf.mxu0  ;;  %v14022_v49 = vld [vmem:[%s21838_s5 + $0x7e8] ss:$16 sps:$4 sm:$0xff]   ;;  %v14030_v46 = vld [vmem:[%s21838_s5 + $0x7cc] ss:$16 sps:$4 sm:$0xff]  }
 0x3f2   : > { %v18623_v9 = vpack.c.bf16 %v3789_v47, %v3785_v58  ;;  %v18625_v37 = vpack.c.bf16 %v3708_v8, %v3704_v2  ;;  %4892 = vmatpush1.bf16.msra.mxu0 %v14013_v11  ;;  %v14027_v58 = vld [vmem:[%s21838_s5 + $0x5cc] ss:$16 sps:$4 sm:$0xff]   ;;  %v14025_v2 = vld [vmem:[%s21838_s5 + $0x5c8] ss:$16 sps:$4 sm:$0xff]  }
 0x3f3   : > { %v3791_v41 = vpop.f32.mrf.mxu1  ;;  %4893 = vmatprep.subr.bf16.mxu0 %v14021_v7  ;;  %v14033_v11 = vld [vmem:[%s21838_s5 + $0x5ac] ss:$16 sps:$4 sm:$0xff]   ;;  %v14037_v47 = vld [vmem:[%s21838_s5 + $0x588] ss:$16 sps:$4 sm:$0xff]  }
 0x3f4   : > { %v18630_v14 = vpack.c.bf16 %v3791_v41, %v3787_v35  ;;  %4975 = vmatpush1.bf16.msra.mxu1 %v14016_v6  ;;  %4783 = vmatprep.mubr.bf16.mxu0 %v18625_v37  ;;  %v14028_v35 = vld [vmem:[%s21838_s5 + $0x7c8] ss:$16 sps:$4 sm:$0xff]   ;;  %v14042_v7 = vld [vmem:[%s21838_s5 + $0x78c] ss:$16 sps:$4 sm:$0xff]  }
 0x3f5   : > { %4976 = vmatprep.subr.bf16.mxu1 %v14024_v59  ;;  %4784 = vmatmul.mubr.bf16.gmra.mxu0 %v18621_v44  ;;  %v14034_v6 = vld [vmem:[%s21838_s5 + $0x7a8] ss:$16 sps:$4 sm:$0xff]   ;;  %v14045_v8 = vld [vmem:[%s21838_s5 + $0x56c] ss:$16 sps:$4 sm:$0xff]  }
 0x3f6   : > { %4866 = vmatprep.mubr.bf16.mxu1 %v18630_v14  ;;  %4894 = vmatpush2.bf16.msra.mxu0 %v14019_v4  ;;  %v14040_v59 = vld [vmem:[%s21838_s5 + $0x788] ss:$16 sps:$4 sm:$0xff]   ;;  %v14048_v41 = vld [vmem:[%s21838_s5 + $0x76c] ss:$16 sps:$4 sm:$0xff]  }
 0x3f7   : > { %4867 = vmatmul.mubr.bf16.gmra.mxu1 %v18623_v9  ;;  %4909 = vmatprep.mubr.bf16.mxu0 %v18477_v33  ;;  %v14031_v33 = vld [vmem:[%s21838_s5 + $0x5a8] ss:$16 sps:$4 sm:$0xff]  }
 0x3f8   : > { %4977 = vmatpush2.bf16.msra.mxu1 %v14022_v49  ;;  %4992 = vmatprep.mubr.bf16.mxu1 %v18484_v34  ;;  %v14039_v34 = vld [vmem:[%s21838_s5 + $0x58c] ss:$16 sps:$4 sm:$0xff]   ;;  %v14043_v4 = vld [vmem:[%s21838_s5 + $0x568] ss:$16 sps:$4 sm:$0xff]  }
 0x3f9   : > { %4895 = vmatprep.subr.bf16.mxu0 %v14027_v58  ;;  %4978 = vmatprep.subr.bf16.mxu1 %v14030_v46  ;;  %v14046_v49 = vld [vmem:[%s21838_s5 + $0x768] ss:$16 sps:$4 sm:$0xff]   ;;  %v14051_v58 = vld [vmem:[%s21838_s5 + $0x54c] ss:$16 sps:$4 sm:$0xff]  }
 0x3fa   : > { %4896 = vmatpush2.bf16.msra.mxu0 %v14025_v2  ;;  %v14054_v46 = vld [vmem:[%s21838_s5 + $0x74c] ss:$16 sps:$4 sm:$0xff]   ;;  %v14049_v2 = vld [vmem:[%s21838_s5 + $0x548] ss:$16 sps:$4 sm:$0xff]  }
 0x3fb   : > { %4897 = vmatprep.subr.bf16.mxu0 %v14033_v11  ;;  %v14057_v11 = vld [vmem:[%s21838_s5 + $0x52c] ss:$16 sps:$4 sm:$0xff]  }
 0x3fc   : > { %4979 = vmatpush2.bf16.msra.mxu1 %v14028_v35  ;;  %v14052_v35 = vld [vmem:[%s21838_s5 + $0x748] ss:$16 sps:$4 sm:$0xff]  }
 0x3fd   : > { %4980 = vmatprep.subr.bf16.mxu1 %v14036_v23  ;;  %v14060_v23 = vld [vmem:[%s21838_s5 + $0x72c] ss:$16 sps:$4 sm:$0xff]  }
 0x3fe   : > { %4898 = vmatpush2.bf16.msra.mxu0 %v14031_v33  ;;  %v14055_v33 = vld [vmem:[%s21838_s5 + $0x528] ss:$16 sps:$4 sm:$0xff]  }
 0x3ff   : > { %4899 = vmatprep.subr.bf16.mxu0 %v14039_v34  ;;  %v14063_v34 = vld [vmem:[%s21838_s5 + $0x50c] ss:$16 sps:$4 sm:$0xff]  }
 0x400   : > { %4981 = vmatpush2.bf16.msra.mxu1 %v14034_v6  ;;  %v14058_v6 = vld [vmem:[%s21838_s5 + $0x728] ss:$16 sps:$4 sm:$0xff]  }
 0x401   : > { %4982 = vmatprep.subr.bf16.mxu1 %v14042_v7  ;;  %v14066_v7 = vld [vmem:[%s21838_s5 + $0x70c] ss:$16 sps:$4 sm:$0xff]  }
 0x402   : > { %4900 = vmatpush2.bf16.msra.mxu0 %v14037_v47  ;;  %v14061_v47 = vld [vmem:[%s21838_s5 + $0x508] ss:$16 sps:$4 sm:$0xff]  }
 0x403   : > { %4901 = vmatprep.subr.bf16.mxu0 %v14045_v8  ;;  %v14069_v8 = vld [vmem:[%s21838_s5 + $0xe4] ss:$16 sps:$4 sm:$0xff]  }
 0x404   : > { %4983 = vmatpush2.bf16.msra.mxu1 %v14040_v59  ;;  %v14064_v59 = vld [vmem:[%s21838_s5 + $0x708] ss:$16 sps:$4 sm:$0xff]  }
 0x405   : > { %4984 = vmatprep.subr.bf16.mxu1 %v14048_v41  ;;  %v14072_v41 = vld [vmem:[%s21838_s5 + $0x2e4] ss:$16 sps:$4 sm:$0xff]  }
 0x406   : > { %4902 = vmatpush2.bf16.msra.mxu0 %v14043_v4  ;;  %v14067_v4 = vld [vmem:[%s21838_s5 + $0xe0] ss:$16 sps:$4 sm:$0xff]  }
 0x407   : > { %4903 = vmatprep.subr.bf16.mxu0 %v14051_v58  ;;  %v14075_v58 = vld [vmem:[%s21838_s5 + $0xc4] ss:$16 sps:$4 sm:$0xff]  }
 0x408   : > { %4985 = vmatpush2.bf16.msra.mxu1 %v14046_v49  ;;  %v14070_v49 = vld [vmem:[%s21838_s5 + $0x2e0] ss:$16 sps:$4 sm:$0xff]  }
 0x409   : > { %4986 = vmatprep.subr.bf16.mxu1 %v14054_v46  ;;  %v14078_v46 = vld [vmem:[%s21838_s5 + $0x2c4] ss:$16 sps:$4 sm:$0xff]  }
 0x40a   : > { %4904 = vmatpush2.bf16.msra.mxu0 %v14049_v2  ;;  %v14073_v2 = vld [vmem:[%s21838_s5 + $0xc0] ss:$16 sps:$4 sm:$0xff]  }
 0x40b   : > { %4905 = vmatprep.subr.bf16.mxu0 %v14057_v11  ;;  %v14087_v11 = vld [vmem:[%s21838_s5 + $0x84] ss:$16 sps:$4 sm:$0xff]  }
 0x40c   : > { %4987 = vmatpush2.bf16.msra.mxu1 %v14052_v35  ;;  %v14081_v35 = vld [vmem:[%s21838_s5 + $0xa4] ss:$16 sps:$4 sm:$0xff]  }
 0x40d   : > { %4988 = vmatprep.subr.bf16.mxu1 %v14060_v23  ;;  %v14090_v23 = vld [vmem:[%s21838_s5 + $0x284] ss:$16 sps:$4 sm:$0xff]  }
 0x40e   : > { %4906 = vmatpush2.bf16.msra.mxu0 %v14055_v33  ;;  %v14085_v33 = vld [vmem:[%s21838_s5 + $0x80] ss:$16 sps:$4 sm:$0xff]  }
 0x40f   : > { %4907 = vmatprep.subr.bf16.mxu0 %v14063_v34  ;;  %v14099_v34 = vld [vmem:[%s21838_s5 + $0x44] ss:$16 sps:$4 sm:$0xff]  }
 0x410   : > { %4989 = vmatpush2.bf16.msra.mxu1 %v14058_v6  ;;  %v14093_v6 = vld [vmem:[%s21838_s5 + $0x64] ss:$16 sps:$4 sm:$0xff]  }
 0x411   : > { %4990 = vmatprep.subr.bf16.mxu1 %v14066_v7  ;;  %v14102_v7 = vld [vmem:[%s21838_s5 + $0x244] ss:$16 sps:$4 sm:$0xff]  }
 0x412   : > { %4908 = vmatpush2.bf16.msra.mxu0 %v14061_v47  ;;  %v14097_v47 = vld [vmem:[%s21838_s5 + $0x40] ss:$16 sps:$4 sm:$0xff]  }
 0x413   : > { %5683 = vmatprep.subr.bf16.mxu0 %v14069_v8  ;;  %v14111_v8 = vld [vmem:[%s21838_s5 + $0x4] ss:$16 sps:$4 sm:$0xff]  }
 0x414   : > { %4991 = vmatpush2.bf16.msra.mxu1 %v14064_v59  ;;  %v14105_v59 = vld [vmem:[%s21838_s5 + $0x24] ss:$16 sps:$4 sm:$0xff]  }
 0x415   : > { %5766 = vmatprep.subr.bf16.mxu1 %v14072_v41  ;;  %4910 = vmatmul.mubr.bf16.vlgmr.msra.gmra.mxu0 %v18482_v61  ;;  %v14076_v61 = vld [vmem:[%s21838_s5 + $0x2c0] ss:$16 sps:$4 sm:$0xff]   ;;  %v14114_v41 = vld [vmem:[%s21838_s5 + $0x204] ss:$16 sps:$4 sm:$0xff]  }
 0x416   : > { %4919 = vmatprep.mubr.bf16.mxu0 %v18517_v26  ;;  %5684 = vmatpush1.bf16.msra.mxu0 %v14067_v4  ;;  %v14079_v26 = vld [vmem:[%s21838_s5 + $0xa0] ss:$16 sps:$4 sm:$0xff]  }
 0x417   : > { %4993 = vmatmul.mubr.bf16.vlgmr.msra.gmra.mxu1 %v18492_v43  ;;  %5685 = vmatprep.subr.bf16.mxu0 %v14075_v58  ;;  %v14084_v43 = vld [vmem:[%s21838_s5 + $0x2a4] ss:$16 sps:$4 sm:$0xff]   ;;  %v14109_v4 = vld [vmem:[%s21838_s5] ss:$16 sps:$4 sm:$0xff]  }
 0x418   : > { %5002 = vmatprep.mubr.bf16.mxu1 %v18522_v17  ;;  %5767 = vmatpush1.bf16.msra.mxu1 %v14070_v49  ;;  %v14082_v17 = vld [vmem:[%s21838_s5 + $0x2a0] ss:$16 sps:$4 sm:$0xff]   ;;  %v14117_v49 = vld [vmem:[%s21838_s5 + $0x1e4] ss:$16 sps:$4 sm:$0xff]  }
 0x419   : > { %5768 = vmatprep.subr.bf16.mxu1 %v14078_v46  ;;  %v14118_v58 = vld [vmem:[%s21838_s5 + $0x3e0] ss:$16 sps:$4 sm:$0xff]   ;;  %v14123_v46 = vld [vmem:[%s21838_s5 + $0x1c4] ss:$16 sps:$4 sm:$0xff]  }
 0x41a   : > { %5686 = vmatpush1.bf16.msra.mxu0 %v14073_v2  ;;  %v18858_v2 = vpack.c.bf16 %v18427_v20, %v18419_v12  ;;  %v14124_v12 = vld [vmem:[%s21838_s5 + $0x3c0] ss:$16 sps:$4 sm:$0xff]   ;;  %v14129_v20 = vld [vmem:[%s21838_s5 + $0x1a4] ss:$16 sps:$4 sm:$0xff]  }
 0x41b   : > { %5687 = vmatprep.subr.bf16.mxu0 %v14081_v35  ;;  %v14135_v35 = vld [vmem:[%s21838_s5 + $0x184] ss:$16 sps:$4 sm:$0xff]  }
 0x41c   : > { %5769 = vmatpush1.bf16.msra.mxu1 %v14076_v61  ;;  %v14130_v61 = vld [vmem:[%s21838_s5 + $0x3a0] ss:$16 sps:$4 sm:$0xff]  }
 0x41d   : > { %4920 = vmatmul.mubr.bf16.gmra.mxu0 %v18513_v22  ;;  %5770 = vmatprep.subr.bf16.mxu1 %v14084_v43  ;;  %v14088_v22 = vld [vmem:[%s21838_s5 + $0x280] ss:$16 sps:$4 sm:$0xff]   ;;  %v14138_v43 = vld [vmem:[%s21838_s5 + $0x384] ss:$16 sps:$4 sm:$0xff]  }
 0x41e   : > { %4929 = vmatprep.mubr.bf16.mxu0 %v18553_v55  ;;  %5688 = vmatpush1.bf16.msra.mxu0 %v14079_v26  ;;  %v14091_v55 = vld [vmem:[%s21838_s5 + $0x60] ss:$16 sps:$4 sm:$0xff]  }
 0x41f   : > { %5003 = vmatmul.mubr.bf16.gmra.mxu1 %v18515_v10  ;;  %5689 = vmatprep.subr.bf16.mxu0 %v14087_v11  ;;  %v14096_v10 = vld [vmem:[%s21838_s5 + $0x264] ss:$16 sps:$4 sm:$0xff]   ;;  %v14133_v26 = vld [vmem:[%s21838_s5 + $0x180] ss:$16 sps:$4 sm:$0xff]  }
 0x420   : > { %5012 = vmatprep.mubr.bf16.mxu1 %v18558_v48  ;;  %5771 = vmatpush1.bf16.msra.mxu1 %v14082_v17  ;;  %v14094_v48 = vld [vmem:[%s21838_s5 + $0x260] ss:$16 sps:$4 sm:$0xff]   ;;  %v14141_v11 = vld [vmem:[%s21838_s5 + $0x164] ss:$16 sps:$4 sm:$0xff]  }
 0x421   : > { %5772 = vmatprep.subr.bf16.mxu1 %v14090_v23  ;;  %v14136_v17 = vld [vmem:[%s21838_s5 + $0x380] ss:$16 sps:$4 sm:$0xff]   ;;  %v14144_v23 = vld [vmem:[%s21838_s5 + $0x364] ss:$16 sps:$4 sm:$0xff]  }
 0x422   : > { %5690 = vmatpush1.bf16.msra.mxu0 %v14085_v33  ;;  %v14139_v33 = vld [vmem:[%s21838_s5 + $0x160] ss:$16 sps:$4 sm:$0xff]  }
 0x423   : > { %5691 = vmatprep.subr.bf16.mxu0 %v14093_v6  ;;  %v14147_v6 = vld [vmem:[%s21838_s5 + $0x144] ss:$16 sps:$4 sm:$0xff]  }
 0x424   : > { %5773 = vmatpush1.bf16.msra.mxu1 %v14088_v22  ;;  %v14142_v22 = vld [vmem:[%s21838_s5 + $0x360] ss:$16 sps:$4 sm:$0xff]  }
 0x425   : > { %4930 = vmatmul.mubr.bf16.gmra.mxu0 %v18549_v3  ;;  %5774 = vmatprep.subr.bf16.mxu1 %v14096_v10  ;;  %v14100_v3 = vld [vmem:[%s21838_s5 + $0x240] ss:$16 sps:$4 sm:$0xff]   ;;  %v14150_v10 = vld [vmem:[%s21838_s5 + $0x344] ss:$16 sps:$4 sm:$0xff]  }
 0x426   : > { %4939 = vmatprep.mubr.bf16.mxu0 %v18589_v50  ;;  %5692 = vmatpush1.bf16.msra.mxu0 %v14091_v55  ;;  %v14103_v50 = vld [vmem:[%s21838_s5 + $0x20] ss:$16 sps:$4 sm:$0xff]  }
 0x427   : > { %5013 = vmatmul.mubr.bf16.gmra.mxu1 %v18551_v36  ;;  %5693 = vmatprep.subr.bf16.mxu0 %v14099_v34  ;;  %v14108_v36 = vld [vmem:[%s21838_s5 + $0x224] ss:$16 sps:$4 sm:$0xff]   ;;  %v14145_v55 = vld [vmem:[%s21838_s5 + $0x140] ss:$16 sps:$4 sm:$0xff]  }
 0x428   : > { %5022 = vmatprep.mubr.bf16.mxu1 %v18594_v29  ;;  %5775 = vmatpush1.bf16.msra.mxu1 %v14094_v48  ;;  %v14106_v29 = vld [vmem:[%s21838_s5 + $0x220] ss:$16 sps:$4 sm:$0xff]   ;;  %v14153_v34 = vld [vmem:[%s21838_s5 + $0x124] ss:$16 sps:$4 sm:$0xff]  }
 0x429   : > { %5776 = vmatprep.subr.bf16.mxu1 %v14102_v7  ;;  %v14148_v48 = vld [vmem:[%s21838_s5 + $0x340] ss:$16 sps:$4 sm:$0xff]   ;;  %v14156_v7 = vld [vmem:[%s21838_s5 + $0x324] ss:$16 sps:$4 sm:$0xff]  }
 0x42a   : > { %5694 = vmatpush1.bf16.msra.mxu0 %v14097_v47  ;;  %v14151_v47 = vld [vmem:[%s21838_s5 + $0x120] ss:$16 sps:$4 sm:$0xff]  }
 0x42b   : > { %5695 = vmatprep.subr.bf16.mxu0 %v14105_v59  ;;  %v14159_v59 = vld [vmem:[%s21838_s5 + $0x104] ss:$16 sps:$4 sm:$0xff]  }
 0x42c   : > { %5777 = vmatpush1.bf16.msra.mxu1 %v14100_v3  ;;  %v14154_v3 = vld [vmem:[%s21838_s5 + $0x320] ss:$16 sps:$4 sm:$0xff]  }
 0x42d   : > { %4940 = vmatmul.mubr.bf16.gmra.mxu0 %v18585_v30  ;;  %5778 = vmatprep.subr.bf16.mxu1 %v14108_v36  ;;  %v14112_v30 = vld [vmem:[%s21838_s5 + $0x200] ss:$16 sps:$4 sm:$0xff]   ;;  %v14162_v36 = vld [vmem:[%s21838_s5 + $0x304] ss:$16 sps:$4 sm:$0xff]  }
 0x42e   : > { %4949 = vmatprep.mubr.bf16.mxu0 %v18625_v37  ;;  %5696 = vmatpush1.bf16.msra.mxu0 %v14103_v50  ;;  %v14115_v37 = vld [vmem:[%s21838_s5 + $0x1e0] ss:$16 sps:$4 sm:$0xff]  }
 0x42f   : > { %5023 = vmatmul.mubr.bf16.gmra.mxu1 %v18587_v25  ;;  %5697 = vmatprep.subr.bf16.mxu0 %v14111_v8  ;;  %v14120_v25 = vld [vmem:[%s21838_s5 + $0x3e4] ss:$16 sps:$4 sm:$0xff]   ;;  %v14157_v50 = vld [vmem:[%s21838_s5 + $0x100] ss:$16 sps:$4 sm:$0xff]   ;;  %v14165_v8 = vld [vmem:[%s21838_s5 + $0xec] ss:$16 sps:$4 sm:$0xff]  }
 0x430   : > { %5032 = vmatprep.mubr.bf16.mxu1 %v18630_v14  ;;  %5779 = vmatpush1.bf16.msra.mxu1 %v14106_v29  ;;  %v18848_v14 = vpack.c.bf16 %v18425_v38, %v18417_v39  ;;  %v14126_v39 = vld [vmem:[%s21838_s5 + $0x3c4] ss:$16 sps:$4 sm:$0xff]   ;;  %v14121_v38 = vld [vmem:[%s21838_s5 + $0x1c0] ss:$16 sps:$4 sm:$0xff]  }
 0x431   : > { %5780 = vmatprep.subr.bf16.mxu1 %v14114_v41  ;;  %v14160_v29 = vld [vmem:[%s21838_s5 + $0x300] ss:$16 sps:$4 sm:$0xff]   ;;  %v14168_v41 = vld [vmem:[%s21838_s5 + $0x2ec] ss:$16 sps:$4 sm:$0xff]  }
 0x432   : > { %5698 = vmatpush1.bf16.msra.mxu0 %v14109_v4  ;;  %v14163_v4 = vld [vmem:[%s21838_s5 + $0xe8] ss:$16 sps:$4 sm:$0xff]  }
 0x433   : > { %5699 = vmatprep.subr.bf16.mxu0 %v14117_v49  ;;  %v14166_v49 = vld [vmem:[%s21838_s5 + $0x2e8] ss:$16 sps:$4 sm:$0xff]  }
 0x434   : > { %5781 = vmatpush1.bf16.msra.mxu1 %v14112_v30  ;;  %v18956_v30 = vpack.c.bf16 %v18437_v57, %v18429_v54  ;;  %v14174_v54 = vld [vmem:[%s21838_s5 + $0x2cc] ss:$16 sps:$4 sm:$0xff]   ;;  %v14169_v57 = vld [vmem:[%s21838_s5 + $0xc8] ss:$16 sps:$4 sm:$0xff]  }
 0x435   : > { %4950 = vmatmul.mubr.bf16.gmra.mxu0 %v18621_v44  ;;  %5782 = vmatprep.subr.bf16.mxu1 %v14120_v25  ;;  %v14132_v44 = vld [vmem:[%s21838_s5 + $0x3a4] ss:$16 sps:$4 sm:$0xff]   ;;  %v14171_v25 = vld [vmem:[%s21838_s5 + $0xcc] ss:$16 sps:$4 sm:$0xff]  }
 0x436   : > { %5715 = vmatprep.mubr.bf16.mxu0 %v18848_v14  ;;  %5700 = vmatpush2.bf16.msra.mxu0 %v14115_v37  ;;  %v18966_v37 = vpack.c.bf16 %v18439_v13, %v18431_v53  ;;  %v14172_v53 = vld [vmem:[%s21838_s5 + $0x2c8] ss:$16 sps:$4 sm:$0xff]   ;;  %v14177_v13 = vld [vmem:[%s21838_s5 + $0xac] ss:$16 sps:$4 sm:$0xff]  }
 0x437   : > { %5033 = vmatmul.mubr.bf16.gmra.mxu1 %v18623_v9  ;;  %5701 = vmatprep.subr.bf16.mxu0 %v14123_v46  ;;  %v14127_v9 = vld [vmem:[%s21838_s5 + $0x1a0] ss:$16 sps:$4 sm:$0xff]   ;;  %v14175_v46 = vld [vmem:[%s21838_s5 + $0xa8] ss:$16 sps:$4 sm:$0xff]  }
 0x438   : > { %5798 = vmatprep.mubr.bf16.mxu1 %v18858_v2  ;;  %5783 = vmatpush2.bf16.msra.mxu1 %v14118_v58  ;;  %v14180_v58 = vld [vmem:[%s21838_s5 + $0x2ac] ss:$16 sps:$4 sm:$0xff]  }
 0x439   : > { %5784 = vmatprep.subr.bf16.mxu1 %v14126_v39  ;;  %v18992_v39 = vpack.c.bf16 %v18449_v5, %v18441_v63  ;;  %v14186_v63 = vld [vmem:[%s21838_s5 + $0x28c] ss:$16 sps:$4 sm:$0xff]   ;;  %v14181_v5 = vld [vmem:[%s21838_s5 + $0x88] ss:$16 sps:$4 sm:$0xff]  }
 0x43a   : > { %5702 = vmatpush2.bf16.msra.mxu0 %v14121_v38  ;;  %v14178_v38 = vld [vmem:[%s21838_s5 + $0x2a8] ss:$16 sps:$4 sm:$0xff]  }
 0x43b   : > { %5703 = vmatprep.subr.bf16.mxu0 %v14129_v20  ;;  %v19002_v20 = vpack.c.bf16 %v18451_v18, %v18443_v56  ;;  %v14184_v56 = vld [vmem:[%s21838_s5 + $0x288] ss:$16 sps:$4 sm:$0xff]   ;;  %v14189_v18 = vld [vmem:[%s21838_s5 + $0x6c] ss:$16 sps:$4 sm:$0xff]  }
 0x43c   : > { %5785 = vmatpush2.bf16.msra.mxu1 %v14124_v12  ;;  %v14183_v12 = vld [vmem:[%s21838_s5 + $0x8c] ss:$16 sps:$4 sm:$0xff]  }
 0x43d   : > { %5786 = vmatprep.subr.bf16.mxu1 %v14132_v44  ;;  %v14192_v44 = vld [vmem:[%s21838_s5 + $0x26c] ss:$16 sps:$4 sm:$0xff]  }
 0x43e   : > { %5704 = vmatpush2.bf16.msra.mxu0 %v14127_v9  ;;  %v14187_v9 = vld [vmem:[%s21838_s5 + $0x68] ss:$16 sps:$4 sm:$0xff]  }
 0x43f   : > { %5705 = vmatprep.subr.bf16.mxu0 %v14135_v35  ;;  %v14190_v35 = vld [vmem:[%s21838_s5 + $0x268] ss:$16 sps:$4 sm:$0xff]  }
 0x440   : > { %5787 = vmatpush2.bf16.msra.mxu1 %v14130_v61  ;;  %v19028_v61 = vpack.c.bf16 %v18461_v27, %v18453_v51  ;;  %v14198_v51 = vld [vmem:[%s21838_s5 + $0x24c] ss:$16 sps:$4 sm:$0xff]   ;;  %v14193_v27 = vld [vmem:[%s21838_s5 + $0x48] ss:$16 sps:$4 sm:$0xff]  }
 0x441   : > { %5788 = vmatprep.subr.bf16.mxu1 %v14138_v43  ;;  %v14195_v43 = vld [vmem:[%s21838_s5 + $0x4c] ss:$16 sps:$4 sm:$0xff]  }
 0x442   : > { %5706 = vmatpush2.bf16.msra.mxu0 %v14133_v26  ;;  %v19038_v26 = vpack.c.bf16 %v18463_v45, %v18455_v19  ;;  %v14196_v19 = vld [vmem:[%s21838_s5 + $0x248] ss:$16 sps:$4 sm:$0xff]   ;;  %v14201_v45 = vld [vmem:[%s21838_s5 + $0x2c] ss:$16 sps:$4 sm:$0xff]  }
 0x443   : > { %5707 = vmatprep.subr.bf16.mxu0 %v14141_v11  ;;  %v14199_v11 = vld [vmem:[%s21838_s5 + $0x28] ss:$16 sps:$4 sm:$0xff]  }
 0x444   : > { %5789 = vmatpush2.bf16.msra.mxu1 %v14136_v17  ;;  %v14204_v17 = vld [vmem:[%s21838_s5 + $0x22c] ss:$16 sps:$4 sm:$0xff]  }
 0x445   : > { %5790 = vmatprep.subr.bf16.mxu1 %v14144_v23  ;;  %v19064_v23 = vpack.c.bf16 %v18473_v21, %v18465_v1  ;;  %v14210_v1 = vld [vmem:[%s21838_s5 + $0x20c] ss:$16 sps:$4 sm:$0xff]   ;;  %v14205_v21 = vld [vmem:[%s21838_s5 + $0x8] ss:$16 sps:$4 sm:$0xff]  }
 0x446   : > { %5708 = vmatpush2.bf16.msra.mxu0 %v14139_v33  ;;  %v14202_v33 = vld [vmem:[%s21838_s5 + $0x228] ss:$16 sps:$4 sm:$0xff]  }
 0x447   : > { %5709 = vmatprep.subr.bf16.mxu0 %v14147_v6  ;;  %v19074_v6 = vpack.c.bf16 %v18475_v40, %v18467_v62  ;;  %v14208_v62 = vld [vmem:[%s21838_s5 + $0x208] ss:$16 sps:$4 sm:$0xff]   ;;  %v14213_v40 = vld [vmem:[%s21838_s5 + $0x1ec] ss:$16 sps:$4 sm:$0xff]  }
 0x448   : > { %5791 = vmatpush2.bf16.msra.mxu1 %v14142_v22  ;;  %v14207_v22 = vld [vmem:[%s21838_s5 + $0xc] ss:$16 sps:$4 sm:$0xff]  }
 0x449   : > { %5792 = vmatprep.subr.bf16.mxu1 %v14150_v10  ;;  %v14216_v10 = vld [vmem:[%s21838_s5 + $0x3ec] ss:$16 sps:$4 sm:$0xff]  }
 0x44a   : > { %5710 = vmatpush2.bf16.msra.mxu0 %v14145_v55  ;;  %v14211_v55 = vld [vmem:[%s21838_s5 + $0x1e8] ss:$16 sps:$4 sm:$0xff]  }
 0x44b   : > { %5711 = vmatprep.subr.bf16.mxu0 %v14153_v34  ;;  %v14219_v34 = vld [vmem:[%s21838_s5 + $0x1cc] ss:$16 sps:$4 sm:$0xff]  }
 0x44c   : > { %5793 = vmatpush2.bf16.msra.mxu1 %v14148_v48  ;;  %v14214_v48 = vld [vmem:[%s21838_s5 + $0x3e8] ss:$16 sps:$4 sm:$0xff]  }
 0x44d   : > { %5794 = vmatprep.subr.bf16.mxu1 %v14156_v7  ;;  %v14222_v7 = vld [vmem:[%s21838_s5 + $0x3cc] ss:$16 sps:$4 sm:$0xff]  }
 0x44e   : > { %5712 = vmatpush2.bf16.msra.mxu0 %v14151_v47  ;;  %v14217_v47 = vld [vmem:[%s21838_s5 + $0x1c8] ss:$16 sps:$4 sm:$0xff]  }
 0x44f   : > { %5713 = vmatprep.subr.bf16.mxu0 %v14159_v59  ;;  %v14225_v59 = vld [vmem:[%s21838_s5 + $0x1ac] ss:$16 sps:$4 sm:$0xff]  }
 0x450   : > { %5795 = vmatpush2.bf16.msra.mxu1 %v14154_v3  ;;  %v14220_v3 = vld [vmem:[%s21838_s5 + $0x3c8] ss:$16 sps:$4 sm:$0xff]  }
 0x451   : > { %5796 = vmatprep.subr.bf16.mxu1 %v14162_v36  ;;  %v14228_v36 = vld [vmem:[%s21838_s5 + $0x3ac] ss:$16 sps:$4 sm:$0xff]  }
 0x452   : > { %5714 = vmatpush2.bf16.msra.mxu0 %v14157_v50  ;;  %v14223_v50 = vld [vmem:[%s21838_s5 + $0x1a8] ss:$16 sps:$4 sm:$0xff]  }
 0x453   : > { %5849 = vmatprep.subr.bf16.mxu0 %v14165_v8  ;;  %v14231_v8 = vld [vmem:[%s21838_s5 + $0x18c] ss:$16 sps:$4 sm:$0xff]  }
 0x454   : > { %5797 = vmatpush2.bf16.msra.mxu1 %v14160_v29  ;;  %v14226_v29 = vld [vmem:[%s21838_s5 + $0x3a8] ss:$16 sps:$4 sm:$0xff]  }
 0x455   : > { %5932 = vmatprep.subr.bf16.mxu1 %v14168_v41  ;;  %5716 = vmatmul.mubr.bf16.vlgmr.msra.gmra.mxu0 %v18421_v15  ;;  %v14234_v41 = vld [vmem:[%s21838_s5 + $0x38c] ss:$16 sps:$4 sm:$0xff]  }
 0x456   : > { %5725 = vmatprep.mubr.bf16.mxu0 %v18956_v30  ;;  %5850 = vmatpush1.bf16.msra.mxu0 %v14163_v4  ;;  %v14229_v4 = vld [vmem:[%s21838_s5 + $0x188] ss:$16 sps:$4 sm:$0xff]  }
 0x457   : > { %5799 = vmatmul.mubr.bf16.vlgmr.msra.gmra.mxu1 %v18423_v60  ;;  %5851 = vmatprep.subr.bf16.mxu0 %v14171_v25  ;;  %v14237_v25 = vld [vmem:[%s21838_s5 + $0x16c] ss:$16 sps:$4 sm:$0xff]  }
 0x458   : > { %5808 = vmatprep.mubr.bf16.mxu1 %v18966_v37  ;;  %5933 = vmatpush1.bf16.msra.mxu1 %v14166_v49  ;;  %v14232_v49 = vld [vmem:[%s21838_s5 + $0x388] ss:$16 sps:$4 sm:$0xff]  }
 0x459   : > { %5934 = vmatprep.subr.bf16.mxu1 %v14174_v54  ;;  %v14240_v54 = vld [vmem:[%s21838_s5 + $0x36c] ss:$16 sps:$4 sm:$0xff]  }
 0x45a   : > { %5852 = vmatpush1.bf16.msra.mxu0 %v14169_v57  ;;  %v14235_v57 = vld [vmem:[%s21838_s5 + $0x168] ss:$16 sps:$4 sm:$0xff]  }
 0x45b   : > { %5853 = vmatprep.subr.bf16.mxu0 %v14177_v13  ;;  %v14243_v13 = vld [vmem:[%s21838_s5 + $0x14c] ss:$16 sps:$4 sm:$0xff]  }
 0x45c   : > { %5935 = vmatpush1.bf16.msra.mxu1 %v14172_v53  ;;  %v14238_v53 = vld [vmem:[%s21838_s5 + $0x368] ss:$16 sps:$4 sm:$0xff]  }
 0x45d   : > { %5726 = vmatmul.mubr.bf16.gmra.mxu0 %v18433_v24  ;;  %5936 = vmatprep.subr.bf16.mxu1 %v14180_v58  ;;  %v14246_v58 = vld [vmem:[%s21838_s5 + $0x34c] ss:$16 sps:$4 sm:$0xff]  }
 0x45e   : > { %5735 = vmatprep.mubr.bf16.mxu0 %v18992_v39  ;;  %5854 = vmatpush1.bf16.msra.mxu0 %v14175_v46  ;;  %v14241_v46 = vld [vmem:[%s21838_s5 + $0x148] ss:$16 sps:$4 sm:$0xff]  }
 0x45f   : > { %5809 = vmatmul.mubr.bf16.gmra.mxu1 %v18435_v42  ;;  %5855 = vmatprep.subr.bf16.mxu0 %v14183_v12  ;;  %v14249_v12 = vld [vmem:[%s21838_s5 + $0x12c] ss:$16 sps:$4 sm:$0xff]  }
 0x460   : > { %5818 = vmatprep.mubr.bf16.mxu1 %v19002_v20  ;;  %5937 = vmatpush1.bf16.msra.mxu1 %v14178_v38  ;;  %v14244_v38 = vld [vmem:[%s21838_s5 + $0x348] ss:$16 sps:$4 sm:$0xff]  }
 0x461   : > { %5938 = vmatprep.subr.bf16.mxu1 %v14186_v63  ;;  %v14252_v63 = vld [vmem:[%s21838_s5 + $0x32c] ss:$16 sps:$4 sm:$0xff]  }
 0x462   : > { %5856 = vmatpush1.bf16.msra.mxu0 %v14181_v5  ;;  %v14247_v5 = vld [vmem:[%s21838_s5 + $0x128] ss:$16 sps:$4 sm:$0xff]  }
 0x463   : > { %5857 = vmatprep.subr.bf16.mxu0 %v14189_v18  ;;  %v14255_v18 = vld [vmem:[%s21838_s5 + $0x10c] ss:$16 sps:$4 sm:$0xff]  }
 0x464   : > { %5939 = vmatpush1.bf16.msra.mxu1 %v14184_v56  ;;  %v14250_v56 = vld [vmem:[%s21838_s5 + $0x328] ss:$16 sps:$4 sm:$0xff]  }
 0x465   : > { %5736 = vmatmul.mubr.bf16.gmra.mxu0 %v18445_v28  ;;  %5940 = vmatprep.subr.bf16.mxu1 %v14192_v44  ;;  %v14258_v44 = vld [vmem:[%s21838_s5 + $0x30c] ss:$16 sps:$4 sm:$0xff]  }
 0x466   : > { %5745 = vmatprep.mubr.bf16.mxu0 %v19028_v61  ;;  %5858 = vmatpush1.bf16.msra.mxu0 %v14187_v9  ;;  %v14253_v9 = vld [vmem:[%s21838_s5 + $0x108] ss:$16 sps:$4 sm:$0xff]  }
 0x467   : > { %5819 = vmatmul.mubr.bf16.gmra.mxu1 %v18447_v31  ;;  %5859 = vmatprep.subr.bf16.mxu0 %v14195_v43  ;;  %v14261_v43 = vld [vmem:[%s21838_s5 + $0x8e4] ss:$16 sps:$4 sm:$0xff]  }
 0x468   : > { %5828 = vmatprep.mubr.bf16.mxu1 %v19038_v26  ;;  %5941 = vmatpush1.bf16.msra.mxu1 %v14190_v35  ;;  %v14256_v35 = vld [vmem:[%s21838_s5 + $0x308] ss:$16 sps:$4 sm:$0xff]  }
 0x469   : > { %5942 = vmatprep.subr.bf16.mxu1 %v14198_v51  ;;  %v14264_v51 = vld [vmem:[%s21838_s5 + $0xae4] ss:$16 sps:$4 sm:$0xff]  }
 0x46a   : > { %5860 = vmatpush1.bf16.msra.mxu0 %v14193_v27  ;;  %v14259_v27 = vld [vmem:[%s21838_s5 + $0x8e0] ss:$16 sps:$4 sm:$0xff]  }
 0x46b   : > { %5861 = vmatprep.subr.bf16.mxu0 %v14201_v45  ;;  %v14262_v45 = vld [vmem:[%s21838_s5 + $0xae0] ss:$16 sps:$4 sm:$0xff]  }
 0x46c   : > { %5943 = vmatpush1.bf16.msra.mxu1 %v14196_v19 }
 0x46d   : > { %5746 = vmatmul.mubr.bf16.gmra.mxu0 %v18457_v52  ;;  %5944 = vmatprep.subr.bf16.mxu1 %v14204_v17  ;;  %v14267_v17 = vld [vmem:[%s21838_s5 + $0x8c4] ss:$16 sps:$4 sm:$0xff]  }
 0x46e   : > { %5755 = vmatprep.mubr.bf16.mxu0 %v19064_v23  ;;  %5862 = vmatpush1.bf16.msra.mxu0 %v14199_v11 }
 0x46f   : > { %5829 = vmatmul.mubr.bf16.gmra.mxu1 %v18459_v16  ;;  %5863 = vmatprep.subr.bf16.mxu0 %v14207_v22 }
 0x470   : > { %5838 = vmatprep.mubr.bf16.mxu1 %v19074_v6  ;;  %5945 = vmatpush1.bf16.msra.mxu1 %v14202_v33  ;;  %v14270_v33 = vld [vmem:[%s21838_s5 + $0xac4] ss:$16 sps:$4 sm:$0xff]  }
 0x471   : > { %5946 = vmatprep.subr.bf16.mxu1 %v14210_v1 }
 0x472   : > { %5864 = vmatpush1.bf16.msra.mxu0 %v14205_v21 }
 0x473   : > { %5865 = vmatprep.subr.bf16.mxu0 %v14213_v40 }
 0x474   : > { %5947 = vmatpush1.bf16.msra.mxu1 %v14208_v62  ;;  %v14265_v62 = vld [vmem:[%s21838_s5 + $0x8c0] ss:$16 sps:$4 sm:$0xff]  }
 0x475   : > { %5756 = vmatmul.mubr.bf16.gmra.mxu0 %v18469_v0  ;;  %5948 = vmatprep.subr.bf16.mxu1 %v14216_v10 }
 0x476   : > { %5881 = vmatprep.mubr.bf16.mxu0 %v18848_v14  ;;  %5866 = vmatpush2.bf16.msra.mxu0 %v14211_v55  ;;  %v14268_v55 = vld [vmem:[%s21838_s5 + $0xac0] ss:$16 sps:$4 sm:$0xff]  }
 0x477   : > { %5839 = vmatmul.mubr.bf16.gmra.mxu1 %v18471_v32  ;;  %5867 = vmatprep.subr.bf16.mxu0 %v14219_v34 }
 0x478   : > { %5964 = vmatprep.mubr.bf16.mxu1 %v18858_v2  ;;  %5949 = vmatpush2.bf16.msra.mxu1 %v14214_v48  ;;  %v14273_v48 = vld [vmem:[%s21838_s5 + $0x8a4] ss:$16 sps:$4 sm:$0xff]  }
 0x479   : > { %5950 = vmatprep.subr.bf16.mxu1 %v14222_v7  ;;  %v14276_v7 = vld [vmem:[%s21838_s5 + $0xaa4] ss:$16 sps:$4 sm:$0xff]  }
 0x47a   : > { %5868 = vmatpush2.bf16.msra.mxu0 %v14217_v47 }
 0x47b   : > { %5869 = vmatprep.subr.bf16.mxu0 %v14225_v59 }
 0x47c   : > { %5951 = vmatpush2.bf16.msra.mxu1 %v14220_v3 }
 0x47d   : > { %5952 = vmatprep.subr.bf16.mxu1 %v14228_v36  ;;  %v14271_v36 = vld [vmem:[%s21838_s5 + $0x8a0] ss:$16 sps:$4 sm:$0xff]  }
 0x47e   : > { %5870 = vmatpush2.bf16.msra.mxu0 %v14223_v50 }
 0x47f   : > { %5871 = vmatprep.subr.bf16.mxu0 %v14231_v8  ;;  %v14279_v8 = vld [vmem:[%s21838_s5 + $0x884] ss:$16 sps:$4 sm:$0xff]  }
 0x480   : > { %5953 = vmatpush2.bf16.msra.mxu1 %v14226_v29  ;;  %v14274_v29 = vld [vmem:[%s21838_s5 + $0xaa0] ss:$16 sps:$4 sm:$0xff]  }
 0x481   : > { %5954 = vmatprep.subr.bf16.mxu1 %v14234_v41 }
 0x482   : > { %5872 = vmatpush2.bf16.msra.mxu0 %v14229_v4  ;;  %v14282_v4 = vld [vmem:[%s21838_s5 + $0xa84] ss:$16 sps:$4 sm:$0xff]  }
 0x483   : > { %5873 = vmatprep.subr.bf16.mxu0 %v14237_v25 }
 0x484   : > { %5955 = vmatpush2.bf16.msra.mxu1 %v14232_v49 }
 0x485   : > { %5956 = vmatprep.subr.bf16.mxu1 %v14240_v54 }
 0x486   : > { %5874 = vmatpush2.bf16.msra.mxu0 %v14235_v57  ;;  %v14277_v57 = vld [vmem:[%s21838_s5 + $0x880] ss:$16 sps:$4 sm:$0xff]  }
 0x487   : > { %5875 = vmatprep.subr.bf16.mxu0 %v14243_v13 }
 0x488   : > { %5957 = vmatpush2.bf16.msra.mxu1 %v14238_v53 }
 0x489   : > { %5958 = vmatprep.subr.bf16.mxu1 %v14246_v58  ;;  %v14280_v58 = vld [vmem:[%s21838_s5 + $0xa80] ss:$16 sps:$4 sm:$0xff]  }
 0x48a   : > { %5876 = vmatpush2.bf16.msra.mxu0 %v14241_v46  ;;  %v14285_v46 = vld [vmem:[%s21838_s5 + $0x864] ss:$16 sps:$4 sm:$0xff]  }
 0x48b   : > { %5877 = vmatprep.subr.bf16.mxu0 %v14249_v12  ;;  %v14288_v12 = vld [vmem:[%s21838_s5 + $0xa64] ss:$16 sps:$4 sm:$0xff]  }
 0x48c   : > { %5959 = vmatpush2.bf16.msra.mxu1 %v14244_v38 }
 0x48d   : > { %5960 = vmatprep.subr.bf16.mxu1 %v14252_v63 }
 0x48e   : > { %5878 = vmatpush2.bf16.msra.mxu0 %v14247_v5 }
 0x48f   : > { %5879 = vmatprep.subr.bf16.mxu0 %v14255_v18  ;;  %v14283_v18 = vld [vmem:[%s21838_s5 + $0x860] ss:$16 sps:$4 sm:$0xff]  }
 0x490   : > { %5961 = vmatpush2.bf16.msra.mxu1 %v14250_v56 }
 0x491   : > { %5962 = vmatprep.subr.bf16.mxu1 %v14258_v44 }
 0x492   : > { %5880 = vmatpush2.bf16.msra.mxu0 %v14253_v9  ;;  %v14286_v9 = vld [vmem:[%s21838_s5 + $0xa60] ss:$16 sps:$4 sm:$0xff]  }
 0x493   : > { %6960 = vmatprep.subr.bf16.mxu0 %v14261_v43 }
 0x494   : > { %5963 = vmatpush2.bf16.msra.mxu1 %v14256_v35  ;;  %v14291_v35 = vld [vmem:[%s21838_s5 + $0x844] ss:$16 sps:$4 sm:$0xff]  }
 0x495   : > { %v4745_v19 = vpop.f32.mrf.mxu0  ;;  %7043 = vmatprep.subr.bf16.mxu1 %v14264_v51  ;;  %5882 = vmatmul.mubr.bf16.vlgmr.msra.gmra.mxu0 %v18421_v15  ;;  %v14294_v51 = vld [vmem:[%s21838_s5 + $0xa44] ss:$16 sps:$4 sm:$0xff]  }
 0x496   : > { %5891 = vmatprep.mubr.bf16.mxu0 %v18956_v30  ;;  %6961 = vmatpush1.bf16.msra.mxu0 %v14259_v27 }
 0x497   : > { %v4828_v11 = vpop.f32.mrf.mxu1  ;;  %v4747_v1 = vpop.f32.mrf.mxu0  ;;  %5965 = vmatmul.mubr.bf16.vlgmr.msra.gmra.mxu1 %v18423_v60  ;;  %6962 = vmatprep.subr.bf16.mxu0 %v14267_v17  ;;  %v14289_v17 = vld [vmem:[%s21838_s5 + $0x840] ss:$16 sps:$4 sm:$0xff]  }
 0x498   : > { %v19208_v22 = vadd.f32 %v4828_v11, %v4745_v19  ;;  %5974 = vmatprep.mubr.bf16.mxu1 %v18966_v37  ;;  %7044 = vmatpush1.bf16.msra.mxu1 %v14262_v45 }
 0x499   : > { %v4830_v21 = vpop.f32.mrf.mxu1  ;;  %v4749_v10 = vpop.f32.mrf.mxu0  ;;  %7045 = vmatprep.subr.bf16.mxu1 %v14270_v33 }
 0x49a   : > { %v19216_v40 = vadd.f32 %v4830_v21, %v4747_v1  ;;  %6963 = vmatpush1.bf16.msra.mxu0 %v14265_v62  ;;  %v14292_v1 = vld [vmem:[%s21838_s5 + $0xa40] ss:$16 sps:$4 sm:$0xff]   ;;  %v14297_v21 = vld [vmem:[%s21838_s5 + $0x824] ss:$16 sps:$4 sm:$0xff]  }
 0x49b   : > { %v4832_v34 = vpop.f32.mrf.mxu1  ;;  %v19229_v3 = vpop.f32.mrf.mxu0  ;;  %6964 = vmatprep.subr.bf16.mxu0 %v14273_v48 }
 0x49c   : > { %v19227_v47 = vadd.f32 %v4832_v34, %v4749_v10  ;;  %22917 = vst [vmem:[#allocation174_spill] sm:$0xff] %v19229_v3  ;;  %7046 = vmatpush1.bf16.msra.mxu1 %v14268_v55  ;;  %v14300_v10 = vld [vmem:[%s21838_s5 + $0xa24] ss:$16 sps:$4 sm:$0xff]  }
 0x49d   : > { %v19231_v59 = vpop.f32.mrf.mxu1  ;;  %v4755_v50 = vpop.f32.mrf.mxu0  ;;  %5892 = vmatmul.mubr.bf16.gmra.mxu0 %v18433_v24  ;;  %7047 = vmatprep.subr.bf16.mxu1 %v14276_v7  ;;  %v14295_v7 = vld [vmem:[%s21838_s5 + $0x820] ss:$16 sps:$4 sm:$0xff]  }
 0x49e   : > { %22918 = vst [vmem:[#allocation175_spill] sm:$0xff] %v19231_v59  ;;  %5901 = vmatprep.mubr.bf16.mxu0 %v18992_v39  ;;  %6965 = vmatpush1.bf16.msra.mxu0 %v14271_v36  ;;  %v6159_v36 = vshll.u32 %v18848_v14, 16 }
 0x49f   : > { %v4838_v41 = vpop.f32.mrf.mxu1  ;;  %v4757_v25 = vpop.f32.mrf.mxu0  ;;  %5975 = vmatmul.mubr.bf16.gmra.mxu1 %v18435_v42  ;;  %6966 = vmatprep.subr.bf16.mxu0 %v14279_v8  ;;  %v14303_v8 = vld [vmem:[%s21838_s5 + $0x804] ss:$16 sps:$4 sm:$0xff]  }
 0x4a0   : > { %v19246_v49 = vadd.f32 %v4838_v41, %v4755_v50  ;;  %5984 = vmatprep.mubr.bf16.mxu1 %v19002_v20  ;;  %7048 = vmatpush1.bf16.msra.mxu1 %v14274_v29  ;;  %v14298_v29 = vld [vmem:[%s21838_s5 + $0xa20] ss:$16 sps:$4 sm:$0xff]   ;;  %v6183_v41 = vshll.u32 %v18858_v2, 16 }
 0x4a1   : > { %v4840_v54 = vpop.f32.mrf.mxu1  ;;  %v4759_v13 = vpop.f32.mrf.mxu0  ;;  %7049 = vmatprep.subr.bf16.mxu1 %v14282_v4 }
 0x4a2   : > { %v19254_v53 = vadd.f32 %v4840_v54, %v4757_v25  ;;  %6967 = vmatpush1.bf16.msra.mxu0 %v14277_v57  ;;  %v14306_v25 = vld [vmem:[%s21838_s5 + $0xa04] ss:$16 sps:$4 sm:$0xff]   ;;  %v6164_v54 = vshll.u32 %v18956_v30, 16 }
 0x4a3   : > { %v4842_v38 = vpop.f32.mrf.mxu1  ;;  %v19267_v5 = vpop.f32.mrf.mxu0  ;;  %6968 = vmatprep.subr.bf16.mxu0 %v14285_v46 }
 0x4a4   : > { %v19265_v63 = vadd.f32 %v4842_v38, %v4759_v13  ;;  %22919 = vst [vmem:[#allocation176_spill] sm:$0xff] %v19267_v5  ;;  %7050 = vmatpush1.bf16.msra.mxu1 %v14280_v58  ;;  %v6188_v58 = vshll.u32 %v18966_v37, 16  ;;  %v14301_v38 = vld [vmem:[%s21838_s5 + $0x800] ss:$16 sps:$4 sm:$0xff]  }
 0x4a5   : > { %v19269_v56 = vpop.f32.mrf.mxu1  ;;  %v4765_v44 = vpop.f32.mrf.mxu0  ;;  %5902 = vmatmul.mubr.bf16.gmra.mxu0 %v18445_v28  ;;  %7051 = vmatprep.subr.bf16.mxu1 %v14288_v12  ;;  %v6161_v12 = vrot.slane %v6159_v36, 1 }
 0x4a6   : > { %22920 = vst [vmem:[#allocation177_spill] sm:$0xff] %v19269_v56  ;;  %5911 = vmatprep.mubr.bf16.mxu0 %v19028_v61  ;;  %6969 = vmatpush1.bf16.msra.mxu0 %v14283_v18  ;;  %v14355_v56 = vld [vmem:[%s21838_s5 + $0x8e8] ss:$16 sps:$4 sm:$0xff]  }
 0x4a7   : > { %v4848_v43 = vpop.f32.mrf.mxu1  ;;  %v4767_v19 = vpop.f32.mrf.mxu0  ;;  %5985 = vmatmul.mubr.bf16.gmra.mxu1 %v18447_v31  ;;  %6970 = vmatprep.subr.bf16.mxu0 %v14291_v35  ;;  %v14309_v35 = vld [vmem:[%s21838_s5 + $0x9e4] ss:$16 sps:$4 sm:$0xff]  }
 0x4a8   : > { %v19284_v27 = vadd.f32 %v4848_v43, %v4765_v44  ;;  %5994 = vmatprep.mubr.bf16.mxu1 %v19038_v26  ;;  %7052 = vmatpush1.bf16.msra.mxu1 %v14286_v9  ;;  %v14304_v9 = vld [vmem:[%s21838_s5 + $0xa00] ss:$16 sps:$4 sm:$0xff]   ;;  %v6185_v43 = vrot.slane %v6183_v41, 1 }
 0x4a9   : > { %v4850_v45 = vpop.f32.mrf.mxu1  ;;  %v4769_v33 = vpop.f32.mrf.mxu0  ;;  %7053 = vmatprep.subr.bf16.mxu1 %v14294_v51 }
 0x4aa   : > { %v19292_v11 = vadd.f32 %v4850_v45, %v4767_v19  ;;  %6971 = vmatpush1.bf16.msra.mxu0 %v14289_v17  ;;  %v14312_v19 = vld [vmem:[%s21838_s5 + $0xbe4] ss:$16 sps:$4 sm:$0xff]   ;;  %v6157_v45 = vshrl.u32 %v18848_v14, 16  ;;  %v19346_v17 = vrot.slane %v6164_v54, 1  ;;  %v14310_v14 = vld [vmem:[%s21838_s5 + $0xbe0] ss:$16 sps:$4 sm:$0xff]  }
 0x4ab   : > { %v4852_v62 = vpop.f32.mrf.mxu1  ;;  %v19305_v48 = vpop.f32.mrf.mxu0  ;;  %6972 = vmatprep.subr.bf16.mxu0 %v14297_v21  ;;  %v6181_v21 = vshrl.u32 %v18858_v2, 16  ;;  %v14315_v2 = vld [vmem:[%s21838_s5 + $0x9c4] ss:$16 sps:$4 sm:$0xff]  }
 0x4ac   : > { %v19303_v55 = vadd.f32 %v4852_v62, %v4769_v33  ;;  %22921 = vst [vmem:[#allocation178_spill] sm:$0xff] %v19305_v48  ;;  %7054 = vmatpush1.bf16.msra.mxu1 %v14292_v1  ;;  %v19353_v62 = vrot.slane %v6188_v58, 1  ;;  %v6162_v36 = vor.u32 %v6161_v12, %v6157_v45  ;;  %v14316_v12 = vld [vmem:[%s21838_s5 + $0xbc0] ss:$16 sps:$4 sm:$0xff]  }
 0x4ad   : > { %v19307_v34 = vpop.f32.mrf.mxu1  ;;  %v4775_v50 = vpop.f32.mrf.mxu0  ;;  %5912 = vmatmul.mubr.bf16.gmra.mxu0 %v18457_v52  ;;  %7055 = vmatprep.subr.bf16.mxu1 %v14300_v10  ;;  %v14322_v45 = vld [vmem:[%s21838_s5 + $0xba0] ss:$16 sps:$4 sm:$0xff]  }
 0x4ae   : > { %22922 = vst [vmem:[#allocation179_spill] sm:$0xff] %v19307_v34  ;;  %5921 = vmatprep.mubr.bf16.mxu0 %v19064_v23  ;;  %6973 = vmatpush1.bf16.msra.mxu0 %v14295_v7  ;;  %v14307_v7 = vld [vmem:[%s21838_s5 + $0x9e0] ss:$16 sps:$4 sm:$0xff]   ;;  %v19369_v41 = vsel %vm22925_vm4, %v6162_v36, %v19346_v17 }
 0x4af   : > { %v4858_v4 = vpop.f32.mrf.mxu1  ;;  %v4777_v13 = vpop.f32.mrf.mxu0  ;;  %5995 = vmatmul.mubr.bf16.gmra.mxu1 %v18459_v16  ;;  %6974 = vmatprep.subr.bf16.mxu0 %v14303_v8  ;;  %v14325_v36 = vld [vmem:[%s21838_s5 + $0x980] ss:$16 sps:$4 sm:$0xff]  }
 0x4b0   : > { %v19325_v57 = vadd.f32 %v4858_v4, %v4775_v50  ;;  %6004 = vmatprep.mubr.bf16.mxu1 %v19074_v6  ;;  %7056 = vmatpush1.bf16.msra.mxu1 %v14298_v29  ;;  %v6186_v29 = vor.u32 %v6185_v43, %v6181_v21  ;;  %v14318_v4 = vld [vmem:[%s21838_s5 + $0xbc4] ss:$16 sps:$4 sm:$0xff]  }
 0x4b1   : > { %v4860_v46 = vpop.f32.mrf.mxu1  ;;  %v4779_v44 = vpop.f32.mrf.mxu0  ;;  %7057 = vmatprep.subr.bf16.mxu1 %v14306_v25  ;;  %v14324_v43 = vld [vmem:[%s21838_s5 + $0xba4] ss:$16 sps:$4 sm:$0xff]  }
 0x4b2   : > { %v19334_v18 = vadd.f32 %v4860_v46, %v4777_v13  ;;  %6975 = vmatpush1.bf16.msra.mxu0 %v14301_v38  ;;  %v19380_v13 = vsel %vm22926_vm5, %v6186_v29, %v19353_v62  ;;  %v14313_v46 = vld [vmem:[%s21838_s5 + $0x9c0] ss:$16 sps:$4 sm:$0xff]   ;;  %v14327_v21 = vld [vmem:[%s21838_s5 + $0x984] ss:$16 sps:$4 sm:$0xff]  }
 0x4b3   : > { %v4862_v51 = vpop.f32.mrf.mxu1  ;;  %v19350_v1 = vpop.f32.mrf.mxu0  ;;  %6976 = vmatprep.subr.bf16.mxu0 %v14309_v35  ;;  %v14336_v29 = vld [vmem:[%s21838_s5 + $0xb64] ss:$16 sps:$4 sm:$0xff]  }
 0x4b4   : > { %v19348_v33 = vadd.f32 %v4862_v51, %v4779_v44  ;;  %22923 = vst [vmem:[#allocation180_spill] sm:$0xff] %v19350_v1  ;;  %7058 = vmatpush1.bf16.msra.mxu1 %v14304_v9  ;;  %v14321_v44 = vld [vmem:[%s21838_s5 + $0x9a4] ss:$16 sps:$4 sm:$0xff]  }
 0x4b5   : > { %v19355_v10 = vpop.f32.mrf.mxu1  ;;  %v4785_v50 = vpop.f32.mrf.mxu0  ;;  %5922 = vmatmul.mubr.bf16.gmra.mxu0 %v18469_v0  ;;  %7059 = vmatprep.subr.bf16.mxu1 %v14312_v19  ;;  %v14319_v19 = vld [vmem:[%s21838_s5 + $0x9a0] ss:$16 sps:$4 sm:$0xff]  }
 0x4b6   : > { %22924 = vst [vmem:[#allocation181_spill] sm:$0xff] %v19355_v10  ;;  %6992 = vmatprep.mubr.bf16.mxu0 %v19369_v41  ;;  %6977 = vmatpush2.bf16.msra.mxu0 %v14307_v7  ;;  %v14330_v7 = vld [vmem:[%s21838_s5 + $0xb84] ss:$16 sps:$4 sm:$0xff]  }
 0x4b7   : > { %v4868_v8 = vpop.f32.mrf.mxu1  ;;  %v4787_v54 = vpop.f32.mrf.mxu0  ;;  %6005 = vmatmul.mubr.bf16.gmra.mxu1 %v18471_v32  ;;  %6978 = vmatprep.subr.bf16.mxu0 %v14315_v2  ;;  %v14331_v2 = vld [vmem:[%s21838_s5 + $0x960] ss:$16 sps:$4 sm:$0xff]  }
 0x4b8   : > { %v19374_v25 = vadd.f32 %v4868_v8, %v4785_v50  ;;  %7075 = vmatprep.mubr.bf16.mxu1 %v19380_v13  ;;  %7060 = vmatpush2.bf16.msra.mxu1 %v14310_v14  ;;  %v14328_v50 = vld [vmem:[%s21838_s5 + $0xb80] ss:$16 sps:$4 sm:$0xff]   ;;  %v14333_v14 = vld [vmem:[%s21838_s5 + $0x964] ss:$16 sps:$4 sm:$0xff]  }
 0x4b9   : > { %v4870_v58 = vpop.f32.mrf.mxu1  ;;  %v4789_v9 = vpop.f32.mrf.mxu0  ;;  %7061 = vmatprep.subr.bf16.mxu1 %v14318_v4  ;;  %v14334_v8 = vld [vmem:[%s21838_s5 + $0xb60] ss:$16 sps:$4 sm:$0xff]   ;;  %v14339_v4 = vld [vmem:[%s21838_s5 + $0x944] ss:$16 sps:$4 sm:$0xff]  }
 0x4ba   : > { %v19386_v38 = vadd.f32 %v4870_v58, %v4787_v54  ;;  %6979 = vmatpush2.bf16.msra.mxu0 %v14313_v46  ;;  %v14342_v54 = vld [vmem:[%s21838_s5 + $0xb44] ss:$16 sps:$4 sm:$0xff]   ;;  %v14337_v58 = vld [vmem:[%s21838_s5 + $0x940] ss:$16 sps:$4 sm:$0xff]  }
 0x4bb   : > { %v4872_v35 = vpop.f32.mrf.mxu1  ;;  %6980 = vmatprep.subr.bf16.mxu0 %v14321_v44  ;;  %v14340_v46 = vld [vmem:[%s21838_s5 + $0xb40] ss:$16 sps:$4 sm:$0xff]   ;;  %v14348_v44 = vld [vmem:[%s21838_s5 + $0xb24] ss:$16 sps:$4 sm:$0xff]  }
 0x4bc   : > { %v19397_v51 = vadd.f32 %v4872_v35, %v4789_v9  ;;  %7062 = vmatpush2.bf16.msra.mxu1 %v14316_v12  ;;  %v14345_v12 = vld [vmem:[%s21838_s5 + $0x924] ss:$16 sps:$4 sm:$0xff]   ;;  %v6147_v9 = vshll.u32 %v18421_v15, 16  ;;  %v14343_v35 = vld [vmem:[%s21838_s5 + $0x920] ss:$16 sps:$4 sm:$0xff]  }
 0x4bd   : > { %7063 = vmatprep.subr.bf16.mxu1 %v14324_v43  ;;  %v6171_v43 = vshll.u32 %v18423_v60, 16 }
 0x4be   : > { %6981 = vmatpush2.bf16.msra.mxu0 %v14319_v19  ;;  %v14346_v19 = vld [vmem:[%s21838_s5 + $0xb20] ss:$16 sps:$4 sm:$0xff]  }
 0x4bf   : > { %6982 = vmatprep.subr.bf16.mxu0 %v14327_v21  ;;  %v6152_v21 = vshll.u32 %v18433_v24, 16 }
 0x4c0   : > { %7064 = vmatpush2.bf16.msra.mxu1 %v14322_v45  ;;  %v14351_v45 = vld [vmem:[%s21838_s5 + $0x904] ss:$16 sps:$4 sm:$0xff]  }
 0x4c1   : > { %7065 = vmatprep.subr.bf16.mxu1 %v14330_v7  ;;  %v14354_v7 = vld [vmem:[%s21838_s5 + $0xb04] ss:$16 sps:$4 sm:$0xff]  }
 0x4c2   : > { %6983 = vmatpush2.bf16.msra.mxu0 %v14325_v36  ;;  %v6176_v36 = vshll.u32 %v18435_v42, 16 }
 0x4c3   : > { %6984 = vmatprep.subr.bf16.mxu0 %v14333_v14  ;;  %v6149_v14 = vrot.slane %v6147_v9, 1  ;;  %v6169_v9 = vshrl.u32 %v18423_v60, 16 }
 0x4c4   : > { %7066 = vmatpush2.bf16.msra.mxu1 %v14328_v50  ;;  %v6204_v50 = vshll.u32 %v18992_v39, 16 }
 0x4c5   : > { %7067 = vmatprep.subr.bf16.mxu1 %v14336_v29  ;;  %v14349_v29 = vld [vmem:[%s21838_s5 + $0x900] ss:$16 sps:$4 sm:$0xff]  }
 0x4c6   : > { %6985 = vmatpush2.bf16.msra.mxu0 %v14331_v2  ;;  %v6220_v2 = vshll.u32 %v19002_v20, 16 }
 0x4c7   : > { %6986 = vmatprep.subr.bf16.mxu0 %v14339_v4  ;;  %v14352_v4 = vld [vmem:[%s21838_s5 + $0xb00] ss:$16 sps:$4 sm:$0xff]  }
 0x4c8   : > { %7068 = vmatpush2.bf16.msra.mxu1 %v14334_v8  ;;  %v6173_v8 = vrot.slane %v6171_v43, 1  ;;  %v19481_v43 = vpop.f32.mrf.mxu1 }
 0x4c9   : > { %7069 = vmatprep.subr.bf16.mxu1 %v14342_v54  ;;  %v14357_v54 = vld [vmem:[%s21838_s5 + $0x8ec] ss:$16 sps:$4 sm:$0xff]   ;;  %22928 = vst [vmem:[#allocation38_spill] sm:$0xff] %v19481_v43 }
 0x4ca   : > { %6987 = vmatpush2.bf16.msra.mxu0 %v14337_v58  ;;  %v6145_v58 = vshrl.u32 %v18421_v15, 16  ;;  %v6216_v15 = vshrl.u32 %v18966_v37, 16  ;;  %v14358_v37 = vld [vmem:[%s21838_s5 + $0xae8] ss:$16 sps:$4 sm:$0xff]  }
 0x4cb   : > { %6988 = vmatprep.subr.bf16.mxu0 %v14345_v12  ;;  %v19475_v12 = vpop.f32.mrf.mxu0 }
 0x4cc   : > { %7070 = vmatpush2.bf16.msra.mxu1 %v14340_v46  ;;  %v6154_v46 = vrot.slane %v6152_v21, 1  ;;  %22927 = vst [vmem:[#allocation32_spill] sm:$0xff] %v19475_v12  ;;  %v6150_v34 = vor.u32 %v6149_v14, %v6145_v58  ;;  %v6222_v21 = vrot.slane %v6220_v2, 1  ;;  %v6196_v2 = vshll.u32 %v18445_v28, 16 }
 0x4cd   : > { %7071 = vmatprep.subr.bf16.mxu1 %v14348_v44  ;;  %v14360_v44 = vld [vmem:[%s21838_s5 + $0xaec] ss:$16 sps:$4 sm:$0xff]  }
 0x4ce   : > { %6989 = vmatpush2.bf16.msra.mxu0 %v14343_v35  ;;  %v6178_v35 = vrot.slane %v6176_v36, 1 }
 0x4cf   : > { %6990 = vmatprep.subr.bf16.mxu0 %v14351_v45  ;;  %v6206_v45 = vrot.slane %v6204_v50, 1  ;;  %v6218_v50 = vor.u32 %v6216_v15, %v19353_v62  ;;  %v14366_v62 = vld [vmem:[%s21838_s5 + $0xacc] ss:$16 sps:$4 sm:$0xff]   ;;  %v6192_v15 = vshrl.u32 %v18433_v24, 16 }
 0x4d0   : > { %7072 = vmatpush2.bf16.msra.mxu1 %v14346_v19  ;;  %v6200_v19 = vshrl.u32 %v18956_v30, 16  ;;  %v19492_v30 = vsel %vm22929_vm15, %v6150_v34, %v6154_v46 }
 0x4d1   : > { %7073 = vmatprep.subr.bf16.mxu1 %v14354_v7  ;;  %v6174_v7 = vor.u32 %v6173_v8, %v6169_v9  ;;  %v6212_v8 = vshll.u32 %v18447_v31, 16 }
 0x4d2   : > { %6991 = vmatpush2.bf16.msra.mxu0 %v14349_v29  ;;  %v6202_v60 = vor.u32 %v6200_v19, %v19346_v17  ;;  %v14363_v29 = vld [vmem:[%s21838_s5 + $0x8cc] ss:$16 sps:$4 sm:$0xff]   ;;  %v14361_v19 = vld [vmem:[%s21838_s5 + $0x8c8] ss:$16 sps:$4 sm:$0xff]  }
 0x4d3   : > { %7126 = vmatprep.subr.bf16.mxu0 %v14357_v54  ;;  %v19517_v54 = vsel %vm22932_vm12, %v6218_v50, %v6222_v21  ;;  %v6214_v24 = vrot.slane %v6212_v8, 1 }
 0x4d4   : > { %7074 = vmatpush2.bf16.msra.mxu1 %v14352_v4  ;;  %v19507_v34 = vsel %vm22931_vm3, %v6202_v60, %v6206_v45  ;;  %v6236_v4 = vshll.u32 %v19028_v61, 16  ;;  %v14364_v60 = vld [vmem:[%s21838_s5 + $0xac8] ss:$16 sps:$4 sm:$0xff]  }
 0x4d5   : > { %v4911_v48 = vpop.f32.mrf.mxu0  ;;  %7209 = vmatprep.subr.bf16.mxu1 %v14360_v44  ;;  %6993 = vmatmul.mubr.bf16.vlgmr.msra.gmra.mxu0 %v19492_v30  ;;  %v6252_v44 = vshll.u32 %v19038_v26, 16 }
 0x4d6   : > { %7002 = vmatprep.mubr.bf16.mxu0 %v19507_v34  ;;  %7127 = vmatpush1.bf16.msra.mxu0 %v14355_v56  ;;  %v14369_v56 = vld [vmem:[%s21838_s5 + $0x8ac] ss:$16 sps:$4 sm:$0xff]  }
 0x4d7   : > { %v4994_v12 = vpop.f32.mrf.mxu1  ;;  %v4913_v14 = vpop.f32.mrf.mxu0  ;;  %7128 = vmatprep.subr.bf16.mxu0 %v14363_v29  ;;  %v6232_v29 = vshrl.u32 %v18992_v39, 16  ;;  %v6254_v5 = vrot.slane %v6252_v44, 1  ;;  %v14370_v39 = vld [vmem:[%s21838_s5 + $0xaa8] ss:$16 sps:$4 sm:$0xff]  }
 0x4d8   : > { %v19489_v36 = vadd.f32 %v4994_v12, %v4911_v48  ;;  %v19504_v48 = vsel %vm22930_vm1, %v6174_v7, %v6178_v35 }
 0x4d9   : > { %v4996_v17 = vpop.f32.mrf.mxu1  ;;  %7076 = vmatmul.mubr.bf16.vlgmr.msra.gmra.mxu1 %v19504_v48  ;;  %v4915_v12 = vpop.f32.mrf.mxu0 }
 0x4da   : > { %v19519_v58 = vadd.f32 %v4996_v17, %v4913_v14  ;;  %7085 = vmatprep.mubr.bf16.mxu1 %v19517_v54  ;;  %7210 = vmatpush1.bf16.msra.mxu1 %v14358_v37  ;;  %v6198_v14 = vrot.slane %v6196_v2, 1  ;;  %v6208_v17 = vshrl.u32 %v18435_v42, 16  ;;  %v14372_v37 = vld [vmem:[%s21838_s5 + $0xaac] ss:$16 sps:$4 sm:$0xff]   ;;  %v6248_v2 = vshrl.u32 %v19002_v20, 16 }
 0x4db   : > { %v4998_v9 = vpop.f32.mrf.mxu1  ;;  %v19532_v50 = vpop.f32.mrf.mxu0  ;;  %7211 = vmatprep.subr.bf16.mxu1 %v14366_v62  ;;  %7129 = vmatpush1.bf16.msra.mxu0 %v14361_v19  ;;  %v14367_v42 = vld [vmem:[%s21838_s5 + $0x8a8] ss:$16 sps:$4 sm:$0xff]   ;;  %v6234_v62 = vor.u32 %v6232_v29, %v6206_v45  ;;  %v6244_v19 = vshll.u32 %v18459_v16, 16  ;;  %v6224_v29 = vshrl.u32 %v18445_v28, 16 }
 0x4dc   : > { %v19527_v7 = vadd.f32 %v4998_v9, %v4915_v12  ;;  %22933 = vst [vmem:[#allocation43_spill] sm:$0xff] %v19532_v50  ;;  %v6238_v12 = vrot.slane %v6236_v4, 1  ;;  %v6194_v50 = vor.u32 %v6192_v15, %v6154_v46  ;;  %v6210_v1 = vor.u32 %v6208_v17, %v6178_v35  ;;  %7130 = vmatprep.subr.bf16.mxu0 %v14369_v56  ;;  %v14375_v35 = vld [vmem:[%s21838_s5 + $0x88c] ss:$16 sps:$4 sm:$0xff]  }
 0x4dd   : > { %v19538_v43 = vpop.f32.mrf.mxu1  ;;  %v4921_v9 = vpop.f32.mrf.mxu0  ;;  %v6250_v20 = vor.u32 %v6248_v2, %v6222_v21  ;;  %v6228_v4 = vshll.u32 %v18457_v52, 16  ;;  %v14378_v21 = vld [vmem:[%s21838_s5 + $0xa8c] ss:$16 sps:$4 sm:$0xff]   ;;  %v6268_v15 = vshll.u32 %v19064_v23, 16  ;;  %v6284_v56 = vshll.u32 %v19074_v6, 16 }
 0x4de   : > { %22934 = vst [vmem:[#allocation95_spill] sm:$0xff] %v19538_v43  ;;  %7212 = vmatpush1.bf16.msra.mxu1 %v14364_v60  ;;  %v19551_v43 = vsel %vm22935_vm9, %v6194_v50, %v6198_v14  ;;  %v19565_v45 = vsel %vm22937_vm7, %v6234_v62, %v6238_v12  ;;  %v14376_v2 = vld [vmem:[%s21838_s5 + $0xa88] ss:$16 sps:$4 sm:$0xff]   ;;  %v6246_v28 = vrot.slane %v6244_v19, 1  ;;  %vm22989_vm7 = vcmask 1045504  }
 0x4df   : > { %v5004_v10 = vpop.f32.mrf.mxu1  ;;  %v4923_v46 = vpop.f32.mrf.mxu0  ;;  %7003 = vmatmul.mubr.bf16.gmra.mxu0 %v19551_v43  ;;  %7213 = vmatprep.subr.bf16.mxu1 %v14372_v37  ;;  %v14373_v37 = vld [vmem:[%s21838_s5 + $0x888] ss:$16 sps:$4 sm:$0xff]   ;;  %v19603_v59 = vrot.slane %v6284_v56, 1  ;;  %v6260_v56 = vshll.u32 %v18469_v0, 16 }
 0x4e0   : > { %v19548_v8 = vadd.f32 %v5004_v10, %v4921_v9  ;;  %v19562_v10 = vsel %vm22936_vm6, %v6210_v1, %v6214_v24  ;;  %7012 = vmatprep.mubr.bf16.mxu0 %v19565_v45  ;;  %v19575_v1 = vsel %vm22938_vm11, %v6250_v20, %v6254_v5  ;;  %7131 = vmatpush1.bf16.msra.mxu0 %v14367_v42  ;;  %v6230_v20 = vrot.slane %v6228_v4, 1  ;;  %v14381_v42 = vld [vmem:[%s21838_s5 + $0x86c] ss:$16 sps:$4 sm:$0xff]  }
 0x4e1   : > { %v5006_v44 = vpop.f32.mrf.mxu1  ;;  %7086 = vmatmul.mubr.bf16.gmra.mxu1 %v19562_v10  ;;  %v4925_v50 = vpop.f32.mrf.mxu0  ;;  %7132 = vmatprep.subr.bf16.mxu0 %v14375_v35  ;;  %v6264_v35 = vshrl.u32 %v19028_v61, 16  ;;  %v6280_v4 = vshrl.u32 %v19038_v26, 16  ;;  %v14382_v26 = vld [vmem:[%s21838_s5 + $0xa68] ss:$16 sps:$4 sm:$0xff]  }
 0x4e2   : > { %v19577_v60 = vadd.f32 %v5006_v44, %v4923_v46  ;;  %7095 = vmatprep.mubr.bf16.mxu1 %v19575_v1  ;;  %7214 = vmatpush1.bf16.msra.mxu1 %v14370_v39  ;;  %v6240_v46 = vshrl.u32 %v18447_v31, 16  ;;  %v14384_v39 = vld [vmem:[%s21838_s5 + $0xa6c] ss:$16 sps:$4 sm:$0xff]  }
 0x4e3   : > { %v5008_v17 = vpop.f32.mrf.mxu1  ;;  %v19590_v62 = vpop.f32.mrf.mxu0  ;;  %7215 = vmatprep.subr.bf16.mxu1 %v14378_v21  ;;  %v14379_v21 = vld [vmem:[%s21838_s5 + $0x868] ss:$16 sps:$4 sm:$0xff]   ;;  %v6266_v19 = vor.u32 %v6264_v35, %v6238_v12  ;;  %v6256_v35 = vshrl.u32 %v18457_v52, 16 }
 0x4e4   : > { %v19585_v9 = vadd.f32 %v5008_v17, %v4925_v50  ;;  %22939 = vst [vmem:[#allocation182_spill] sm:$0xff] %v19590_v62  ;;  %v6270_v50 = vrot.slane %v6268_v15, 1  ;;  %v6226_v62 = vor.u32 %v6224_v29, %v6198_v14  ;;  %7133 = vmatpush1.bf16.msra.mxu0 %v14373_v37  ;;  %v6242_v31 = vor.u32 %v6240_v46, %v6214_v24  ;;  %v14387_v24 = vld [vmem:[%s21838_s5 + $0x84c] ss:$16 sps:$4 sm:$0xff]  }
 0x4e5   : > { %v19596_v44 = vpop.f32.mrf.mxu1  ;;  %v4931_v17 = vpop.f32.mrf.mxu0  ;;  %7134 = vmatprep.subr.bf16.mxu0 %v14381_v42  ;;  %v6282_v14 = vor.u32 %v6280_v4, %v6254_v5  ;;  %v14390_v5 = vld [vmem:[%s21838_s5 + $0xa4c] ss:$16 sps:$4 sm:$0xff]   ;;  %v6276_v29 = vshll.u32 %v18471_v32, 16  ;;  %v14388_v4 = vld [vmem:[%s21838_s5 + $0xa48] ss:$16 sps:$4 sm:$0xff]  }
 0x4e6   : > { %22940 = vst [vmem:[#allocation87_spill] sm:$0xff] %v19596_v44  ;;  %7216 = vmatpush1.bf16.msra.mxu1 %v14376_v2  ;;  %v19611_v61 = vsel %vm22941_vm10, %v6226_v62, %v6230_v20  ;;  %v19625_v12 = vsel %vm22943_vm8, %v6266_v19, %v6270_v50  ;;  %v6262_v19 = vrot.slane %v6260_v56, 1 }
 0x4e7   : > { %v5014_v3 = vpop.f32.mrf.mxu1  ;;  %v4933_v15 = vpop.f32.mrf.mxu0  ;;  %7013 = vmatmul.mubr.bf16.gmra.mxu0 %v19611_v61  ;;  %7217 = vmatprep.subr.bf16.mxu1 %v14384_v39  ;;  %v19635_v2 = vsel %vm22944_vm14, %v6282_v14, %v19603_v59  ;;  %v14385_v39 = vld [vmem:[%s21838_s5 + $0x848] ss:$16 sps:$4 sm:$0xff]   ;;  %v6272_v14 = vshrl.u32 %v18459_v16, 16  ;;  %v6278_v52 = vrot.slane %v6276_v29, 1  ;;  %v6297_v16 = vshrl.u32 %v19074_v6, 16 }
 0x4e8   : > { %v19608_v44 = vadd.f32 %v5014_v3, %v4931_v17  ;;  %v19622_v3 = vsel %vm22942_vm0, %v6242_v31, %v6246_v28  ;;  %7022 = vmatprep.mubr.bf16.mxu0 %v19625_v12  ;;  %7135 = vmatpush1.bf16.msra.mxu0 %v14379_v21  ;;  %v14393_v21 = vld [vmem:[%s21838_s5 + $0x82c] ss:$16 sps:$4 sm:$0xff]  }
 0x4e9   : > { %v5016_v37 = vpop.f32.mrf.mxu1  ;;  %7096 = vmatmul.mubr.bf16.gmra.mxu1 %v19622_v3  ;;  %v4935_v42 = vpop.f32.mrf.mxu0  ;;  %7136 = vmatprep.subr.bf16.mxu0 %v14387_v24 }
 0x4ea   : > { %v19637_v62 = vadd.f32 %v5016_v37, %v4933_v15  ;;  %7105 = vmatprep.mubr.bf16.mxu1 %v19635_v2  ;;  %7218 = vmatpush1.bf16.msra.mxu1 %v14382_v26  ;;  %v14396_v26 = vld [vmem:[%s21838_s5 + $0xa2c] ss:$16 sps:$4 sm:$0xff]   ;;  %v6258_v37 = vor.u32 %v6256_v35, %v6230_v20  ;;  %v19683_v35 = vor.u32 %v6297_v16, %v19603_v59  ;;  %v14397_v59 = vld [vmem:[%s21838_s5 + $0x808] ss:$16 sps:$4 sm:$0xff]  }
 0x4eb   : > { %v5018_v46 = vpop.f32.mrf.mxu1  ;;  %v19649_v31 = vpop.f32.mrf.mxu0  ;;  %7219 = vmatprep.subr.bf16.mxu1 %v14390_v5  ;;  %v14408_v16 = vld [vmem:[%s21838_s5 + $0xbec] ss:$16 sps:$4 sm:$0xff]  }
 0x4ec   : > { %v19644_v17 = vadd.f32 %v5018_v46, %v4935_v42  ;;  %22945 = vst [vmem:[#allocation183_spill] sm:$0xff] %v19649_v31  ;;  %v6291_v42 = vshrl.u32 %v19064_v23, 16  ;;  %7137 = vmatpush1.bf16.msra.mxu0 %v14385_v39  ;;  %v6274_v46 = vor.u32 %v6272_v14, %v6246_v28  ;;  %v14391_v31 = vld [vmem:[%s21838_s5 + $0x828] ss:$16 sps:$4 sm:$0xff]   ;;  %v19668_v29 = vsel %vm22947_vm2, %v6258_v37, %v6262_v19  ;;  %v14399_v39 = vld [vmem:[%s21838_s5 + $0x80c] ss:$16 sps:$4 sm:$0xff]  }
 0x4ed   : > { %v19655_v15 = vpop.f32.mrf.mxu1  ;;  %v4941_v24 = vpop.f32.mrf.mxu0  ;;  %7138 = vmatprep.subr.bf16.mxu0 %v14393_v21  ;;  %v14394_v23 = vld [vmem:[%s21838_s5 + $0xa28] ss:$16 sps:$4 sm:$0xff]   ;;  %vm22990_vm2 = vcmask 1046528  }
 0x4ee   : > { %22946 = vst [vmem:[#allocation37_spill] sm:$0xff] %v19655_v15  ;;  %7220 = vmatpush1.bf16.msra.mxu1 %v14388_v4  ;;  %v19673_v20 = vor.u32 %v6291_v42, %v6270_v50  ;;  %v19680_v6 = vsel %vm22948_vm13, %v6274_v46, %v6278_v52  ;;  %v14402_v50 = vld [vmem:[%s21838_s5 + $0xa0c] ss:$16 sps:$4 sm:$0xff]   ;;  %v14400_v37 = vld [vmem:[%s21838_s5 + $0xa08] ss:$16 sps:$4 sm:$0xff]  }
 0x4ef   : > { %v5024_v56 = vpop.f32.mrf.mxu1  ;;  %v4943_v28 = vpop.f32.mrf.mxu0  ;;  %7023 = vmatmul.mubr.bf16.gmra.mxu0 %v19668_v29  ;;  %7221 = vmatprep.subr.bf16.mxu1 %v14396_v26 }
 0x4f0   : > { %v19665_v5 = vadd.f32 %v5024_v56, %v4941_v24  ;;  %7032 = vmatprep.mubr.bf16.mxu0 %v19673_v20  ;;  %7139 = vmatpush1.bf16.msra.mxu0 %v14391_v31  ;;  %v14405_v56 = vld [vmem:[%s21838_s5 + $0x9ec] ss:$16 sps:$4 sm:$0xff]   ;;  %v6288_v31 = vshrl.u32 %v18469_v0, 16 }
 0x4f1   : > { %v5026_v4 = vpop.f32.mrf.mxu1  ;;  %7106 = vmatmul.mubr.bf16.gmra.mxu1 %v19680_v6  ;;  %v4945_v14 = vpop.f32.mrf.mxu0  ;;  %7140 = vmatprep.subr.bf16.mxu0 %v14399_v39 }
 0x4f2   : > { %v19690_v21 = vadd.f32 %v5026_v4, %v4943_v28  ;;  %7115 = vmatprep.mubr.bf16.mxu1 %v19683_v35  ;;  %7222 = vmatpush1.bf16.msra.mxu1 %v14394_v23  ;;  %v6294_v23 = vshrl.u32 %v18471_v32, 16  ;;  %v19713_v4 = vor.u32 %v6288_v31, %v6262_v19  ;;  %v14411_v19 = vld [vmem:[%s21838_s5 + $0x9cc] ss:$16 sps:$4 sm:$0xff]  }
 0x4f3   : > { %v5028_v24 = vpop.f32.mrf.mxu1  ;;  %v19701_v42 = vpop.f32.mrf.mxu0  ;;  %7223 = vmatprep.subr.bf16.mxu1 %v14402_v50 }
 0x4f4   : > { %v19696_v26 = vadd.f32 %v5028_v24, %v4945_v14  ;;  %22949 = vst [vmem:[#allocation239_spill] sm:$0xff] %v19701_v42  ;;  %7141 = vmatpush1.bf16.msra.mxu0 %v14397_v59  ;;  %v14403_v14 = vld [vmem:[%s21838_s5 + $0x9e8] ss:$16 sps:$4 sm:$0xff]   ;;  %v19720_v50 = vor.u32 %v6294_v23, %v6278_v52 }
 0x4f5   : > { %v19707_v46 = vpop.f32.mrf.mxu1  ;;  %v4951_v28 = vpop.f32.mrf.mxu0  ;;  %7142 = vmatprep.subr.bf16.mxu0 %v14405_v56  ;;  %v14406_v24 = vld [vmem:[%s21838_s5 + $0xbe8] ss:$16 sps:$4 sm:$0xff]  }
 0x4f6   : > { %22950 = vst [vmem:[#allocation240_spill] sm:$0xff] %v19707_v46  ;;  %7224 = vmatpush1.bf16.msra.mxu1 %v14400_v37  ;;  %v14414_v37 = vld [vmem:[%s21838_s5 + $0xbcc] ss:$16 sps:$4 sm:$0xff]  }
 0x4f7   : > { %v5034_v39 = vpop.f32.mrf.mxu1  ;;  %v4953_v32 = vpop.f32.mrf.mxu0  ;;  %7033 = vmatmul.mubr.bf16.gmra.mxu0 %v19713_v4  ;;  %7225 = vmatprep.subr.bf16.mxu1 %v14408_v16  ;;  %v14409_v16 = vld [vmem:[%s21838_s5 + $0x9c8] ss:$16 sps:$4 sm:$0xff]  }
 0x4f8   : > { %v19718_v0 = vadd.f32 %v5034_v39, %v4951_v28  ;;  %7158 = vmatprep.mubr.bf16.mxu0 %v19369_v41  ;;  %7143 = vmatpush2.bf16.msra.mxu0 %v14403_v14  ;;  %v14412_v28 = vld [vmem:[%s21838_s5 + $0xbc8] ss:$16 sps:$4 sm:$0xff]   ;;  %v14417_v41 = vld [vmem:[%s21838_s5 + $0x9ac] ss:$16 sps:$4 sm:$0xff]  }
 0x4f9   : > { %v5036_v59 = vpop.f32.mrf.mxu1  ;;  %7116 = vmatmul.mubr.bf16.gmra.mxu1 %v19720_v50  ;;  %v4955_v56 = vpop.f32.mrf.mxu0  ;;  %7144 = vmatprep.subr.bf16.mxu0 %v14411_v19  ;;  %v14415_v39 = vld [vmem:[%s21838_s5 + $0x9a8] ss:$16 sps:$4 sm:$0xff]  }
 0x4fa   : > { %v19734_v52 = vadd.f32 %v5036_v59, %v4953_v32  ;;  %7241 = vmatprep.mubr.bf16.mxu1 %v19380_v13  ;;  %7226 = vmatpush2.bf16.msra.mxu1 %v14406_v24  ;;  %v14420_v13 = vld [vmem:[%s21838_s5 + $0xbac] ss:$16 sps:$4 sm:$0xff]   ;;  %v14418_v14 = vld [vmem:[%s21838_s5 + $0xba8] ss:$16 sps:$4 sm:$0xff]  }
 0x4fb   : > { %v5038_v31 = vpop.f32.mrf.mxu1  ;;  %7227 = vmatprep.subr.bf16.mxu1 %v14414_v37  ;;  %v14423_v24 = vld [vmem:[%s21838_s5 + $0x98c] ss:$16 sps:$4 sm:$0xff]   ;;  %v14421_v19 = vld [vmem:[%s21838_s5 + $0x988] ss:$16 sps:$4 sm:$0xff]  }
 0x4fc   : > { %v19740_v23 = vadd.f32 %v5038_v31, %v4955_v56  ;;  %7145 = vmatpush2.bf16.msra.mxu0 %v14409_v16  ;;  %v14426_v32 = vld [vmem:[%s21838_s5 + $0xb8c] ss:$16 sps:$4 sm:$0xff]   ;;  %v14424_v59 = vld [vmem:[%s21838_s5 + $0xb88] ss:$16 sps:$4 sm:$0xff]  }
 0x4fd   : > { %7146 = vmatprep.subr.bf16.mxu0 %v14417_v41  ;;  %v14429_v37 = vld [vmem:[%s21838_s5 + $0x96c] ss:$16 sps:$4 sm:$0xff]   ;;  %v14427_v31 = vld [vmem:[%s21838_s5 + $0x968] ss:$16 sps:$4 sm:$0xff]  }
 0x4fe   : > { %7228 = vmatpush2.bf16.msra.mxu1 %v14412_v28  ;;  %v14432_v56 = vld [vmem:[%s21838_s5 + $0xb6c] ss:$16 sps:$4 sm:$0xff]   ;;  %v14430_v16 = vld [vmem:[%s21838_s5 + $0xb68] ss:$16 sps:$4 sm:$0xff]  }
 0x4ff   : > { %7229 = vmatprep.subr.bf16.mxu1 %v14420_v13  ;;  %v14435_v28 = vld [vmem:[%s21838_s5 + $0x94c] ss:$16 sps:$4 sm:$0xff]   ;;  %v14433_v13 = vld [vmem:[%s21838_s5 + $0x948] ss:$16 sps:$4 sm:$0xff]  }
 0x500   : > { %7147 = vmatpush2.bf16.msra.mxu0 %v14415_v39  ;;  %v14438_v41 = vld [vmem:[%s21838_s5 + $0xb4c] ss:$16 sps:$4 sm:$0xff]   ;;  %v14436_v39 = vld [vmem:[%s21838_s5 + $0xb48] ss:$16 sps:$4 sm:$0xff]  }
 0x501   : > { %7148 = vmatprep.subr.bf16.mxu0 %v14423_v24  ;;  %v14444_v24 = vld [vmem:[%s21838_s5 + $0xb2c] ss:$16 sps:$4 sm:$0xff]  }
 0x502   : > { %7230 = vmatpush2.bf16.msra.mxu1 %v14418_v14  ;;  %v14441_v14 = vld [vmem:[%s21838_s5 + $0x92c] ss:$16 sps:$4 sm:$0xff]  }
 0x503   : > { %7231 = vmatprep.subr.bf16.mxu1 %v14426_v32  ;;  %v14439_v32 = vld [vmem:[%s21838_s5 + $0x928] ss:$16 sps:$4 sm:$0xff]  }
 0x504   : > { %7149 = vmatpush2.bf16.msra.mxu0 %v14421_v19  ;;  %v14442_v19 = vld [vmem:[%s21838_s5 + $0xb28] ss:$16 sps:$4 sm:$0xff]  }
 0x505   : > { %7150 = vmatprep.subr.bf16.mxu0 %v14429_v37  ;;  %v14450_v37 = vld [vmem:[%s21838_s5 + $0xb0c] ss:$16 sps:$4 sm:$0xff]  }
 0x506   : > { %7232 = vmatpush2.bf16.msra.mxu1 %v14424_v59  ;;  %v14447_v59 = vld [vmem:[%s21838_s5 + $0x90c] ss:$16 sps:$4 sm:$0xff]  }
 0x507   : > { %7233 = vmatprep.subr.bf16.mxu1 %v14432_v56  ;;  %v14445_v56 = vld [vmem:[%s21838_s5 + $0x908] ss:$16 sps:$4 sm:$0xff]  }
 0x508   : > { %7151 = vmatpush2.bf16.msra.mxu0 %v14427_v31  ;;  %v14448_v31 = vld [vmem:[%s21838_s5 + $0xb08] ss:$16 sps:$4 sm:$0xff]  }
 0x509   : > { %7152 = vmatprep.subr.bf16.mxu0 %v14435_v28  ;;  %v19819_v28 = vpop.f32.mrf.mxu1 }
 0x50a   : > { %7234 = vmatpush2.bf16.msra.mxu1 %v14430_v16  ;;  %v19817_v16 = vpop.f32.mrf.mxu0  ;;  %22952 = vst [vmem:[#allocation90_spill] sm:$0xff] %v19819_v28 }
 0x50b   : > { %7235 = vmatprep.subr.bf16.mxu1 %v14438_v41  ;;  %22951 = vst [vmem:[#allocation184_spill] sm:$0xff] %v19817_v16 }
 0x50c   : > { %7153 = vmatpush2.bf16.msra.mxu0 %v14433_v13 }
 0x50d   : > { %7154 = vmatprep.subr.bf16.mxu0 %v14441_v14 }
 0x50e   : > { %7236 = vmatpush2.bf16.msra.mxu1 %v14436_v39 }
 0x50f   : > { %7237 = vmatprep.subr.bf16.mxu1 %v14444_v24 }
 0x510   : > { %7155 = vmatpush2.bf16.msra.mxu0 %v14439_v32 }
 0x511   : > { %7156 = vmatprep.subr.bf16.mxu0 %v14447_v59 }
 0x512   : > { %7238 = vmatpush2.bf16.msra.mxu1 %v14442_v19 }
 0x513   : > { %7239 = vmatprep.subr.bf16.mxu1 %v14450_v37 }
 0x514   : > { %7157 = vmatpush2.bf16.msra.mxu0 %v14445_v56 }
 0x515   : > { %v5717_v41 = vpop.f32.mrf.mxu0 }
 0x516   : > { %7240 = vmatpush2.bf16.msra.mxu1 %v14448_v31  ;;  %v5718_v13 = vadd.f32 %v5717_v41, %v19208_v22 }
 0x517   : > { %v5800_v39 = vpop.f32.mrf.mxu1  ;;  %v5719_v14 = vpop.f32.mrf.mxu0  ;;  %7159 = vmatmul.mubr.bf16.vlgmr.msra.gmra.mxu0 %v19492_v30 }
 0x518   : > { %v19822_v24 = vadd.f32 %v5800_v39, %v5718_v13  ;;  %v5720_v32 = vadd.f32 %v5719_v14, %v19216_v40  ;;  %7168 = vmatprep.mubr.bf16.mxu0 %v19507_v34 }
 0x519   : > { %v5802_v19 = vpop.f32.mrf.mxu1  ;;  %7242 = vmatmul.mubr.bf16.vlgmr.msra.gmra.mxu1 %v19504_v48  ;;  %v5721_v59 = vpop.f32.mrf.mxu0 }
 0x51a   : > { %7251 = vmatprep.mubr.bf16.mxu1 %v19517_v54  ;;  %v19829_v37 = vadd.f32 %v5802_v19, %v5720_v32  ;;  %v5722_v22 = vadd.f32 %v5721_v59, %v19227_v47 }
 0x51b   : > { %v5804_v56 = vpop.f32.mrf.mxu1  ;;  %v19832_v31 = vpop.f32.mrf.mxu0 }
 0x51c   : > { %v19834_v41 = vadd.f32 %v5804_v56, %v5722_v22 }
 0x51d   : > { %v19836_v30 = vpop.f32.mrf.mxu1  ;;  %v5727_v40 = vpop.f32.mrf.mxu0 }
 0x51e   : > { %v5728_v13 = vadd.f32 %v5727_v40, %v19246_v49 }
 0x51f   : > { %v5810_v48 = vpop.f32.mrf.mxu1  ;;  %v5729_v39 = vpop.f32.mrf.mxu0  ;;  %7169 = vmatmul.mubr.bf16.gmra.mxu0 %v19551_v43 }
 0x520   : > { %v19839_v34 = vadd.f32 %v5810_v48, %v5728_v13  ;;  %v5730_v54 = vadd.f32 %v5729_v39, %v19254_v53  ;;  %7178 = vmatprep.mubr.bf16.mxu0 %v19565_v45 }
 0x521   : > { %v5812_v14 = vpop.f32.mrf.mxu1  ;;  %7252 = vmatmul.mubr.bf16.gmra.mxu1 %v19562_v10  ;;  %v5731_v47 = vpop.f32.mrf.mxu0 }
 0x522   : > { %7261 = vmatprep.mubr.bf16.mxu1 %v19575_v1  ;;  %v19846_v32 = vadd.f32 %v5812_v14, %v5730_v54  ;;  %v5732_v49 = vadd.f32 %v5731_v47, %v19265_v63 }
 0x523   : > { %v5814_v19 = vpop.f32.mrf.mxu1  ;;  %v19849_v59 = vpop.f32.mrf.mxu0 }
 0x524   : > { %v19851_v22 = vadd.f32 %v5814_v19, %v5732_v49 }
 0x525   : > { %v19853_v43 = vpop.f32.mrf.mxu1  ;;  %v5737_v53 = vpop.f32.mrf.mxu0 }
 0x526   : > { %v5738_v56 = vadd.f32 %v5737_v53, %v19284_v27 }
 0x527   : > { %v5820_v10 = vpop.f32.mrf.mxu1  ;;  %v5739_v40 = vpop.f32.mrf.mxu0  ;;  %7179 = vmatmul.mubr.bf16.gmra.mxu0 %v19611_v61 }
 0x528   : > { %v19856_v45 = vadd.f32 %v5820_v10, %v5738_v56  ;;  %v5740_v1 = vadd.f32 %v5739_v40, %v19292_v11  ;;  %7188 = vmatprep.mubr.bf16.mxu0 %v19625_v12 }
 0x529   : > { %v5822_v13 = vpop.f32.mrf.mxu1  ;;  %7262 = vmatmul.mubr.bf16.gmra.mxu1 %v19622_v3  ;;  %v5741_v63 = vpop.f32.mrf.mxu0 }
 0x52a   : > { %7271 = vmatprep.mubr.bf16.mxu1 %v19635_v2  ;;  %v19863_v48 = vadd.f32 %v5822_v13, %v5740_v1  ;;  %v5742_v27 = vadd.f32 %v5741_v63, %v19303_v55 }
 0x52b   : > { %v5824_v39 = vpop.f32.mrf.mxu1  ;;  %v19866_v54 = vpop.f32.mrf.mxu0 }
 0x52c   : > { %v19868_v14 = vadd.f32 %v5824_v39, %v5742_v27  ;;  %v22953_v27 = vmov 0  }
 0x52d   : > { %v19870_v61 = vpop.f32.mrf.mxu1  ;;  %v5747_v11 = vpop.f32.mrf.mxu0 }
 0x52e   : > { %v5748_v47 = vadd.f32 %v5747_v11, %v19325_v57 }
 0x52f   : > { %v5830_v3 = vpop.f32.mrf.mxu1  ;;  %v5749_v49 = vpop.f32.mrf.mxu0  ;;  %7189 = vmatmul.mubr.bf16.gmra.mxu0 %v19668_v29 }
 0x530   : > { %v19873_v12 = vadd.f32 %v5830_v3, %v5748_v47  ;;  %v5750_v2 = vadd.f32 %v5749_v49, %v19334_v18  ;;  %7198 = vmatprep.mubr.bf16.mxu0 %v19673_v20 }
 0x531   : > { %v5832_v19 = vpop.f32.mrf.mxu1  ;;  %7272 = vmatmul.mubr.bf16.gmra.mxu1 %v19680_v6  ;;  %v5751_v55 = vpop.f32.mrf.mxu0 }
 0x532   : > { %7281 = vmatprep.mubr.bf16.mxu1 %v19683_v35  ;;  %v19880_v53 = vadd.f32 %v5832_v19, %v5750_v2  ;;  %v5752_v57 = vadd.f32 %v5751_v55, %v19348_v33 }
 0x533   : > { %v5834_v56 = vpop.f32.mrf.mxu1  ;;  %v19883_v10 = vpop.f32.mrf.mxu0 }
 0x534   : > { %v19885_v40 = vadd.f32 %v5834_v56, %v5752_v57 }
 0x535   : > { %v19887_v29 = vpop.f32.mrf.mxu1  ;;  %v5757_v18 = vpop.f32.mrf.mxu0 }
 0x536   : > { %v5758_v1 = vadd.f32 %v5757_v18, %v19374_v25 }
 0x537   : > { %v5840_v6 = vpop.f32.mrf.mxu1  ;;  %v5759_v13 = vpop.f32.mrf.mxu0  ;;  %7199 = vmatmul.mubr.bf16.gmra.mxu0 %v19713_v4 }
 0x538   : > { %v19890_v20 = vadd.f32 %v5840_v6, %v5758_v1  ;;  %v5760_v35 = vadd.f32 %v5759_v13, %v19386_v38  ;;  %7609 = vmatprep.mubr.bf16.mxu0 %v22953_v27 }
 0x539   : > { %v5842_v63 = vpop.f32.mrf.mxu1  ;;  %7282 = vmatmul.mubr.bf16.gmra.mxu1 %v19720_v50  ;;  %v5761_v33 = vpop.f32.mrf.mxu0 }
 0x53a   : > { %v19896_v39 = vadd.f32 %v5842_v63, %v5760_v35  ;;  %v5762_v11 = vadd.f32 %v5761_v33, %v19397_v51  ;;  %7670 = vmatprep.mubr.bf16.mxu1 %v22953_v27 }
 0x53b   : > { %v5844_v25 = vpop.f32.mrf.mxu1  ;;  %v19902_v3 = vpop.f32.mrf.mxu0 }
 0x53c   : > { %v19900_v47 = vadd.f32 %v5844_v25, %v5762_v11 }
 0x53d   : > { %v19904_v4 = vpop.f32.mrf.mxu1 }
 0x555   : > { %v5883_v38 = vpop.f32.mrf.mxu0 }
 0x556   : > { %v5884_v49 = vadd.f32 %v5883_v38, %v19489_v36 }
 0x557   : > { %v5966_v50 = vpop.f32.mrf.mxu1  ;;  %v5885_v2 = vpop.f32.mrf.mxu0 }
 0x558   : > { %v19907_v19 = vadd.f32 %v5966_v50, %v5884_v49  ;;  %v5886_v55 = vadd.f32 %v5885_v2, %v19519_v58 }
 0x559   : > { %v5968_v57 = vpop.f32.mrf.mxu1  ;;  %v5887_v51 = vpop.f32.mrf.mxu0 }
 0x55a   : > { %v19910_v56 = vadd.f32 %v5968_v57, %v5886_v55  ;;  %v5888_v18 = vadd.f32 %v5887_v51, %v19527_v7 }
 0x55b   : > { %v5970_v1 = vpop.f32.mrf.mxu1  ;;  %v19913_v6 = vpop.f32.mrf.mxu0 }
 0x55c   : > { %22954 = vst [vmem:[#allocation185_spill] sm:$0xff] %v19910_v56  ;;  %22955 = vst [vmem:[#allocation92_spill] sm:$0xff] %v19913_v6  ;;  %v19915_v13 = vadd.f32 %v5970_v1, %v5888_v18 }
 0x55d   : > { %v19917_v35 = vpop.f32.mrf.mxu1  ;;  %v5893_v36 = vpop.f32.mrf.mxu0 }
 0x55e   : > { %22956 = vst [vmem:[#allocation186_spill] sm:$0xff] %v19917_v35  ;;  %v5894_v63 = vadd.f32 %v5893_v36, %v19548_v8 }
 0x55f   : > { %v5976_v33 = vpop.f32.mrf.mxu1  ;;  %v5895_v11 = vpop.f32.mrf.mxu0 }
 0x560   : > { %v19920_v25 = vadd.f32 %v5976_v33, %v5894_v63  ;;  %v5896_v58 = vadd.f32 %v5895_v11, %v19577_v60 }
 0x561   : > { %v5978_v38 = vpop.f32.mrf.mxu1  ;;  %v5897_v49 = vpop.f32.mrf.mxu0 }
 0x562   : > { %22957 = vst [vmem:[#allocation42_spill] sm:$0xff] %v19920_v25  ;;  %v19923_v50 = vadd.f32 %v5978_v38, %v5896_v58  ;;  %v5898_v7 = vadd.f32 %v5897_v49, %v19585_v9  ;;  %v22985_v25 = vld [vmem:[#allocation179_spill] sm:$0xff] }
 0x563   : > { %v5980_v2 = vpop.f32.mrf.mxu1  ;;  %v19926_v55 = vpop.f32.mrf.mxu0 }
 0x564   : > { %22958 = vst [vmem:[#allocation187_spill] sm:$0xff] %v19923_v50  ;;  %22959 = vst [vmem:[#allocation94_spill] sm:$0xff] %v19926_v55  ;;  %v19928_v57 = vadd.f32 %v5980_v2, %v5898_v7 }
 0x565   : > { %v19930_v51 = vpop.f32.mrf.mxu1  ;;  %v5903_v8 = vpop.f32.mrf.mxu0 }
 0x566   : > { %22960 = vst [vmem:[#allocation235_spill] sm:$0xff] %v19928_v57  ;;  %22961 = vst [vmem:[#allocation236_spill] sm:$0xff] %v19930_v51  ;;  %v5904_v18 = vadd.f32 %v5903_v8, %v19608_v44  ;;  %v22983_v57 = vld [vmem:[#allocation177_spill] sm:$0xff] }
 0x567   : > { %v5986_v1 = vpop.f32.mrf.mxu1  ;;  %v5905_v36 = vpop.f32.mrf.mxu0 }
 0x568   : > { %v19933_v63 = vadd.f32 %v5986_v1, %v5904_v18  ;;  %v5906_v60 = vadd.f32 %v5905_v36, %v19637_v62 }
 0x569   : > { %v5988_v33 = vpop.f32.mrf.mxu1  ;;  %v5907_v11 = vpop.f32.mrf.mxu0 }
 0x56a   : > { %22962 = vst [vmem:[#allocation97_spill] sm:$0xff] %v19933_v63  ;;  %v19936_v58 = vadd.f32 %v5988_v33, %v5906_v60  ;;  %v5908_v9 = vadd.f32 %v5907_v11, %v19644_v17  ;;  %v22982_v63 = vld [vmem:[#allocation176_spill] sm:$0xff] }
 0x56b   : > { %v5990_v38 = vpop.f32.mrf.mxu1  ;;  %v19939_v49 = vpop.f32.mrf.mxu0 }
 0x56c   : > { %22963 = vst [vmem:[#allocation46_spill] sm:$0xff] %v19936_v58  ;;  %22964 = vst [vmem:[#allocation188_spill] sm:$0xff] %v19939_v49  ;;  %v19941_v7 = vadd.f32 %v5990_v38, %v5908_v9 }
 0x56d   : > { %v19943_v2 = vpop.f32.mrf.mxu1  ;;  %v5913_v44 = vpop.f32.mrf.mxu0 }
 0x56e   : > { %22965 = vst [vmem:[#allocation45_spill] sm:$0xff] %v19941_v7  ;;  %22966 = vst [vmem:[#allocation189_spill] sm:$0xff] %v19943_v2  ;;  %v5914_v8 = vadd.f32 %v5913_v44, %v19665_v5 }
 0x56f   : > { %v5996_v18 = vpop.f32.mrf.mxu1  ;;  %v5915_v1 = vpop.f32.mrf.mxu0 }
 0x570   : > { %v19946_v56 = vadd.f32 %v5996_v18, %v5914_v8  ;;  %v5916_v62 = vadd.f32 %v5915_v1, %v19690_v21 }
 0x571   : > { %v5998_v36 = vpop.f32.mrf.mxu1  ;;  %v5917_v60 = vpop.f32.mrf.mxu0 }
 0x572   : > { %22967 = vst [vmem:[#allocation48_spill] sm:$0xff] %v19946_v56  ;;  %v19949_v33 = vadd.f32 %v5998_v36, %v5916_v62  ;;  %v5918_v17 = vadd.f32 %v5917_v60, %v19696_v26 }
 0x573   : > { %v6000_v11 = vpop.f32.mrf.mxu1  ;;  %v19952_v9 = vpop.f32.mrf.mxu0 }
 0x574   : > { %22968 = vst [vmem:[#allocation91_spill] sm:$0xff] %v19949_v33  ;;  %22969 = vst [vmem:[#allocation39_spill] sm:$0xff] %v19952_v9  ;;  %v19954_v38 = vadd.f32 %v6000_v11, %v5918_v17 }
 0x575   : > { %v19956_v50 = vpop.f32.mrf.mxu1  ;;  %v5923_v5 = vpop.f32.mrf.mxu0 }
 0x576   : > { %22970 = vst [vmem:[#allocation40_spill] sm:$0xff] %v19954_v38  ;;  %22971 = vst [vmem:[#allocation241_spill] sm:$0xff] %v19956_v50  ;;  %v5924_v44 = vadd.f32 %v5923_v5, %v19718_v0  ;;  %v19974_v0 = vld [vmem:[%s21839_s6] sm:$0xf] }
 0x577   : > { %v6006_v8 = vpop.f32.mrf.mxu1  ;;  %v5925_v18 = vpop.f32.mrf.mxu0 }
 0x578   : > { %v19959_v35 = vadd.f32 %v6006_v8, %v5924_v44  ;;  %v5926_v21 = vadd.f32 %v5925_v18, %v19734_v52  ;;  %v22977_v8 = vld [vmem:[#allocation28_spill] sm:$0xff] }
 0x579   : > { %v6008_v1 = vpop.f32.mrf.mxu1  ;;  %v5927_v62 = vpop.f32.mrf.mxu0  ;;  %v19978_v18 = vrot.slane %v19974_v0, %v22977_v8 }
 0x57a   : > { %22972 = vst [vmem:[#allocation242_spill] sm:$0xff] %v19959_v35  ;;  %v19962_v36 = vadd.f32 %v6008_v1, %v5926_v21  ;;  %v5928_v26 = vadd.f32 %v5927_v62, %v19740_v23 }
 0x57b   : > { %v6010_v60 = vpop.f32.mrf.mxu1  ;;  %v19967_v11 = vpop.f32.mrf.mxu0 }
 0x57c   : > { %22973 = vst [vmem:[#allocation243_spill] sm:$0xff] %v19962_v36  ;;  %v19965_v17 = vadd.f32 %v6010_v60, %v5928_v26  ;;  %22975 = vst [vmem:[#allocation41_spill] sm:$0xff] %v19967_v11 }
 0x57d   : > { %v19969_v58 = vpop.f32.mrf.mxu1 }
 0x57e   : > { %22974 = vst [vmem:[#allocation60_spill] sm:$0xff] %v19965_v17  ;;  %22976 = vst [vmem:[#allocation93_spill] sm:$0xff] %v19969_v58 }
 0x595   : > { %v6994_v5 = vpop.f32.mrf.mxu0 }
 0x597   : > { %v19980_v23 = vpop.f32.mrf.mxu0 }
 0x599   : > { %v7077_v52 = vpop.f32.mrf.mxu1  ;;  %v6998_v62 = vpop.f32.mrf.mxu0 }
 0x59a   : > { %v7078_v44 = vadd.f32 %v7077_v52, %v6994_v5 }
 0x59b   : > { %v19982_v21 = vpop.f32.mrf.mxu1  ;;  %v19986_v33 = vpop.f32.mrf.mxu0 }
 0x59c   : > { %v7292_v1 = vadd.f32 %v7078_v44, %v19822_v24 }
 0x59d   : > { %v7081_v26 = vpop.f32.mrf.mxu1 }
 0x59e   : > { %v7354_v60 = vadd.f32 %v19978_v18, %v7292_v1  ;;  %v7082_v51 = vadd.f32 %v7081_v26, %v6998_v62 }
 0x59f   : > { %v19988_v17 = vpop.f32.mrf.mxu1  ;;  %v7004_v52 = vpop.f32.mrf.mxu0 }
 0x5a0   : > { %v7296_v5 = vadd.f32 %v7082_v51, %v19834_v41  ;;  %v7434_v58 = vmul.f32 0.01, %v7354_v60  ;;  %vm7394_vm4 = vcmp.gt.f32.partialorder %v7354_v60, 0.0 }
 0x5a1   : > { %v7087_v8 = vpop.f32.mrf.mxu1  ;;  %v19992_v36 = vpop.f32.mrf.mxu0 }
 0x5a2   : > { %v7358_v2 = vadd.f32 %v19978_v18, %v7296_v5  ;;  %v7088_v6 = vadd.f32 %v7087_v8, %v7004_v52  ;;  %v7474_v35 = vsel %vm7394_vm4, %v7354_v60, %v7434_v58 }
 0x5a3   : > { %v19994_v24 = vpop.f32.mrf.mxu1  ;;  %v7008_v62 = vpop.f32.mrf.mxu0 }
 0x5a4   : > { %vm7398_vm5 = vcmp.gt.f32.partialorder %v7358_v2, 0.0  ;;  %v7438_v44 = vmul.f32 0.01, %v7358_v2  ;;  %v7300_v1 = vadd.f32 %v7088_v6, %v19839_v34 }
 0x5a5   : > { %v7091_v26 = vpop.f32.mrf.mxu1  ;;  %v19998_v51 = vpop.f32.mrf.mxu0 }
 0x5a6   : > { %v7362_v50 = vadd.f32 %v19978_v18, %v7300_v1  ;;  %v7092_v41 = vadd.f32 %v7091_v26, %v7008_v62  ;;  %v7478_v11 = vsel %vm7398_vm5, %v7358_v2, %v7438_v44 }
 0x5a7   : > { %v20000_v5 = vpop.f32.mrf.mxu1  ;;  %v20002_v8 = vpack.c.bf16 %v7478_v11, %v7474_v35  ;;  %v7014_v49 = vpop.f32.mrf.mxu0 }
 0x5a8   : > { %v7304_v52 = vadd.f32 %v7092_v41, %v19851_v22  ;;  %v7442_v9 = vmul.f32 0.01, %v7362_v50  ;;  %vm7402_vm15 = vcmp.gt.f32.partialorder %v7362_v50, 0.0 }
 0x5a9   : > { %v7097_v55 = vpop.f32.mrf.mxu1  ;;  %v20006_v28 = vpop.f32.mrf.mxu0 }
 0x5aa   : > { %v7366_v34 = vadd.f32 %v19978_v18, %v7304_v52  ;;  %v7098_v6 = vadd.f32 %v7097_v55, %v7014_v49  ;;  %v7482_v62 = vsel %vm7402_vm15, %v7362_v50, %v7442_v9 }
 0x5ab   : > { %v20008_v1 = vpop.f32.mrf.mxu1  ;;  %v7018_v60 = vpop.f32.mrf.mxu0 }
 0x5ac   : > { %vm7406_vm1 = vcmp.gt.f32.partialorder %v7366_v34, 0.0  ;;  %v7446_v58 = vmul.f32 0.01, %v7366_v34  ;;  %v7308_v2 = vadd.f32 %v7098_v6, %v19856_v45 }
 0x5ad   : > { %v7101_v35 = vpop.f32.mrf.mxu1  ;;  %v7020_v44 = vpop.f32.mrf.mxu0 }
 0x5ae   : > { %v7370_v11 = vadd.f32 %v19978_v18, %v7308_v2  ;;  %v7102_v22 = vadd.f32 %v7101_v35, %v7018_v60  ;;  %v7486_v26 = vsel %vm7406_vm1, %v7366_v34, %v7446_v58 }
 0x5af   : > { %v7103_v41 = vpop.f32.mrf.mxu1  ;;  %v20012_v52 = vpack.c.bf16 %v7486_v26, %v7482_v62  ;;  %v7024_v49 = vpop.f32.mrf.mxu0  ;;  %v22978_v62 = vld [vmem:[#allocation174_spill] sm:$0xff]  ;;  %v22979_v26 = vld [vmem:[#allocation175_spill] sm:$0xff] }
 0x5b0   : > { %v7312_v55 = vadd.f32 %v7102_v22, %v19868_v14  ;;  %v7450_v15 = vmul.f32 0.01, %v7370_v11  ;;  %vm7410_vm3 = vcmp.gt.f32.partialorder %v7370_v11, 0.0  ;;  %v4835_v42 = vadd.f32 %v22979_v26, %v22978_v62 }
 0x5b1   : > { %v7107_v16 = vpop.f32.mrf.mxu1  ;;  %v7026_v45 = vpop.f32.mrf.mxu0 }
 0x5b2   : > { %v7374_v38 = vadd.f32 %v19978_v18, %v7312_v55  ;;  %v7108_v46 = vadd.f32 %v7107_v16, %v7024_v49  ;;  %v7490_v14 = vsel %vm7410_vm3, %v7370_v11, %v7450_v15  ;;  %v22980_v55 = vld [vmem:[#allocation180_spill] sm:$0xff]  ;;  %v22981_v16 = vld [vmem:[#allocation181_spill] sm:$0xff] }
 0x5b3   : > { %v7109_v6 = vpop.f32.mrf.mxu1  ;;  %v7028_v50 = vpop.f32.mrf.mxu0  ;;  %v4865_v49 = vadd.f32 %v22981_v16, %v22980_v55  ;;  %v22986_v15 = vld [vmem:[#allocation32_spill] sm:$0xff] }
 0x5b4   : > { %vm7414_vm12 = vcmp.gt.f32.partialorder %v7374_v38, 0.0  ;;  %v7454_v2 = vmul.f32 0.01, %v7374_v38  ;;  %v7316_v60 = vadd.f32 %v7108_v46, %v19873_v12  ;;  %v4845_v46 = vadd.f32 %v22983_v57, %v22982_v63  ;;  %v22984_v12 = vld [vmem:[#allocation178_spill] sm:$0xff] }
 0x5b5   : > { %v7111_v9 = vpop.f32.mrf.mxu1  ;;  %v7030_v35 = vpop.f32.mrf.mxu0  ;;  %v4855_v27 = vadd.f32 %v22985_v25, %v22984_v12 }
 0x5b6   : > { %v7378_v34 = vadd.f32 %v19978_v18, %v7316_v60  ;;  %v7112_v58 = vadd.f32 %v7111_v9, %v7028_v50  ;;  %v7494_v22 = vsel %vm7414_vm12, %v7374_v38, %v7454_v2  ;;  %v22987_v38 = vld [vmem:[#allocation38_spill] sm:$0xff]  ;;  %v20032_v2 = vadd.f32 %v19832_v31, %v4835_v42 }
 0x5b7   : > { %v7113_v56 = vpop.f32.mrf.mxu1  ;;  %v20022_v7 = vpack.c.bf16 %v7494_v22, %v7490_v14  ;;  %v7034_v50 = vpop.f32.mrf.mxu0  ;;  %v4875_v11 = vadd.f32 %v22987_v38, %v22986_v15  ;;  %v5754_v9 = vadd.f32 %v19883_v10, %v4865_v49  ;;  %v22988_v22 = vld [vmem:[#allocation29_spill] sm:$0xff]  ;;  %v5734_v63 = vadd.f32 %v19849_v59, %v4845_v46 }
 0x5b8   : > { %v7320_v60 = vadd.f32 %v7112_v58, %v19885_v40  ;;  %v7458_v62 = vmul.f32 0.01, %v7378_v34  ;;  %v20037_v26 = vrot.slane %v19974_v0, %v22988_v22  ;;  %vm7418_vm9 = vcmp.gt.f32.partialorder %v7378_v34, 0.0 }
 0x5b9   : > { %v7117_v14 = vpop.f32.mrf.mxu1  ;;  %v7036_v40 = vpop.f32.mrf.mxu0  ;;  %v5744_v58 = vadd.f32 %v19866_v54, %v4855_v27  ;;  %v5764_v42 = vadd.f32 %v19902_v3, %v4875_v11  ;;  %v7114_v31 = vadd.f32 %v7113_v56, %v7030_v35  ;;  %v5837_v15 = vadd.f32 %v19887_v29, %v5754_v9 }
 0x5ba   : > { %v7382_v25 = vadd.f32 %v19978_v18, %v7320_v60  ;;  %v7118_v57 = vadd.f32 %v7117_v14, %v7034_v50  ;;  %v7104_v38 = vadd.f32 %v7103_v41, %v7020_v44  ;;  %v7110_v60 = vadd.f32 %v7109_v6, %v7026_v45 }
 0x5bb   : > { %v7119_v55 = vpop.f32.mrf.mxu1  ;;  %v7038_v12 = vpop.f32.mrf.mxu0  ;;  %v7498_v14 = vsel %vm7418_vm9, %v7378_v34, %v7458_v62  ;;  %v5817_v35 = vadd.f32 %v19853_v43, %v5734_v63  ;;  %v7321_v46 = vadd.f32 %v7114_v31, %v5837_v15  ;;  %v5827_v29 = vadd.f32 %v19870_v61, %v5744_v58 }
 0x5bc   : > { %vm7422_vm6 = vcmp.gt.f32.partialorder %v7382_v25, 0.0  ;;  %v7462_v10 = vmul.f32 0.01, %v7382_v25  ;;  %v7324_v16 = vadd.f32 %v7118_v57, %v19890_v20  ;;  %v7120_v49 = vadd.f32 %v7119_v55, %v7036_v40 }
 0x5bd   : > { %v7121_v50 = vpop.f32.mrf.mxu1  ;;  %v7040_v3 = vpop.f32.mrf.mxu0  ;;  %v5847_v44 = vadd.f32 %v19904_v4, %v5764_v42  ;;  %v7094_v41 = vadd.f32 %v20000_v5, %v19998_v51  ;;  %v7317_v6 = vadd.f32 %v7110_v60, %v19880_v53  ;;  %v7313_v9 = vadd.f32 %v7104_v38, %v5827_v29 }
 0x5be   : > { %v7386_v59 = vadd.f32 %v19978_v18, %v7324_v16  ;;  %v7325_v54 = vadd.f32 %v7120_v49, %v19896_v39  ;;  %v7122_v27 = vadd.f32 %v7121_v50, %v7038_v12  ;;  %v7502_v56 = vsel %vm7422_vm6, %v7382_v25, %v7462_v10 }
 0x5bf   : > { %v7123_v20 = vpop.f32.mrf.mxu1  ;;  %v20049_v11 = vpack.c.bf16 %v7502_v56, %v7498_v14  ;;  %v7100_v39 = vadd.f32 %v20008_v1, %v20006_v28  ;;  %v14902_v61 = vmov 65535   ;;  %v7084_v51 = vadd.f32 %v19988_v17, %v19986_v33 }
 0x5c0   : > { %v7328_v45 = vadd.f32 %v7122_v27, %v19900_v47  ;;  %v7387_v43 = vadd.f32 %v20037_v26, %v7325_v54  ;;  %v7124_v34 = vadd.f32 %v7123_v20, %v7040_v3  ;;  %v7466_v62 = vmul.f32 0.01, %v7386_v59 }
 0x5c1   : > { %v7563_v4 = vsel %vm22989_vm7, 4294967295, %v14902_v61  ;;  %v7383_v47 = vadd.f32 %v20037_v26, %v7321_v46  ;;  %vm7426_vm11 = vcmp.gt.f32.partialorder %v7386_v59, 0.0  ;;  %v7090_v28 = vadd.f32 %v19994_v24, %v19992_v36  ;;  %v22991_v61 = vld [vmem:[#allocation82_spill] sm:$0xff] }
 0x5c2   : > { %v7390_v25 = vadd.f32 %v19978_v18, %v7328_v45  ;;  %v7329_v5 = vadd.f32 %v7124_v34, %v5847_v44  ;;  %v7305_v53 = vadd.f32 %v7094_v41, %v5817_v35  ;;  %v7309_v57 = vadd.f32 %v7100_v39, %v19863_v48 }
 0x5c3   : > { %v7379_v18 = vadd.f32 %v20037_v26, %v7317_v6  ;;  %v7467_v40 = vmul.f32 0.01, %v7387_v43  ;;  %v7375_v58 = vadd.f32 %v20037_v26, %v7313_v9  ;;  %v7506_v33 = vsel %vm7426_vm11, %v7386_v59, %v7466_v62 }
 0x5c4   : > { %vm7430_vm10 = vcmp.gt.f32.partialorder %v7390_v25, 0.0  ;;  %v7470_v1 = vmul.f32 0.01, %v7390_v25  ;;  %v7391_v63 = vadd.f32 %v20037_v26, %v7329_v5  ;;  %vm7427_vm0 = vcmp.gt.f32.partialorder %v7387_v43, 0.0 }
 0x5c5   : > { %v7463_v55 = vmul.f32 0.01, %v7383_v47  ;;  %v5807_v36 = vadd.f32 %v19836_v30, %v20032_v2  ;;  %v7080_v48 = vadd.f32 %v19982_v21, %v19980_v23  ;;  %v7301_v24 = vadd.f32 %v7090_v28, %v19846_v32 }
 0x5c6   : > { %v7510_v17 = vsel %vm7430_vm10, %v7390_v25, %v7470_v1  ;;  %v7471_v42 = vmul.f32 0.01, %v7391_v63  ;;  %vm7431_vm8 = vcmp.gt.f32.partialorder %v7391_v63, 0.0  ;;  %vm7423_vm14 = vcmp.gt.f32.partialorder %v7383_v47, 0.0  ;;  %v20108_v1 = vld [vmem:[%s21840_s7] sm:$0xff]  }
 0x5c7   : > { %v7530_v31 = vpack.c.bf16 %v7510_v17, %v7506_v33  ;;  %v7371_v10 = vadd.f32 %v20037_v26, %v7309_v57  ;;  %v7459_v16 = vmul.f32 0.01, %v7379_v18  ;;  %v7507_v49 = vsel %vm7427_vm0, %v7387_v43, %v7467_v40 }
 0x5c8   : > { %v7511_v12 = vsel %vm7431_vm8, %v7391_v63, %v7471_v42  ;;  %v20078_v38 = vsel %vm22990_vm2, %v7563_v4, 0  ;;  %vm7419_vm13 = vcmp.gt.f32.partialorder %v7379_v18, 0.0  ;;  %v7297_v60 = vadd.f32 %v7084_v51, %v5807_v36 }
 0x5c9   : > { %v7531_v15 = vpack.c.bf16 %v7511_v12, %v7507_v49  ;;  %v7367_v50 = vadd.f32 %v20037_v26, %v7305_v53  ;;  %v7503_v30 = vsel %vm7423_vm14, %v7383_v47, %v7463_v55  ;;  %v7455_v2 = vmul.f32 0.01, %v7375_v58  ;;  %v20129_v12 = vld [vmem:[%s21840_s7 + $0x8] sm:$0xff]  }
 0x5ca   : > { %v7293_v23 = vadd.f32 %v7080_v48, %v19829_v37  ;;  %vm7415_vm4 = vcmp.gt.f32.partialorder %v7375_v58, 0.0  ;;  %v7363_v21 = vadd.f32 %v20037_v26, %v7301_v24  ;;  %v7451_v14 = vmul.f32 0.01, %v7371_v10  ;;  %v22993_v24 = vld [vmem:[#allocation42_spill] sm:$0xff] }
 0x5cb   : > { %v7569_v32 = vand.u32 %v20078_v38, %v7531_v15  ;;  %v7566_v59 = vand.u32 %v20078_v38, %v7530_v31  ;;  %v7499_v54 = vsel %vm7419_vm13, %v7379_v18, %v7459_v16  ;;  %vm7411_vm5 = vcmp.gt.f32.partialorder %v7371_v10, 0.0 }
 0x5cc   : > { %v7527_v27 = vpack.c.bf16 %v7503_v30, %v7499_v54  ;;  %v7359_v3 = vadd.f32 %v20037_v26, %v7297_v60  ;;  %v7495_v56 = vsel %vm7415_vm4, %v7375_v58, %v7455_v2  ;;  %v7447_v35 = vmul.f32 0.01, %v7367_v50 }
 0x5cd   : > { %7583 = vmatprep.subr.bf16.mxu0 %v7569_v32  ;;  %vm7407_vm15 = vcmp.gt.f32.partialorder %v7367_v50, 0.0  ;;  %v7355_v37 = vadd.f32 %v20037_v26, %v7293_v23  ;;  %v7443_v46 = vmul.f32 0.01, %v7363_v21  ;;  %v7491_v20 = vsel %vm7411_vm5, %v7371_v10, %v7451_v14 }
 0x5ce   : > { %7584 = vmatpush1.bf16.msra.mxu0 %v7566_v59  ;;  %v7523_v29 = vpack.c.bf16 %v7495_v56, %v7491_v20  ;;  %vm7403_vm1 = vcmp.gt.f32.partialorder %v7363_v21, 0.0  ;;  %v7487_v44 = vsel %vm7407_vm15, %v7367_v50, %v7447_v35  ;;  %v7439_v41 = vmul.f32 0.01, %v7359_v3 }
 0x5cf   : > { %7585 = vmatprep.subr.bf16.mxu0 %v7527_v27  ;;  %vm7399_vm3 = vcmp.gt.f32.partialorder %v7359_v3, 0.0  ;;  %v7435_v45 = vmul.f32 0.01, %v7355_v37  ;;  %v7483_v39 = vsel %vm7403_vm1, %v7363_v21, %v7443_v46  ;;  %vm7395_vm12 = vcmp.gt.f32.partialorder %v7355_v37, 0.0  ;;  %v22994_v21 = vld [vmem:[#allocation235_spill] sm:$0xff]  ;;  %v22995_v46 = vld [vmem:[#allocation97_spill] sm:$0xff] }
 0x5d0   : > { %v20088_v6 = vpack.c.bf16 %v7487_v44, %v7483_v39  ;;  %v7479_v43 = vsel %vm7399_vm3, %v7359_v3, %v7439_v41  ;;  %v20096_v4 = vrot.slane %v19974_v0, %v22991_v61  ;;  %vm7552_vm9 = vcmask 629760   ;;  %v20154_v41 = vld [vmem:[%s21840_s7 + $0x10] ss:$0 sps:$4 sm:$0xff]  }
 0x5d1   : > { %v7475_v34 = vsel %vm7395_vm12, %v7355_v37, %v7435_v45  ;;  %v22992_v36 = vmov 0  }
 0x5d2   : > { %7586 = vmatpush1.bf16.msra.mxu0 %v20049_v11  ;;  %v20092_v62 = vpack.c.bf16 %v7479_v43, %v7475_v34 }
 0x5d3   : > { %7587 = vmatprep.subr.bf16.mxu0 %v7523_v29 }
 0x5d6   : > { %7588 = vmatpush1.bf16.msra.mxu0 %v20022_v7 }
 0x5d7   : > { %7589 = vmatprep.subr.bf16.mxu0 %v20088_v6  ;;  %v7160_v26 = vpop.f32.mrf.mxu0 }
 0x5d9   : > { %v7243_v9 = vpop.f32.mrf.mxu1  ;;  %v20099_v51 = vpop.f32.mrf.mxu0 }
 0x5da   : > { %v7244_v25 = vadd.f32 %v7243_v9, %v7160_v26  ;;  %7590 = vmatpush1.bf16.msra.mxu0 %v20012_v52  ;;  %v14459_v9 = vld [vmem:[%s21842_s9 + $0x34c] ss:$12 sps:$4 sm:$0xff]  }
 0x5db   : > { %v20101_v47 = vpop.f32.mrf.mxu1  ;;  %7591 = vmatprep.subr.bf16.mxu0 %v20092_v62  ;;  %v7164_v28 = vpop.f32.mrf.mxu0 }
 0x5dc   : > { %v7294_v5 = vadd.f32 %v7244_v25, %v19907_v19  ;;  %v22996_v25 = vld [vmem:[#allocation45_spill] sm:$0xff] }
 0x5dd   : > { %v7247_v53 = vpop.f32.mrf.mxu1  ;;  %v20112_v40 = vpop.f32.mrf.mxu0 }
 0x5de   : > { %v7356_v57 = vadd.f32 %v20096_v4, %v7294_v5  ;;  %v7248_v18 = vadd.f32 %v7247_v53, %v7164_v28  ;;  %7592 = vmatpush1.bf16.msra.mxu0 %v20002_v8 }
 0x5df   : > { %v20114_v63 = vpop.f32.mrf.mxu1  ;;  %7744 = vmatprep.subr.bf16.mxu0 %v7569_v32  ;;  %v7170_v58 = vpop.f32.mrf.mxu0 }
 0x5e0   : > { %v7298_v19 = vadd.f32 %v7248_v18, %v19915_v13  ;;  %v7436_v17 = vmul.f32 0.01, %v7356_v57  ;;  %vm7396_vm6 = vcmp.gt.f32.partialorder %v7356_v57, 0.0 }
 0x5e1   : > { %v7253_v33 = vpop.f32.mrf.mxu1  ;;  %12691 = vmatmul.mubr.msk.bf16.vlgmr.msra.gmra.mxu0 %vm7552_vm9, %v20108_v1  ;;  %v20120_v55 = vpop.f32.mrf.mxu0 }
 0x5e2   : > { %v7360_v42 = vadd.f32 %v20096_v4, %v7298_v19  ;;  %v7254_v31 = vadd.f32 %v7253_v33, %v7170_v58  ;;  %7745 = vmatpush1.bf16.msra.mxu0 %v7566_v59  ;;  %7619 = vmatprep.mubr.bf16.mxu0 %v22992_v36  ;;  %v7476_v30 = vsel %vm7396_vm6, %v7356_v57, %v7436_v17  ;;  %v22997_v33 = vld [vmem:[#allocation48_spill] sm:$0xff] }
 0x5e3   : > { %v20123_v48 = vpop.f32.mrf.mxu1  ;;  %7746 = vmatprep.subr.bf16.mxu0 %v7527_v27  ;;  %v7174_v16 = vpop.f32.mrf.mxu0 }
 0x5e4   : > { %vm7400_vm7 = vcmp.gt.f32.partialorder %v7360_v42, 0.0  ;;  %v7440_v13 = vmul.f32 0.01, %v7360_v42  ;;  %v7302_v10 = vadd.f32 %v7254_v31, %v22993_v24 }
 0x5e5   : > { %v7257_v49 = vpop.f32.mrf.mxu1  ;;  %v20133_v50 = vpop.f32.mrf.mxu0 }
 0x5e6   : > { %v7364_v15 = vadd.f32 %v20096_v4, %v7302_v10  ;;  %v7258_v60 = vadd.f32 %v7257_v49, %v7174_v16  ;;  %7747 = vmatpush1.bf16.msra.mxu0 %v20049_v11  ;;  %v7480_v2 = vsel %vm7400_vm7, %v7360_v42, %v7440_v13  ;;  %v20178_v13 = vld [vmem:[%s21841_s8] sm:$0xff]  }
 0x5e7   : > { %v20135_v23 = vpop.f32.mrf.mxu1  ;;  %7748 = vmatprep.subr.bf16.mxu0 %v7523_v29  ;;  %v20137_v32 = vpack.c.bf16 %v7480_v2, %v7476_v30  ;;  %v7180_v59 = vpop.f32.mrf.mxu0  ;;  %v22999_v30 = vld [vmem:[#allocation240_spill] sm:$0xff] }
 0x5e8   : > { %v7306_v14 = vadd.f32 %v7258_v60, %v22994_v21  ;;  %v7444_v27 = vmul.f32 0.01, %v7364_v15  ;;  %vm7404_vm11 = vcmp.gt.f32.partialorder %v7364_v15, 0.0  ;;  %v22998_v60 = vld [vmem:[#allocation239_spill] sm:$0xff] }
 0x5e9   : > { %v7263_v54 = vpop.f32.mrf.mxu1  ;;  %12692 = vmatmul.mubr.msk.bf16.gmra.mxu0 %vm7552_vm9, %v20129_v12  ;;  %v20144_v56 = vpop.f32.mrf.mxu0  ;;  %v5031_v2 = vadd.f32 %v22999_v30, %v22998_v60 }
 0x5ea   : > { %v7368_v3 = vadd.f32 %v20096_v4, %v7306_v14  ;;  %v7264_v11 = vadd.f32 %v7263_v54, %v7180_v59  ;;  %7749 = vmatpush1.bf16.msra.mxu0 %v20022_v7  ;;  %7629 = vmatprep.mubr.bf16.mxu0 %v22992_v36  ;;  %v7484_v43 = vsel %vm7404_vm11, %v7364_v15, %v7444_v27  ;;  %v14457_v15 = vld [vmem:[%s21842_s9 + $0x348] ss:$12 sps:$4 sm:$0xff]   ;;  %v23000_v54 = vld [vmem:[#allocation182_spill] sm:$0xff] }
 0x5eb   : > { %v20147_v35 = vpop.f32.mrf.mxu1  ;;  %7750 = vmatprep.subr.bf16.mxu0 %v20088_v6  ;;  %v7184_v29 = vpop.f32.mrf.mxu0  ;;  %v14462_v59 = vld [vmem:[%s21842_s9 + $0x334] ss:$12 sps:$4 sm:$0xff]   ;;  %v23001_v27 = vld [vmem:[#allocation87_spill] sm:$0xff] }
 0x5ec   : > { %vm7408_vm10 = vcmp.gt.f32.partialorder %v7368_v3, 0.0  ;;  %v7448_v37 = vmul.f32 0.01, %v7368_v3  ;;  %v7310_v20 = vadd.f32 %v7264_v11, %v22995_v46  ;;  %v23002_v11 = vld [vmem:[#allocation40_spill] sm:$0xff] }
 0x5ed   : > { %v7267_v44 = vpop.f32.mrf.mxu1  ;;  %v20158_v39 = vpop.f32.mrf.mxu0 }
 0x5ee   : > { %v7372_v7 = vadd.f32 %v20096_v4, %v7310_v20  ;;  %v7268_v45 = vadd.f32 %v7267_v44, %v7184_v29  ;;  %7751 = vmatpush1.bf16.msra.mxu0 %v20012_v52  ;;  %v7488_v6 = vsel %vm7408_vm10, %v7368_v3, %v7448_v37  ;;  %v5011_v3 = vadd.f32 %v23001_v27, %v23000_v54  ;;  %v23003_v20 = vld [vmem:[#allocation183_spill] sm:$0xff]  ;;  %v23004_v29 = vld [vmem:[#allocation37_spill] sm:$0xff] }
 0x5ef   : > { %v20160_v26 = vpop.f32.mrf.mxu1  ;;  %7752 = vmatprep.subr.bf16.mxu0 %v20092_v62  ;;  %v20163_v34 = vpack.c.bf16 %v7488_v6, %v7484_v43  ;;  %v7190_v28 = vpop.f32.mrf.mxu0  ;;  %v5021_v44 = vadd.f32 %v23004_v29, %v23003_v20  ;;  %v23007_v6 = vld [vmem:[#allocation39_spill] sm:$0xff] }
 0x5f0   : > { %v7314_v5 = vadd.f32 %v7268_v45, %v22996_v25  ;;  %v7452_v52 = vmul.f32 0.01, %v7372_v7  ;;  %vm7412_vm0 = vcmp.gt.f32.partialorder %v7372_v7, 0.0  ;;  %v23006_v45 = vld [vmem:[#allocation90_spill] sm:$0xff] }
 0x5f1   : > { %v7273_v53 = vpop.f32.mrf.mxu1  ;;  %12693 = vmatmul.mubr.msk.bf16.gmra.mxu0 %vm7552_vm9, %v20154_v41  ;;  %v7192_v62 = vpop.f32.mrf.mxu0 }
 0x5f2   : > { %v7376_v57 = vadd.f32 %v20096_v4, %v7314_v5  ;;  %v7274_v18 = vadd.f32 %v7273_v53, %v7190_v28  ;;  %7753 = vmatpush1.bf16.msra.mxu0 %v20002_v8  ;;  %7770 = vmatprep.mubr.bf16.mxu0 %v22992_v36  ;;  %v7492_v16 = vsel %vm7412_vm0, %v7372_v7, %v7452_v52  ;;  %v23005_v7 = vld [vmem:[#allocation184_spill] sm:$0xff]  ;;  %v23008_v28 = vld [vmem:[#allocation43_spill] sm:$0xff] }
 0x5f3   : > { %v7275_v19 = vpop.f32.mrf.mxu1  ;;  %8555 = vmatprep.subr.bf16.mxu0 %v14459_v9  ;;  %v7194_v42 = vpop.f32.mrf.mxu0  ;;  %v5041_v43 = vadd.f32 %v23006_v45, %v23005_v7  ;;  %v5920_v9 = vadd.f32 %v23007_v6, %v5031_v2  ;;  %v23009_v53 = vld [vmem:[#allocation95_spill] sm:$0xff] }
 0x5f4   : > { %vm7416_vm8 = vcmp.gt.f32.partialorder %v7376_v57, 0.0  ;;  %v7456_v58 = vmul.f32 0.01, %v7376_v57  ;;  %v7318_v17 = vadd.f32 %v7274_v18, %v22997_v33  ;;  %v5001_v52 = vadd.f32 %v23009_v53, %v23008_v28  ;;  %v14460_v33 = vld [vmem:[%s21842_s9 + $0x330] ss:$12 sps:$4 sm:$0xff]   ;;  %v23015_v7 = vld [vmem:[#allocation243_spill] sm:$0xff] }
 0x5f5   : > { %v7277_v31 = vpop.f32.mrf.mxu1  ;;  %v7196_v10 = vpop.f32.mrf.mxu0  ;;  %v14465_v2 = vld [vmem:[%s21842_s9 + $0x31c] ss:$12 sps:$4 sm:$0xff]   ;;  %v7276_v29 = vadd.f32 %v7275_v19, %v7192_v62 }
 0x5f6   : > { %v7380_v24 = vadd.f32 %v20096_v4, %v7318_v17  ;;  %v7278_v8 = vadd.f32 %v7277_v31, %v7194_v42  ;;  %v7496_v49 = vsel %vm7416_vm8, %v7376_v57, %v7456_v58  ;;  %v23010_v17 = vld [vmem:[#allocation94_spill] sm:$0xff]  ;;  %v23011_v31 = vld [vmem:[#allocation188_spill] sm:$0xff]  ;;  %v23017_v19 = vld [vmem:[#allocation21_spill] sm:$0xff]  ;;  %vm23028_vm8 = vsmask.f32 7424 }
 0x5f7   : > { %v7279_v21 = vpop.f32.mrf.mxu1  ;;  %v20186_v14 = vpack.c.bf16 %v7496_v49, %v7492_v16  ;;  %v7200_v46 = vpop.f32.mrf.mxu0  ;;  %v5900_v42 = vadd.f32 %v23010_v17, %v5011_v3  ;;  %v23012_v16 = vld [vmem:[#allocation41_spill] sm:$0xff]  ;;  %v7270_v3 = vadd.f32 %v20160_v26, %v20158_v39  ;;  %v23016_v26 = vld [vmem:[#allocation92_spill] sm:$0xff] }
 0x5f8   : > { %v7322_v37 = vadd.f32 %v7278_v8, %v23002_v11  ;;  %v7460_v25 = vmul.f32 0.01, %v7380_v24  ;;  %vm7420_vm14 = vcmp.gt.f32.partialorder %v7380_v24, 0.0  ;;  %v5910_v8 = vadd.f32 %v23011_v31, %v5021_v44  ;;  %v14463_v39 = vld [vmem:[%s21842_s9 + $0x318] ss:$12 sps:$4 sm:$0xff]   ;;  %v23021_v31 = vld [vmem:[#allocation60_spill] sm:$0xff] }
 0x5f9   : > { %v7283_v5 = vpop.f32.mrf.mxu1  ;;  %12700 = vmatmul.mubr.msk.bf16.vlgmr.msra.gmra.mxu0 %vm7552_vm9, %v20178_v13  ;;  %v7202_v58 = vpop.f32.mrf.mxu0  ;;  %v5930_v49 = vadd.f32 %v23012_v16, %v5041_v43  ;;  %v7280_v60 = vadd.f32 %v7279_v21, %v7196_v10  ;;  %v20222_v21 = vld [vmem:[%s21841_s8 + $0x8] sm:$0xff]   ;;  %v5890_v62 = vadd.f32 %v23016_v26, %v5001_v52  ;;  %v7260_v52 = vadd.f32 %v20135_v23, %v20133_v50 }
 0x5fa   : > { %v7384_v57 = vadd.f32 %v20096_v4, %v7322_v37  ;;  %v7284_v18 = vadd.f32 %v7283_v5, %v7200_v46  ;;  %7780 = vmatprep.mubr.bf16.mxu0 %v22992_v36  ;;  %8556 = vmatpush1.bf16.msra.mxu0 %v14457_v15  ;;  %v23013_v15 = vld [vmem:[#allocation242_spill] sm:$0xff]  ;;  %v23014_v46 = vld [vmem:[#allocation241_spill] sm:$0xff]  ;;  %v7500_v10 = vsel %vm7420_vm14, %v7380_v24, %v7460_v25  ;;  %v23018_v24 = vsub.s32 3, %v23017_v19  ;;  %v23026_v19 = vld [vmem:[#allocation187_spill] sm:$0xff] }
 0x5fb   : > { %v7285_v30 = vpop.f32.mrf.mxu1  ;;  %8557 = vmatprep.subr.bf16.mxu0 %v14462_v59  ;;  %v7204_v37 = vpop.f32.mrf.mxu0  ;;  %v6003_v20 = vadd.f32 %v23014_v46, %v5920_v9  ;;  %v14466_v50 = vld [vmem:[%s21842_s9 + $0x300] ss:$12 sps:$4 sm:$0xff]   ;;  %v7250_v23 = vadd.f32 %v20114_v63, %v20112_v40  ;;  %vm23029_vm14 = vmmov %vm23028_vm8 }
 0x5fc   : > { %vm7424_vm2 = vcmp.gt.f32.partialorder %v7384_v57, 0.0  ;;  %v7464_v54 = vmul.f32 0.01, %v7384_v57  ;;  %v7326_v27 = vadd.f32 %v7284_v18, %v23013_v15  ;;  %v7286_v11 = vadd.f32 %v7285_v30, %v7202_v58  ;;  %v23019_v18 = vld [vmem:[#allocation189_spill] sm:$0xff]  ;;  %v23023_v15 = vld [vmem:[#allocation236_spill] sm:$0xff] }
 0x5fd   : > { %v7287_v44 = vpop.f32.mrf.mxu1  ;;  %v7206_v6 = vpop.f32.mrf.mxu0  ;;  %v20233_v9 = vrot.slane %v19974_v0, %v23018_v24  ;;  %v7323_v25 = vadd.f32 %v7280_v60, %v6003_v20  ;;  %v5993_v58 = vadd.f32 %v23019_v18, %v5910_v8  ;;  %v7266_v0 = vadd.f32 %v20147_v35, %v20144_v56  ;;  %v23022_v60 = vld [vmem:[#allocation91_spill] sm:$0xff]  ;;  %v23024_v20 = vld [vmem:[#allocation46_spill] sm:$0xff] }
 0x5fe   : > { %v7388_v59 = vadd.f32 %v20096_v4, %v7326_v27  ;;  %v7327_v45 = vadd.f32 %v7286_v11, %v23015_v7  ;;  %v7288_v43 = vadd.f32 %v7287_v44, %v7204_v37  ;;  %v7504_v5 = vsel %vm7424_vm2, %v7384_v57, %v7464_v54  ;;  %8558 = vmatpush1.bf16.msra.mxu0 %v14460_v33  ;;  %v14468_v57 = vld [vmem:[%s21842_s9 + $0x304] ss:$12 sps:$4 sm:$0xff]   ;;  %v23020_v33 = vld [vmem:[#allocation93_spill] sm:$0xff]  ;;  %vm23030_vm2 = vmmov %vm23028_vm8 }
 0x5ff   : > { %v7289_v28 = vpop.f32.mrf.mxu1  ;;  %v20235_v53 = vpack.c.bf16 %v7504_v5, %v7500_v10  ;;  %8559 = vmatprep.subr.bf16.mxu0 %v14465_v2  ;;  %v6013_v17 = vadd.f32 %v23020_v33, %v5930_v49  ;;  %v7319_v30 = vadd.f32 %v7276_v29, %v23022_v60  ;;  %v5983_v8 = vadd.f32 %v23023_v15, %v5900_v42  ;;  %v14471_v42 = vld [vmem:[%s21842_s9 + $0x2ec] ss:$12 sps:$4 sm:$0xff]   ;;  %v20271_v44 = vld [vmem:[%s21841_s8 + $0x10] ss:$0 sps:$4 sm:$0xff]  }
 0x600   : > { %v7330_v16 = vadd.f32 %v7288_v43, %v23021_v31  ;;  %v7389_v2 = vadd.f32 %v20233_v9, %v7327_v45  ;;  %v7290_v54 = vadd.f32 %v7289_v28, %v7206_v6  ;;  %v7315_v27 = vadd.f32 %v7270_v3, %v5993_v58  ;;  %v14474_v45 = vld [vmem:[%s21842_s9 + $0x2d4] ss:$12 sps:$4 sm:$0xff]   ;;  %v23027_v31 = vld [vmem:[#allocation185_spill] sm:$0xff] }
 0x601   : > { %12701 = vmatmul.mubr.msk.bf16.gmra.mxu0 %vm7552_vm9, %v20222_v21  ;;  %v7468_v49 = vmul.f32 0.01, %v7388_v59  ;;  %v7385_v56 = vadd.f32 %v20233_v9, %v7323_v25  ;;  %vm7428_vm13 = vcmp.gt.f32.partialorder %v7388_v59, 0.0  ;;  %v7307_v37 = vadd.f32 %v7260_v52, %v5983_v8  ;;  %v14477_v52 = vld [vmem:[%s21842_s9 + $0x2bc] ss:$12 sps:$4 sm:$0xff]  }
 0x602   : > { %v7392_v11 = vadd.f32 %v20096_v4, %v7330_v16  ;;  %7790 = vmatprep.mubr.bf16.mxu0 %v22992_v36  ;;  %8560 = vmatpush1.bf16.msra.mxu0 %v14463_v39  ;;  %v7331_v35 = vadd.f32 %v7290_v54, %v6013_v17  ;;  %v7256_v4 = vadd.f32 %v20123_v48, %v20120_v55  ;;  %v7469_v40 = vmul.f32 0.01, %v7389_v2  ;;  %v14469_v48 = vld [vmem:[%s21842_s9 + $0x2e8] ss:$12 sps:$4 sm:$0xff]   ;;  %v23025_v39 = vld [vmem:[#allocation186_spill] sm:$0xff] }
 0x603   : > { %8561 = vmatprep.subr.bf16.mxu0 %v14468_v57  ;;  %v7311_v3 = vadd.f32 %v7266_v0, %v23024_v20  ;;  %v7381_v29 = vadd.f32 %v20233_v9, %v7319_v30  ;;  %v7377_v10 = vadd.f32 %v20233_v9, %v7315_v27  ;;  %v7508_v7 = vsel %vm7428_vm13, %v7388_v59, %v7468_v49  ;;  %v14475_v8 = vld [vmem:[%s21842_s9 + $0x2b8] ss:$12 sps:$4 sm:$0xff]   ;;  %vm23031_vm13 = vmmov %vm23030_vm2 }
 0x604   : > { %vm7432_vm4 = vcmp.gt.f32.partialorder %v7392_v11, 0.0  ;;  %v7472_v46 = vmul.f32 0.01, %v7392_v11  ;;  %v7393_v63 = vadd.f32 %v20233_v9, %v7331_v35  ;;  %vm7429_vm5 = vcmp.gt.f32.partialorder %v7389_v2, 0.0 }
 0x605   : > { %v7465_v5 = vmul.f32 0.01, %v7385_v56  ;;  %v5973_v26 = vadd.f32 %v23025_v39, %v5890_v62  ;;  %v7246_v59 = vadd.f32 %v20101_v47, %v20099_v51  ;;  %v7303_v24 = vadd.f32 %v7256_v4, %v23026_v19  ;;  %v14472_v62 = vld [vmem:[%s21842_s9 + $0x2d0] ss:$12 sps:$4 sm:$0xff]   ;;  %v14502_v39 = vld [vmem:[%s21842_s9 + $0x360] ss:$12 sps:$4 sm:$0xff]  }
 0x606   : > { %v7512_v55 = vsel %vm7432_vm4, %v7392_v11, %v7472_v46  ;;  %8562 = vmatpush1.bf16.msra.mxu0 %v14466_v50  ;;  %v7473_v43 = vmul.f32 0.01, %v7393_v63  ;;  %vm7433_vm15 = vcmp.gt.f32.partialorder %v7393_v63, 0.0  ;;  %vm7425_vm1 = vcmp.gt.f32.partialorder %v7385_v56, 0.0  ;;  %v14480_v50 = vld [vmem:[%s21842_s9 + $0x2a4] ss:$12 sps:$4 sm:$0xff]   ;;  %vm23032_vm4 = vmmov %vm23030_vm2 }
 0x607   : > { %v7532_v6 = vpack.c.bf16 %v7512_v55, %v7508_v7  ;;  %8563 = vmatprep.subr.bf16.mxu0 %v14471_v42  ;;  %v7373_v25 = vadd.f32 %v20233_v9, %v7311_v3  ;;  %v7461_v28 = vmul.f32 0.01, %v7381_v29  ;;  %v7509_v57 = vsel %vm7429_vm5, %v7389_v2, %v7469_v40  ;;  %v14478_v42 = vld [vmem:[%s21842_s9 + $0x2a0] ss:$12 sps:$4 sm:$0xff]   ;;  %v14513_v19 = vld [vmem:[%s21842_s9 + $0x498] ss:$12 sps:$4 sm:$0xff]   ;;  %vm23033_vm5 = vmmov %vm23030_vm2 }
 0x608   : > { %v7513_v18 = vsel %vm7433_vm15, %v7393_v63, %v7473_v43  ;;  %vm7421_vm3 = vcmp.gt.f32.partialorder %v7381_v29, 0.0  ;;  %v7299_v51 = vadd.f32 %v7250_v23, %v5973_v26  ;;  %v7369_v47 = vadd.f32 %v20233_v9, %v7307_v37  ;;  %v14481_v63 = vld [vmem:[%s21842_s9 + $0x408] ss:$12 sps:$4 sm:$0xff]   ;;  %v14495_v55 = vld [vmem:[%s21842_s9 + $0x3ac] ss:$12 sps:$4 sm:$0xff]   ;;  %vm23034_vm15 = vmmov %vm23030_vm2 }
 0x609   : > { %12702 = vmatmul.mubr.msk.bf16.gmra.mxu0 %vm7552_vm9, %v20271_v44  ;;  %v7533_v58 = vpack.c.bf16 %v7513_v18, %v7509_v57  ;;  %v7505_v33 = vsel %vm7425_vm1, %v7385_v56, %v7465_v5  ;;  %v7457_v17 = vmul.f32 0.01, %v7377_v10  ;;  %v7295_v16 = vadd.f32 %v7246_v59, %v23027_v31  ;;  %v14486_v7 = vld [vmem:[%s21842_s9 + $0x3f4] ss:$12 sps:$4 sm:$0xff]   ;;  %v14499_v43 = vld [vmem:[%s21842_s9 + $0x378] ss:$12 sps:$4 sm:$0xff]   ;;  %vm23035_vm1 = vmmov %vm23030_vm2 }
 0x60a   : > { %8564 = vmatpush1.bf16.msra.mxu0 %v14469_v48  ;;  %vm7417_vm12 = vcmp.gt.f32.partialorder %v7377_v10, 0.0  ;;  %v7365_v60 = vadd.f32 %v20233_v9, %v7303_v24  ;;  %v7453_v30 = vmul.f32 0.01, %v7373_v25  ;;  %v7572_v2 = vand.u32 %v20078_v38, %v7532_v6  ;;  %v14496_v48 = vld [vmem:[%s21842_s9 + $0x390] ss:$12 sps:$4 sm:$0xff]  }
 0x60b   : > { %8565 = vmatprep.subr.bf16.mxu0 %v14474_v45  ;;  %v7575_v0 = vand.u32 %v20078_v38, %v7533_v58  ;;  %v7501_v54 = vsel %vm7421_vm3, %v7381_v29, %v7461_v28  ;;  %vm7413_vm6 = vcmp.gt.f32.partialorder %v7373_v25, 0.0  ;;  %v7361_v27 = vadd.f32 %v20233_v9, %v7299_v51  ;;  %v14501_v45 = vld [vmem:[%s21842_s9 + $0x37c] ss:$12 sps:$4 sm:$0xff]   ;;  %v14507_v5 = vld [vmem:[%s21842_s9 + $0x4cc] ss:$12 sps:$4 sm:$0xff]  }
 0x60c   : > { %v7529_v15 = vpack.c.bf16 %v7505_v33, %v7501_v54  ;;  %v7497_v49 = vsel %vm7417_vm12, %v7377_v10, %v7457_v17  ;;  %v7449_v11 = vmul.f32 0.01, %v7369_v47  ;;  %vm7409_vm7 = vcmp.gt.f32.partialorder %v7369_v47, 0.0  ;;  %v14483_v10 = vld [vmem:[%s21842_s9 + $0x40c] ss:$12 sps:$4 sm:$0xff]  }
 0x60d   : > { %7644 = vmatprep.subr.bf16.mxu1 %v7575_v0  ;;  %v7357_v38 = vadd.f32 %v20233_v9, %v7295_v16  ;;  %v7445_v23 = vmul.f32 0.01, %v7365_v60  ;;  %v7493_v56 = vsel %vm7413_vm6, %v7373_v25, %v7453_v30  ;;  %vm7405_vm11 = vcmp.gt.f32.partialorder %v7365_v60, 0.0  ;;  %v14505_v6 = vld [vmem:[%s21842_s9 + $0x4c8] ss:$12 sps:$4 sm:$0xff]  }
 0x60e   : > { %8566 = vmatpush1.bf16.msra.mxu0 %v14472_v62  ;;  %7645 = vmatpush1.bf16.msra.mxu1 %v7572_v2  ;;  %v7525_v35 = vpack.c.bf16 %v7497_v49, %v7493_v56  ;;  %v7489_v4 = vsel %vm7409_vm7, %v7369_v47, %v7449_v11  ;;  %v7441_v37 = vmul.f32 0.01, %v7361_v27  ;;  %vm7401_vm10 = vcmp.gt.f32.partialorder %v7361_v27, 0.0  ;;  %v14509_v26 = vld [vmem:[%s21842_s9 + $0x4b0] ss:$12 sps:$4 sm:$0xff]  }
 0x60f   : > { %8567 = vmatprep.subr.bf16.mxu0 %v14477_v52  ;;  %7646 = vmatprep.subr.bf16.mxu1 %v7529_v15  ;;  %v7437_v46 = vmul.f32 0.01, %v7357_v38  ;;  %v7485_v20 = vsel %vm7405_vm11, %v7365_v60, %v7445_v23  ;;  %vm7397_vm0 = vcmp.gt.f32.partialorder %v7357_v38, 0.0  ;;  %v14515_v59 = vld [vmem:[%s21842_s9 + $0x49c] ss:$12 sps:$4 sm:$0xff]   ;;  %vm14904_vm3 = vmmov 0  }
 0x610   : > { %v7521_v3 = vpack.c.bf16 %v7489_v4, %v7485_v20  ;;  %v7481_v9 = vsel %vm7401_vm10, %v7361_v27, %v7441_v37  ;;  %v14519_v24 = vld [vmem:[%s21842_s9 + $0x484] ss:$12 sps:$4 sm:$0xff]   ;;  %v14517_v25 = vld [vmem:[%s21842_s9 + $0x480] ss:$12 sps:$4 sm:$0xff]   ;;  %v14521_v28 = vld [vmem:[%s21842_s9 + $0x468] ss:$12 sps:$4 sm:$0xff]  }
 0x611   : > { %v7477_v29 = vsel %vm7397_vm0, %v7357_v38, %v7437_v46  ;;  %v14525_v57 = vld [vmem:[%s21842_s9 + $0x450] ss:$12 sps:$4 sm:$0xff]   ;;  %v14527_v18 = vld [vmem:[%s21842_s9 + $0x454] ss:$12 sps:$4 sm:$0xff]   ;;  %v14529_v62 = vld [vmem:[%s21842_s9 + $0x438] ss:$12 sps:$4 sm:$0xff]  }
 0x612   : > { %8568 = vmatpush1.bf16.msra.mxu0 %v14475_v8  ;;  %7647 = vmatpush1.bf16.msra.mxu1 %v20235_v53  ;;  %v7517_v40 = vpack.c.bf16 %v7481_v9, %v7477_v29  ;;  %v14531_v58 = vld [vmem:[%s21842_s9 + $0x43c] ss:$12 sps:$4 sm:$0xff]   ;;  %v14535_v51 = vld [vmem:[%s21842_s9 + $0x424] ss:$12 sps:$4 sm:$0xff]   ;;  %v14533_v47 = vld [vmem:[%s21842_s9 + $0x420] ss:$12 sps:$4 sm:$0xff]  }
 0x613   : > { %8569 = vmatprep.subr.bf16.mxu0 %v14480_v50  ;;  %7648 = vmatprep.subr.bf16.mxu1 %v7525_v35  ;;  %v14539_v33 = vld [vmem:[%s21842_s9 + $0x52c] ss:$12 sps:$4 sm:$0xff]   ;;  %v14537_v17 = vld [vmem:[%s21842_s9 + $0x528] ss:$12 sps:$4 sm:$0xff]   ;;  %v14541_v31 = vld [vmem:[%s21842_s9 + $0x510] ss:$12 sps:$4 sm:$0xff]  }
 0x614   : > { %v14543_v52 = vld [vmem:[%s21842_s9 + $0x514] ss:$12 sps:$4 sm:$0xff]   ;;  %v14547_v16 = vld [vmem:[%s21842_s9 + $0x4fc] ss:$12 sps:$4 sm:$0xff]   ;;  %v14551_v60 = vld [vmem:[%s21842_s9 + $0x4e4] ss:$12 sps:$4 sm:$0xff]  }
 0x615   : > { %v14549_v30 = vld [vmem:[%s21842_s9 + $0x4e0] ss:$12 sps:$4 sm:$0xff]  }
 0x616   : > { %8570 = vmatpush1.bf16.msra.mxu0 %v14478_v42  ;;  %7649 = vmatpush1.bf16.msra.mxu1 %v20186_v14 }
 0x617   : > { %7650 = vmatprep.subr.bf16.mxu1 %v7521_v3  ;;  %8571 = vmatprep.subr.bf16.mxu0 %v14483_v10  ;;  %v14508_v10 = vld [vmem:[%s21842_s9 + $0x4d0] ss:$12 sps:$4 sm:$0xff]  }
 0x61a   : > { %7651 = vmatpush1.bf16.msra.mxu1 %v20163_v34  ;;  %8572 = vmatpush2.bf16.msra.mxu0 %v14481_v63 }
 0x61b   : > { %7652 = vmatprep.subr.bf16.mxu1 %v7517_v40  ;;  %8573 = vmatprep.subr.bf16.mxu0 %v14486_v7 }
 0x61e   : > { %7653 = vmatpush1.bf16.msra.mxu1 %v20137_v32 }
 0x61f   : > { %7805 = vmatprep.subr.bf16.mxu1 %v7575_v0  ;;  %v14545_v0 = vld [vmem:[%s21842_s9 + $0x4f8] ss:$12 sps:$4 sm:$0xff]  }
 0x621   : > { %12694 = vmatmul.mubr.msk.bf16.vlgmr.msra.gmra.mxu1 %vm7552_vm9, %v20108_v1  ;;  %v14484_v1 = vld [vmem:[%s21842_s9 + $0x3f0] ss:$12 sps:$4 sm:$0xff]  }
 0x622   : > { %7806 = vmatpush1.bf16.msra.mxu1 %v7572_v2  ;;  %7680 = vmatprep.mubr.bf16.mxu1 %v22992_v36  ;;  %v14553_v2 = vld [vmem:[%s21842_s9 + $0x410] ss:$12 sps:$4 sm:$0xff]  }
 0x623   : > { %7807 = vmatprep.subr.bf16.mxu1 %v7529_v15  ;;  %8574 = vmatpush2.bf16.msra.mxu0 %v14484_v1 }
 0x626   : > { %7808 = vmatpush1.bf16.msra.mxu1 %v20235_v53  ;;  %v14489_v53 = vld [vmem:[%s21842_s9 + $0x3dc] ss:$12 sps:$4 sm:$0xff]  }
 0x627   : > { %7809 = vmatprep.subr.bf16.mxu1 %v7525_v35  ;;  %8575 = vmatprep.subr.bf16.mxu0 %v14489_v53  ;;  %v14512_v53 = vld [vmem:[%s21842_s9 + $0x4b8] ss:$12 sps:$4 sm:$0xff]  }
 0x629   : > { %12695 = vmatmul.mubr.msk.bf16.gmra.mxu1 %vm7552_vm9, %v20129_v12  ;;  %v14487_v12 = vld [vmem:[%s21842_s9 + $0x3d8] ss:$12 sps:$4 sm:$0xff]  }
 0x62a   : > { %7810 = vmatpush1.bf16.msra.mxu1 %v20186_v14  ;;  %7690 = vmatprep.mubr.bf16.mxu1 %v22992_v36  ;;  %v14492_v14 = vld [vmem:[%s21842_s9 + $0x3c4] ss:$12 sps:$4 sm:$0xff]  }
 0x62b   : > { %7811 = vmatprep.subr.bf16.mxu1 %v7521_v3  ;;  %8576 = vmatpush2.bf16.msra.mxu0 %v14487_v12 }
 0x62c   : > { %8577 = vmatprep.subr.bf16.mxu0 %v14492_v14 }
 0x62e   : > { %7812 = vmatpush1.bf16.msra.mxu1 %v20163_v34  ;;  %v14490_v34 = vld [vmem:[%s21842_s9 + $0x3c0] ss:$12 sps:$4 sm:$0xff]  }
 0x62f   : > { %7813 = vmatprep.subr.bf16.mxu1 %v7517_v40  ;;  %8578 = vmatpush2.bf16.msra.mxu0 %v14490_v34 }
 0x630   : > { %8579 = vmatprep.subr.bf16.mxu0 %v14495_v55  ;;  %v14516_v55 = vld [vmem:[%s21842_s9 + $0x4a0] ss:$12 sps:$4 sm:$0xff]  }
 0x631   : > { %12696 = vmatmul.mubr.msk.bf16.gmra.mxu1 %vm7552_vm9, %v20154_v41  ;;  %v14493_v41 = vld [vmem:[%s21842_s9 + $0x3a8] ss:$12 sps:$4 sm:$0xff]  }
 0x632   : > { %7814 = vmatpush1.bf16.msra.mxu1 %v20137_v32  ;;  %7831 = vmatprep.mubr.bf16.mxu1 %v22992_v36  ;;  %v14498_v32 = vld [vmem:[%s21842_s9 + $0x394] ss:$12 sps:$4 sm:$0xff]  }
 0x633   : > { %8580 = vmatpush2.bf16.msra.mxu0 %v14493_v41  ;;  %8616 = vmatprep.subr.bf16.mxu1 %v14507_v5 }
 0x634   : > { %8581 = vmatprep.subr.bf16.mxu0 %v14498_v32 }
 0x637   : > { %8582 = vmatpush2.bf16.msra.mxu0 %v14496_v48 }
 0x638   : > { %8583 = vmatprep.subr.bf16.mxu0 %v14501_v45  ;;  %v14520_v45 = vld [vmem:[%s21842_s9 + $0x488] ss:$12 sps:$4 sm:$0xff]  }
 0x639   : > { %12703 = vmatmul.mubr.msk.bf16.vlgmr.msra.gmra.mxu1 %vm7552_vm9, %v20178_v13  ;;  %v14504_v13 = vld [vmem:[%s21842_s9 + $0x364] ss:$12 sps:$4 sm:$0xff]  }
 0x63a   : > { %7841 = vmatprep.mubr.bf16.mxu1 %v22992_v36  ;;  %8617 = vmatpush1.bf16.msra.mxu1 %v14505_v6 }
 0x63b   : > { %8584 = vmatpush2.bf16.msra.mxu0 %v14499_v43 }
 0x63c   : > { %8585 = vmatprep.subr.bf16.mxu0 %v14504_v13 }
 0x63f   : > { %8586 = vmatpush2.bf16.msra.mxu0 %v14502_v39  ;;  %v14524_v39 = vld [vmem:[%s21842_s9 + $0x470] ss:$12 sps:$4 sm:$0xff]  }
 0x640   : > { %8733 = vmatprep.subr.bf16.mxu0 %v22992_v36 }
 0x641   : > { %12704 = vmatmul.mubr.msk.bf16.gmra.mxu1 %vm7552_vm9, %v20222_v21  ;;  %v14511_v21 = vld [vmem:[%s21842_s9 + $0x4b4] ss:$12 sps:$4 sm:$0xff]  }
 0x642   : > { %7851 = vmatprep.mubr.bf16.mxu1 %v22992_v36  ;;  %8618 = vmatprep.subr.bf16.mxu1 %v14511_v21  ;;  %v14528_v21 = vld [vmem:[%s21842_s9 + $0x458] ss:$12 sps:$4 sm:$0xff]  }
 0x643   : > { %8619 = vmatpush1.bf16.msra.mxu1 %v14509_v26  ;;  %v14532_v26 = vld [vmem:[%s21842_s9 + $0x440] ss:$12 sps:$4 sm:$0xff]  }
 0x644   : > { %8620 = vmatprep.subr.bf16.mxu1 %v14515_v59  ;;  %v14536_v59 = vld [vmem:[%s21842_s9 + $0x428] ss:$12 sps:$4 sm:$0xff]  }
 0x647   : > { %8621 = vmatpush1.bf16.msra.mxu1 %v14513_v19  ;;  %v14540_v19 = vld [vmem:[%s21842_s9 + $0x530] ss:$12 sps:$4 sm:$0xff]  }
 0x648   : > { %8622 = vmatprep.subr.bf16.mxu1 %v14519_v24 }
 0x649   : > { %12705 = vmatmul.mubr.msk.bf16.gmra.mxu1 %vm7552_vm9, %v20271_v44  ;;  %v14523_v44 = vld [vmem:[%s21842_s9 + $0x46c] ss:$12 sps:$4 sm:$0xff]   ;;  %vm8545_vm9 = vcmask 523264  }
 0x64b   : > { %8623 = vmatpush1.bf16.msra.mxu1 %v14517_v25 }
 0x64c   : > { %8624 = vmatprep.subr.bf16.mxu1 %v14523_v44 }
 0x64f   : > { %8625 = vmatpush1.bf16.msra.mxu1 %v14521_v28  ;;  %v14544_v28 = vld [vmem:[%s21842_s9 + $0x518] ss:$12 sps:$4 sm:$0xff]  }
 0x650   : > { %8626 = vmatprep.subr.bf16.mxu1 %v14527_v18 }
 0x653   : > { %8627 = vmatpush1.bf16.msra.mxu1 %v14525_v57 }
 0x654   : > { %8628 = vmatprep.subr.bf16.mxu1 %v14531_v58  ;;  %v14548_v58 = vld [vmem:[%s21842_s9 + $0x500] ss:$12 sps:$4 sm:$0xff]  }
 0x657   : > { %8629 = vmatpush1.bf16.msra.mxu1 %v14529_v62 }
 0x658   : > { %8630 = vmatprep.subr.bf16.mxu1 %v14535_v51 }
 0x65b   : > { %8631 = vmatpush1.bf16.msra.mxu1 %v14533_v47  ;;  %v14552_v47 = vld [vmem:[%s21842_s9 + $0x4e8] ss:$12 sps:$4 sm:$0xff]  }
 0x65c   : > { %8640 = vmatprep.subr.bf16.mxu1 %v14539_v33  ;;  %v14556_v33 = vld [vmem:[%s21842_s9 + $0x22c] ss:$12 sps:$4 sm:$0xff]  }
 0x65f   : > { %8641 = vmatpush2.bf16.msra.mxu1 %v14537_v17 }
 0x660   : > { %8642 = vmatprep.subr.bf16.mxu1 %v14543_v52 }
 0x663   : > { %8643 = vmatpush2.bf16.msra.mxu1 %v14541_v31 }
 0x664   : > { %8644 = vmatprep.subr.bf16.mxu1 %v14547_v16 }
 0x667   : > { %8645 = vmatpush2.bf16.msra.mxu1 %v14545_v0 }
 0x668   : > { %8646 = vmatprep.subr.bf16.mxu1 %v14551_v60 }
 0x66b   : > { %8647 = vmatpush2.bf16.msra.mxu1 %v14549_v30 }
 0x66c   : > { %13388 = vmatprep.subr.bf16.mxu1 %v14553_v2 }
 0x6a1   : > { %v7611_v54 = vpop.f32.mrf.mxu0 }
 0x6a3   : > { %v20459_v15 = vpop.f32.mrf.mxu0 }
 0x6a5   : > { %v7615_v8 = vpop.f32.mrf.mxu0 }
 0x6a6   : > { %v20461_v27 = vpack.c.bf16 %v7615_v8, %v7611_v54 }
 0x6a7   : > { %v20463_v49 = vpop.f32.mrf.mxu0 }
 0x6a9   : > { %v7621_v11 = vpop.f32.mrf.mxu0 }
 0x6ab   : > { %v7623_v50 = vpop.f32.mrf.mxu0 }
 0x6ad   : > { %v7625_v38 = vpop.f32.mrf.mxu0 }
 0x6ae   : > { %v20465_v23 = vpack.c.bf16 %v7625_v38, %v7621_v11  ;;  %v14554_v38 = vld [vmem:[%s21842_s9 + $0x228] ss:$12 sps:$4 sm:$0xff]  }
 0x6af   : > { %v7627_v56 = vpop.f32.mrf.mxu0 }
 0x6b0   : > { %v20467_v35 = vpack.c.bf16 %v7627_v56, %v7623_v50  ;;  %v14557_v56 = vld [vmem:[%s21842_s9 + $0x350] ss:$12 sps:$4 sm:$0xff]  }
 0x6b1   : > { %v20469_v42 = vpop.f32.mrf.mxu0 }
 0x6b3   : > { %v20471_v4 = vpop.f32.mrf.mxu0 }
 0x6b5   : > { %v7635_v37 = vpop.f32.mrf.mxu0 }
 0x6b7   : > { %v7636_v46 = vpop.f32.mrf.mxu0 }
 0x6b9   : > { %v7772_v20 = vpop.f32.mrf.mxu0 }
 0x6bb   : > { %v7774_v3 = vpop.f32.mrf.mxu0 }
 0x6bd   : > { %v7776_v9 = vpop.f32.mrf.mxu0 }
 0x6be   : > { %v20473_v29 = vpack.c.bf16 %v7776_v9, %v7772_v20  ;;  %v14558_v20 = vld [vmem:[%s21842_s9 + $0x3f8] ss:$12 sps:$4 sm:$0xff]  }
 0x6bf   : > { %v7778_v40 = vpop.f32.mrf.mxu0 }
 0x6c0   : > { %v20475_v63 = vpack.c.bf16 %v7778_v40, %v7774_v3  ;;  %v14561_v3 = vld [vmem:[%s21842_s9 + $0x214] ss:$12 sps:$4 sm:$0xff]   ;;  %v14559_v40 = vld [vmem:[%s21842_s9 + $0x210] ss:$12 sps:$4 sm:$0xff]  }
 0x6c1   : > { %v7782_v1 = vpop.f32.mrf.mxu0 }
 0x6c2   : > { %8587 = vmatprep.mubr.bf16.mxu0 %v20475_v63 }
 0x6c3   : > { %8588 = vmatmul.mubr.bf16.vlgmr.msra.gmra.mxu0 %v20473_v29  ;;  %v7784_v7 = vpop.f32.mrf.mxu0 }
 0x6c4   : > { %8734 = vmatpush1.bf16.msra.mxu0 %v14508_v10  ;;  %v14562_v10 = vld [vmem:[%s21842_s9 + $0x338] ss:$12 sps:$4 sm:$0xff]  }
 0x6c5   : > { %8735 = vmatprep.subr.bf16.mxu0 %v22992_v36  ;;  %v7786_v12 = vpop.f32.mrf.mxu0 }
 0x6c6   : > { %v20486_v14 = vpack.c.bf16 %v7786_v12, %v7782_v1 }
 0x6c7   : > { %v7788_v34 = vpop.f32.mrf.mxu0 }
 0x6c8   : > { %8736 = vmatpush1.bf16.msra.mxu0 %v14512_v53  ;;  %v20491_v41 = vpack.c.bf16 %v7788_v34, %v7784_v7  ;;  %v14563_v7 = vld [vmem:[%s21842_s9 + $0x3e0] ss:$12 sps:$4 sm:$0xff]   ;;  %v14566_v53 = vld [vmem:[%s21842_s9 + $0x1fc] ss:$12 sps:$4 sm:$0xff]  }
 0x6c9   : > { %8737 = vmatprep.subr.bf16.mxu0 %v22992_v36  ;;  %v7792_v32 = vpop.f32.mrf.mxu0 }
 0x6ca   : > { %8597 = vmatprep.mubr.bf16.mxu0 %v20491_v41  ;;  %v20503_v6 = vpack.c.bf16 %v7792_v32, %v7792_v32  ;;  %v14564_v32 = vld [vmem:[%s21842_s9 + $0x1f8] ss:$12 sps:$4 sm:$0xff]  }
 0x6cb   : > { %8598 = vmatmul.mubr.bf16.gmra.mxu0 %v20486_v14  ;;  %v7794_v48 = vpop.f32.mrf.mxu0 }
 0x6cc   : > { %8738 = vmatpush1.bf16.msra.mxu0 %v14516_v55  ;;  %v20499_v43 = vpack.c.bf16 %v7794_v48, %v7794_v48  ;;  %v14567_v48 = vld [vmem:[%s21842_s9 + $0x320] ss:$12 sps:$4 sm:$0xff]  }
 0x6cd   : > { %8739 = vmatprep.subr.bf16.mxu0 %v22992_v36  ;;  %v7796_v13 = vpop.f32.mrf.mxu0 }
 0x6ce   : > { %8607 = vmatprep.mubr.bf16.mxu0 %v20499_v43  ;;  %v14568_v13 = vld [vmem:[%s21842_s9 + $0x3c8] ss:$12 sps:$4 sm:$0xff]  }
 0x6cf   : > { %v7797_v5 = vpop.f32.mrf.mxu0 }
 0x6d0   : > { %8740 = vmatpush1.bf16.msra.mxu0 %v14520_v45  ;;  %v14571_v5 = vld [vmem:[%s21842_s9 + $0x1e4] ss:$12 sps:$4 sm:$0xff]  }
 0x6d1   : > { %8741 = vmatprep.subr.bf16.mxu0 %v22992_v36 }
 0x6d3   : > { %8608 = vmatmul.mubr.bf16.gmra.mxu0 %v20503_v6 }
 0x6d4   : > { %8742 = vmatpush1.bf16.msra.mxu0 %v14524_v39 }
 0x6d5   : > { %8743 = vmatprep.subr.bf16.mxu0 %v22992_v36 }
 0x6d8   : > { %8744 = vmatpush1.bf16.msra.mxu0 %v14528_v21  ;;  %v14569_v21 = vld [vmem:[%s21842_s9 + $0x1e0] ss:$12 sps:$4 sm:$0xff]  }
 0x6d9   : > { %8745 = vmatprep.subr.bf16.mxu0 %v22992_v36 }
 0x6dc   : > { %8746 = vmatpush1.bf16.msra.mxu0 %v14532_v26 }
 0x6dd   : > { %8747 = vmatprep.subr.bf16.mxu0 %v22992_v36 }
 0x6e0   : > { %8748 = vmatpush1.bf16.msra.mxu0 %v14536_v59  ;;  %v14572_v59 = vld [vmem:[%s21842_s9 + $0x308] ss:$12 sps:$4 sm:$0xff]  }
 0x6e1   : > { %8757 = vmatprep.subr.bf16.mxu0 %v22992_v36  ;;  %v7672_v24 = vpop.f32.mrf.mxu1 }
 0x6e3   : > { %v20526_v25 = vpop.f32.mrf.mxu1 }
 0x6e4   : > { %8758 = vmatpush2.bf16.msra.mxu0 %v14540_v19  ;;  %v14573_v19 = vld [vmem:[%s21842_s9 + $0x3b0] ss:$12 sps:$4 sm:$0xff]  }
 0x6e5   : > { %8759 = vmatprep.subr.bf16.mxu0 %v22992_v36  ;;  %v7676_v44 = vpop.f32.mrf.mxu1 }
 0x6e6   : > { %v20532_v57 = vpack.c.bf16 %v7676_v44, %v7672_v24  ;;  %v14576_v24 = vld [vmem:[%s21842_s9 + $0x1cc] ss:$12 sps:$4 sm:$0xff]  }
 0x6e7   : > { %v20534_v18 = vpop.f32.mrf.mxu1 }
 0x6e8   : > { %8760 = vmatpush2.bf16.msra.mxu0 %v14544_v28 }
 0x6e9   : > { %8761 = vmatprep.subr.bf16.mxu0 %v22992_v36  ;;  %v7682_v62 = vpop.f32.mrf.mxu1 }
 0x6eb   : > { %v20540_v51 = vpop.f32.mrf.mxu1 }
 0x6ec   : > { %8762 = vmatpush2.bf16.msra.mxu0 %v14548_v58 }
 0x6ed   : > { %8763 = vmatprep.subr.bf16.mxu0 %v22992_v36  ;;  %v7686_v17 = vpop.f32.mrf.mxu1 }
 0x6ee   : > { %v20549_v52 = vpack.c.bf16 %v7686_v17, %v7682_v62  ;;  %v14574_v62 = vld [vmem:[%s21842_s9 + $0x1c8] ss:$12 sps:$4 sm:$0xff]  }
 0x6ef   : > { %v20551_v31 = vpop.f32.mrf.mxu1  ;;  %v14581_v17 = vld [vmem:[%s21842_s9 + $0x1b4] ss:$12 sps:$4 sm:$0xff]  }
 0x6f0   : > { %8764 = vmatpush2.bf16.msra.mxu0 %v14552_v47  ;;  %v14577_v47 = vld [vmem:[%s21842_s9 + $0x2f0] ss:$12 sps:$4 sm:$0xff]  }
 0x6f1   : > { %9307 = vmatprep.subr.bf16.mxu0 %v14556_v33  ;;  %v20553_v16 = vpop.f32.mrf.mxu1  ;;  %v14578_v33 = vld [vmem:[%s21842_s9 + $0x398] ss:$12 sps:$4 sm:$0xff]  }
 0x6f3   : > { %v20555_v0 = vpop.f32.mrf.mxu1 }
 0x6f5   : > { %v7696_v60 = vpop.f32.mrf.mxu1 }
 0x6f6   : > { %v20625_v60 = vpack.c.bf16 %v20534_v18, %v20526_v25  ;;  %v14583_v25 = vld [vmem:[%s21842_s9 + $0x380] ss:$12 sps:$4 sm:$0xff]   ;;  %v14586_v18 = vld [vmem:[%s21842_s9 + $0x19c] ss:$12 sps:$4 sm:$0xff]  }
 0x6f7   : > { %v7697_v30 = vpop.f32.mrf.mxu1 }
 0x6f8   : > { %v14579_v30 = vld [vmem:[%s21842_s9 + $0x1b0] ss:$12 sps:$4 sm:$0xff]  }
 0x6f9   : > { %v7833_v2 = vpop.f32.mrf.mxu1 }
 0x6fb   : > { %v7835_v54 = vpop.f32.mrf.mxu1 }
 0x6fd   : > { %v7837_v8 = vpop.f32.mrf.mxu1 }
 0x6fe   : > { %v7862_v37 = vpack.c.bf16 %v7837_v8, %v7833_v2  ;;  %v14582_v2 = vld [vmem:[%s21842_s9 + $0x2d8] ss:$12 sps:$4 sm:$0xff]   ;;  %v14587_v8 = vld [vmem:[%s21842_s9 + $0x2c0] ss:$12 sps:$4 sm:$0xff]  }
 0x6ff   : > { %v7839_v11 = vpop.f32.mrf.mxu1 }
 0x700   : > { %v7863_v50 = vpack.c.bf16 %v7839_v11, %v7835_v54  ;;  %v14584_v54 = vld [vmem:[%s21842_s9 + $0x198] ss:$12 sps:$4 sm:$0xff]   ;;  %v14588_v11 = vld [vmem:[%s21842_s9 + $0x368] ss:$12 sps:$4 sm:$0xff]  }
 0x701   : > { %v7843_v46 = vpop.f32.mrf.mxu1 }
 0x702   : > { %12902 = vmatprep.mubr.msk.bf16.mxu1 %vm8545_vm9, %v7863_v50  ;;  %12905 = vmatprep.mubr.msk.bf16.mxu0 %vm8545_vm9, %v7863_v50  ;;  %v14589_v50 = vld [vmem:[%s21842_s9 + $0x180] ss:$12 sps:$4 sm:$0xff]  }
 0x703   : > { %v7845_v9 = vpop.f32.mrf.mxu1  ;;  %8649 = vmatmul.mubr.bf16.vlgmr.msra.gmra.mxu1 %v7862_v37  ;;  %8766 = vmatmul.mubr.bf16.vlgmr.msra.gmra.mxu0 %v7862_v37  ;;  %v14598_v37 = vld [vmem:[%s21842_s9 + $0x28c] ss:$12 sps:$4 sm:$0xff]  }
 0x704   : > { %13389 = vmatpush3.bf16.msra.mxu1 %v14557_v56  ;;  %9308 = vmatpush1.bf16.msra.mxu0 %v14554_v38  ;;  %v14592_v38 = vld [vmem:[%s21842_s9 + $0x2a8] ss:$12 sps:$4 sm:$0xff]   ;;  %v14595_v56 = vld [vmem:[%s21842_s9 + $0xac] ss:$12 sps:$4 sm:$0xff]  }
 0x705   : > { %v7847_v1 = vpop.f32.mrf.mxu1  ;;  %13390 = vmatprep.subr.bf16.mxu1 %v14558_v20  ;;  %9309 = vmatprep.subr.bf16.mxu0 %v14561_v3  ;;  %v14596_v20 = vld [vmem:[%s21842_s9 + $0x288] ss:$12 sps:$4 sm:$0xff]  }
 0x706   : > { %v7866_v12 = vpack.c.bf16 %v7847_v1, %v7843_v46  ;;  %v14593_v46 = vld [vmem:[%s21842_s9 + $0xa8] ss:$12 sps:$4 sm:$0xff]  }
 0x707   : > { %v7849_v34 = vpop.f32.mrf.mxu1  ;;  %v14601_v3 = vld [vmem:[%s21842_s9 + $0x94] ss:$12 sps:$4 sm:$0xff]   ;;  %v14607_v1 = vld [vmem:[%s21842_s9 + $0x7c] ss:$12 sps:$4 sm:$0xff]  }
 0x708   : > { %v7867_v55 = vpack.c.bf16 %v7849_v34, %v7845_v9  ;;  %13391 = vmatpush3.bf16.msra.mxu1 %v14562_v10  ;;  %9310 = vmatpush1.bf16.msra.mxu0 %v14559_v40  ;;  %v14604_v9 = vld [vmem:[%s21842_s9 + $0x274] ss:$12 sps:$4 sm:$0xff]   ;;  %v14599_v40 = vld [vmem:[%s21842_s9 + $0x90] ss:$12 sps:$4 sm:$0xff]  }
 0x709   : > { %13392 = vmatprep.subr.bf16.mxu1 %v14563_v7  ;;  %9311 = vmatprep.subr.bf16.mxu0 %v14566_v53  ;;  %v7853_v45 = vpop.f32.mrf.mxu1  ;;  %v14602_v10 = vld [vmem:[%s21842_s9 + $0x270] ss:$12 sps:$4 sm:$0xff]   ;;  %v14605_v7 = vld [vmem:[%s21842_s9 + $0x78] ss:$12 sps:$4 sm:$0xff]   ;;  %v14611_v34 = vld [vmem:[%s21842_s9 + $0x60] ss:$12 sps:$4 sm:$0xff]  }
 0x70a   : > { %12906 = vmatprep.mubr.msk.bf16.mxu0 %vm8545_vm9, %v7867_v55  ;;  %12903 = vmatprep.mubr.msk.bf16.mxu1 %vm8545_vm9, %v7867_v55  ;;  %v7870_v44 = vpack.c.bf16 %v7853_v45, %v7853_v45  ;;  %v14608_v53 = vld [vmem:[%s21842_s9 + $0x258] ss:$12 sps:$4 sm:$0xff]   ;;  %v14614_v55 = vld [vmem:[%s21842_s9 + $0x240] ss:$12 sps:$4 sm:$0xff]   ;;  %v20724_v45 = vpack.c.bf16 %v20463_v49, %v20459_v15  ;;  %v14621_v15 = vld [vmem:[%s21842_s9 + $0x30] ss:$12 sps:$4 sm:$0xff]  }
 0x70b   : > { %8774 = vmatmul.mubr.bf16.gmra.mxu0 %v7866_v12  ;;  %v7855_v39 = vpop.f32.mrf.mxu1  ;;  %8659 = vmatmul.mubr.bf16.gmra.mxu1 %v7866_v12  ;;  %v14613_v12 = vld [vmem:[%s21842_s9 + $0x64] ss:$12 sps:$4 sm:$0xff]  }
 0x70c   : > { %13393 = vmatpush3.bf16.msra.mxu1 %v14567_v48  ;;  %9312 = vmatpush1.bf16.msra.mxu0 %v14564_v32  ;;  %v7871_v26 = vpack.c.bf16 %v7855_v39, %v7855_v39  ;;  %v14619_v32 = vld [vmem:[%s21842_s9 + $0x4c] ss:$12 sps:$4 sm:$0xff]   ;;  %v14620_v48 = vld [vmem:[%s21842_s9 + $0x230] ss:$12 sps:$4 sm:$0xff]   ;;  %v20759_v39 = vpack.c.bf16 %v20555_v0, %v20555_v0 }
 0x70d   : > { %13394 = vmatprep.subr.bf16.mxu1 %v14568_v13  ;;  %9313 = vmatprep.subr.bf16.mxu0 %v14571_v5  ;;  %v7857_v28 = vpop.f32.mrf.mxu1  ;;  %v20731_v13 = vpack.c.bf16 %v20551_v31, %v20540_v51  ;;  %v14624_v49 = vld [vmem:[%s21842_s9 + $0x218] ss:$12 sps:$4 sm:$0xff]   ;;  %v14628_v31 = vld [vmem:[%s21842_s9 + $0x200] ss:$12 sps:$4 sm:$0xff]  }
 0x70e   : > { %12907 = vmatprep.mubr.msk.bf16.mxu0 %vm8545_vm9, %v7871_v26  ;;  %12904 = vmatprep.mubr.msk.bf16.mxu1 %vm8545_vm9, %v7871_v26  ;;  %v14625_v51 = vld [vmem:[%s21842_s9 + $0x18] ss:$12 sps:$4 sm:$0xff]   ;;  %v14632_v26 = vld [vmem:[%s21842_s9 + $0x1e8] ss:$12 sps:$4 sm:$0xff]  }
 0x70f   : > { %v7858_v58 = vpop.f32.mrf.mxu1  ;;  %v14631_v5 = vld [vmem:[%s21842_s9 + $0x4] ss:$12 sps:$4 sm:$0xff]   ;;  %v14635_v0 = vld [vmem:[%s21842_s9 + $0x16c] ss:$12 sps:$4 sm:$0xff]   ;;  %v14639_v28 = vld [vmem:[%s21842_s9 + $0x154] ss:$12 sps:$4 sm:$0xff]  }
 0x710   : > { %13395 = vmatpush3.bf16.msra.mxu1 %v14572_v59  ;;  %9314 = vmatpush1.bf16.msra.mxu0 %v14569_v21  ;;  %v14629_v21 = vld [vmem:[%s21842_s9] ss:$12 sps:$4 sm:$0xff]   ;;  %v14633_v59 = vld [vmem:[%s21842_s9 + $0x168] ss:$12 sps:$4 sm:$0xff]  }
 0x711   : > { %13396 = vmatprep.subr.bf16.mxu1 %v14573_v19  ;;  %9315 = vmatprep.subr.bf16.mxu0 %v14576_v24  ;;  %v20780_v19 = vpack.c.bf16 %v20553_v16, %v20553_v16  ;;  %v14636_v24 = vld [vmem:[%s21842_s9 + $0x1d0] ss:$12 sps:$4 sm:$0xff]  }
 0x712   : > { %v14637_v16 = vld [vmem:[%s21842_s9 + $0x150] ss:$12 sps:$4 sm:$0xff]  }
 0x713   : > { %8782 = vmatmul.mubr.bf16.gmra.mxu0 %v7870_v44  ;;  %8669 = vmatmul.mubr.bf16.gmra.mxu1 %v7870_v44  ;;  %v14640_v44 = vld [vmem:[%s21842_s9 + $0x1b8] ss:$12 sps:$4 sm:$0xff]   ;;  %v14643_v58 = vld [vmem:[%s21842_s9 + $0x13c] ss:$12 sps:$4 sm:$0xff]  }
 0x714   : > { %13397 = vmatpush3.bf16.msra.mxu1 %v14577_v47  ;;  %9316 = vmatpush1.bf16.msra.mxu0 %v14574_v62  ;;  %v14641_v62 = vld [vmem:[%s21842_s9 + $0x138] ss:$12 sps:$4 sm:$0xff]   ;;  %v14644_v47 = vld [vmem:[%s21842_s9 + $0x1a0] ss:$12 sps:$4 sm:$0xff]  }
 0x715   : > { %12992 = vmatprep.mubr.msk.bf16.mxu0 %vm8545_vm9, %v20625_v60  ;;  %13398 = vmatprep.subr.bf16.mxu1 %v14578_v33  ;;  %v14647_v33 = vld [vmem:[%s21842_s9 + $0x124] ss:$12 sps:$4 sm:$0xff]  }
 0x716   : > { %9317 = vmatprep.subr.bf16.mxu0 %v14581_v17  ;;  %8709 = vmatprep.mubr.bf16.mxu1 %v20475_v63  ;;  %v14591_v63 = vld [vmem:[%s21842_s9 + $0x184] ss:$12 sps:$4 sm:$0xff]   ;;  %v14645_v17 = vld [vmem:[%s21842_s9 + $0x120] ss:$12 sps:$4 sm:$0xff]  }
 0x718   : > { %13399 = vmatpush3.bf16.msra.mxu1 %v14582_v2  ;;  %9318 = vmatpush1.bf16.msra.mxu0 %v14579_v30  ;;  %v14648_v30 = vld [vmem:[%s21842_s9 + $0x188] ss:$12 sps:$4 sm:$0xff]   ;;  %v14651_v2 = vld [vmem:[%s21842_s9 + $0x10c] ss:$12 sps:$4 sm:$0xff]  }
 0x719   : > { %13400 = vmatprep.subr.bf16.mxu1 %v14583_v25  ;;  %9319 = vmatprep.subr.bf16.mxu0 %v14586_v18  ;;  %v14649_v25 = vld [vmem:[%s21842_s9 + $0x108] ss:$12 sps:$4 sm:$0xff]   ;;  %v14652_v18 = vld [vmem:[%s21842_s9 + $0x290] ss:$12 sps:$4 sm:$0xff]  }
 0x71c   : > { %13401 = vmatpush3.bf16.msra.mxu1 %v14587_v8  ;;  %9320 = vmatpush1.bf16.msra.mxu0 %v14584_v54  ;;  %v14655_v54 = vld [vmem:[%s21842_s9 + $0xf4] ss:$12 sps:$4 sm:$0xff]   ;;  %v14653_v8 = vld [vmem:[%s21842_s9 + $0xf0] ss:$12 sps:$4 sm:$0xff]  }
 0x71d   : > { %13402 = vmatprep.subr.bf16.mxu1 %v14588_v11  ;;  %9321 = vmatprep.subr.bf16.mxu0 %v14591_v63  ;;  %v14656_v11 = vld [vmem:[%s21842_s9 + $0x278] ss:$12 sps:$4 sm:$0xff]   ;;  %v14659_v63 = vld [vmem:[%s21842_s9 + $0xdc] ss:$12 sps:$4 sm:$0xff]  }
 0x720   : > { %13403 = vmatpush3.bf16.msra.mxu1 %v14592_v38  ;;  %9322 = vmatpush1.bf16.msra.mxu0 %v14589_v50  ;;  %v14657_v50 = vld [vmem:[%s21842_s9 + $0xd8] ss:$12 sps:$4 sm:$0xff]   ;;  %v14660_v38 = vld [vmem:[%s21842_s9 + $0x260] ss:$12 sps:$4 sm:$0xff]  }
 0x721   : > { %9246 = vmatprep.subr.bf16.mxu1 %v14595_v56  ;;  %9331 = vmatprep.subr.bf16.mxu0 %v14598_v37  ;;  %v14663_v56 = vld [vmem:[%s21842_s9 + $0xc4] ss:$12 sps:$4 sm:$0xff]   ;;  %v14661_v37 = vld [vmem:[%s21842_s9 + $0xc0] ss:$12 sps:$4 sm:$0xff]  }
 0x723   : > { %8710 = vmatmul.mubr.bf16.vlgmr.msra.gmra.mxu1 %v20473_v29  ;;  %v14610_v29 = vld [vmem:[%s21842_s9 + $0x25c] ss:$12 sps:$4 sm:$0xff]  }
 0x724   : > { %9247 = vmatpush1.bf16.msra.mxu1 %v14593_v46  ;;  %9332 = vmatpush2.bf16.msra.mxu0 %v14596_v20  ;;  %v14664_v46 = vld [vmem:[%s21842_s9 + $0x248] ss:$12 sps:$4 sm:$0xff]   ;;  %v14665_v20 = vld [vmem:[%s21842_s9 + $0x170] ss:$12 sps:$4 sm:$0xff]  }
 0x725   : > { %9248 = vmatprep.subr.bf16.mxu1 %v14601_v3  ;;  %9333 = vmatprep.subr.bf16.mxu0 %v14604_v9  ;;  %v14668_v3 = vld [vmem:[%s21842_s9 + $0x76c] ss:$12 sps:$4 sm:$0xff]   ;;  %v14669_v9 = vld [vmem:[%s21842_s9 + $0xb0] ss:$12 sps:$4 sm:$0xff]  }
 0x726   : > { %8717 = vmatprep.mubr.bf16.mxu1 %v20491_v41  ;;  %v14616_v41 = vld [vmem:[%s21842_s9 + $0x244] ss:$12 sps:$4 sm:$0xff]  }
 0x728   : > { %9249 = vmatpush1.bf16.msra.mxu1 %v14599_v40  ;;  %9334 = vmatpush2.bf16.msra.mxu0 %v14602_v10  ;;  %v14666_v40 = vld [vmem:[%s21842_s9 + $0x768] ss:$12 sps:$4 sm:$0xff]   ;;  %v14670_v10 = vld [vmem:[%s21842_s9 + $0x158] ss:$12 sps:$4 sm:$0xff]  }
 0x729   : > { %9250 = vmatprep.subr.bf16.mxu1 %v14607_v1  ;;  %9335 = vmatprep.subr.bf16.mxu0 %v14610_v29  ;;  %v14673_v1 = vld [vmem:[%s21842_s9 + $0x754] ss:$12 sps:$4 sm:$0xff]   ;;  %v14674_v29 = vld [vmem:[%s21842_s9 + $0x98] ss:$12 sps:$4 sm:$0xff]  }
 0x72b   : > { %8718 = vmatmul.mubr.bf16.gmra.mxu1 %v20486_v14  ;;  %v14617_v14 = vld [vmem:[%s21842_s9 + $0x48] ss:$12 sps:$4 sm:$0xff]  }
 0x72c   : > { %9251 = vmatpush1.bf16.msra.mxu1 %v14605_v7  ;;  %9336 = vmatpush2.bf16.msra.mxu0 %v14608_v53  ;;  %v14671_v7 = vld [vmem:[%s21842_s9 + $0x750] ss:$12 sps:$4 sm:$0xff]   ;;  %v14675_v53 = vld [vmem:[%s21842_s9 + $0x140] ss:$12 sps:$4 sm:$0xff]  }
 0x72d   : > { %9252 = vmatprep.subr.bf16.mxu1 %v14613_v12  ;;  %9337 = vmatprep.subr.bf16.mxu0 %v14616_v41  ;;  %v14678_v12 = vld [vmem:[%s21842_s9 + $0x73c] ss:$12 sps:$4 sm:$0xff]   ;;  %v14679_v41 = vld [vmem:[%s21842_s9 + $0x80] ss:$12 sps:$4 sm:$0xff]  }
 0x72e   : > { %8725 = vmatprep.mubr.bf16.mxu1 %v20499_v43  ;;  %v14623_v43 = vld [vmem:[%s21842_s9 + $0x34] ss:$12 sps:$4 sm:$0xff]  }
 0x730   : > { %9253 = vmatpush1.bf16.msra.mxu1 %v14611_v34  ;;  %9338 = vmatpush2.bf16.msra.mxu0 %v14614_v55  ;;  %v20899_v34 = vpack.c.bf16 %v20471_v4, %v20471_v4  ;;  %v9631_v55 = vshll.u32 %v20625_v60, 16  ;;  %v14683_v4 = vld [vmem:[%s21842_s9 + $0x724] ss:$12 sps:$4 sm:$0xff]  }
 0x731   : > { %9254 = vmatprep.subr.bf16.mxu1 %v14619_v32  ;;  %9424 = vmatprep.subr.bf16.mxu0 %v22992_v36  ;;  %v14676_v32 = vld [vmem:[%s21842_s9 + $0x738] ss:$12 sps:$4 sm:$0xff]  }
 0x733   : > { %8726 = vmatmul.mubr.bf16.gmra.mxu1 %v20503_v6  ;;  %9340 = vmatmul.mubr.bf16.vlgmr.msra.gmra.mxu0 %v20532_v57  ;;  %v14627_v6 = vld [vmem:[%s21842_s9 + $0x1c] ss:$12 sps:$4 sm:$0xff]  }
 0x734   : > { %9255 = vmatpush1.bf16.msra.mxu1 %v14617_v14  ;;  %9278 = vmatprep.mubr.bf16.mxu1 %v20724_v45  ;;  %v14680_v14 = vld [vmem:[%s21842_s9 + $0x128] ss:$12 sps:$4 sm:$0xff]  }
 0x735   : > { %12993 = vmatprep.mubr.msk.bf16.mxu0 %vm8545_vm9, %v20731_v13  ;;  %9425 = vmatpush1.bf16.msra.mxu0 %v14620_v48  ;;  %v9635_v48 = vshll.u32 %v20731_v13, 16 }
 0x736   : > { %9256 = vmatprep.subr.bf16.mxu1 %v14623_v43  ;;  %9426 = vmatprep.subr.bf16.mxu0 %v22992_v36  ;;  %v14684_v43 = vld [vmem:[%s21842_s9 + $0x68] ss:$12 sps:$4 sm:$0xff]  }
 0x738   : > { %9257 = vmatpush1.bf16.msra.mxu1 %v14621_v15  ;;  %v14681_v15 = vld [vmem:[%s21842_s9 + $0x720] ss:$12 sps:$4 sm:$0xff]  }
 0x739   : > { %9427 = vmatpush1.bf16.msra.mxu0 %v14624_v49  ;;  %9258 = vmatprep.subr.bf16.mxu1 %v14627_v6  ;;  %v14685_v49 = vld [vmem:[%s21842_s9 + $0x110] ss:$12 sps:$4 sm:$0xff]   ;;  %v9633_v6 = vrot.slane %v9631_v55, 1 }
 0x73a   : > { %9428 = vmatprep.subr.bf16.mxu0 %v22992_v36 }
 0x73b   : > { %9350 = vmatmul.mubr.bf16.gmra.mxu0 %v20549_v52 }
 0x73c   : > { %9259 = vmatpush1.bf16.msra.mxu1 %v14625_v51  ;;  %12994 = vmatprep.mubr.msk.bf16.mxu0 %vm8545_vm9, %v20759_v39  ;;  %v14688_v51 = vld [vmem:[%s21842_s9 + $0x70c] ss:$12 sps:$4 sm:$0xff]  }
 0x73d   : > { %9429 = vmatpush1.bf16.msra.mxu0 %v14628_v31  ;;  %9260 = vmatprep.subr.bf16.mxu1 %v14631_v5  ;;  %v9629_v31 = vshrl.u32 %v20625_v60, 16  ;;  %v20930_v5 = vrot.slane %v9635_v48, 1  ;;  %v9613_v48 = vshll.u32 %v20467_v35, 16 }
 0x73e   : > { %9430 = vmatprep.subr.bf16.mxu0 %v22992_v36 }
 0x740   : > { %9261 = vmatpush1.bf16.msra.mxu1 %v14629_v21  ;;  %v20934_v21 = vpack.c.bf16 %v20469_v42, %v20469_v42  ;;  %v14693_v42 = vld [vmem:[%s21842_s9 + $0x6f4] ss:$12 sps:$4 sm:$0xff]  }
 0x741   : > { %9431 = vmatpush1.bf16.msra.mxu0 %v14632_v26  ;;  %9262 = vmatprep.subr.bf16.mxu1 %v14635_v0  ;;  %v14689_v26 = vld [vmem:[%s21842_s9 + $0x50] ss:$12 sps:$4 sm:$0xff]   ;;  %v14686_v0 = vld [vmem:[%s21842_s9 + $0x708] ss:$12 sps:$4 sm:$0xff]  }
 0x742   : > { %9432 = vmatprep.subr.bf16.mxu0 %v22992_v36 }
 0x743   : > { %9360 = vmatmul.mubr.bf16.gmra.mxu0 %v20780_v19 }
 0x744   : > { %9263 = vmatpush2.bf16.msra.mxu1 %v14633_v59  ;;  %12995 = vmatprep.mubr.msk.bf16.mxu0 %vm8545_vm9, %v20625_v60  ;;  %v9634_v59 = vor.u32 %v9633_v6, %v9629_v31  ;;  %v14690_v60 = vld [vmem:[%s21842_s9 + $0xf8] ss:$12 sps:$4 sm:$0xff]  }
 0x745   : > { %9433 = vmatpush1.bf16.msra.mxu0 %v14636_v24  ;;  %9264 = vmatprep.subr.bf16.mxu1 %v14639_v28  ;;  %v14694_v28 = vld [vmem:[%s21842_s9 + $0x38] ss:$12 sps:$4 sm:$0xff]  }
 0x746   : > { %9434 = vmatprep.subr.bf16.mxu0 %v22992_v36  ;;  %v20953_v24 = vsel %vm23028_vm8, %v9634_v59, %v20930_v5  ;;  %v14731_v6 = vld [vmem:[%s21842_s9 + $0x58c] ss:$12 sps:$4 sm:$0xff]   ;;  %v14729_v59 = vld [vmem:[%s21842_s9 + $0x588] ss:$12 sps:$4 sm:$0xff]  }
 0x748   : > { %9265 = vmatpush2.bf16.msra.mxu1 %v14637_v16  ;;  %v14691_v16 = vld [vmem:[%s21842_s9 + $0x6f0] ss:$12 sps:$4 sm:$0xff]  }
 0x749   : > { %9435 = vmatpush1.bf16.msra.mxu0 %v14640_v44  ;;  %9266 = vmatprep.subr.bf16.mxu1 %v14643_v58  ;;  %v14695_v44 = vld [vmem:[%s21842_s9 + $0xe0] ss:$12 sps:$4 sm:$0xff]   ;;  %v14698_v58 = vld [vmem:[%s21842_s9 + $0x6dc] ss:$12 sps:$4 sm:$0xff]  }
 0x74a   : > { %9436 = vmatprep.subr.bf16.mxu0 %v22992_v36 }
 0x74c   : > { %9267 = vmatpush2.bf16.msra.mxu1 %v14641_v62  ;;  %v14699_v62 = vld [vmem:[%s21842_s9 + $0x20] ss:$12 sps:$4 sm:$0xff]  }
 0x74d   : > { %9437 = vmatpush1.bf16.msra.mxu0 %v14644_v47  ;;  %9268 = vmatprep.subr.bf16.mxu1 %v14647_v33  ;;  %v14696_v47 = vld [vmem:[%s21842_s9 + $0x6d8] ss:$12 sps:$4 sm:$0xff]   ;;  %v14700_v33 = vld [vmem:[%s21842_s9 + $0xc8] ss:$12 sps:$4 sm:$0xff]  }
 0x74e   : > { %9438 = vmatprep.subr.bf16.mxu0 %v22992_v36 }
 0x750   : > { %9269 = vmatpush2.bf16.msra.mxu1 %v14645_v17  ;;  %v14703_v17 = vld [vmem:[%s21842_s9 + $0x6c4] ss:$12 sps:$4 sm:$0xff]  }
 0x751   : > { %9439 = vmatpush1.bf16.msra.mxu0 %v14648_v30  ;;  %9270 = vmatprep.subr.bf16.mxu1 %v14651_v2  ;;  %v14704_v30 = vld [vmem:[%s21842_s9 + $0x8] ss:$12 sps:$4 sm:$0xff]   ;;  %v14701_v2 = vld [vmem:[%s21842_s9 + $0x6c0] ss:$12 sps:$4 sm:$0xff]  }
 0x752   : > { %9448 = vmatprep.subr.bf16.mxu0 %v22992_v36 }
 0x754   : > { %9271 = vmatpush2.bf16.msra.mxu1 %v14649_v25  ;;  %v14707_v25 = vld [vmem:[%s21842_s9 + $0x5ec] ss:$12 sps:$4 sm:$0xff]  }
 0x755   : > { %9449 = vmatpush2.bf16.msra.mxu0 %v14652_v18  ;;  %9272 = vmatprep.subr.bf16.mxu1 %v14655_v54  ;;  %v14710_v18 = vld [vmem:[%s21842_s9 + $0x7cc] ss:$12 sps:$4 sm:$0xff]   ;;  %v14705_v54 = vld [vmem:[%s21842_s9 + $0x5e8] ss:$12 sps:$4 sm:$0xff]  }
 0x756   : > { %9450 = vmatprep.subr.bf16.mxu0 %v22992_v36 }
 0x758   : > { %9273 = vmatpush2.bf16.msra.mxu1 %v14653_v8  ;;  %v14708_v8 = vld [vmem:[%s21842_s9 + $0x7c8] ss:$12 sps:$4 sm:$0xff]  }
 0x759   : > { %9451 = vmatpush2.bf16.msra.mxu0 %v14656_v11  ;;  %9274 = vmatprep.subr.bf16.mxu1 %v14659_v63  ;;  %v14713_v11 = vld [vmem:[%s21842_s9 + $0x5d4] ss:$12 sps:$4 sm:$0xff]  }
 0x75a   : > { %9452 = vmatprep.subr.bf16.mxu0 %v22992_v36 }
 0x75c   : > { %9275 = vmatpush2.bf16.msra.mxu1 %v14657_v50  ;;  %v14716_v50 = vld [vmem:[%s21842_s9 + $0x7b4] ss:$12 sps:$4 sm:$0xff]  }
 0x75d   : > { %9453 = vmatpush2.bf16.msra.mxu0 %v14660_v38  ;;  %9276 = vmatprep.subr.bf16.mxu1 %v14663_v56  ;;  %v14711_v56 = vld [vmem:[%s21842_s9 + $0x5d0] ss:$12 sps:$4 sm:$0xff]  }
 0x75e   : > { %9454 = vmatprep.subr.bf16.mxu0 %v22992_v36 }
 0x760   : > { %9277 = vmatpush2.bf16.msra.mxu1 %v14661_v37  ;;  %v14714_v37 = vld [vmem:[%s21842_s9 + $0x7b0] ss:$12 sps:$4 sm:$0xff]  }
 0x761   : > { %9455 = vmatpush2.bf16.msra.mxu0 %v14664_v46  ;;  %13422 = vmatprep.subr.bf16.mxu1 %v14665_v20  ;;  %v14719_v46 = vld [vmem:[%s21842_s9 + $0x5bc] ss:$12 sps:$4 sm:$0xff]  }
 0x762   : > { %10209 = vmatprep.subr.bf16.mxu0 %v14668_v3  ;;  %v14722_v3 = vld [vmem:[%s21842_s9 + $0x79c] ss:$12 sps:$4 sm:$0xff]  }
 0x763   : > { %9279 = vmatmul.mubr.bf16.vlgmr.msra.gmra.mxu1 %v20461_v27 }
 0x764   : > { %9457 = vmatmul.mubr.bf16.vlgmr.msra.gmra.mxu0 %v20532_v57  ;;  %9288 = vmatprep.mubr.bf16.mxu1 %v20467_v35 }
 0x765   : > { %13423 = vmatpush3.bf16.msra.mxu1 %v14669_v9  ;;  %12996 = vmatprep.mubr.msk.bf16.mxu0 %vm8545_vm9, %v20731_v13 }
 0x766   : > { %10210 = vmatpush1.bf16.msra.mxu0 %v14666_v40  ;;  %13424 = vmatprep.subr.bf16.mxu1 %v14670_v10  ;;  %v14717_v40 = vld [vmem:[%s21842_s9 + $0x5b8] ss:$12 sps:$4 sm:$0xff]   ;;  %v9608_v10 = vshll.u32 %v20724_v45, 16 }
 0x767   : > { %10211 = vmatprep.subr.bf16.mxu0 %v14673_v1  ;;  %v9620_v1 = vshll.u32 %v20532_v57, 16 }
 0x769   : > { %13425 = vmatpush3.bf16.msra.mxu1 %v14674_v29  ;;  %v14720_v29 = vld [vmem:[%s21842_s9 + $0x798] ss:$12 sps:$4 sm:$0xff]  }
 0x76a   : > { %10212 = vmatpush1.bf16.msra.mxu0 %v14671_v7  ;;  %13426 = vmatprep.subr.bf16.mxu1 %v14675_v53  ;;  %v14725_v7 = vld [vmem:[%s21842_s9 + $0x5a4] ss:$12 sps:$4 sm:$0xff]  }
 0x76b   : > { %9289 = vmatmul.mubr.bf16.gmra.mxu1 %v20465_v23  ;;  %10213 = vmatprep.subr.bf16.mxu0 %v14678_v12  ;;  %v14728_v12 = vld [vmem:[%s21842_s9 + $0x784] ss:$12 sps:$4 sm:$0xff]  }
 0x76c   : > { %9465 = vmatmul.mubr.bf16.gmra.mxu0 %v20549_v52  ;;  %9298 = vmatprep.mubr.bf16.mxu1 %v20899_v34 }
 0x76d   : > { %13427 = vmatpush3.bf16.msra.mxu1 %v14679_v41  ;;  %12997 = vmatprep.mubr.msk.bf16.mxu0 %vm8545_vm9, %v20759_v39  ;;  %v9625_v41 = vshll.u32 %v20549_v52, 16 }
 0x76e   : > { %10214 = vmatpush1.bf16.msra.mxu0 %v14676_v32  ;;  %13428 = vmatprep.subr.bf16.mxu1 %v14680_v14  ;;  %v14723_v32 = vld [vmem:[%s21842_s9 + $0x5a0] ss:$12 sps:$4 sm:$0xff]   ;;  %v9606_v14 = vshrl.u32 %v20724_v45, 16 }
 0x76f   : > { %10215 = vmatprep.subr.bf16.mxu0 %v14683_v4  ;;  %v9610_v4 = vrot.slane %v9608_v10, 1  ;;  %v9627_v31 = vrot.slane %v9625_v41, 1  ;;  %v14747_v10 = vld [vmem:[%s21842_s9 + $0x6ac] ss:$12 sps:$4 sm:$0xff]  }
 0x771   : > { %13429 = vmatpush3.bf16.msra.mxu1 %v14684_v43  ;;  %v9666_v43 = vshll.u32 %v20759_v39, 16 }
 0x772   : > { %10216 = vmatpush1.bf16.msra.mxu0 %v14681_v15  ;;  %13430 = vmatprep.subr.bf16.mxu1 %v14685_v49  ;;  %v9622_v15 = vrot.slane %v9620_v1, 1  ;;  %v14726_v49 = vld [vmem:[%s21842_s9 + $0x780] ss:$12 sps:$4 sm:$0xff]   ;;  %v14744_v1 = vld [vmem:[%s21842_s9 + $0x728] ss:$12 sps:$4 sm:$0xff]  }
 0x773   : > { %9299 = vmatmul.mubr.bf16.gmra.mxu1 %v20934_v21  ;;  %10217 = vmatprep.subr.bf16.mxu0 %v14688_v51 }
 0x774   : > { %9473 = vmatmul.mubr.bf16.gmra.mxu0 %v20780_v19  ;;  %9400 = vmatprep.mubr.bf16.mxu1 %v20724_v45  ;;  %v9618_v45 = vshrl.u32 %v20532_v57, 16 }
 0x775   : > { %13431 = vmatpush3.bf16.msra.mxu1 %v14689_v26  ;;  %13194 = vmatprep.mubr.msk.bf16.mxu0 %vm8545_vm9, %v20953_v24 }
 0x776   : > { %10218 = vmatpush1.bf16.msra.mxu0 %v14686_v0  ;;  %13432 = vmatprep.subr.bf16.mxu1 %v14690_v60  ;;  %v9663_v0 = vshrl.u32 %v20731_v13, 16  ;;  %v9611_v60 = vor.u32 %v9610_v4, %v9606_v14  ;;  %v14732_v13 = vld [vmem:[%s21842_s9 + $0x770] ss:$12 sps:$4 sm:$0xff]   ;;  %v14752_v4 = vld [vmem:[%s21842_s9 + $0x6f8] ss:$12 sps:$4 sm:$0xff]  }
 0x777   : > { %10219 = vmatprep.subr.bf16.mxu0 %v14693_v42  ;;  %v21069_v42 = vrot.slane %v9613_v48, 1  ;;  %v14755_v14 = vld [vmem:[%s21842_s9 + $0x67c] ss:$12 sps:$4 sm:$0xff]   ;;  %v14753_v48 = vld [vmem:[%s21842_s9 + $0x678] ss:$12 sps:$4 sm:$0xff]  }
 0x778   : > { %v9665_v57 = vor.u32 %v9663_v0, %v20930_v5  ;;  %v14764_v0 = vld [vmem:[%s21842_s9 + $0x7d0] ss:$12 sps:$4 sm:$0xff]  }
 0x779   : > { %13433 = vmatpush3.bf16.msra.mxu1 %v14694_v28  ;;  %v9668_v28 = vrot.slane %v9666_v43, 1  ;;  %v21091_v5 = vsel %vm23030_vm2, %v9611_v60, %v21069_v42  ;;  %v14756_v43 = vld [vmem:[%s21842_s9 + $0x6e0] ss:$12 sps:$4 sm:$0xff]   ;;  %v14771_v60 = vld [vmem:[%s21842_s9 + $0x61c] ss:$12 sps:$4 sm:$0xff]  }
 0x77a   : > { %10220 = vmatpush1.bf16.msra.mxu0 %v14691_v16  ;;  %13434 = vmatprep.subr.bf16.mxu1 %v14695_v44  ;;  %v9623_v16 = vor.u32 %v9622_v15, %v9618_v45  ;;  %v14757_v15 = vld [vmem:[%s21842_s9 + $0x660] ss:$12 sps:$4 sm:$0xff]   ;;  %v14761_v45 = vld [vmem:[%s21842_s9 + $0x648] ss:$12 sps:$4 sm:$0xff]  }
 0x77b   : > { %10221 = vmatprep.subr.bf16.mxu0 %v14698_v58  ;;  %v14735_v58 = vld [vmem:[%s21842_s9 + $0x574] ss:$12 sps:$4 sm:$0xff]  }
 0x77d   : > { %13435 = vmatpush3.bf16.msra.mxu1 %v14699_v62  ;;  %v21083_v62 = vsel %vm23029_vm14, %v9623_v16, %v9627_v31  ;;  %v14768_v16 = vld [vmem:[%s21842_s9 + $0x7b8] ss:$12 sps:$4 sm:$0xff]  }
 0x77e   : > { %10222 = vmatpush1.bf16.msra.mxu0 %v14696_v47  ;;  %13436 = vmatprep.subr.bf16.mxu1 %v14700_v33  ;;  %v9659_v47 = vshll.u32 %v20780_v19, 16 }
 0x77f   : > { %10223 = vmatprep.subr.bf16.mxu0 %v14703_v17  ;;  %v21094_v17 = vsel %vm23031_vm13, %v9665_v57, %v9668_v28  ;;  %v14769_v57 = vld [vmem:[%s21842_s9 + $0x618] ss:$12 sps:$4 sm:$0xff]  }
 0x781   : > { %13437 = vmatpush3.bf16.msra.mxu1 %v14704_v30  ;;  %v14733_v30 = vld [vmem:[%s21842_s9 + $0x570] ss:$12 sps:$4 sm:$0xff]  }
 0x782   : > { %10224 = vmatpush1.bf16.msra.mxu0 %v14701_v2  ;;  %10148 = vmatprep.subr.bf16.mxu1 %v14707_v25  ;;  %v14739_v2 = vld [vmem:[%s21842_s9 + $0x55c] ss:$12 sps:$4 sm:$0xff]  }
 0x783   : > { %v21002_v63 = vpop.f32.mrf.mxu0  ;;  %10233 = vmatprep.subr.bf16.mxu0 %v14710_v18  ;;  %v14736_v18 = vld [vmem:[%s21842_s9 + $0x758] ss:$12 sps:$4 sm:$0xff]  }
 0x784   : > { %9401 = vmatmul.mubr.bf16.vlgmr.msra.gmra.mxu1 %v20461_v27 }
 0x785   : > { %v21008_v38 = vpop.f32.mrf.mxu0  ;;  %9408 = vmatprep.mubr.bf16.mxu1 %v20467_v35  ;;  %10149 = vmatpush1.bf16.msra.mxu1 %v14705_v54  ;;  %v9655_v54 = vshrl.u32 %v20549_v52, 16  ;;  %v14740_v52 = vld [vmem:[%s21842_s9 + $0x740] ss:$12 sps:$4 sm:$0xff]  }
 0x786   : > { %10234 = vmatpush2.bf16.msra.mxu0 %v14708_v8  ;;  %10150 = vmatprep.subr.bf16.mxu1 %v14713_v11  ;;  %v9661_v8 = vrot.slane %v9659_v47, 1 }
 0x787   : > { %v21020_v20 = vpop.f32.mrf.mxu0  ;;  %10235 = vmatprep.subr.bf16.mxu0 %v14716_v50  ;;  %v14737_v50 = vld [vmem:[%s21842_s9 + $0x558] ss:$12 sps:$4 sm:$0xff]  }
 0x789   : > { %v21025_v9 = vpop.f32.mrf.mxu0  ;;  %10151 = vmatpush1.bf16.msra.mxu1 %v14711_v56  ;;  %v9679_v56 = vshrl.u32 %v20759_v39, 16  ;;  %v14741_v39 = vld [vmem:[%s21842_s9 + $0x540] ss:$12 sps:$4 sm:$0xff]  }
 0x78a   : > { %10236 = vmatpush2.bf16.msra.mxu0 %v14714_v37  ;;  %10152 = vmatprep.subr.bf16.mxu1 %v14719_v46  ;;  %v9657_v37 = vor.u32 %v9655_v54, %v9627_v31  ;;  %v14743_v46 = vld [vmem:[%s21842_s9 + $0x544] ss:$12 sps:$4 sm:$0xff]   ;;  %v14767_v31 = vld [vmem:[%s21842_s9 + $0x634] ss:$12 sps:$4 sm:$0xff]  }
 0x78b   : > { %v21038_v53 = vpop.f32.mrf.mxu0  ;;  %10237 = vmatprep.subr.bf16.mxu0 %v14722_v3  ;;  %v14773_v54 = vld [vmem:[%s21842_s9 + $0x600] ss:$12 sps:$4 sm:$0xff]  }
 0x78c   : > { %9409 = vmatmul.mubr.bf16.gmra.mxu1 %v20465_v23  ;;  %v21121_v3 = vsel %vm23032_vm4, %v9657_v37, %v9661_v8  ;;  %v14778_v37 = vld [vmem:[%s21842_s9 + $0x5f0] ss:$12 sps:$4 sm:$0xff]   ;;  %vm10488_vm4 = vcmask 1042432  }
 0x78d   : > { %v21045_v55 = vpop.f32.mrf.mxu0  ;;  %9416 = vmatprep.mubr.bf16.mxu1 %v20899_v34  ;;  %10153 = vmatpush1.bf16.msra.mxu1 %v14717_v40  ;;  %v21124_v40 = vor.u32 %v9679_v56, %v9668_v28  ;;  %v9596_v28 = vshll.u32 %v20461_v27, 16 }
 0x78e   : > { %10238 = vmatpush2.bf16.msra.mxu0 %v14720_v29  ;;  %10154 = vmatprep.subr.bf16.mxu1 %v14725_v7  ;;  %v9676_v29 = vshrl.u32 %v20780_v19, 16  ;;  %v14745_v7 = vld [vmem:[%s21842_s9 + $0x6a8] ss:$12 sps:$4 sm:$0xff]   ;;  %v14749_v19 = vld [vmem:[%s21842_s9 + $0x690] ss:$12 sps:$4 sm:$0xff]  }
 0x78f   : > { %v21060_v51 = vpop.f32.mrf.mxu0  ;;  %10239 = vmatprep.subr.bf16.mxu0 %v14728_v12  ;;  %v14751_v12 = vld [vmem:[%s21842_s9 + $0x694] ss:$12 sps:$4 sm:$0xff]   ;;  %v9598_v47 = vrot.slane %v9596_v28, 1  ;;  %v9670_v28 = vshrl.u32 %v20934_v21, 16 }
 0x790   : > { %v21146_v41 = vor.u32 %v9676_v29, %v9661_v8 }
 0x791   : > { %v21063_v26 = vpop.f32.mrf.mxu0  ;;  %10155 = vmatpush1.bf16.msra.mxu1 %v14723_v32  ;;  %v14748_v32 = vld [vmem:[%s21842_s9 + $0x710] ss:$12 sps:$4 sm:$0xff]  }
 0x792   : > { %10240 = vmatpush2.bf16.msra.mxu0 %v14726_v49  ;;  %10156 = vmatprep.subr.bf16.mxu1 %v14731_v6  ;;  %v14763_v49 = vld [vmem:[%s21842_s9 + $0x64c] ss:$12 sps:$4 sm:$0xff]   ;;  %v14760_v6 = vld [vmem:[%s21842_s9 + $0x6c8] ss:$12 sps:$4 sm:$0xff]  }
 0x793   : > { %v21071_v44 = vpop.f32.mrf.mxu0  ;;  %10326 = vmatprep.subr.bf16.mxu0 %v22992_v36 }
 0x794   : > { %9417 = vmatmul.mubr.bf16.gmra.mxu1 %v20934_v21 }
 0x795   : > { %v21086_v33 = vpop.f32.mrf.mxu0  ;;  %10242 = vmatmul.mubr.bf16.vlgmr.msra.gmra.mxu0 %v21083_v62  ;;  %10157 = vmatpush1.bf16.msra.mxu1 %v14729_v59  ;;  %v14765_v59 = vld [vmem:[%s21842_s9 + $0x630] ss:$12 sps:$4 sm:$0xff]  }
 0x796   : > { %10180 = vmatprep.mubr.bf16.mxu1 %v21091_v5  ;;  %13195 = vmatprep.mubr.msk.bf16.mxu0 %vm8545_vm9, %v21094_v17 }
 0x797   : > { %v8613_v25 = vpop.f32.mrf.mxu0  ;;  %10327 = vmatpush1.bf16.msra.mxu0 %v14732_v13  ;;  %10158 = vmatprep.subr.bf16.mxu1 %v14735_v58  ;;  %v14775_v13 = vld [vmem:[%s21842_s9 + $0x604] ss:$12 sps:$4 sm:$0xff]   ;;  %v9594_v58 = vshrl.u32 %v20461_v27, 16 }
 0x798   : > { %10328 = vmatprep.subr.bf16.mxu0 %v22992_v36  ;;  %v9647_v25 = vshrl.u32 %v20467_v35, 16  ;;  %v14777_v27 = vld [vmem:[%s21842_s9 + $0x6b0] ss:$12 sps:$4 sm:$0xff]  }
 0x799   : > { %v8614_v11 = vpop.f32.mrf.mxu0  ;;  %10159 = vmatpush1.bf16.msra.mxu1 %v14733_v30  ;;  %v9601_v30 = vshll.u32 %v20465_v23, 16  ;;  %v9599_v8 = vor.u32 %v9598_v47, %v9594_v58 }
 0x79a   : > { %10160 = vmatprep.subr.bf16.mxu1 %v14739_v2  ;;  %v14772_v2 = vld [vmem:[%s21842_s9 + $0x7a0] ss:$12 sps:$4 sm:$0xff]   ;;  %v9649_v35 = vor.u32 %v9647_v25, %v21069_v42  ;;  %v9643_v42 = vshll.u32 %v20934_v21, 16  ;;  %v14786_v21 = vld [vmem:[%s21842_s9 + $0x590] ss:$12 sps:$4 sm:$0xff]  }
 0x79b   : > { %10329 = vmatpush1.bf16.msra.mxu0 %v14736_v18  ;;  %v9651_v18 = vshll.u32 %v20899_v34, 16  ;;  %v9603_v11 = vrot.slane %v9601_v30, 1 }
 0x79c   : > { %10330 = vmatprep.subr.bf16.mxu0 %v22992_v36 }
 0x79d   : > { %10252 = vmatmul.mubr.bf16.gmra.mxu0 %v21121_v3  ;;  %10161 = vmatpush1.bf16.msra.mxu1 %v14737_v50  ;;  %v14776_v50 = vld [vmem:[%s21842_s9 + $0x788] ss:$12 sps:$4 sm:$0xff]   ;;  %v9653_v56 = vrot.slane %v9651_v18, 1  ;;  %v14788_v18 = vld [vmem:[%s21842_s9 + $0x578] ss:$12 sps:$4 sm:$0xff]  }
 0x79e   : > { %13196 = vmatprep.mubr.msk.bf16.mxu0 %vm8545_vm9, %v21124_v40  ;;  %10162 = vmatprep.subr.bf16.mxu1 %v14743_v46  ;;  %v14779_v46 = vld [vmem:[%s21842_s9 + $0x698] ss:$12 sps:$4 sm:$0xff]  }
 0x79f   : > { %10331 = vmatpush1.bf16.msra.mxu0 %v14740_v52  ;;  %v9639_v52 = vshrl.u32 %v20465_v23, 16  ;;  %v21246_v29 = vsel %vm23034_vm15, %v9649_v35, %v9653_v56  ;;  %v14780_v23 = vld [vmem:[%s21842_s9 + $0x5d8] ss:$12 sps:$4 sm:$0xff]  }
 0x7a0   : > { %10332 = vmatprep.subr.bf16.mxu0 %v22992_v36 }
 0x7a1   : > { %10163 = vmatpush1.bf16.msra.mxu1 %v14741_v39  ;;  %v21239_v39 = vsel %vm23033_vm5, %v9599_v8, %v9603_v11  ;;  %vm10484_vm5 = vcmask 310272  }
 0x7a2   : > { %10164 = vmatprep.subr.bf16.mxu1 %v14747_v10 }
 0x7a3   : > { %10333 = vmatpush1.bf16.msra.mxu0 %v14744_v1 }
 0x7a4   : > { %10334 = vmatprep.subr.bf16.mxu0 %v22992_v36 }
 0x7a5   : > { %10262 = vmatmul.mubr.bf16.gmra.mxu0 %v21146_v41  ;;  %10165 = vmatpush2.bf16.msra.mxu1 %v14745_v7 }
 0x7a6   : > { %13197 = vmatprep.mubr.msk.bf16.mxu0 %vm8545_vm9, %v20953_v24  ;;  %10166 = vmatprep.subr.bf16.mxu1 %v14751_v12  ;;  %v14759_v24 = vld [vmem:[%s21842_s9 + $0x664] ss:$12 sps:$4 sm:$0xff]  }
 0x7a7   : > { %10335 = vmatpush1.bf16.msra.mxu0 %v14748_v32 }
 0x7a8   : > { %10336 = vmatprep.subr.bf16.mxu0 %v22992_v36 }
 0x7a9   : > { %10167 = vmatpush2.bf16.msra.mxu1 %v14749_v19  ;;  %v14781_v19 = vld [vmem:[%s21842_s9 + $0x680] ss:$12 sps:$4 sm:$0xff]  }
 0x7aa   : > { %10168 = vmatprep.subr.bf16.mxu1 %v14755_v14 }
 0x7ab   : > { %10337 = vmatpush1.bf16.msra.mxu0 %v14752_v4  ;;  %v9645_v4 = vrot.slane %v9643_v42, 1 }
 0x7ac   : > { %10338 = vmatprep.subr.bf16.mxu0 %v22992_v36 }
 0x7ad   : > { %10169 = vmatpush2.bf16.msra.mxu1 %v14753_v48  ;;  %v9673_v48 = vshrl.u32 %v20899_v34, 16  ;;  %v9672_v30 = vor.u32 %v9670_v28, %v9645_v4 }
 0x7ae   : > { %10170 = vmatprep.subr.bf16.mxu1 %v14759_v24 }
 0x7af   : > { %10339 = vmatpush1.bf16.msra.mxu0 %v14756_v43 }
 0x7b0   : > { %10340 = vmatprep.subr.bf16.mxu0 %v22992_v36 }
 0x7b1   : > { %10171 = vmatpush2.bf16.msra.mxu1 %v14757_v15  ;;  %v14782_v15 = vld [vmem:[%s21842_s9 + $0x5c0] ss:$12 sps:$4 sm:$0xff]  }
 0x7b2   : > { %10172 = vmatprep.subr.bf16.mxu1 %v14763_v49 }
 0x7b3   : > { %10341 = vmatpush1.bf16.msra.mxu0 %v14760_v6 }
 0x7b4   : > { %10350 = vmatprep.subr.bf16.mxu0 %v22992_v36 }
 0x7b5   : > { %10173 = vmatpush2.bf16.msra.mxu1 %v14761_v45 }
 0x7b6   : > { %10174 = vmatprep.subr.bf16.mxu1 %v14767_v31 }
 0x7b7   : > { %10351 = vmatpush2.bf16.msra.mxu0 %v14764_v0 }
 0x7b8   : > { %10352 = vmatprep.subr.bf16.mxu0 %v22992_v36 }
 0x7b9   : > { %10175 = vmatpush2.bf16.msra.mxu1 %v14765_v59 }
 0x7ba   : > { %10176 = vmatprep.subr.bf16.mxu1 %v14771_v60 }
 0x7bb   : > { %10353 = vmatpush2.bf16.msra.mxu0 %v14768_v16  ;;  %v14785_v16 = vld [vmem:[%s21842_s9 + $0x650] ss:$12 sps:$4 sm:$0xff]  }
 0x7bc   : > { %10354 = vmatprep.subr.bf16.mxu0 %v22992_v36 }
 0x7bd   : > { %10177 = vmatpush2.bf16.msra.mxu1 %v14769_v57 }
 0x7be   : > { %10178 = vmatprep.subr.bf16.mxu1 %v14775_v13 }
 0x7bf   : > { %10355 = vmatpush2.bf16.msra.mxu0 %v14772_v2 }
 0x7c0   : > { %10356 = vmatprep.subr.bf16.mxu0 %v22992_v36 }
 0x7c1   : > { %10179 = vmatpush2.bf16.msra.mxu1 %v14773_v54 }
 0x7c2   : > { %13456 = vmatprep.subr.bf16.mxu1 %v14777_v27 }
 0x7c3   : > { %10357 = vmatpush2.bf16.msra.mxu0 %v14776_v50  ;;  %v8650_v10 = vpop.f32.mrf.mxu1  ;;  %v21242_v1 = vpop.f32.mrf.mxu0 }
 0x7c4   : > { %10181 = vmatmul.mubr.bf16.vlgmr.msra.gmra.mxu1 %v21239_v39  ;;  %v21249_v7 = vadd.f32 %v8650_v10, %v21002_v63  ;;  %v9641_v63 = vor.u32 %v9639_v52, %v9603_v11 }
 0x7c5   : > { %10190 = vmatprep.mubr.bf16.mxu1 %v21246_v29  ;;  %13457 = vmatpush3.bf16.msra.mxu1 %v14778_v37  ;;  %v8652_v12 = vpop.f32.mrf.mxu1  ;;  %v8769_v32 = vpop.f32.mrf.mxu0 }
 0x7c6   : > { %10359 = vmatmul.mubr.bf16.vlgmr.msra.gmra.mxu0 %v21083_v62  ;;  %13458 = vmatprep.subr.bf16.mxu1 %v14779_v46  ;;  %v21260_v14 = vadd.f32 %v8652_v12, %v21008_v38  ;;  %v21280_v6 = vsel %vm23035_vm1, %v9641_v63, %v9645_v4 }
 0x7c7   : > { %13198 = vmatprep.mubr.msk.bf16.mxu0 %vm8545_vm9, %v21094_v17  ;;  %v8654_v24 = vpop.f32.mrf.mxu1  ;;  %v21265_v43 = vpop.f32.mrf.mxu0  ;;  %v14783_v17 = vld [vmem:[%s21842_s9 + $0x668] ss:$12 sps:$4 sm:$0xff]  }
 0x7c8   : > { %v21268_v62 = vadd.f32 %v8654_v24, %v21020_v20  ;;  %v21282_v20 = vor.u32 %v9673_v48, %v9653_v56 }
 0x7c9   : > { %13459 = vmatpush3.bf16.msra.mxu1 %v14780_v23  ;;  %v8656_v38 = vpop.f32.mrf.mxu1  ;;  %v8772_v49 = vpop.f32.mrf.mxu0 }
 0x7ca   : > { %13460 = vmatprep.subr.bf16.mxu1 %v14781_v19  ;;  %v21277_v34 = vadd.f32 %v8656_v38, %v21025_v9  ;;  %v14784_v9 = vld [vmem:[%s21842_s9 + $0x5a8] ss:$12 sps:$4 sm:$0xff]  }
 0x7cb   : > { %v8660_v45 = vpop.f32.mrf.mxu1  ;;  %v21284_v31 = vpop.f32.mrf.mxu0 }
 0x7cc   : > { %10191 = vmatmul.mubr.bf16.gmra.mxu1 %v21280_v6  ;;  %v21288_v0 = vadd.f32 %v8660_v45, %v21038_v53 }
 0x7cd   : > { %10200 = vmatprep.mubr.bf16.mxu1 %v21282_v20  ;;  %13461 = vmatpush3.bf16.msra.mxu1 %v14782_v15  ;;  %v8662_v59 = vpop.f32.mrf.mxu1  ;;  %v8777_v60 = vpop.f32.mrf.mxu0 }
 0x7ce   : > { %10367 = vmatmul.mubr.bf16.gmra.mxu0 %v21121_v3  ;;  %13462 = vmatprep.subr.bf16.mxu1 %v14783_v17  ;;  %v21300_v53 = vadd.f32 %v8662_v59, %v21045_v55  ;;  %v14787_v55 = vld [vmem:[%s21842_s9 + $0x638] ss:$12 sps:$4 sm:$0xff]  }
 0x7cf   : > { %13199 = vmatprep.mubr.msk.bf16.mxu0 %vm8545_vm9, %v21124_v40  ;;  %v8664_v57 = vpop.f32.mrf.mxu1  ;;  %v8778_v13 = vpop.f32.mrf.mxu0 }
 0x7d0   : > { %v21305_v58 = vadd.f32 %v8664_v57, %v21060_v51 }
 0x7d1   : > { %13463 = vmatpush3.bf16.msra.mxu1 %v14784_v9  ;;  %v8666_v3 = vpop.f32.mrf.mxu1  ;;  %v8780_v47 = vpop.f32.mrf.mxu0 }
 0x7d2   : > { %13464 = vmatprep.subr.bf16.mxu1 %v14785_v16  ;;  %v21314_v40 = vadd.f32 %v8666_v3, %v21063_v26  ;;  %v14789_v26 = vld [vmem:[%s21842_s9 + $0x620] ss:$12 sps:$4 sm:$0xff]  }
 0x7d3   : > { %v8670_v2 = vpop.f32.mrf.mxu1  ;;  %v8783_v25 = vpop.f32.mrf.mxu0 }
 0x7d4   : > { %10201 = vmatmul.mubr.bf16.gmra.mxu1 %v9672_v30  ;;  %v21317_v51 = vadd.f32 %v8670_v2, %v21071_v44 }
 0x7d5   : > { %13465 = vmatpush3.bf16.msra.mxu1 %v14786_v21  ;;  %10302 = vmatprep.mubr.bf16.mxu1 %v21091_v5  ;;  %v8672_v54 = vpop.f32.mrf.mxu1  ;;  %v8785_v27 = vpop.f32.mrf.mxu0  ;;  %v14790_v5 = vld [vmem:[%s21842_s9 + $0x560] ss:$12 sps:$4 sm:$0xff]  }
 0x7d6   : > { %10375 = vmatmul.mubr.bf16.gmra.mxu0 %v21146_v41  ;;  %13466 = vmatprep.subr.bf16.mxu1 %v14787_v55  ;;  %v21328_v8 = vadd.f32 %v8672_v54, %v21086_v33  ;;  %v14791_v41 = vld [vmem:[%s21842_s9 + $0x608] ss:$12 sps:$4 sm:$0xff]  }
 0x7d7   : > { %v8674_v44 = vpop.f32.mrf.mxu1  ;;  %v8786_v11 = vpop.f32.mrf.mxu0  ;;  %v14792_v33 = vld [vmem:[%s21842_s9 + $0x548] ss:$12 sps:$4 sm:$0xff]  }
 0x7d9   : > { %13467 = vmatpush3.bf16.msra.mxu1 %v14788_v18  ;;  %v8675_v50 = vpop.f32.mrf.mxu1  ;;  %v8787_v35 = vpop.f32.mrf.mxu0 }
 0x7da   : > { %13468 = vmatprep.subr.bf16.mxu1 %v14789_v26 }
 0x7dd   : > { %13469 = vmatpush3.bf16.msra.mxu1 %v14790_v5 }
 0x7de   : > { %13470 = vmatprep.subr.bf16.mxu1 %v14791_v41 }
 0x7e1   : > { %13471 = vmatpush3.bf16.msra.mxu1 %v14792_v33 }
 0x7e3   : > { %v13404_v56 = vpop.f32.mrf.mxu1 }
 0x7e4   : > { %10303 = vmatmul.mubr.bf16.vlgmr.msra.gmra.mxu1 %v21239_v39 }
 0x7e5   : > { %10310 = vmatprep.mubr.bf16.mxu1 %v21246_v29  ;;  %v13405_v37 = vpop.f32.mrf.mxu1 }
 0x7e6   : > { %v13406_v46 = vadd.f32 %v13405_v37, %v13404_v56 }
 0x7e7   : > { %v13407_v52 = vpop.f32.mrf.mxu1 }
 0x7e8   : > { %v21342_v10 = vadd.f32 %v13406_v46, %v21242_v1 }
 0x7e9   : > { %v13408_v42 = vpop.f32.mrf.mxu1 }
 0x7ea   : > { %v13409_v23 = vadd.f32 %v13408_v42, %v13407_v52 }
 0x7eb   : > { %v13410_v12 = vpop.f32.mrf.mxu1 }
 0x7ec   : > { %v21345_v32 = vadd.f32 %v13409_v23, %v21265_v43  ;;  %10311 = vmatmul.mubr.bf16.gmra.mxu1 %v21280_v6 }
 0x7ed   : > { %10318 = vmatprep.mubr.bf16.mxu1 %v21282_v20  ;;  %v13411_v19 = vpop.f32.mrf.mxu1 }
 0x7ee   : > { %v13412_v39 = vadd.f32 %v13411_v19, %v13410_v12 }
 0x7ef   : > { %v13413_v63 = vpop.f32.mrf.mxu1 }
 0x7f0   : > { %v21350_v29 = vadd.f32 %v13412_v39, %v21284_v31 }
 0x7f1   : > { %v13414_v4 = vpop.f32.mrf.mxu1 }
 0x7f2   : > { %v13415_v48 = vadd.f32 %v13414_v4, %v13413_v63 }
 0x7f3   : > { %v9341_v1 = vpop.f32.mrf.mxu0  ;;  %v13416_v24 = vpop.f32.mrf.mxu1 }
 0x7f4   : > { %10319 = vmatmul.mubr.bf16.gmra.mxu1 %v9672_v30  ;;  %v21352_v15 = vadd.f32 %v13415_v48, %v8778_v13 }
 0x7f5   : > { %v9343_v38 = vpop.f32.mrf.mxu0  ;;  %v13417_v43 = vpop.f32.mrf.mxu1  ;;  %10530 = vmatprep.mubr.bf16.mxu1 %v22992_v36 }
 0x7f6   : > { %v13418_v49 = vadd.f32 %v13417_v43, %v13416_v24 }
 0x7f7   : > { %v9345_v17 = vpop.f32.mrf.mxu0  ;;  %v13419_v6 = vpop.f32.mrf.mxu1 }
 0x7f8   : > { %v21355_v20 = vadd.f32 %v13418_v49, %v8783_v25 }
 0x7f9   : > { %v9347_v45 = vpop.f32.mrf.mxu0  ;;  %v13420_v9 = vpop.f32.mrf.mxu1 }
 0x7fb   : > { %v9351_v31 = vpop.f32.mrf.mxu0 }
 0x7fd   : > { %v9353_v59 = vpop.f32.mrf.mxu0 }
 0x7ff   : > { %v9355_v60 = vpop.f32.mrf.mxu0 }
 0x801   : > { %v9357_v28 = vpop.f32.mrf.mxu0 }
 0x803   : > { %v9361_v16 = vpop.f32.mrf.mxu0 }
 0x805   : > { %v9363_v57 = vpop.f32.mrf.mxu0 }
 0x807   : > { %v9365_v21 = vpop.f32.mrf.mxu0 }
 0x809   : > { %v9366_v13 = vpop.f32.mrf.mxu0 }
 0x823   : > { %v9280_v3 = vpop.f32.mrf.mxu1 }
 0x824   : > { %v9281_v47 = vadd.f32 %v9280_v3, %v21249_v7  ;;  %v9458_v30 = vpop.f32.mrf.mxu0 }
 0x825   : > { %v9282_v55 = vpop.f32.mrf.mxu1 }
 0x826   : > { %v21358_v2 = vadd.f32 %v9341_v1, %v9281_v47  ;;  %v9283_v25 = vadd.f32 %v9282_v55, %v21260_v14  ;;  %v9460_v18 = vpop.f32.mrf.mxu0 }
 0x827   : > { %v9284_v54 = vpop.f32.mrf.mxu1 }
 0x828   : > { %v21361_v27 = vadd.f32 %v9343_v38, %v9283_v25  ;;  %v9285_v26 = vadd.f32 %v9284_v54, %v21268_v62  ;;  %v9461_v44 = vpop.f32.mrf.mxu0 }
 0x829   : > { %v9286_v11 = vpop.f32.mrf.mxu1 }
 0x82a   : > { %v21364_v5 = vadd.f32 %v9345_v17, %v9285_v26  ;;  %v9287_v50 = vadd.f32 %v9286_v11, %v21277_v34  ;;  %v9463_v35 = vpop.f32.mrf.mxu0 }
 0x82b   : > { %v9290_v7 = vpop.f32.mrf.mxu1 }
 0x82c   : > { %v21367_v41 = vadd.f32 %v9347_v45, %v9287_v50  ;;  %v9291_v33 = vadd.f32 %v9290_v7, %v21288_v0  ;;  %v9466_v56 = vpop.f32.mrf.mxu0 }
 0x82d   : > { %v9292_v14 = vpop.f32.mrf.mxu1 }
 0x82e   : > { %v21370_v37 = vadd.f32 %v9351_v31, %v9291_v33  ;;  %v9293_v46 = vadd.f32 %v9292_v14, %v21300_v53  ;;  %v9468_v52 = vpop.f32.mrf.mxu0 }
 0x82f   : > { %v9294_v62 = vpop.f32.mrf.mxu1 }
 0x830   : > { %v21373_v42 = vadd.f32 %v9353_v59, %v9293_v46  ;;  %v9295_v23 = vadd.f32 %v9294_v62, %v21305_v58  ;;  %v9469_v12 = vpop.f32.mrf.mxu0 }
 0x831   : > { %v9296_v34 = vpop.f32.mrf.mxu1 }
 0x832   : > { %v21376_v19 = vadd.f32 %v9355_v60, %v9295_v23  ;;  %v9297_v39 = vadd.f32 %v9296_v34, %v21314_v40  ;;  %v9471_v63 = vpop.f32.mrf.mxu0  ;;  %v14903_v40 = vmov 0.0  }
 0x833   : > { %v9300_v0 = vpop.f32.mrf.mxu1  ;;  %13610 = vmatprep.subr.bf16.mxu0 %v14903_v40  ;;  %13616 = vmatprep.mubr.msk.bf16.mxu0 %vm14904_vm3, %v14903_v40 }
 0x834   : > { %v21379_v4 = vadd.f32 %v9357_v28, %v9297_v39  ;;  %v9301_v48 = vadd.f32 %v9300_v0, %v21317_v51  ;;  %v9474_v1 = vpop.f32.mrf.mxu0  ;;  %v21410_v0 = vld [vmem:[%s21843_s10] sm:$0x7] }
 0x835   : > { %v9302_v53 = vpop.f32.mrf.mxu1 }
 0x836   : > { %v21382_v24 = vadd.f32 %v9361_v16, %v9301_v48  ;;  %v9303_v38 = vadd.f32 %v9302_v53, %v21328_v8  ;;  %v9476_v43 = vpop.f32.mrf.mxu0  ;;  %v23036_v53 = vld [vmem:[#allocation28_spill] sm:$0xff] }
 0x837   : > { %v9304_v58 = vpop.f32.mrf.mxu1 }
 0x838   : > { %v21385_v49 = vadd.f32 %v9363_v57, %v9303_v38  ;;  %v9477_v17 = vpop.f32.mrf.mxu0 }
 0x839   : > { %v9305_v6 = vpop.f32.mrf.mxu1 }
 0x83a   : > { %v9478_v45 = vpop.f32.mrf.mxu0  ;;  %v21421_v6 = vrot.slane %v21410_v0, %v22988_v22 }
 0x844   : > { %v13438_v9 = vpop.f32.mrf.mxu1 }
 0x846   : > { %v13439_v31 = vpop.f32.mrf.mxu1 }
 0x847   : > { %v13440_v59 = vadd.f32 %v13439_v31, %v13438_v9 }
 0x848   : > { %v13441_v51 = vpop.f32.mrf.mxu1 }
 0x849   : > { %v9403_v60 = vadd.f32 %v13440_v59, %v21342_v10 }
 0x84a   : > { %v13442_v28 = vpop.f32.mrf.mxu1 }
 0x84b   : > { %v21389_v16 = vadd.f32 %v9458_v30, %v9403_v60  ;;  %v13443_v8 = vadd.f32 %v13442_v28, %v13441_v51 }
 0x84c   : > { %v13444_v21 = vpop.f32.mrf.mxu1 }
 0x84d   : > { %v9406_v57 = vadd.f32 %v13443_v8, %v21345_v32 }
 0x84e   : > { %v13445_v13 = vpop.f32.mrf.mxu1 }
 0x84f   : > { %v21392_v3 = vadd.f32 %v9461_v44, %v9406_v57  ;;  %v13446_v47 = vadd.f32 %v13445_v13, %v13444_v21 }
 0x850   : > { %v13447_v55 = vpop.f32.mrf.mxu1 }
 0x851   : > { %v9411_v25 = vadd.f32 %v13446_v47, %v21350_v29 }
 0x852   : > { %v13448_v18 = vpop.f32.mrf.mxu1 }
 0x853   : > { %v21397_v10 = vadd.f32 %v9466_v56, %v9411_v25  ;;  %v13449_v30 = vadd.f32 %v13448_v18, %v13447_v55 }
 0x854   : > { %v13450_v54 = vpop.f32.mrf.mxu1 }
 0x855   : > { %v9414_v26 = vadd.f32 %v13449_v30, %v21352_v15  ;;  %v10243_v11 = vpop.f32.mrf.mxu0 }
 0x856   : > { %v13451_v32 = vpop.f32.mrf.mxu1 }
 0x857   : > { %v21400_v50 = vadd.f32 %v9469_v12, %v9414_v26  ;;  %v13452_v44 = vadd.f32 %v13451_v32, %v13450_v54  ;;  %v10245_v35 = vpop.f32.mrf.mxu0 }
 0x858   : > { %v13453_v7 = vpop.f32.mrf.mxu1 }
 0x859   : > { %v9419_v33 = vadd.f32 %v13452_v44, %v21355_v20  ;;  %v10247_v14 = vpop.f32.mrf.mxu0 }
 0x85a   : > { %v13454_v46 = vpop.f32.mrf.mxu1 }
 0x85b   : > { %v21403_v52 = vadd.f32 %v9474_v1, %v9419_v33  ;;  %v10249_v29 = vpop.f32.mrf.mxu0  ;;  %v21414_v1 = vrot.slane %v21410_v0, %v23036_v53 }
 0x85d   : > { %v10253_v56 = vpop.f32.mrf.mxu0 }
 0x85f   : > { %v10255_v62 = vpop.f32.mrf.mxu0 }
 0x861   : > { %v10257_v23 = vpop.f32.mrf.mxu0 }
 0x863   : > { %v10259_v34 = vpop.f32.mrf.mxu0 }
 0x865   : > { %v10263_v39 = vpop.f32.mrf.mxu0 }
 0x867   : > { %v21405_v15 = vpop.f32.mrf.mxu0 }
 0x869   : > { %v10267_v63 = vpop.f32.mrf.mxu0 }
 0x86b   : > { %v10268_v12 = vpop.f32.mrf.mxu0 }
 0x884   : > { %v10182_v20 = vpop.f32.mrf.mxu1 }
 0x885   : > { %v10244_v48 = vadd.f32 %v10243_v11, %v10182_v20 }
 0x886   : > { %v21416_v38 = vpop.f32.mrf.mxu0  ;;  %v10184_v43 = vpop.f32.mrf.mxu1 }
 0x887   : > { %v10382_v58 = vadd.f32 %v10244_v48, %v21358_v2  ;;  %v10246_v17 = vadd.f32 %v10245_v35, %v10184_v43 }
 0x888   : > { %v10362_v45 = vpop.f32.mrf.mxu0  ;;  %v10186_v9 = vpop.f32.mrf.mxu1 }
 0x889   : > { %v10414_v31 = vadd.f32 %v21414_v1, %v10382_v58  ;;  %v10383_v59 = vadd.f32 %v10246_v17, %v21361_v27  ;;  %v10248_v51 = vadd.f32 %v10247_v14, %v10186_v9 }
 0x88a   : > { %v21425_v60 = vpop.f32.mrf.mxu0  ;;  %v10188_v28 = vpop.f32.mrf.mxu1 }
 0x88b   : > { %v10385_v8 = vadd.f32 %v10248_v51, %v21364_v5  ;;  %v10444_v21 = vmul.f32 0.01, %v10414_v31  ;;  %v10415_v2 = vadd.f32 %v21421_v6, %v10383_v59  ;;  %v10250_v57 = vadd.f32 %v10249_v29, %v10188_v28 }
 0x88c   : > { %v10365_v13 = vpop.f32.mrf.mxu0  ;;  %v10192_v47 = vpop.f32.mrf.mxu1  ;;  %vm10429_vm12 = vcmp.gt.f32.partialorder %v10414_v31, 0.0 }
 0x88d   : > { %v10417_v22 = vadd.f32 %v21414_v1, %v10385_v8  ;;  %v10254_v55 = vadd.f32 %v10253_v56, %v10192_v47  ;;  %v10386_v25 = vadd.f32 %v10250_v57, %v21367_v41  ;;  %v10445_v26 = vmul.f32 0.01, %v10415_v2 }
 0x88e   : > { %v21431_v18 = vpop.f32.mrf.mxu0  ;;  %v10194_v27 = vpop.f32.mrf.mxu1  ;;  %v10459_v35 = vsel %vm10429_vm12, %v10414_v31, %v10444_v21  ;;  %vm10430_vm7 = vcmp.gt.f32.partialorder %v10415_v2, 0.0 }
 0x88f   : > { %vm10432_vm6 = vcmp.gt.f32.partialorder %v10417_v22, 0.0  ;;  %v10447_v30 = vmul.f32 0.01, %v10417_v22  ;;  %v10388_v54 = vadd.f32 %v10254_v55, %v21370_v37  ;;  %v10256_v5 = vadd.f32 %v10255_v62, %v10194_v27 }
 0x890   : > { %v10418_v11 = vadd.f32 %v21421_v6, %v10386_v25  ;;  %v10370_v32 = vpop.f32.mrf.mxu0  ;;  %v10196_v44 = vpop.f32.mrf.mxu1  ;;  %v10460_v58 = vsel %vm10430_vm7, %v10415_v2, %v10445_v26 }
 0x891   : > { %v10420_v7 = vadd.f32 %v21414_v1, %v10388_v54  ;;  %v10389_v33 = vadd.f32 %v10256_v5, %v21373_v42  ;;  %v10258_v14 = vadd.f32 %v10257_v23, %v10196_v44  ;;  %v10462_v41 = vsel %vm10432_vm6, %v10417_v22, %v10447_v30 }
 0x892   : > { %v10448_v46 = vmul.f32 0.01, %v10418_v11  ;;  %v21437_v29 = vpop.f32.mrf.mxu0  ;;  %v10198_v56 = vpop.f32.mrf.mxu1  ;;  %vm10433_vm11 = vcmp.gt.f32.partialorder %v10418_v11, 0.0  ;;  %v21439_v37 = vpack.c.bf16 %v10462_v41, %v10459_v35 }
 0x893   : > { %v10391_v62 = vadd.f32 %v10258_v14, %v21376_v19  ;;  %v10421_v63 = vadd.f32 %v21421_v6, %v10389_v33  ;;  %v10260_v12 = vadd.f32 %v10259_v34, %v10198_v56  ;;  %v10450_v43 = vmul.f32 0.01, %v10420_v7 }
 0x894   : > { %v10373_v20 = vpop.f32.mrf.mxu0  ;;  %v10202_v48 = vpop.f32.mrf.mxu1  ;;  %v10463_v53 = vsel %vm10433_vm11, %v10418_v11, %v10448_v46  ;;  %vm10435_vm10 = vcmp.gt.f32.partialorder %v10420_v7, 0.0  ;;  %v10410_v14 = vrot.slane %v21410_v0, %v22991_v61 }
 0x895   : > { %v10423_v42 = vadd.f32 %v21414_v1, %v10391_v62  ;;  %v10264_v23 = vadd.f32 %v10263_v39, %v10202_v48  ;;  %v10392_v17 = vadd.f32 %v10260_v12, %v21379_v4  ;;  %v21447_v31 = vpack.c.bf16 %v10463_v53, %v10460_v58  ;;  %v21479_v62 = vld [vmem:[%s21844_s11] sm:$0xf] }
 0x896   : > { %v21445_v45 = vpop.f32.mrf.mxu0  ;;  %v10204_v9 = vpop.f32.mrf.mxu1  ;;  %v10451_v51 = vmul.f32 0.01, %v10421_v63  ;;  %vm10436_vm8 = vcmp.gt.f32.partialorder %v10421_v63, 0.0  ;;  %v10465_v2 = vsel %vm10435_vm10, %v10420_v7, %v10450_v43 }
 0x897   : > { %vm10438_vm0 = vcmp.gt.f32.partialorder %v10423_v42, 0.0  ;;  %v10453_v19 = vmul.f32 0.01, %v10423_v42  ;;  %v10394_v34 = vadd.f32 %v10264_v23, %v21382_v24  ;;  %v10266_v59 = vadd.f32 %v21405_v15, %v10204_v9 }
 0x898   : > { %v10424_v28 = vadd.f32 %v21421_v6, %v10392_v17  ;;  %v10378_v8 = vpop.f32.mrf.mxu0  ;;  %v10206_v39 = vpop.f32.mrf.mxu1  ;;  %v10466_v27 = vsel %vm10436_vm8, %v10421_v63, %v10451_v51 }
 0x899   : > { %v10426_v21 = vadd.f32 %v21414_v1, %v10394_v34  ;;  %v10395_v4 = vadd.f32 %v10266_v59, %v21385_v49  ;;  %v10468_v57 = vsel %vm10438_vm0, %v10423_v42, %v10453_v19 }
 0x89a   : > { %v10454_v13 = vmul.f32 0.01, %v10424_v28  ;;  %v10379_v47 = vpop.f32.mrf.mxu0  ;;  %v10207_v22 = vpop.f32.mrf.mxu1  ;;  %vm10439_vm14 = vcmp.gt.f32.partialorder %v10424_v28, 0.0  ;;  %v21455_v24 = vpack.c.bf16 %v10468_v57, %v10465_v2 }
 0x89b   : > { %v10456_v15 = vmul.f32 0.01, %v10426_v21  ;;  %v10427_v55 = vadd.f32 %v21421_v6, %v10395_v4  ;;  %vm10441_vm2 = vcmp.gt.f32.partialorder %v10426_v21, 0.0 }
 0x89c   : > { %v10380_v25 = vpop.f32.mrf.mxu0  ;;  %v10469_v30 = vsel %vm10439_vm14, %v10424_v28, %v10454_v13 }
 0x89d   : > { %vm10442_vm13 = vcmp.gt.f32.partialorder %v10427_v55, 0.0  ;;  %v10457_v1 = vmul.f32 0.01, %v10427_v55  ;;  %v10471_v54 = vsel %vm10441_vm2, %v10426_v21, %v10456_v15  ;;  %v21458_v49 = vpack.c.bf16 %v10469_v30, %v10466_v27  ;;  %v14794_v27 = vld [vmem:[%s21845_s12 + $0x170] sm:$0xff]   ;;  %v14795_v30 = vld [vmem:[%s21845_s12 + $0x168] sm:$0xff]  }
 0x89e   : > { %v10480_v5 = vpack.c.bf16 %v10471_v54, %v10471_v54  ;;  %v14798_v54 = vld [vmem:[%s21845_s12 + $0xf8] sm:$0xff]  }
 0x89f   : > { %v10472_v26 = vsel %vm10442_vm13, %v10427_v55, %v10457_v1  ;;  %v14797_v1 = vld [vmem:[%s21845_s12 + $0x138] sm:$0xff]  }
 0x8a0   : > { %v21460_v11 = vpack.c.bf16 %v10472_v26, %v10472_v26  ;;  %v21465_v32 = vsel %vm10488_vm4, %v10480_v5, 0  ;;  %v14796_v5 = vld [vmem:[%s21845_s12 + $0x160] sm:$0xff]   ;;  %v14800_v26 = vld [vmem:[%s21845_s12 + $0x130] sm:$0xff]  }
 0x8a2   : > { %13200 = vmatprep.subr.msk.bf16.mxu1 %vm10488_vm4, %v21460_v11 }
 0x8a3   : > { %10509 = vmatpush1.bf16.msra.mxu1 %v21465_v32 }
 0x8a4   : > { %v13472_v6 = vpop.f32.mrf.mxu1  ;;  %10510 = vmatprep.subr.bf16.mxu1 %v21458_v49 }
 0x8a6   : > { %v13473_v44 = vpop.f32.mrf.mxu1 }
 0x8a7   : > { %v13474_v35 = vadd.f32 %v13473_v44, %v13472_v6  ;;  %10511 = vmatpush1.bf16.msra.mxu1 %v21455_v24  ;;  %v14801_v6 = vld [vmem:[%s21845_s12 + $0xf0] sm:$0xff]   ;;  %v14799_v44 = vld [vmem:[%s21845_s12 + $0x158] sm:$0xff]  }
 0x8a8   : > { %v13475_v7 = vpop.f32.mrf.mxu1  ;;  %10512 = vmatprep.subr.bf16.mxu1 %v21447_v31 }
 0x8a9   : > { %v10361_v33 = vadd.f32 %v13474_v35, %v21416_v38  ;;  %v14803_v35 = vld [vmem:[%s21845_s12 + $0x128] sm:$0xff]  }
 0x8aa   : > { %v13476_v41 = vpop.f32.mrf.mxu1 }
 0x8ab   : > { %v10384_v46 = vadd.f32 %v10361_v33, %v21389_v16  ;;  %v13477_v56 = vadd.f32 %v13476_v41, %v13475_v7  ;;  %10513 = vmatpush1.bf16.msra.mxu1 %v21439_v37  ;;  %v14804_v7 = vld [vmem:[%s21845_s12 + $0xe8] sm:$0xff]   ;;  %v14802_v33 = vld [vmem:[%s21845_s12 + $0x150] sm:$0xff]   ;;  %v14806_v41 = vld [vmem:[%s21845_s12 + $0x120] sm:$0xff]  }
 0x8ac   : > { %v13478_v63 = vpop.f32.mrf.mxu1  ;;  %13600 = vmatprep.subr.bf16.mxu1 %v14903_v40 }
 0x8ad   : > { %v10416_v12 = vadd.f32 %v10410_v14, %v10384_v46  ;;  %v10364_v38 = vadd.f32 %v13477_v56, %v21425_v60  ;;  %v14807_v46 = vld [vmem:[%s21845_s12 + $0xe0] sm:$0xff]  }
 0x8ae   : > { %v13479_v20 = vpop.f32.mrf.mxu1  ;;  %13201 = vmatmul.mubr.msk.bf16.vlgmr.msra.gmra.mxu1 %vm10484_vm5, %v21479_v62  ;;  %v14808_v56 = vld [vmem:[%s21845_s12 + $0x140] sm:$0xff]  }
 0x8af   : > { %v10387_v61 = vadd.f32 %v10364_v38, %v21392_v3  ;;  %v13480_v16 = vadd.f32 %v13479_v20, %v13478_v63  ;;  %13606 = vmatprep.mubr.msk.bf16.mxu1 %vm14904_vm3, %v14903_v40  ;;  %v10446_v48 = vmul.f32 0.01, %v10416_v12  ;;  %vm10431_vm15 = vcmp.gt.f32.partialorder %v10416_v12, 0.0  ;;  %v14810_v63 = vld [vmem:[%s21845_s12 + $0xd8] sm:$0xff]   ;;  %v14813_v38 = vld [vmem:[%s21845_s12 + $0xd0] sm:$0xff]   ;;  %v14815_v20 = vld [vmem:[%s21845_s12 + $0x108] sm:$0xff]  }
 0x8b0   : > { %v13481_v0 = vpop.f32.mrf.mxu1 }
 0x8b1   : > { %v10419_v53 = vadd.f32 %v10410_v14, %v10387_v61  ;;  %v10369_v43 = vadd.f32 %v13480_v16, %v21431_v18  ;;  %v10461_v19 = vsel %vm10431_vm15, %v10416_v12, %v10446_v48  ;;  %v14812_v12 = vld [vmem:[%s21845_s12 + $0x110] sm:$0xff]   ;;  %v14816_v61 = vld [vmem:[%s21845_s12 + $0xc8] sm:$0xff]   ;;  %v14818_v16 = vld [vmem:[%s21845_s12 + $0x100] sm:$0xff]  }
 0x8b2   : > { %v13482_v42 = vpop.f32.mrf.mxu1  ;;  %v14821_v48 = vld [vmem:[%s21845_s12 + $0x78] sm:$0xff]  }
 0x8b3   : > { %v10449_v23 = vmul.f32 0.01, %v10419_v53  ;;  %v10390_v60 = vadd.f32 %v10369_v43, %v21397_v10  ;;  %v13483_v58 = vadd.f32 %v13482_v42, %v13481_v0  ;;  %vm10434_vm1 = vcmp.gt.f32.partialorder %v10419_v53, 0.0  ;;  %v14819_v0 = vld [vmem:[%s21845_s12 + $0xc0] sm:$0xff]  }
 0x8b4   : > { %v13484_v17 = vpop.f32.mrf.mxu1 }
 0x8b5   : > { %v10422_v9 = vadd.f32 %v10410_v14, %v10390_v60  ;;  %v10372_v3 = vadd.f32 %v13483_v58, %v21437_v29  ;;  %v10464_v34 = vsel %vm10434_vm1, %v10419_v53, %v10449_v23  ;;  %v14811_v58 = vld [vmem:[%s21845_s12 + $0xb8] sm:$0xff]  }
 0x8b6   : > { %v13485_v59 = vpop.f32.mrf.mxu1  ;;  %v21491_v51 = vpack.c.bf16 %v10464_v34, %v10461_v19  ;;  %v14814_v34 = vld [vmem:[%s21845_s12 + $0xb0] sm:$0xff]  }
 0x8b7   : > { %v10393_v28 = vadd.f32 %v10372_v3, %v21400_v50  ;;  %v13486_v8 = vadd.f32 %v13485_v59, %v13484_v17  ;;  %v10452_v39 = vmul.f32 0.01, %v10422_v9  ;;  %vm10437_vm12 = vcmp.gt.f32.partialorder %v10422_v9, 0.0 }
 0x8b8   : > { %v13487_v18 = vpop.f32.mrf.mxu1 }
 0x8b9   : > { %v10425_v21 = vadd.f32 %v10410_v14, %v10393_v28  ;;  %v10377_v4 = vadd.f32 %v13486_v8, %v21445_v45  ;;  %v10467_v13 = vsel %vm10437_vm12, %v10422_v9, %v10452_v39  ;;  %v14793_v45 = vld [vmem:[%s21845_s12 + $0x178] sm:$0xff]   ;;  %v14817_v39 = vld [vmem:[%s21845_s12 + $0xa8] sm:$0xff]  }
 0x8ba   : > { %v13488_v10 = vpop.f32.mrf.mxu1 }
 0x8bb   : > { %v10455_v2 = vmul.f32 0.01, %v10425_v21  ;;  %v10396_v57 = vadd.f32 %v10377_v4, %v21403_v52  ;;  %vm10440_vm6 = vcmp.gt.f32.partialorder %v10425_v21, 0.0  ;;  %v13203_v52 = vld [vmem:[%s21844_s11 + $0x4] sm:$0xf] }
 0x8bc   : > { %v14820_v4 = vld [vmem:[%s21845_s12 + $0xa0] sm:$0xff]  }
 0x8bd   : > { %v10428_v29 = vadd.f32 %v10410_v14, %v10396_v57  ;;  %v10470_v47 = vsel %vm10440_vm6, %v10425_v21, %v10455_v2  ;;  %v14805_v14 = vld [vmem:[%s21845_s12 + $0x148] sm:$0xff]   ;;  %v14822_v57 = vld [vmem:[%s21845_s12 + $0x38] sm:$0xff]  }
 0x8be   : > { %v21496_v22 = vpack.c.bf16 %v10470_v47, %v10467_v13  ;;  %v14823_v13 = vld [vmem:[%s21845_s12 + $0x98] sm:$0xff]   ;;  %v14824_v47 = vld [vmem:[%s21845_s12 + $0x70] sm:$0xff]  }
 0x8bf   : > { %vm10443_vm7 = vcmp.gt.f32.partialorder %v10428_v29, 0.0  ;;  %v10458_v15 = vmul.f32 0.01, %v10428_v29 }
 0x8c1   : > { %v10473_v50 = vsel %vm10443_vm7, %v10428_v29, %v10458_v15 }
 0x8c2   : > { %v10482_v55 = vpack.c.bf16 %v10473_v50, %v10473_v50 }
 0x8c4   : > { %v21499_v25 = vsel %vm10488_vm4, %v10482_v55, 0 }
 0x8c5   : > { %13601 = vmatpush3.bf16.msra.mxu1 %v21499_v25  ;;  %13611 = vmatpush3.bf16.msra.mxu0 %v21499_v25 }
 0x8c6   : > { %13602 = vmatprep.subr.bf16.mxu1 %v14903_v40  ;;  %13612 = vmatprep.subr.bf16.mxu0 %v14903_v40 }
 0x8c9   : > { %13603 = vmatpush3.bf16.msra.mxu1 %v21496_v22  ;;  %13613 = vmatpush3.bf16.msra.mxu0 %v21496_v22 }
 0x8ca   : > { %13604 = vmatprep.subr.bf16.mxu1 %v14903_v40  ;;  %13614 = vmatprep.subr.bf16.mxu0 %v14903_v40 }
 0x8cd   : > { %13605 = vmatpush3.bf16.msra.mxu1 %v21491_v51  ;;  %13615 = vmatpush3.bf16.msra.mxu0 %v21491_v51 }
 0x8ce   : > { %13204 = vmatprep.subr.msk.bf16.mxu1 %vm10488_vm4, %v21460_v11  ;;  %13620 = vmatprep.subr.bf16.mxu0 %v14903_v40 }
 0x8d0   : > { %13617 = vmatmul.mubr.msk.bf16.vlgmr.msra.gmra.mxu0 %vm10484_vm5, %v13203_v52  ;;  %13607 = vmatmul.mubr.msk.bf16.vlgmr.msra.gmra.mxu1 %vm10484_vm5, %v21479_v62  ;;  %v14809_v62 = vld [vmem:[%s21845_s12 + $0x118] sm:$0xff]  }
 0x8d1   : > { %10646 = vmatpush1.bf16.msra.mxu1 %v21465_v32  ;;  %10667 = vmatprep.mubr.bf16.mxu1 %v22992_v36 }
 0x8d2   : > { %10647 = vmatprep.subr.bf16.mxu1 %v21458_v49  ;;  %13621 = vmatpush3.bf16.msra.mxu0 %v14793_v45  ;;  %v14826_v45 = vld [vmem:[%s21845_s12 + $0x90] sm:$0xff]  }
 0x8d3   : > { %13622 = vmatprep.subr.bf16.mxu0 %v14903_v40  ;;  %13636 = vmatprep.mubr.msk.bf16.mxu0 %vm14904_vm3, %v14903_v40 }
 0x8d5   : > { %10648 = vmatpush1.bf16.msra.mxu1 %v21455_v24 }
 0x8d6   : > { %10649 = vmatprep.subr.bf16.mxu1 %v21447_v31  ;;  %13623 = vmatpush3.bf16.msra.mxu0 %v14794_v27  ;;  %v14827_v27 = vld [vmem:[%s21845_s12 + $0x68] sm:$0xff]  }
 0x8d7   : > { %13624 = vmatprep.subr.bf16.mxu0 %v14903_v40 }
 0x8d9   : > { %10650 = vmatpush1.bf16.msra.mxu1 %v21439_v37 }
 0x8da   : > { %13625 = vmatpush3.bf16.msra.mxu0 %v14795_v30  ;;  %13498 = vmatprep.subr.bf16.mxu1 %v14797_v1  ;;  %v14828_v30 = vld [vmem:[%s21845_s12 + $0x28] sm:$0xff]  }
 0x8db   : > { %13626 = vmatprep.subr.bf16.mxu0 %v14903_v40  ;;  %v14829_v1 = vld [vmem:[%s21845_s12 + $0x88] sm:$0xff]  }
 0x8dc   : > { %13205 = vmatmul.mubr.msk.bf16.vlgmr.msra.gmra.mxu1 %vm10484_vm5, %v13203_v52  ;;  %v14825_v52 = vld [vmem:[%s21845_s12 + $0x30] sm:$0xff]  }
 0x8dd   : > { %13499 = vmatpush3.bf16.msra.mxu1 %v14798_v54  ;;  %v14830_v54 = vld [vmem:[%s21845_s12 + $0x60] sm:$0xff]  }
 0x8de   : > { %13627 = vmatpush3.bf16.msra.mxu0 %v14796_v5  ;;  %13500 = vmatprep.subr.bf16.mxu1 %v14800_v26  ;;  %v14831_v5 = vld [vmem:[%s21845_s12 + $0x20] sm:$0xff]  }
 0x8df   : > { %13628 = vmatprep.subr.bf16.mxu0 %v14903_v40  ;;  %v14832_v26 = vld [vmem:[%s21845_s12 + $0x80] sm:$0xff]  }
 0x8e1   : > { %13501 = vmatpush3.bf16.msra.mxu1 %v14801_v6  ;;  %v14833_v6 = vld [vmem:[%s21845_s12 + $0x58] sm:$0xff]  }
 0x8e2   : > { %13629 = vmatpush3.bf16.msra.mxu0 %v14799_v44  ;;  %13502 = vmatprep.subr.bf16.mxu1 %v14803_v35  ;;  %v14834_v44 = vld [vmem:[%s21845_s12 + $0x18] sm:$0xff]   ;;  %v14835_v35 = vld [vmem:[%s21845_s12 + $0x50] sm:$0xff]  }
 0x8e3   : > { %13630 = vmatprep.subr.bf16.mxu0 %v14903_v40 }
 0x8e5   : > { %13503 = vmatpush3.bf16.msra.mxu1 %v14804_v7 }
 0x8e6   : > { %13631 = vmatpush3.bf16.msra.mxu0 %v14802_v33  ;;  %13504 = vmatprep.subr.bf16.mxu1 %v14806_v41  ;;  %v14836_v33 = vld [vmem:[%s21845_s12 + $0x10] sm:$0xff]   ;;  %v14838_v41 = vld [vmem:[%s21845_s12 + $0x8] sm:$0xff]  }
 0x8e7   : > { %13632 = vmatprep.subr.bf16.mxu0 %v14903_v40 }
 0x8e9   : > { %13505 = vmatpush3.bf16.msra.mxu1 %v14807_v46  ;;  %v14840_v46 = vld [vmem:[%s21845_s12] sm:$0xff]  }
 0x8ea   : > { %13633 = vmatpush3.bf16.msra.mxu0 %v14805_v14  ;;  %13506 = vmatprep.subr.bf16.mxu1 %v14809_v62  ;;  %v14837_v14 = vld [vmem:[%s21845_s12 + $0x48] sm:$0xff]   ;;  %v14849_v62 = vld [vmem:[%s21845_s12 + $0x1e0] sm:$0xff]  }
 0x8eb   : > { %13634 = vmatprep.subr.bf16.mxu0 %v14903_v40 }
 0x8ed   : > { %13507 = vmatpush3.bf16.msra.mxu1 %v14810_v63  ;;  %v14851_v63 = vld [vmem:[%s21845_s12 + $0x228] sm:$0xff]  }
 0x8ee   : > { %13635 = vmatpush3.bf16.msra.mxu0 %v14808_v56  ;;  %13508 = vmatprep.subr.bf16.mxu1 %v14812_v12  ;;  %v13303_v56 = vld [vmem:[%s21844_s11 + $0x8] sm:$0xf]  ;;  %v14850_v12 = vld [vmem:[%s21845_s12 + $0x1a0] sm:$0xff]  }
 0x8ef   : > { %13640 = vmatprep.subr.bf16.mxu0 %v14903_v40 }
 0x8f1   : > { %13509 = vmatpush3.bf16.msra.mxu1 %v14813_v38  ;;  %v14852_v38 = vld [vmem:[%s21845_s12 + $0x1d8] sm:$0xff]  }
 0x8f2   : > { %13510 = vmatprep.subr.bf16.mxu1 %v14815_v20  ;;  %v14853_v20 = vld [vmem:[%s21845_s12 + $0x198] sm:$0xff]  }
 0x8f5   : > { %13511 = vmatpush3.bf16.msra.mxu1 %v14816_v61  ;;  %v14854_v61 = vld [vmem:[%s21845_s12 + $0x220] sm:$0xff]  }
 0x8f6   : > { %13512 = vmatprep.subr.bf16.mxu1 %v14818_v16  ;;  %v14855_v16 = vld [vmem:[%s21845_s12 + $0x1d0] sm:$0xff]  }
 0x8f9   : > { %13513 = vmatpush3.bf16.msra.mxu1 %v14819_v0  ;;  %v14857_v0 = vld [vmem:[%s21845_s12 + $0x218] sm:$0xff]  }
 0x8fa   : > { %13529 = vmatprep.subr.bf16.mxu1 %v14821_v48  ;;  %v14856_v48 = vld [vmem:[%s21845_s12 + $0x190] sm:$0xff]  }
 0x96e   : > { %v21612_v53 = vpop.f32.mrf.mxu1 }
 0x970   : > { %v10534_v43 = vpop.f32.mrf.mxu1 }
 0x971   : > { %v10580_v50 = vpack.c.bf16 %v10534_v43, %v10534_v43  ;;  %v14860_v43 = vld [vmem:[%s21845_s12 + $0x210] sm:$0xff]  }
 0x972   : > { %v10536_v42 = vpop.f32.mrf.mxu1 }
 0x973   : > { %v14859_v42 = vld [vmem:[%s21845_s12 + $0x188] sm:$0xff]  }
 0x974   : > { %v10537_v23 = vpop.f32.mrf.mxu1 }
 0x975   : > { %v14861_v23 = vld [vmem:[%s21845_s12 + $0x1c0] sm:$0xff]  }
 0x990   : > { %v10710_v60 = vpop.f32.mrf.mxu0  ;;  %v21617_v17 = vpop.f32.mrf.mxu1 }
 0x991   : > { %v10718_v9 = vpack.c.bf16 %v10710_v60, %v10710_v60  ;;  %v10581_v7 = vpack.c.bf16 %v21617_v17, %v21617_v17  ;;  %v14863_v60 = vld [vmem:[%s21845_s12 + $0x208] sm:$0xff]   ;;  %v14864_v17 = vld [vmem:[%s21845_s12 + $0x200] sm:$0xff]  }
 0x992   : > { %v13608_v3 = vpop.f32.mrf.mxu1  ;;  %v13618_v19 = vpop.f32.mrf.mxu0 }
 0x993   : > { %13637 = vmatmul.mubr.bf16.vlgmr.msra.gmra.mxu0 %v10718_v9 }
 0x994   : > { %13641 = vmatpush3.bf16.msra.mxu0 %v14811_v58  ;;  %v10576_v59 = vpop.f32.mrf.mxu1  ;;  %13656 = vmatprep.mubr.msk.bf16.mxu0 %vm14904_vm3, %v14903_v40  ;;  %v10713_v28 = vpop.f32.mrf.mxu0  ;;  %v14862_v58 = vld [vmem:[%s21845_s12 + $0x180] sm:$0xff]  }
 0x995   : > { %13642 = vmatprep.subr.bf16.mxu0 %v14903_v40 }
 0x996   : > { %v13609_v8 = vpop.f32.mrf.mxu1  ;;  %v13619_v18 = vpop.f32.mrf.mxu0 }
 0x998   : > { %13643 = vmatpush3.bf16.msra.mxu0 %v14814_v34 }
 0x999   : > { %13644 = vmatprep.subr.bf16.mxu0 %v14903_v40 }
 0x99c   : > { %13645 = vmatpush3.bf16.msra.mxu0 %v14817_v39  ;;  %v10669_v21 = vpop.f32.mrf.mxu1 }
 0x99d   : > { %13646 = vmatprep.subr.bf16.mxu0 %v14903_v40  ;;  %v10716_v29 = vpack.c.bf16 %v10669_v21, %v10669_v21 }
 0x99e   : > { %v10671_v10 = vpop.f32.mrf.mxu1 }
 0x99f   : > { %v10717_v2 = vpack.c.bf16 %v10671_v10, %v10671_v10 }
 0x9a0   : > { %13647 = vmatpush3.bf16.msra.mxu0 %v14820_v4  ;;  %v10673_v15 = vpop.f32.mrf.mxu1 }
 0x9a1   : > { %10944 = vmatprep.mubr.bf16.mxu1 %v10717_v2  ;;  %13648 = vmatprep.subr.bf16.mxu0 %v14903_v40 }
 0x9a2   : > { %10945 = vmatmul.mubr.bf16.vlgmr.msra.gmra.mxu1 %v10716_v29  ;;  %v10674_v55 = vpop.f32.mrf.mxu1 }
 0x9a3   : > { %13530 = vmatpush3.bf16.msra.mxu1 %v14822_v57  ;;  %11168 = vmatprep.mubr.bf16.mxu1 %v10580_v50 }
 0x9a4   : > { %13649 = vmatpush3.bf16.msra.mxu0 %v14823_v13  ;;  %13531 = vmatprep.subr.bf16.mxu1 %v14824_v47 }
 0x9a5   : > { %13650 = vmatprep.subr.bf16.mxu0 %v14903_v40 }
 0x9a7   : > { %13532 = vmatpush3.bf16.msra.mxu1 %v14825_v52 }
 0x9a8   : > { %13651 = vmatpush3.bf16.msra.mxu0 %v14826_v45  ;;  %13533 = vmatprep.subr.bf16.mxu1 %v14827_v27 }
 0x9a9   : > { %13652 = vmatprep.subr.bf16.mxu0 %v14903_v40 }
 0x9ab   : > { %13534 = vmatpush3.bf16.msra.mxu1 %v14828_v30 }
 0x9ac   : > { %13653 = vmatpush3.bf16.msra.mxu0 %v14829_v1  ;;  %13535 = vmatprep.subr.bf16.mxu1 %v14830_v54 }
 0x9ad   : > { %13654 = vmatprep.subr.bf16.mxu0 %v14903_v40 }
 0x9af   : > { %13536 = vmatpush3.bf16.msra.mxu1 %v14831_v5 }
 0x9b0   : > { %13655 = vmatpush3.bf16.msra.mxu0 %v14832_v26  ;;  %13537 = vmatprep.subr.bf16.mxu1 %v14833_v6 }
 0x9b1   : > { %13660 = vmatprep.subr.bf16.mxu0 %v14903_v40 }
 0x9b3   : > { %13538 = vmatpush3.bf16.msra.mxu1 %v14834_v44  ;;  %13657 = vmatmul.mubr.bf16.vlgmr.msra.gmra.mxu0 %v10581_v7 }
 0x9b4   : > { %13661 = vmatpush3.bf16.msra.mxu0 %v21499_v25  ;;  %13539 = vmatprep.subr.bf16.mxu1 %v14835_v35  ;;  %v14839_v25 = vld [vmem:[%s21845_s12 + $0x40] sm:$0xff]  }
 0x9b5   : > { %13662 = vmatprep.subr.bf16.mxu0 %v14903_v40  ;;  %13666 = vmatprep.mubr.msk.bf16.mxu0 %vm14904_vm3, %v14903_v40 }
 0x9b7   : > { %13540 = vmatpush3.bf16.msra.mxu1 %v14836_v33  ;;  %v14865_v33 = vld [vmem:[%s21847_s14 + $0x18] sm:$0xff]  }
 0x9b8   : > { %13663 = vmatpush3.bf16.msra.mxu0 %v21496_v22  ;;  %13541 = vmatprep.subr.bf16.mxu1 %v14837_v14  ;;  %v10579_v22 = vpack.c.bf16 %v21612_v53, %v21612_v53  ;;  %v14858_v53 = vld [vmem:[%s21845_s12 + $0x1c8] sm:$0xff]   ;;  %v14866_v14 = vld [vmem:[%s21847_s14 + $0x10] sm:$0xff]  }
 0x9b9   : > { %13664 = vmatprep.subr.bf16.mxu0 %v14903_v40 }
 0x9bb   : > { %13542 = vmatpush3.bf16.msra.mxu1 %v14838_v41  ;;  %v14867_v41 = vld [vmem:[%s21847_s14 + $0x8] sm:$0xff]  }
 0x9bc   : > { %13665 = vmatpush3.bf16.msra.mxu0 %v21491_v51  ;;  %13543 = vmatprep.subr.bf16.mxu1 %v14839_v25  ;;  %v14848_v51 = vld [vmem:[%s21845_s12 + $0x230] sm:$0xff]   ;;  %v14868_v25 = vld [vmem:[%s21847_s14] sm:$0xff]  }
 0x9bd   : > { %13670 = vmatprep.subr.bf16.mxu0 %v14903_v40 }
 0x9bf   : > { %13544 = vmatpush3.bf16.msra.mxu1 %v14840_v46  ;;  %13667 = vmatmul.mubr.msk.bf16.vlgmr.msra.gmra.mxu0 %vm10484_vm5, %v13303_v56 }
 0x9c0   : > { %13304 = vmatprep.subr.msk.bf16.mxu1 %vm10488_vm4, %v21460_v11  ;;  %13686 = vmatprep.mubr.msk.bf16.mxu0 %vm14904_vm3, %v14903_v40  ;;  %v14841_v11 = vld [vmem:[%s21845_s12 + $0x1f8] sm:$0xff]  }
 0x9c2   : > { %11169 = vmatmul.mubr.bf16.vlgmr.msra.gmra.mxu1 %v10579_v22 }
 0x9c3   : > { %11232 = vmatpush1.bf16.msra.mxu1 %v21465_v32  ;;  %11253 = vmatprep.mubr.bf16.mxu1 %v22992_v36  ;;  %v14842_v32 = vld [vmem:[%s21845_s12 + $0x1b8] sm:$0xff]   ;;  %v14843_v36 = vld [vmem:[%s21845_s12 + $0x1f0] sm:$0xff]  }
 0x9c4   : > { %11233 = vmatprep.subr.bf16.mxu1 %v21458_v49  ;;  %v14847_v49 = vld [vmem:[%s21845_s12 + $0x1a8] sm:$0xff]  }
 0x9c7   : > { %11234 = vmatpush1.bf16.msra.mxu1 %v21455_v24  ;;  %v14846_v24 = vld [vmem:[%s21845_s12 + $0x1e8] sm:$0xff]  }
 0x9c8   : > { %11235 = vmatprep.subr.bf16.mxu1 %v21447_v31  ;;  %v14845_v31 = vld [vmem:[%s21845_s12 + $0x238] sm:$0xff]  }
 0x9c9   : > { %13671 = vmatpush3.bf16.msra.mxu0 %v14845_v31 }
 0x9ca   : > { %13672 = vmatprep.subr.bf16.mxu0 %v14903_v40 }
 0x9cb   : > { %11236 = vmatpush1.bf16.msra.mxu1 %v21439_v37  ;;  %v14844_v37 = vld [vmem:[%s21845_s12 + $0x1b0] sm:$0xff]  }
 0x9cc   : > { %13564 = vmatprep.subr.bf16.mxu1 %v14841_v11 }
 0x9cd   : > { %13673 = vmatpush3.bf16.msra.mxu0 %v14848_v51 }
 0x9ce   : > { %13305 = vmatmul.mubr.msk.bf16.vlgmr.msra.gmra.mxu1 %vm10484_vm5, %v13303_v56  ;;  %13674 = vmatprep.subr.bf16.mxu0 %v14903_v40 }
 0x9cf   : > { %13565 = vmatpush3.bf16.msra.mxu1 %v14842_v32 }
 0x9d0   : > { %13566 = vmatprep.subr.bf16.mxu1 %v14843_v36 }
 0x9d1   : > { %13675 = vmatpush3.bf16.msra.mxu0 %v14851_v63 }
 0x9d2   : > { %13676 = vmatprep.subr.bf16.mxu0 %v14903_v40 }
 0x9d3   : > { %13567 = vmatpush3.bf16.msra.mxu1 %v14844_v37 }
 0x9d4   : > { %13568 = vmatprep.subr.bf16.mxu1 %v14846_v24 }
 0x9d5   : > { %13677 = vmatpush3.bf16.msra.mxu0 %v14854_v61 }
 0x9d6   : > { %13678 = vmatprep.subr.bf16.mxu0 %v14903_v40 }
 0x9d7   : > { %13569 = vmatpush3.bf16.msra.mxu1 %v14847_v49  ;;  %v13379_v49 = vld [vmem:[%s21846_s13] ss:$0 sm:$0xff] }
 0x9d8   : > { %13570 = vmatprep.subr.bf16.mxu1 %v14849_v62 }
 0x9d9   : > { %13679 = vmatpush3.bf16.msra.mxu0 %v14857_v0 }
 0x9da   : > { %13680 = vmatprep.subr.bf16.mxu0 %v14903_v40 }
 0x9db   : > { %13571 = vmatpush3.bf16.msra.mxu1 %v14850_v12 }
 0x9dc   : > { %13572 = vmatprep.subr.bf16.mxu1 %v14852_v38 }
 0x9dd   : > { %13681 = vmatpush3.bf16.msra.mxu0 %v14860_v43 }
 0x9de   : > { %13682 = vmatprep.subr.bf16.mxu0 %v14903_v40 }
 0x9df   : > { %13573 = vmatpush3.bf16.msra.mxu1 %v14853_v20  ;;  %v13380_v20 = vld [vmem:[%s21848_s15] ss:$0 sm:$0xff] }
 0x9e0   : > { %13574 = vmatprep.subr.bf16.mxu1 %v14855_v16 }
 0x9e1   : > { %13683 = vmatpush3.bf16.msra.mxu0 %v14863_v60 }
 0x9e2   : > { %13684 = vmatprep.subr.bf16.mxu0 %v14903_v40 }
 0x9e3   : > { %13575 = vmatpush3.bf16.msra.mxu1 %v14856_v48 }
 0x9e4   : > { %13576 = vmatprep.subr.bf16.mxu1 %v14858_v53 }
 0x9e5   : > { %13685 = vmatpush3.bf16.msra.mxu0 %v14864_v17 }
 0x9e7   : > { %13577 = vmatpush3.bf16.msra.mxu1 %v14859_v42 }
 0x9e8   : > { %13578 = vmatprep.subr.bf16.mxu1 %v14861_v23 }
 0x9eb   : > { %13579 = vmatpush3.bf16.msra.mxu1 %v14862_v58 }
 0x9ec   : > { %13690 = vmatprep.subr.bf16.mxu1 %v14903_v40 }
 0xa53   : > { %v10986_v9 = vpop.f32.mrf.mxu0 }
 0xa55   : > { %v13638_v3 = vpop.f32.mrf.mxu0 }
 0xa57   : > { %v10989_v19 = vpop.f32.mrf.mxu0 }
 0xa59   : > { %v13639_v34 = vpop.f32.mrf.mxu0 }
 0xa62   : > { %v13514_v59 = vpop.f32.mrf.mxu1 }
 0xa64   : > { %v13515_v28 = vpop.f32.mrf.mxu1 }
 0xa65   : > { %v13516_v8 = vadd.f32 %v13515_v28, %v13514_v59 }
 0xa66   : > { %v13517_v18 = vpop.f32.mrf.mxu1 }
 0xa67   : > { %v10987_v39 = vadd.f32 %v13516_v8, %v10986_v9 }
 0xa68   : > { %v13518_v21 = vpop.f32.mrf.mxu1 }
 0xa73   : > { %v11210_v4 = vpop.f32.mrf.mxu0 }
 0xa75   : > { %v13658_v10 = vpop.f32.mrf.mxu0 }
 0xa77   : > { %v11213_v2 = vpop.f32.mrf.mxu0 }
 0xa79   : > { %v13659_v57 = vpop.f32.mrf.mxu0 }
 0xa7f   : > { %v11296_v29 = vpop.f32.mrf.mxu0 }
 0xa80   : > { %v11304_v13 = vpack.c.bf16 %v11296_v29, %v11296_v29 }
 0xa81   : > { %v13668_v47 = vpop.f32.mrf.mxu0 }
 0xa82   : > { %v13545_v15 = vpop.f32.mrf.mxu1  ;;  %13687 = vmatmul.mubr.bf16.vlgmr.msra.gmra.mxu0 %v11304_v13 }
 0xa83   : > { %v11299_v50 = vpop.f32.mrf.mxu0 }
 0xa84   : > { %v13546_v55 = vpop.f32.mrf.mxu1 }
 0xa85   : > { %v13547_v52 = vadd.f32 %v13546_v55, %v13545_v15  ;;  %v13669_v45 = vpop.f32.mrf.mxu0 }
 0xa86   : > { %v13548_v27 = vpop.f32.mrf.mxu1 }
 0xa87   : > { %v11171_v30 = vadd.f32 %v13547_v52, %v10987_v39 }
 0xa88   : > { %v13549_v1 = vpop.f32.mrf.mxu1 }
 0xa89   : > { %v11211_v54 = vadd.f32 %v11210_v4, %v11171_v30 }
 0xa8e   : > { %v11255_v5 = vpop.f32.mrf.mxu1 }
 0xa8f   : > { %v11302_v44 = vpack.c.bf16 %v11255_v5, %v11255_v5 }
 0xa90   : > { %v11257_v26 = vpop.f32.mrf.mxu1 }
 0xa91   : > { %v11303_v6 = vpack.c.bf16 %v11257_v26, %v11257_v26 }
 0xa92   : > { %v11259_v35 = vpop.f32.mrf.mxu1 }
 0xa93   : > { %11530 = vmatprep.mubr.bf16.mxu1 %v11303_v6 }
 0xa94   : > { %11531 = vmatmul.mubr.bf16.vlgmr.msra.gmra.mxu1 %v11302_v44  ;;  %v11260_v7 = vpop.f32.mrf.mxu1 }
 0xa95   : > { %13698 = vmatprep.mubr.msk.bf16.mxu1 %vm14904_vm3, %v14903_v40  ;;  %13691 = vmatpush3.bf16.msra.mxu1 %v14865_v33 }
 0xa96   : > { %13692 = vmatprep.subr.bf16.mxu1 %v14903_v40 }
 0xa99   : > { %13693 = vmatpush3.bf16.msra.mxu1 %v14866_v14 }
 0xa9a   : > { %13694 = vmatprep.subr.bf16.mxu1 %v14903_v40 }
 0xa9d   : > { %13695 = vmatpush3.bf16.msra.mxu1 %v14867_v41 }
 0xa9e   : > { %13696 = vmatprep.subr.bf16.mxu1 %v14903_v40 }
 0xaa1   : > { %13697 = vmatpush3.bf16.msra.mxu1 %v14868_v25 }
 0xb42   : > { %v11572_v46 = vpop.f32.mrf.mxu0 }
 0xb44   : > { %v13688_v56 = vpop.f32.mrf.mxu0 }
 0xb46   : > { %v11575_v22 = vpop.f32.mrf.mxu0 }
 0xb48   : > { %v13689_v11 = vpop.f32.mrf.mxu0 }
 0xb54   : > { %v13580_v32 = vpop.f32.mrf.mxu1 }
 0xb56   : > { %v13581_v36 = vpop.f32.mrf.mxu1 }
 0xb57   : > { %v13582_v37 = vadd.f32 %v13581_v36, %v13580_v32 }
 0xb58   : > { %v13583_v31 = vpop.f32.mrf.mxu1 }
 0xb59   : > { %v11573_v24 = vadd.f32 %v13582_v37, %v11572_v46 }
 0xb5a   : > { %v13584_v51 = vpop.f32.mrf.mxu1 }
 0xb5b   : > { %v11578_v62 = vadd.f32 %v11573_v24, %v11211_v54 }
 0xb5d   : > { %v11586_v63 = vadd.f32 %v13379_v49, %v11578_v62 }
 0xb5f   : > { %vm11587_vm3 = vcmp.gt.f32.partialorder %v11586_v63, 0.0  ;;  %v11588_v12 = vmul.f32 0.01, %v11586_v63 }
 0xb61   : > { %v11589_v40 = vsel %vm11587_vm3, %v11586_v63, %v11588_v12 }
 0xb62   : > { %v11590_v38 = vpack.c.bf16 %v11589_v40, %v11589_v40 }
 0xb64   : > { %13699 = vmatmul.mubr.msk.bf16.vlgmr.msra.gmra.mxu1 %vm8545_vm9, %v11590_v38 }
 0xc24   : > { %v11667_v61 = vpop.f32.mrf.mxu1 }
 0xc25   : > { %v11668_v16 = vadd.f32 %v13380_v20, %v11667_v61 }
 0xc26   : > { %v13700_v0 = vpop.f32.mrf.mxu1 }
 0xc27   : > { %v11673_v48 = vsub.f32 0.0, %v11668_v16 }
 0xc28   : > { %v11670_v53 = vpop.f32.mrf.mxu1 }
 0xc29   : > { %v11674_v43 = vmul.f32 1.442695, %v11673_v48 }
 0xc2a   : > { %v13701_v42 = vpop.f32.mrf.mxu1 }
 0xc2b   : > { %14869 = vpow2.f32 %v11674_v43 }
 0xc38   : > { %v14870_v23 = vpop.eup %14869 }
 0xc39   : > { %v11676_v60 = vadd.f32 1.0, %v14870_v23 }
 0xc3b   : > { %14871 = vrcp.f32 %v11676_v60 }
 0xc48   : > { %v14872_v58 = vpop.eup %14871 }
 0xc49   : > { %11679 = vst [vmem:[%s519_s29] sm:$0xff] %v14872_v58 }
 0xc4a PF: > { %s26_s21 = sadd.s32 1, %s14899_s21  }
 0xc4b   : > { %p23_p4 = scmp.ge.s32.totalorder %s26_s21, 4  }
 0xc4d   :  { %25 = sbr.rel (!%p23_p4) target bundleno = 2 (0x2), region = 126 }

</bundles_post_ra>
